<compile_context>
chip_gen: v6e
topology: v6e:2x2x1
jax: 0.10.0
libtpu: 0.0.40
codegen_flags: <defaults>
</compile_context>

<pallas_src>
import jax
import jax.numpy as jnp
from jax.experimental import pallas as pl
from jax.experimental.pallas import tpu as pltpu

KERNEL_SIZE = 100
STRIDE = 50
OUT_CH = 30
POOL = 10
N_POOL = 31                                  # fixed by Linear(30*31, 35)
N_CONV = N_POOL * POOL                       # 310 conv output positions
L_IN = (N_CONV - 1) * STRIDE + KERNEL_SIZE   # 15550 input samples
N_CLASSES = 35

HALF_K = STRIDE                              # 50  (KERNEL_SIZE == 2 * STRIDE)
N_CHUNKS = L_IN // HALF_K                    # 311 disjoint chunks of 50


def sound_fused_kernel(chunks_ref, w0_ref, w1_ref, cb_ref, lw_ref, lb_ref,
                       out_ref, a_scr, b_scr, flat_scr):
    # chunks_ref: (TB, 311, 50)   w0/w1: (50, 30)   cb: (1, 30)
    # lw: (930, 35) time-major permuted   lb: (1, 35)   out: (TB, 35)
    # a_scr/b_scr: (TB, 311, 30) VMEM   flat_scr: (TB, 930) VMEM
    tb = chunks_ref.shape[0]

    ch = chunks_ref[...]                                           # (TB, 311, 50)
    w0b = jnp.broadcast_to(w0_ref[...], (tb, HALF_K, OUT_CH))
    w1b = jnp.broadcast_to(w1_ref[...], (tb, HALF_K, OUT_CH))

    # conv[b, p, :] = ch[b, p] @ W0 + ch[b, p+1] @ W1   (p = 0..309)
    # Computed as two big batched matmuls over all 311 chunks; the +1 shift is applied
    # when the pooling windows are read back from the scratch buffers below.
    a_scr[...] = jnp.einsum('bps,bsc->bpc', ch, w0b,
                            preferred_element_type=jnp.float32)
    b_scr[...] = jnp.einsum('bps,bsc->bpc', ch, w1b,
                            preferred_element_type=jnp.float32)

    cb = cb_ref[...]                                               # (1, 30)

    # Fused MaxPool1d(10) + bias + ReLU + time-major flatten into (TB, 930).
    # relu(max_j(dot_j) + b) == max_j(relu(dot_j + b)) since +b and relu are monotone.
    for t in range(N_POOL):
        p0 = t * POOL
        win = (a_scr[:, p0:p0 + POOL, :]
               + b_scr[:, p0 + 1:p0 + POOL + 1, :])                # (TB, 10, 30)
        pooled = jnp.max(win, axis=1)                              # (TB, 30)
        flat_scr[:, t * OUT_CH:(t + 1) * OUT_CH] = jnp.maximum(pooled + cb, 0.0)

    # Linear(930 -> 35) + bias + LogSoftmax(dim=1)
    logits = jnp.dot(flat_scr[...], lw_ref[...],
                     preferred_element_type=jnp.float32) + lb_ref[...]   # (TB, 35)
    m = jnp.max(logits, axis=-1, keepdims=True)
    s = logits - m
    out_ref[...] = s - jnp.log(jnp.sum(jnp.exp(s), axis=-1, keepdims=True))


def sound_forward(x, conv_w, conv_b, lin_w, lin_b):
    # x: (B, 1, L_IN) NCW float32
    B = x.shape[0]
    sig = x[:, 0, :]                                   # (B, 15550)
    chunks = sig.reshape(B, N_CHUNKS, HALF_K)          # (B, 311, 50) -- free view

    TB = min(8, B)                                     # batch block
    Bp = ((B + TB - 1) // TB) * TB
    if Bp != B:
        chunks = jnp.pad(chunks, ((0, Bp - B), (0, 0), (0, 0)))

    # Split conv taps into the two stride-aligned halves (constant transform).
    w0 = conv_w[:, 0, :HALF_K].T                       # (50, 30)
    w1 = conv_w[:, 0, HALF_K:].T                       # (50, 30)
    cb = conv_b.reshape(1, OUT_CH)                     # (1, 30)

    # Permute Linear weight so row (t*30 + c) of lw_perm == lin_w[:, c*31 + t],
    # i.e. a time-major flatten in the kernel matches torch's channel-major view.
    lw_perm = jnp.transpose(
        lin_w.reshape(N_CLASSES, OUT_CH, N_POOL), (2, 1, 0)
    ).reshape(OUT_CH * N_POOL, N_CLASSES)              # (930, 35)
    lb = lin_b.reshape(1, N_CLASSES)                   # (1, 35)

    out = pl.pallas_call(
        sound_fused_kernel,
        out_shape=jax.ShapeDtypeStruct((Bp, N_CLASSES), jnp.float32),
        grid=(Bp // TB,),
        in_specs=[
            pl.BlockSpec((TB, N_CHUNKS, HALF_K), lambda i: (i, 0, 0)),
            pl.BlockSpec((HALF_K, OUT_CH), lambda i: (0, 0)),
            pl.BlockSpec((HALF_K, OUT_CH), lambda i: (0, 0)),
            pl.BlockSpec((1, OUT_CH), lambda i: (0, 0)),
            pl.BlockSpec((OUT_CH * N_POOL, N_CLASSES), lambda i: (0, 0)),
            pl.BlockSpec((1, N_CLASSES), lambda i: (0, 0)),
        ],
        out_specs=pl.BlockSpec((TB, N_CLASSES), lambda i: (i, 0)),
        scratch_shapes=[
            pltpu.VMEM((TB, N_CHUNKS, OUT_CH), jnp.float32),
            pltpu.VMEM((TB, N_CHUNKS, OUT_CH), jnp.float32),
            pltpu.VMEM((TB, OUT_CH * N_POOL), jnp.float32),
        ],
        compiler_params=pltpu.CompilerParams(dimension_semantics=("parallel",)),
    )(chunks, w0, w1, cb, lw_perm, lb)
    return out[:B]


def sound_forward_ref(x, conv_w, conv_b, lin_w, lin_b):
    # pure-JAX reference mirroring the PyTorch forward exactly
    B = x.shape[0]
    sig = x[:, 0, :]
    starts = jnp.arange(N_CONV) * STRIDE
    idx = starts[:, None] + jnp.arange(KERNEL_SIZE)[None, :]
    patches = sig[:, idx]                                             # (B, 310, 100)
    conv = jnp.einsum('bpk,ck->bcp', patches, conv_w[:, 0, :]) \
        + conv_b[None, :, None]                                       # (B, 30, 310)
    conv = jnp.maximum(conv, 0.0)
    pooled = jnp.max(conv.reshape(B, OUT_CH, N_POOL, POOL), axis=-1)  # (B, 30, 31)
    flat = pooled.reshape(B, OUT_CH * N_POOL)                         # (B, 930)
    logits = flat @ lin_w.T + lin_b
    return jax.nn.log_softmax(logits, axis=1)


if __name__ == "__main__":
    key = jax.random.PRNGKey(0)
    kx, kcw, kcb, klw, klb = jax.random.split(key, 5)

    B = 2
    x = jax.random.normal(kx, (B, 1, L_IN), dtype=jnp.float32)

    # deterministic synthetic params (PyTorch-style uniform fan-in bounds)
    cbound = 1.0 / (KERNEL_SIZE ** 0.5)                  # 1/sqrt(in_ch * K) = 0.1
    lbound = 1.0 / ((OUT_CH * N_POOL) ** 0.5)
    conv_w = jax.random.uniform(kcw, (OUT_CH, 1, KERNEL_SIZE), jnp.float32, -cbound, cbound)
    conv_b = jax.random.uniform(kcb, (OUT_CH,), jnp.float32, -cbound, cbound)
    lin_w = jax.random.uniform(klw, (N_CLASSES, OUT_CH * N_POOL), jnp.float32, -lbound, lbound)
    lin_b = jax.random.uniform(klb, (N_CLASSES,), jnp.float32, -lbound, lbound)

    out = jax.jit(sound_forward)(x, conv_w, conv_b, lin_w, lin_b)
    out = jax.block_until_ready(out)

    ref = sound_forward_ref(x, conv_w, conv_b, lin_w, lin_b)
    assert out.shape == (B, N_CLASSES)
    assert jnp.allclose(out, ref, atol=1e-4, rtol=1e-4), "mismatch vs pure-JAX reference"

    print("KERNEL_OK")
</pallas_src>

<mosaic_0001>
module attributes {stable_mosaic.version = 11 : i64} {
  func.func @sound_fused_kernel(%arg0: i32, %arg1: memref<2x311x50xf32, #tpu.memory_space<vmem>>, %arg2: memref<50x30xf32, #tpu.memory_space<vmem>>, %arg3: memref<50x30xf32, #tpu.memory_space<vmem>>, %arg4: memref<1x30xf32, #tpu.memory_space<vmem>>, %arg5: memref<930x35xf32, #tpu.memory_space<vmem>>, %arg6: memref<1x35xf32, #tpu.memory_space<vmem>>, %arg7: memref<2x35xf32, #tpu.memory_space<vmem>>, %arg8: memref<2x311x30xf32, #tpu.memory_space<vmem>>, %arg9: memref<2x311x30xf32, #tpu.memory_space<vmem>>, %arg10: memref<2x930xf32, #tpu.memory_space<vmem>>) attributes {dimension_semantics = [#tpu.dimension_semantics<parallel>], iteration_bounds = array<i64: 1>, scalar_prefetch = 0 : i64, scratch_operands = 3 : i64, tpu.core_type = #tpu.core_type<tc>, window_params = [{transform_indices = @transform_0, window_bounds = array<i64: 2, 311, 50>}, {pipeline_mode = #tpu.pipeline_mode<synchronous>, transform_indices = @transform_1, window_bounds = array<i64: 50, 30>}, {pipeline_mode = #tpu.pipeline_mode<synchronous>, transform_indices = @transform_2, window_bounds = array<i64: 50, 30>}, {pipeline_mode = #tpu.pipeline_mode<synchronous>, transform_indices = @transform_3, window_bounds = array<i64: 1, 30>}, {pipeline_mode = #tpu.pipeline_mode<synchronous>, transform_indices = @transform_4, window_bounds = array<i64: 930, 35>}, {pipeline_mode = #tpu.pipeline_mode<synchronous>, transform_indices = @transform_5, window_bounds = array<i64: 1, 35>}, {transform_indices = @transform_6, window_bounds = array<i64: 2, 35>}]} {
    %c0 = arith.constant 0 : index
    %c0_0 = arith.constant 0 : index
    %c0_1 = arith.constant 0 : index
    %0 = vector.load %arg1[%c0, %c0_0, %c0_1] : memref<2x311x50xf32, #tpu.memory_space<vmem>>, vector<2x311x50xf32>
    %c0_2 = arith.constant 0 : index
    %c0_3 = arith.constant 0 : index
    %1 = vector.load %arg2[%c0_2, %c0_3] : memref<50x30xf32, #tpu.memory_space<vmem>>, vector<50x30xf32>
    %2 = vector.shape_cast %1 : vector<50x30xf32> to vector<1x50x30xf32>
    %3 = vector.broadcast %2 : vector<1x50x30xf32> to vector<2x50x30xf32>
    %c0_4 = arith.constant 0 : index
    %c0_5 = arith.constant 0 : index
    %4 = vector.load %arg3[%c0_4, %c0_5] : memref<50x30xf32, #tpu.memory_space<vmem>>, vector<50x30xf32>
    %5 = vector.shape_cast %4 : vector<50x30xf32> to vector<1x50x30xf32>
    %6 = vector.broadcast %5 : vector<1x50x30xf32> to vector<2x50x30xf32>
    "tpu.trace_start"() <{level = 10 : i32, message = "bps,bsc->bpc"}> : () -> ()
    %cst = arith.constant dense<0.000000e+00> : vector<2x311x30xf32>
    %7 = tpu.matmul %0, %3, %cst {dimension_numbers = #tpu.dot_dimension_numbers<[2], [1], [1], [2], [0, 0, 0, 1, 1, 2], [0], [0]>} : vector<2x311x50xf32>, vector<2x50x30xf32>, vector<2x311x30xf32> -> vector<2x311x30xf32>
    "tpu.trace_stop"() : () -> ()
    %c0_6 = arith.constant 0 : index
    %c0_7 = arith.constant 0 : index
    %c0_8 = arith.constant 0 : index
    %8 = vector.load %arg8[%c0_6, %c0_7, %c0_8] : memref<2x311x30xf32, #tpu.memory_space<vmem>>, vector<2x311x30xf32>
    tpu.vector_store %arg8[%c0_6, %c0_7, %c0_8], %7 {strides = array<i32>} : memref<2x311x30xf32, #tpu.memory_space<vmem>>, vector<2x311x30xf32>,
    "tpu.trace_start"() <{level = 10 : i32, message = "bps,bsc->bpc"}> : () -> ()
    %cst_9 = arith.constant dense<0.000000e+00> : vector<2x311x30xf32>
    %9 = tpu.matmul %0, %6, %cst_9 {dimension_numbers = #tpu.dot_dimension_numbers<[2], [1], [1], [2], [0, 0, 0, 1, 1, 2], [0], [0]>} : vector<2x311x50xf32>, vector<2x50x30xf32>, vector<2x311x30xf32> -> vector<2x311x30xf32>
    "tpu.trace_stop"() : () -> ()
    %c0_10 = arith.constant 0 : index
    %c0_11 = arith.constant 0 : index
    %c0_12 = arith.constant 0 : index
    %10 = vector.load %arg9[%c0_10, %c0_11, %c0_12] : memref<2x311x30xf32, #tpu.memory_space<vmem>>, vector<2x311x30xf32>
    tpu.vector_store %arg9[%c0_10, %c0_11, %c0_12], %9 {strides = array<i32>} : memref<2x311x30xf32, #tpu.memory_space<vmem>>, vector<2x311x30xf32>,
    %c0_13 = arith.constant 0 : index
    %c0_14 = arith.constant 0 : index
    %11 = vector.load %arg4[%c0_13, %c0_14] : memref<1x30xf32, #tpu.memory_space<vmem>>, vector<1x30xf32>
    %c0_15 = arith.constant 0 : index
    %c0_16 = arith.constant 0 : index
    %c0_17 = arith.constant 0 : index
    %12 = vector.load %arg8[%c0_15, %c0_16, %c0_17] : memref<2x311x30xf32, #tpu.memory_space<vmem>>, vector<2x10x30xf32>
    %c0_18 = arith.constant 0 : index
    %c1 = arith.constant 1 : index
    %c0_19 = arith.constant 0 : index
    %13 = vector.load %arg9[%c0_18, %c1, %c0_19] : memref<2x311x30xf32, #tpu.memory_space<vmem>>, vector<2x10x30xf32>
    %14 = arith.addf %12, %13 : vector<2x10x30xf32>
    %cst_20 = arith.constant dense<0xFF800000> : vector<2x30xf32>
    %15 = vector.multi_reduction <maximumf>, %14, %cst_20 [1] : vector<2x10x30xf32> to vector<2x30xf32>
    %16 = vector.broadcast %11 : vector<1x30xf32> to vector<2x30xf32>
    %17 = arith.addf %15, %16 : vector<2x30xf32>
    %cst_21 = arith.constant 0.000000e+00 : f32
    %18 = vector.broadcast %cst_21 : f32 to vector<2x30xf32>
    %19 = arith.maximumf %17, %18 : vector<2x30xf32>
    %c0_22 = arith.constant 0 : index
    %c0_23 = arith.constant 0 : index
    %20 = vector.load %arg10[%c0_22, %c0_23] : memref<2x930xf32, #tpu.memory_space<vmem>>, vector<2x30xf32>
    tpu.vector_store %arg10[%c0_22, %c0_23], %19 {strides = array<i32>} : memref<2x930xf32, #tpu.memory_space<vmem>>, vector<2x30xf32>,
    %c0_24 = arith.constant 0 : index
    %c10 = arith.constant 10 : index
    %c0_25 = arith.constant 0 : index
    %21 = vector.load %arg8[%c0_24, %c10, %c0_25] : memref<2x311x30xf32, #tpu.memory_space<vmem>>, vector<2x10x30xf32>
    %c0_26 = arith.constant 0 : index
    %c11 = arith.constant 11 : index
    %c0_27 = arith.constant 0 : index
    %22 = vector.load %arg9[%c0_26, %c11, %c0_27] : memref<2x311x30xf32, #tpu.memory_space<vmem>>, vector<2x10x30xf32>
    %23 = arith.addf %21, %22 : vector<2x10x30xf32>
    %cst_28 = arith.constant dense<0xFF800000> : vector<2x30xf32>
    %24 = vector.multi_reduction <maximumf>, %23, %cst_28 [1] : vector<2x10x30xf32> to vector<2x30xf32>
    %25 = vector.broadcast %11 : vector<1x30xf32> to vector<2x30xf32>
    %26 = arith.addf %24, %25 : vector<2x30xf32>
    %cst_29 = arith.constant 0.000000e+00 : f32
    %27 = vector.broadcast %cst_29 : f32 to vector<2x30xf32>
    %28 = arith.maximumf %26, %27 : vector<2x30xf32>
    %c0_30 = arith.constant 0 : index
    %c30 = arith.constant 30 : index
    %29 = vector.load %arg10[%c0_30, %c30] : memref<2x930xf32, #tpu.memory_space<vmem>>, vector<2x30xf32>
    tpu.vector_store %arg10[%c0_30, %c30], %28 {strides = array<i32>} : memref<2x930xf32, #tpu.memory_space<vmem>>, vector<2x30xf32>,
    %c0_31 = arith.constant 0 : index
    %c20 = arith.constant 20 : index
    %c0_32 = arith.constant 0 : index
    %30 = vector.load %arg8[%c0_31, %c20, %c0_32] : memref<2x311x30xf32, #tpu.memory_space<vmem>>, vector<2x10x30xf32>
    %c0_33 = arith.constant 0 : index
    %c21 = arith.constant 21 : index
    %c0_34 = arith.constant 0 : index
    %31 = vector.load %arg9[%c0_33, %c21, %c0_34] : memref<2x311x30xf32, #tpu.memory_space<vmem>>, vector<2x10x30xf32>
    %32 = arith.addf %30, %31 : vector<2x10x30xf32>
    %cst_35 = arith.constant dense<0xFF800000> : vector<2x30xf32>
    %33 = vector.multi_reduction <maximumf>, %32, %cst_35 [1] : vector<2x10x30xf32> to vector<2x30xf32>
    %34 = vector.broadcast %11 : vector<1x30xf32> to vector<2x30xf32>
    %35 = arith.addf %33, %34 : vector<2x30xf32>
    %cst_36 = arith.constant 0.000000e+00 : f32
    %36 = vector.broadcast %cst_36 : f32 to vector<2x30xf32>
    %37 = arith.maximumf %35, %36 : vector<2x30xf32>
    %c0_37 = arith.constant 0 : index
    %c60 = arith.constant 60 : index
    %38 = vector.load %arg10[%c0_37, %c60] : memref<2x930xf32, #tpu.memory_space<vmem>>, vector<2x30xf32>
    tpu.vector_store %arg10[%c0_37, %c60], %37 {strides = array<i32>} : memref<2x930xf32, #tpu.memory_space<vmem>>, vector<2x30xf32>,
    %c0_38 = arith.constant 0 : index
    %c30_39 = arith.constant 30 : index
    %c0_40 = arith.constant 0 : index
    %39 = vector.load %arg8[%c0_38, %c30_39, %c0_40] : memref<2x311x30xf32, #tpu.memory_space<vmem>>, vector<2x10x30xf32>
    %c0_41 = arith.constant 0 : index
    %c31 = arith.constant 31 : index
    %c0_42 = arith.constant 0 : index
    %40 = vector.load %arg9[%c0_41, %c31, %c0_42] : memref<2x311x30xf32, #tpu.memory_space<vmem>>, vector<2x10x30xf32>
    %41 = arith.addf %39, %40 : vector<2x10x30xf32>
    %cst_43 = arith.constant dense<0xFF800000> : vector<2x30xf32>
    %42 = vector.multi_reduction <maximumf>, %41, %cst_43 [1] : vector<2x10x30xf32> to vector<2x30xf32>
    %43 = vector.broadcast %11 : vector<1x30xf32> to vector<2x30xf32>
    %44 = arith.addf %42, %43 : vector<2x30xf32>
    %cst_44 = arith.constant 0.000000e+00 : f32
    %45 = vector.broadcast %cst_44 : f32 to vector<2x30xf32>
    %46 = arith.maximumf %44, %45 : vector<2x30xf32>
    %c0_45 = arith.constant 0 : index
    %c90 = arith.constant 90 : index
    %47 = vector.load %arg10[%c0_45, %c90] : memref<2x930xf32, #tpu.memory_space<vmem>>, vector<2x30xf32>
    tpu.vector_store %arg10[%c0_45, %c90], %46 {strides = array<i32>} : memref<2x930xf32, #tpu.memory_space<vmem>>, vector<2x30xf32>,
    %c0_46 = arith.constant 0 : index
    %c40 = arith.constant 40 : index
    %c0_47 = arith.constant 0 : index
    %48 = vector.load %arg8[%c0_46, %c40, %c0_47] : memref<2x311x30xf32, #tpu.memory_space<vmem>>, vector<2x10x30xf32>
    %c0_48 = arith.constant 0 : index
    %c41 = arith.constant 41 : index
    %c0_49 = arith.constant 0 : index
    %49 = vector.load %arg9[%c0_48, %c41, %c0_49] : memref<2x311x30xf32, #tpu.memory_space<vmem>>, vector<2x10x30xf32>
    %50 = arith.addf %48, %49 : vector<2x10x30xf32>
    %cst_50 = arith.constant dense<0xFF800000> : vector<2x30xf32>
    %51 = vector.multi_reduction <maximumf>, %50, %cst_50 [1] : vector<2x10x30xf32> to vector<2x30xf32>
    %52 = vector.broadcast %11 : vector<1x30xf32> to vector<2x30xf32>
    %53 = arith.addf %51, %52 : vector<2x30xf32>
    %cst_51 = arith.constant 0.000000e+00 : f32
    %54 = vector.broadcast %cst_51 : f32 to vector<2x30xf32>
    %55 = arith.maximumf %53, %54 : vector<2x30xf32>
    %c0_52 = arith.constant 0 : index
    %c120 = arith.constant 120 : index
    %56 = vector.load %arg10[%c0_52, %c120] : memref<2x930xf32, #tpu.memory_space<vmem>>, vector<2x30xf32>
    tpu.vector_store %arg10[%c0_52, %c120], %55 {strides = array<i32>} : memref<2x930xf32, #tpu.memory_space<vmem>>, vector<2x30xf32>,
    %c0_53 = arith.constant 0 : index
    %c50 = arith.constant 50 : index
    %c0_54 = arith.constant 0 : index
    %57 = vector.load %arg8[%c0_53, %c50, %c0_54] : memref<2x311x30xf32, #tpu.memory_space<vmem>>, vector<2x10x30xf32>
    %c0_55 = arith.constant 0 : index
    %c51 = arith.constant 51 : index
    %c0_56 = arith.constant 0 : index
    %58 = vector.load %arg9[%c0_55, %c51, %c0_56] : memref<2x311x30xf32, #tpu.memory_space<vmem>>, vector<2x10x30xf32>
    %59 = arith.addf %57, %58 : vector<2x10x30xf32>
    %cst_57 = arith.constant dense<0xFF800000> : vector<2x30xf32>
    %60 = vector.multi_reduction <maximumf>, %59, %cst_57 [1] : vector<2x10x30xf32> to vector<2x30xf32>
    %61 = vector.broadcast %11 : vector<1x30xf32> to vector<2x30xf32>
    %62 = arith.addf %60, %61 : vector<2x30xf32>
    %cst_58 = arith.constant 0.000000e+00 : f32
    %63 = vector.broadcast %cst_58 : f32 to vector<2x30xf32>
    %64 = arith.maximumf %62, %63 : vector<2x30xf32>
    %c0_59 = arith.constant 0 : index
    %c150 = arith.constant 150 : index
    %65 = vector.load %arg10[%c0_59, %c150] : memref<2x930xf32, #tpu.memory_space<vmem>>, vector<2x30xf32>
    tpu.vector_store %arg10[%c0_59, %c150], %64 {strides = array<i32>} : memref<2x930xf32, #tpu.memory_space<vmem>>, vector<2x30xf32>,
    %c0_60 = arith.constant 0 : index
    %c60_61 = arith.constant 60 : index
    %c0_62 = arith.constant 0 : index
    %66 = vector.load %arg8[%c0_60, %c60_61, %c0_62] : memref<2x311x30xf32, #tpu.memory_space<vmem>>, vector<2x10x30xf32>
    %c0_63 = arith.constant 0 : index
    %c61 = arith.constant 61 : index
    %c0_64 = arith.constant 0 : index
    %67 = vector.load %arg9[%c0_63, %c61, %c0_64] : memref<2x311x30xf32, #tpu.memory_space<vmem>>, vector<2x10x30xf32>
    %68 = arith.addf %66, %67 : vector<2x10x30xf32>
    %cst_65 = arith.constant dense<0xFF800000> : vector<2x30xf32>
    %69 = vector.multi_reduction <maximumf>, %68, %cst_65 [1] : vector<2x10x30xf32> to vector<2x30xf32>
    %70 = vector.broadcast %11 : vector<1x30xf32> to vector<2x30xf32>
    %71 = arith.addf %69, %70 : vector<2x30xf32>
    %cst_66 = arith.constant 0.000000e+00 : f32
    %72 = vector.broadcast %cst_66 : f32 to vector<2x30xf32>
    %73 = arith.maximumf %71, %72 : vector<2x30xf32>
    %c0_67 = arith.constant 0 : index
    %c180 = arith.constant 180 : index
    %74 = vector.load %arg10[%c0_67, %c180] : memref<2x930xf32, #tpu.memory_space<vmem>>, vector<2x30xf32>
    tpu.vector_store %arg10[%c0_67, %c180], %73 {strides = array<i32>} : memref<2x930xf32, #tpu.memory_space<vmem>>, vector<2x30xf32>,
    %c0_68 = arith.constant 0 : index
    %c70 = arith.constant 70 : index
    %c0_69 = arith.constant 0 : index
    %75 = vector.load %arg8[%c0_68, %c70, %c0_69] : memref<2x311x30xf32, #tpu.memory_space<vmem>>, vector<2x10x30xf32>
    %c0_70 = arith.constant 0 : index
    %c71 = arith.constant 71 : index
    %c0_71 = arith.constant 0 : index
    %76 = vector.load %arg9[%c0_70, %c71, %c0_71] : memref<2x311x30xf32, #tpu.memory_space<vmem>>, vector<2x10x30xf32>
    %77 = arith.addf %75, %76 : vector<2x10x30xf32>
    %cst_72 = arith.constant dense<0xFF800000> : vector<2x30xf32>
    %78 = vector.multi_reduction <maximumf>, %77, %cst_72 [1] : vector<2x10x30xf32> to vector<2x30xf32>
    %79 = vector.broadcast %11 : vector<1x30xf32> to vector<2x30xf32>
    %80 = arith.addf %78, %79 : vector<2x30xf32>
    %cst_73 = arith.constant 0.000000e+00 : f32
    %81 = vector.broadcast %cst_73 : f32 to vector<2x30xf32>
    %82 = arith.maximumf %80, %81 : vector<2x30xf32>
    %c0_74 = arith.constant 0 : index
    %c210 = arith.constant 210 : index
    %83 = vector.load %arg10[%c0_74, %c210] : memref<2x930xf32, #tpu.memory_space<vmem>>, vector<2x30xf32>
    tpu.vector_store %arg10[%c0_74, %c210], %82 {strides = array<i32>} : memref<2x930xf32, #tpu.memory_space<vmem>>, vector<2x30xf32>,
    %c0_75 = arith.constant 0 : index
    %c80 = arith.constant 80 : index
    %c0_76 = arith.constant 0 : index
    %84 = vector.load %arg8[%c0_75, %c80, %c0_76] : memref<2x311x30xf32, #tpu.memory_space<vmem>>, vector<2x10x30xf32>
    %c0_77 = arith.constant 0 : index
    %c81 = arith.constant 81 : index
    %c0_78 = arith.constant 0 : index
    %85 = vector.load %arg9[%c0_77, %c81, %c0_78] : memref<2x311x30xf32, #tpu.memory_space<vmem>>, vector<2x10x30xf32>
    %86 = arith.addf %84, %85 : vector<2x10x30xf32>
    %cst_79 = arith.constant dense<0xFF800000> : vector<2x30xf32>
    %87 = vector.multi_reduction <maximumf>, %86, %cst_79 [1] : vector<2x10x30xf32> to vector<2x30xf32>
    %88 = vector.broadcast %11 : vector<1x30xf32> to vector<2x30xf32>
    %89 = arith.addf %87, %88 : vector<2x30xf32>
    %cst_80 = arith.constant 0.000000e+00 : f32
    %90 = vector.broadcast %cst_80 : f32 to vector<2x30xf32>
    %91 = arith.maximumf %89, %90 : vector<2x30xf32>
    %c0_81 = arith.constant 0 : index
    %c240 = arith.constant 240 : index
    %92 = vector.load %arg10[%c0_81, %c240] : memref<2x930xf32, #tpu.memory_space<vmem>>, vector<2x30xf32>
    tpu.vector_store %arg10[%c0_81, %c240], %91 {strides = array<i32>} : memref<2x930xf32, #tpu.memory_space<vmem>>, vector<2x30xf32>,
    %c0_82 = arith.constant 0 : index
    %c90_83 = arith.constant 90 : index
    %c0_84 = arith.constant 0 : index
    %93 = vector.load %arg8[%c0_82, %c90_83, %c0_84] : memref<2x311x30xf32, #tpu.memory_space<vmem>>, vector<2x10x30xf32>
    %c0_85 = arith.constant 0 : index
    %c91 = arith.constant 91 : index
    %c0_86 = arith.constant 0 : index
    %94 = vector.load %arg9[%c0_85, %c91, %c0_86] : memref<2x311x30xf32, #tpu.memory_space<vmem>>, vector<2x10x30xf32>
    %95 = arith.addf %93, %94 : vector<2x10x30xf32>
    %cst_87 = arith.constant dense<0xFF800000> : vector<2x30xf32>
    %96 = vector.multi_reduction <maximumf>, %95, %cst_87 [1] : vector<2x10x30xf32> to vector<2x30xf32>
    %97 = vector.broadcast %11 : vector<1x30xf32> to vector<2x30xf32>
    %98 = arith.addf %96, %97 : vector<2x30xf32>
    %cst_88 = arith.constant 0.000000e+00 : f32
    %99 = vector.broadcast %cst_88 : f32 to vector<2x30xf32>
    %100 = arith.maximumf %98, %99 : vector<2x30xf32>
    %c0_89 = arith.constant 0 : index
    %c270 = arith.constant 270 : index
    %101 = vector.load %arg10[%c0_89, %c270] : memref<2x930xf32, #tpu.memory_space<vmem>>, vector<2x30xf32>
    tpu.vector_store %arg10[%c0_89, %c270], %100 {strides = array<i32>} : memref<2x930xf32, #tpu.memory_space<vmem>>, vector<2x30xf32>,
    %c0_90 = arith.constant 0 : index
    %c100 = arith.constant 100 : index
    %c0_91 = arith.constant 0 : index
    %102 = vector.load %arg8[%c0_90, %c100, %c0_91] : memref<2x311x30xf32, #tpu.memory_space<vmem>>, vector<2x10x30xf32>
    %c0_92 = arith.constant 0 : index
    %c101 = arith.constant 101 : index
    %c0_93 = arith.constant 0 : index
    %103 = vector.load %arg9[%c0_92, %c101, %c0_93] : memref<2x311x30xf32, #tpu.memory_space<vmem>>, vector<2x10x30xf32>
    %104 = arith.addf %102, %103 : vector<2x10x30xf32>
    %cst_94 = arith.constant dense<0xFF800000> : vector<2x30xf32>
    %105 = vector.multi_reduction <maximumf>, %104, %cst_94 [1] : vector<2x10x30xf32> to vector<2x30xf32>
    %106 = vector.broadcast %11 : vector<1x30xf32> to vector<2x30xf32>
    %107 = arith.addf %105, %106 : vector<2x30xf32>
    %cst_95 = arith.constant 0.000000e+00 : f32
    %108 = vector.broadcast %cst_95 : f32 to vector<2x30xf32>
    %109 = arith.maximumf %107, %108 : vector<2x30xf32>
    %c0_96 = arith.constant 0 : index
    %c300 = arith.constant 300 : index
    %110 = vector.load %arg10[%c0_96, %c300] : memref<2x930xf32, #tpu.memory_space<vmem>>, vector<2x30xf32>
    tpu.vector_store %arg10[%c0_96, %c300], %109 {strides = array<i32>} : memref<2x930xf32, #tpu.memory_space<vmem>>, vector<2x30xf32>,
    %c0_97 = arith.constant 0 : index
    %c110 = arith.constant 110 : index
    %c0_98 = arith.constant 0 : index
    %111 = vector.load %arg8[%c0_97, %c110, %c0_98] : memref<2x311x30xf32, #tpu.memory_space<vmem>>, vector<2x10x30xf32>
    %c0_99 = arith.constant 0 : index
    %c111 = arith.constant 111 : index
    %c0_100 = arith.constant 0 : index
    %112 = vector.load %arg9[%c0_99, %c111, %c0_100] : memref<2x311x30xf32, #tpu.memory_space<vmem>>, vector<2x10x30xf32>
    %113 = arith.addf %111, %112 : vector<2x10x30xf32>
    %cst_101 = arith.constant dense<0xFF800000> : vector<2x30xf32>
    %114 = vector.multi_reduction <maximumf>, %113, %cst_101 [1] : vector<2x10x30xf32> to vector<2x30xf32>
    %115 = vector.broadcast %11 : vector<1x30xf32> to vector<2x30xf32>
    %116 = arith.addf %114, %115 : vector<2x30xf32>
    %cst_102 = arith.constant 0.000000e+00 : f32
    %117 = vector.broadcast %cst_102 : f32 to vector<2x30xf32>
    %118 = arith.maximumf %116, %117 : vector<2x30xf32>
    %c0_103 = arith.constant 0 : index
    %c330 = arith.constant 330 : index
    %119 = vector.load %arg10[%c0_103, %c330] : memref<2x930xf32, #tpu.memory_space<vmem>>, vector<2x30xf32>
    tpu.vector_store %arg10[%c0_103, %c330], %118 {strides = array<i32>} : memref<2x930xf32, #tpu.memory_space<vmem>>, vector<2x30xf32>,
    %c0_104 = arith.constant 0 : index
    %c120_105 = arith.constant 120 : index
    %c0_106 = arith.constant 0 : index
    %120 = vector.load %arg8[%c0_104, %c120_105, %c0_106] : memref<2x311x30xf32, #tpu.memory_space<vmem>>, vector<2x10x30xf32>
    %c0_107 = arith.constant 0 : index
    %c121 = arith.constant 121 : index
    %c0_108 = arith.constant 0 : index
    %121 = vector.load %arg9[%c0_107, %c121, %c0_108] : memref<2x311x30xf32, #tpu.memory_space<vmem>>, vector<2x10x30xf32>
    %122 = arith.addf %120, %121 : vector<2x10x30xf32>
    %cst_109 = arith.constant dense<0xFF800000> : vector<2x30xf32>
    %123 = vector.multi_reduction <maximumf>, %122, %cst_109 [1] : vector<2x10x30xf32> to vector<2x30xf32>
    %124 = vector.broadcast %11 : vector<1x30xf32> to vector<2x30xf32>
    %125 = arith.addf %123, %124 : vector<2x30xf32>
    %cst_110 = arith.constant 0.000000e+00 : f32
    %126 = vector.broadcast %cst_110 : f32 to vector<2x30xf32>
    %127 = arith.maximumf %125, %126 : vector<2x30xf32>
    %c0_111 = arith.constant 0 : index
    %c360 = arith.constant 360 : index
    %128 = vector.load %arg10[%c0_111, %c360] : memref<2x930xf32, #tpu.memory_space<vmem>>, vector<2x30xf32>
    tpu.vector_store %arg10[%c0_111, %c360], %127 {strides = array<i32>} : memref<2x930xf32, #tpu.memory_space<vmem>>, vector<2x30xf32>,
    %c0_112 = arith.constant 0 : index
    %c130 = arith.constant 130 : index
    %c0_113 = arith.constant 0 : index
    %129 = vector.load %arg8[%c0_112, %c130, %c0_113] : memref<2x311x30xf32, #tpu.memory_space<vmem>>, vector<2x10x30xf32>
    %c0_114 = arith.constant 0 : index
    %c131 = arith.constant 131 : index
    %c0_115 = arith.constant 0 : index
    %130 = vector.load %arg9[%c0_114, %c131, %c0_115] : memref<2x311x30xf32, #tpu.memory_space<vmem>>, vector<2x10x30xf32>
    %131 = arith.addf %129, %130 : vector<2x10x30xf32>
    %cst_116 = arith.constant dense<0xFF800000> : vector<2x30xf32>
    %132 = vector.multi_reduction <maximumf>, %131, %cst_116 [1] : vector<2x10x30xf32> to vector<2x30xf32>
    %133 = vector.broadcast %11 : vector<1x30xf32> to vector<2x30xf32>
    %134 = arith.addf %132, %133 : vector<2x30xf32>
    %cst_117 = arith.constant 0.000000e+00 : f32
    %135 = vector.broadcast %cst_117 : f32 to vector<2x30xf32>
    %136 = arith.maximumf %134, %135 : vector<2x30xf32>
    %c0_118 = arith.constant 0 : index
    %c390 = arith.constant 390 : index
    %137 = vector.load %arg10[%c0_118, %c390] : memref<2x930xf32, #tpu.memory_space<vmem>>, vector<2x30xf32>
    tpu.vector_store %arg10[%c0_118, %c390], %136 {strides = array<i32>} : memref<2x930xf32, #tpu.memory_space<vmem>>, vector<2x30xf32>,
    %c0_119 = arith.constant 0 : index
    %c140 = arith.constant 140 : index
    %c0_120 = arith.constant 0 : index
    %138 = vector.load %arg8[%c0_119, %c140, %c0_120] : memref<2x311x30xf32, #tpu.memory_space<vmem>>, vector<2x10x30xf32>
    %c0_121 = arith.constant 0 : index
    %c141 = arith.constant 141 : index
    %c0_122 = arith.constant 0 : index
    %139 = vector.load %arg9[%c0_121, %c141, %c0_122] : memref<2x311x30xf32, #tpu.memory_space<vmem>>, vector<2x10x30xf32>
    %140 = arith.addf %138, %139 : vector<2x10x30xf32>
    %cst_123 = arith.constant dense<0xFF800000> : vector<2x30xf32>
    %141 = vector.multi_reduction <maximumf>, %140, %cst_123 [1] : vector<2x10x30xf32> to vector<2x30xf32>
    %142 = vector.broadcast %11 : vector<1x30xf32> to vector<2x30xf32>
    %143 = arith.addf %141, %142 : vector<2x30xf32>
    %cst_124 = arith.constant 0.000000e+00 : f32
    %144 = vector.broadcast %cst_124 : f32 to vector<2x30xf32>
    %145 = arith.maximumf %143, %144 : vector<2x30xf32>
    %c0_125 = arith.constant 0 : index
    %c420 = arith.constant 420 : index
    %146 = vector.load %arg10[%c0_125, %c420] : memref<2x930xf32, #tpu.memory_space<vmem>>, vector<2x30xf32>
    tpu.vector_store %arg10[%c0_125, %c420], %145 {strides = array<i32>} : memref<2x930xf32, #tpu.memory_space<vmem>>, vector<2x30xf32>,
    %c0_126 = arith.constant 0 : index
    %c150_127 = arith.constant 150 : index
    %c0_128 = arith.constant 0 : index
    %147 = vector.load %arg8[%c0_126, %c150_127, %c0_128] : memref<2x311x30xf32, #tpu.memory_space<vmem>>, vector<2x10x30xf32>
    %c0_129 = arith.constant 0 : index
    %c151 = arith.constant 151 : index
    %c0_130 = arith.constant 0 : index
    %148 = vector.load %arg9[%c0_129, %c151, %c0_130] : memref<2x311x30xf32, #tpu.memory_space<vmem>>, vector<2x10x30xf32>
    %149 = arith.addf %147, %148 : vector<2x10x30xf32>
    %cst_131 = arith.constant dense<0xFF800000> : vector<2x30xf32>
    %150 = vector.multi_reduction <maximumf>, %149, %cst_131 [1] : vector<2x10x30xf32> to vector<2x30xf32>
    %151 = vector.broadcast %11 : vector<1x30xf32> to vector<2x30xf32>
    %152 = arith.addf %150, %151 : vector<2x30xf32>
    %cst_132 = arith.constant 0.000000e+00 : f32
    %153 = vector.broadcast %cst_132 : f32 to vector<2x30xf32>
    %154 = arith.maximumf %152, %153 : vector<2x30xf32>
    %c0_133 = arith.constant 0 : index
    %c450 = arith.constant 450 : index
    %155 = vector.load %arg10[%c0_133, %c450] : memref<2x930xf32, #tpu.memory_space<vmem>>, vector<2x30xf32>
    tpu.vector_store %arg10[%c0_133, %c450], %154 {strides = array<i32>} : memref<2x930xf32, #tpu.memory_space<vmem>>, vector<2x30xf32>,
    %c0_134 = arith.constant 0 : index
    %c160 = arith.constant 160 : index
    %c0_135 = arith.constant 0 : index
    %156 = vector.load %arg8[%c0_134, %c160, %c0_135] : memref<2x311x30xf32, #tpu.memory_space<vmem>>, vector<2x10x30xf32>
    %c0_136 = arith.constant 0 : index
    %c161 = arith.constant 161 : index
    %c0_137 = arith.constant 0 : index
    %157 = vector.load %arg9[%c0_136, %c161, %c0_137] : memref<2x311x30xf32, #tpu.memory_space<vmem>>, vector<2x10x30xf32>
    %158 = arith.addf %156, %157 : vector<2x10x30xf32>
    %cst_138 = arith.constant dense<0xFF800000> : vector<2x30xf32>
    %159 = vector.multi_reduction <maximumf>, %158, %cst_138 [1] : vector<2x10x30xf32> to vector<2x30xf32>
    %160 = vector.broadcast %11 : vector<1x30xf32> to vector<2x30xf32>
    %161 = arith.addf %159, %160 : vector<2x30xf32>
    %cst_139 = arith.constant 0.000000e+00 : f32
    %162 = vector.broadcast %cst_139 : f32 to vector<2x30xf32>
    %163 = arith.maximumf %161, %162 : vector<2x30xf32>
    %c0_140 = arith.constant 0 : index
    %c480 = arith.constant 480 : index
    %164 = vector.load %arg10[%c0_140, %c480] : memref<2x930xf32, #tpu.memory_space<vmem>>, vector<2x30xf32>
    tpu.vector_store %arg10[%c0_140, %c480], %163 {strides = array<i32>} : memref<2x930xf32, #tpu.memory_space<vmem>>, vector<2x30xf32>,
    %c0_141 = arith.constant 0 : index
    %c170 = arith.constant 170 : index
    %c0_142 = arith.constant 0 : index
    %165 = vector.load %arg8[%c0_141, %c170, %c0_142] : memref<2x311x30xf32, #tpu.memory_space<vmem>>, vector<2x10x30xf32>
    %c0_143 = arith.constant 0 : index
    %c171 = arith.constant 171 : index
    %c0_144 = arith.constant 0 : index
    %166 = vector.load %arg9[%c0_143, %c171, %c0_144] : memref<2x311x30xf32, #tpu.memory_space<vmem>>, vector<2x10x30xf32>
    %167 = arith.addf %165, %166 : vector<2x10x30xf32>
    %cst_145 = arith.constant dense<0xFF800000> : vector<2x30xf32>
    %168 = vector.multi_reduction <maximumf>, %167, %cst_145 [1] : vector<2x10x30xf32> to vector<2x30xf32>
    %169 = vector.broadcast %11 : vector<1x30xf32> to vector<2x30xf32>
    %170 = arith.addf %168, %169 : vector<2x30xf32>
    %cst_146 = arith.constant 0.000000e+00 : f32
    %171 = vector.broadcast %cst_146 : f32 to vector<2x30xf32>
    %172 = arith.maximumf %170, %171 : vector<2x30xf32>
    %c0_147 = arith.constant 0 : index
    %c510 = arith.constant 510 : index
    %173 = vector.load %arg10[%c0_147, %c510] : memref<2x930xf32, #tpu.memory_space<vmem>>, vector<2x30xf32>
    tpu.vector_store %arg10[%c0_147, %c510], %172 {strides = array<i32>} : memref<2x930xf32, #tpu.memory_space<vmem>>, vector<2x30xf32>,
    %c0_148 = arith.constant 0 : index
    %c180_149 = arith.constant 180 : index
    %c0_150 = arith.constant 0 : index
    %174 = vector.load %arg8[%c0_148, %c180_149, %c0_150] : memref<2x311x30xf32, #tpu.memory_space<vmem>>, vector<2x10x30xf32>
    %c0_151 = arith.constant 0 : index
    %c181 = arith.constant 181 : index
    %c0_152 = arith.constant 0 : index
    %175 = vector.load %arg9[%c0_151, %c181, %c0_152] : memref<2x311x30xf32, #tpu.memory_space<vmem>>, vector<2x10x30xf32>
    %176 = arith.addf %174, %175 : vector<2x10x30xf32>
    %cst_153 = arith.constant dense<0xFF800000> : vector<2x30xf32>
    %177 = vector.multi_reduction <maximumf>, %176, %cst_153 [1] : vector<2x10x30xf32> to vector<2x30xf32>
    %178 = vector.broadcast %11 : vector<1x30xf32> to vector<2x30xf32>
    %179 = arith.addf %177, %178 : vector<2x30xf32>
    %cst_154 = arith.constant 0.000000e+00 : f32
    %180 = vector.broadcast %cst_154 : f32 to vector<2x30xf32>
    %181 = arith.maximumf %179, %180 : vector<2x30xf32>
    %c0_155 = arith.constant 0 : index
    %c540 = arith.constant 540 : index
    %182 = vector.load %arg10[%c0_155, %c540] : memref<2x930xf32, #tpu.memory_space<vmem>>, vector<2x30xf32>
    tpu.vector_store %arg10[%c0_155, %c540], %181 {strides = array<i32>} : memref<2x930xf32, #tpu.memory_space<vmem>>, vector<2x30xf32>,
    %c0_156 = arith.constant 0 : index
    %c190 = arith.constant 190 : index
    %c0_157 = arith.constant 0 : index
    %183 = vector.load %arg8[%c0_156, %c190, %c0_157] : memref<2x311x30xf32, #tpu.memory_space<vmem>>, vector<2x10x30xf32>
    %c0_158 = arith.constant 0 : index
    %c191 = arith.constant 191 : index
    %c0_159 = arith.constant 0 : index
    %184 = vector.load %arg9[%c0_158, %c191, %c0_159] : memref<2x311x30xf32, #tpu.memory_space<vmem>>, vector<2x10x30xf32>
    %185 = arith.addf %183, %184 : vector<2x10x30xf32>
    %cst_160 = arith.constant dense<0xFF800000> : vector<2x30xf32>
    %186 = vector.multi_reduction <maximumf>, %185, %cst_160 [1] : vector<2x10x30xf32> to vector<2x30xf32>
    %187 = vector.broadcast %11 : vector<1x30xf32> to vector<2x30xf32>
    %188 = arith.addf %186, %187 : vector<2x30xf32>
    %cst_161 = arith.constant 0.000000e+00 : f32
    %189 = vector.broadcast %cst_161 : f32 to vector<2x30xf32>
    %190 = arith.maximumf %188, %189 : vector<2x30xf32>
    %c0_162 = arith.constant 0 : index
    %c570 = arith.constant 570 : index
    %191 = vector.load %arg10[%c0_162, %c570] : memref<2x930xf32, #tpu.memory_space<vmem>>, vector<2x30xf32>
    tpu.vector_store %arg10[%c0_162, %c570], %190 {strides = array<i32>} : memref<2x930xf32, #tpu.memory_space<vmem>>, vector<2x30xf32>,
    %c0_163 = arith.constant 0 : index
    %c200 = arith.constant 200 : index
    %c0_164 = arith.constant 0 : index
    %192 = vector.load %arg8[%c0_163, %c200, %c0_164] : memref<2x311x30xf32, #tpu.memory_space<vmem>>, vector<2x10x30xf32>
    %c0_165 = arith.constant 0 : index
    %c201 = arith.constant 201 : index
    %c0_166 = arith.constant 0 : index
    %193 = vector.load %arg9[%c0_165, %c201, %c0_166] : memref<2x311x30xf32, #tpu.memory_space<vmem>>, vector<2x10x30xf32>
    %194 = arith.addf %192, %193 : vector<2x10x30xf32>
    %cst_167 = arith.constant dense<0xFF800000> : vector<2x30xf32>
    %195 = vector.multi_reduction <maximumf>, %194, %cst_167 [1] : vector<2x10x30xf32> to vector<2x30xf32>
    %196 = vector.broadcast %11 : vector<1x30xf32> to vector<2x30xf32>
    %197 = arith.addf %195, %196 : vector<2x30xf32>
    %cst_168 = arith.constant 0.000000e+00 : f32
    %198 = vector.broadcast %cst_168 : f32 to vector<2x30xf32>
    %199 = arith.maximumf %197, %198 : vector<2x30xf32>
    %c0_169 = arith.constant 0 : index
    %c600 = arith.constant 600 : index
    %200 = vector.load %arg10[%c0_169, %c600] : memref<2x930xf32, #tpu.memory_space<vmem>>, vector<2x30xf32>
    tpu.vector_store %arg10[%c0_169, %c600], %199 {strides = array<i32>} : memref<2x930xf32, #tpu.memory_space<vmem>>, vector<2x30xf32>,
    %c0_170 = arith.constant 0 : index
    %c210_171 = arith.constant 210 : index
    %c0_172 = arith.constant 0 : index
    %201 = vector.load %arg8[%c0_170, %c210_171, %c0_172] : memref<2x311x30xf32, #tpu.memory_space<vmem>>, vector<2x10x30xf32>
    %c0_173 = arith.constant 0 : index
    %c211 = arith.constant 211 : index
    %c0_174 = arith.constant 0 : index
    %202 = vector.load %arg9[%c0_173, %c211, %c0_174] : memref<2x311x30xf32, #tpu.memory_space<vmem>>, vector<2x10x30xf32>
    %203 = arith.addf %201, %202 : vector<2x10x30xf32>
    %cst_175 = arith.constant dense<0xFF800000> : vector<2x30xf32>
    %204 = vector.multi_reduction <maximumf>, %203, %cst_175 [1] : vector<2x10x30xf32> to vector<2x30xf32>
    %205 = vector.broadcast %11 : vector<1x30xf32> to vector<2x30xf32>
    %206 = arith.addf %204, %205 : vector<2x30xf32>
    %cst_176 = arith.constant 0.000000e+00 : f32
    %207 = vector.broadcast %cst_176 : f32 to vector<2x30xf32>
    %208 = arith.maximumf %206, %207 : vector<2x30xf32>
    %c0_177 = arith.constant 0 : index
    %c630 = arith.constant 630 : index
    %209 = vector.load %arg10[%c0_177, %c630] : memref<2x930xf32, #tpu.memory_space<vmem>>, vector<2x30xf32>
    tpu.vector_store %arg10[%c0_177, %c630], %208 {strides = array<i32>} : memref<2x930xf32, #tpu.memory_space<vmem>>, vector<2x30xf32>,
    %c0_178 = arith.constant 0 : index
    %c220 = arith.constant 220 : index
    %c0_179 = arith.constant 0 : index
    %210 = vector.load %arg8[%c0_178, %c220, %c0_179] : memref<2x311x30xf32, #tpu.memory_space<vmem>>, vector<2x10x30xf32>
    %c0_180 = arith.constant 0 : index
    %c221 = arith.constant 221 : index
    %c0_181 = arith.constant 0 : index
    %211 = vector.load %arg9[%c0_180, %c221, %c0_181] : memref<2x311x30xf32, #tpu.memory_space<vmem>>, vector<2x10x30xf32>
    %212 = arith.addf %210, %211 : vector<2x10x30xf32>
    %cst_182 = arith.constant dense<0xFF800000> : vector<2x30xf32>
    %213 = vector.multi_reduction <maximumf>, %212, %cst_182 [1] : vector<2x10x30xf32> to vector<2x30xf32>
    %214 = vector.broadcast %11 : vector<1x30xf32> to vector<2x30xf32>
    %215 = arith.addf %213, %214 : vector<2x30xf32>
    %cst_183 = arith.constant 0.000000e+00 : f32
    %216 = vector.broadcast %cst_183 : f32 to vector<2x30xf32>
    %217 = arith.maximumf %215, %216 : vector<2x30xf32>
    %c0_184 = arith.constant 0 : index
    %c660 = arith.constant 660 : index
    %218 = vector.load %arg10[%c0_184, %c660] : memref<2x930xf32, #tpu.memory_space<vmem>>, vector<2x30xf32>
    tpu.vector_store %arg10[%c0_184, %c660], %217 {strides = array<i32>} : memref<2x930xf32, #tpu.memory_space<vmem>>, vector<2x30xf32>,
    %c0_185 = arith.constant 0 : index
    %c230 = arith.constant 230 : index
    %c0_186 = arith.constant 0 : index
    %219 = vector.load %arg8[%c0_185, %c230, %c0_186] : memref<2x311x30xf32, #tpu.memory_space<vmem>>, vector<2x10x30xf32>
    %c0_187 = arith.constant 0 : index
    %c231 = arith.constant 231 : index
    %c0_188 = arith.constant 0 : index
    %220 = vector.load %arg9[%c0_187, %c231, %c0_188] : memref<2x311x30xf32, #tpu.memory_space<vmem>>, vector<2x10x30xf32>
    %221 = arith.addf %219, %220 : vector<2x10x30xf32>
    %cst_189 = arith.constant dense<0xFF800000> : vector<2x30xf32>
    %222 = vector.multi_reduction <maximumf>, %221, %cst_189 [1] : vector<2x10x30xf32> to vector<2x30xf32>
    %223 = vector.broadcast %11 : vector<1x30xf32> to vector<2x30xf32>
    %224 = arith.addf %222, %223 : vector<2x30xf32>
    %cst_190 = arith.constant 0.000000e+00 : f32
    %225 = vector.broadcast %cst_190 : f32 to vector<2x30xf32>
    %226 = arith.maximumf %224, %225 : vector<2x30xf32>
    %c0_191 = arith.constant 0 : index
    %c690 = arith.constant 690 : index
    %227 = vector.load %arg10[%c0_191, %c690] : memref<2x930xf32, #tpu.memory_space<vmem>>, vector<2x30xf32>
    tpu.vector_store %arg10[%c0_191, %c690], %226 {strides = array<i32>} : memref<2x930xf32, #tpu.memory_space<vmem>>, vector<2x30xf32>,
    %c0_192 = arith.constant 0 : index
    %c240_193 = arith.constant 240 : index
    %c0_194 = arith.constant 0 : index
    %228 = vector.load %arg8[%c0_192, %c240_193, %c0_194] : memref<2x311x30xf32, #tpu.memory_space<vmem>>, vector<2x10x30xf32>
    %c0_195 = arith.constant 0 : index
    %c241 = arith.constant 241 : index
    %c0_196 = arith.constant 0 : index
    %229 = vector.load %arg9[%c0_195, %c241, %c0_196] : memref<2x311x30xf32, #tpu.memory_space<vmem>>, vector<2x10x30xf32>
    %230 = arith.addf %228, %229 : vector<2x10x30xf32>
    %cst_197 = arith.constant dense<0xFF800000> : vector<2x30xf32>
    %231 = vector.multi_reduction <maximumf>, %230, %cst_197 [1] : vector<2x10x30xf32> to vector<2x30xf32>
    %232 = vector.broadcast %11 : vector<1x30xf32> to vector<2x30xf32>
    %233 = arith.addf %231, %232 : vector<2x30xf32>
    %cst_198 = arith.constant 0.000000e+00 : f32
    %234 = vector.broadcast %cst_198 : f32 to vector<2x30xf32>
    %235 = arith.maximumf %233, %234 : vector<2x30xf32>
    %c0_199 = arith.constant 0 : index
    %c720 = arith.constant 720 : index
    %236 = vector.load %arg10[%c0_199, %c720] : memref<2x930xf32, #tpu.memory_space<vmem>>, vector<2x30xf32>
    tpu.vector_store %arg10[%c0_199, %c720], %235 {strides = array<i32>} : memref<2x930xf32, #tpu.memory_space<vmem>>, vector<2x30xf32>,
    %c0_200 = arith.constant 0 : index
    %c250 = arith.constant 250 : index
    %c0_201 = arith.constant 0 : index
    %237 = vector.load %arg8[%c0_200, %c250, %c0_201] : memref<2x311x30xf32, #tpu.memory_space<vmem>>, vector<2x10x30xf32>
    %c0_202 = arith.constant 0 : index
    %c251 = arith.constant 251 : index
    %c0_203 = arith.constant 0 : index
    %238 = vector.load %arg9[%c0_202, %c251, %c0_203] : memref<2x311x30xf32, #tpu.memory_space<vmem>>, vector<2x10x30xf32>
    %239 = arith.addf %237, %238 : vector<2x10x30xf32>
    %cst_204 = arith.constant dense<0xFF800000> : vector<2x30xf32>
    %240 = vector.multi_reduction <maximumf>, %239, %cst_204 [1] : vector<2x10x30xf32> to vector<2x30xf32>
    %241 = vector.broadcast %11 : vector<1x30xf32> to vector<2x30xf32>
    %242 = arith.addf %240, %241 : vector<2x30xf32>
    %cst_205 = arith.constant 0.000000e+00 : f32
    %243 = vector.broadcast %cst_205 : f32 to vector<2x30xf32>
    %244 = arith.maximumf %242, %243 : vector<2x30xf32>
    %c0_206 = arith.constant 0 : index
    %c750 = arith.constant 750 : index
    %245 = vector.load %arg10[%c0_206, %c750] : memref<2x930xf32, #tpu.memory_space<vmem>>, vector<2x30xf32>
    tpu.vector_store %arg10[%c0_206, %c750], %244 {strides = array<i32>} : memref<2x930xf32, #tpu.memory_space<vmem>>, vector<2x30xf32>,
    %c0_207 = arith.constant 0 : index
    %c260 = arith.constant 260 : index
    %c0_208 = arith.constant 0 : index
    %246 = vector.load %arg8[%c0_207, %c260, %c0_208] : memref<2x311x30xf32, #tpu.memory_space<vmem>>, vector<2x10x30xf32>
    %c0_209 = arith.constant 0 : index
    %c261 = arith.constant 261 : index
    %c0_210 = arith.constant 0 : index
    %247 = vector.load %arg9[%c0_209, %c261, %c0_210] : memref<2x311x30xf32, #tpu.memory_space<vmem>>, vector<2x10x30xf32>
    %248 = arith.addf %246, %247 : vector<2x10x30xf32>
    %cst_211 = arith.constant dense<0xFF800000> : vector<2x30xf32>
    %249 = vector.multi_reduction <maximumf>, %248, %cst_211 [1] : vector<2x10x30xf32> to vector<2x30xf32>
    %250 = vector.broadcast %11 : vector<1x30xf32> to vector<2x30xf32>
    %251 = arith.addf %249, %250 : vector<2x30xf32>
    %cst_212 = arith.constant 0.000000e+00 : f32
    %252 = vector.broadcast %cst_212 : f32 to vector<2x30xf32>
    %253 = arith.maximumf %251, %252 : vector<2x30xf32>
    %c0_213 = arith.constant 0 : index
    %c780 = arith.constant 780 : index
    %254 = vector.load %arg10[%c0_213, %c780] : memref<2x930xf32, #tpu.memory_space<vmem>>, vector<2x30xf32>
    tpu.vector_store %arg10[%c0_213, %c780], %253 {strides = array<i32>} : memref<2x930xf32, #tpu.memory_space<vmem>>, vector<2x30xf32>,
    %c0_214 = arith.constant 0 : index
    %c270_215 = arith.constant 270 : index
    %c0_216 = arith.constant 0 : index
    %255 = vector.load %arg8[%c0_214, %c270_215, %c0_216] : memref<2x311x30xf32, #tpu.memory_space<vmem>>, vector<2x10x30xf32>
    %c0_217 = arith.constant 0 : index
    %c271 = arith.constant 271 : index
    %c0_218 = arith.constant 0 : index
    %256 = vector.load %arg9[%c0_217, %c271, %c0_218] : memref<2x311x30xf32, #tpu.memory_space<vmem>>, vector<2x10x30xf32>
    %257 = arith.addf %255, %256 : vector<2x10x30xf32>
    %cst_219 = arith.constant dense<0xFF800000> : vector<2x30xf32>
    %258 = vector.multi_reduction <maximumf>, %257, %cst_219 [1] : vector<2x10x30xf32> to vector<2x30xf32>
    %259 = vector.broadcast %11 : vector<1x30xf32> to vector<2x30xf32>
    %260 = arith.addf %258, %259 : vector<2x30xf32>
    %cst_220 = arith.constant 0.000000e+00 : f32
    %261 = vector.broadcast %cst_220 : f32 to vector<2x30xf32>
    %262 = arith.maximumf %260, %261 : vector<2x30xf32>
    %c0_221 = arith.constant 0 : index
    %c810 = arith.constant 810 : index
    %263 = vector.load %arg10[%c0_221, %c810] : memref<2x930xf32, #tpu.memory_space<vmem>>, vector<2x30xf32>
    tpu.vector_store %arg10[%c0_221, %c810], %262 {strides = array<i32>} : memref<2x930xf32, #tpu.memory_space<vmem>>, vector<2x30xf32>,
    %c0_222 = arith.constant 0 : index
    %c280 = arith.constant 280 : index
    %c0_223 = arith.constant 0 : index
    %264 = vector.load %arg8[%c0_222, %c280, %c0_223] : memref<2x311x30xf32, #tpu.memory_space<vmem>>, vector<2x10x30xf32>
    %c0_224 = arith.constant 0 : index
    %c281 = arith.constant 281 : index
    %c0_225 = arith.constant 0 : index
    %265 = vector.load %arg9[%c0_224, %c281, %c0_225] : memref<2x311x30xf32, #tpu.memory_space<vmem>>, vector<2x10x30xf32>
    %266 = arith.addf %264, %265 : vector<2x10x30xf32>
    %cst_226 = arith.constant dense<0xFF800000> : vector<2x30xf32>
    %267 = vector.multi_reduction <maximumf>, %266, %cst_226 [1] : vector<2x10x30xf32> to vector<2x30xf32>
    %268 = vector.broadcast %11 : vector<1x30xf32> to vector<2x30xf32>
    %269 = arith.addf %267, %268 : vector<2x30xf32>
    %cst_227 = arith.constant 0.000000e+00 : f32
    %270 = vector.broadcast %cst_227 : f32 to vector<2x30xf32>
    %271 = arith.maximumf %269, %270 : vector<2x30xf32>
    %c0_228 = arith.constant 0 : index
    %c840 = arith.constant 840 : index
    %272 = vector.load %arg10[%c0_228, %c840] : memref<2x930xf32, #tpu.memory_space<vmem>>, vector<2x30xf32>
    tpu.vector_store %arg10[%c0_228, %c840], %271 {strides = array<i32>} : memref<2x930xf32, #tpu.memory_space<vmem>>, vector<2x30xf32>,
    %c0_229 = arith.constant 0 : index
    %c290 = arith.constant 290 : index
    %c0_230 = arith.constant 0 : index
    %273 = vector.load %arg8[%c0_229, %c290, %c0_230] : memref<2x311x30xf32, #tpu.memory_space<vmem>>, vector<2x10x30xf32>
    %c0_231 = arith.constant 0 : index
    %c291 = arith.constant 291 : index
    %c0_232 = arith.constant 0 : index
    %274 = vector.load %arg9[%c0_231, %c291, %c0_232] : memref<2x311x30xf32, #tpu.memory_space<vmem>>, vector<2x10x30xf32>
    %275 = arith.addf %273, %274 : vector<2x10x30xf32>
    %cst_233 = arith.constant dense<0xFF800000> : vector<2x30xf32>
    %276 = vector.multi_reduction <maximumf>, %275, %cst_233 [1] : vector<2x10x30xf32> to vector<2x30xf32>
    %277 = vector.broadcast %11 : vector<1x30xf32> to vector<2x30xf32>
    %278 = arith.addf %276, %277 : vector<2x30xf32>
    %cst_234 = arith.constant 0.000000e+00 : f32
    %279 = vector.broadcast %cst_234 : f32 to vector<2x30xf32>
    %280 = arith.maximumf %278, %279 : vector<2x30xf32>
    %c0_235 = arith.constant 0 : index
    %c870 = arith.constant 870 : index
    %281 = vector.load %arg10[%c0_235, %c870] : memref<2x930xf32, #tpu.memory_space<vmem>>, vector<2x30xf32>
    tpu.vector_store %arg10[%c0_235, %c870], %280 {strides = array<i32>} : memref<2x930xf32, #tpu.memory_space<vmem>>, vector<2x30xf32>,
    %c0_236 = arith.constant 0 : index
    %c300_237 = arith.constant 300 : index
    %c0_238 = arith.constant 0 : index
    %282 = vector.load %arg8[%c0_236, %c300_237, %c0_238] : memref<2x311x30xf32, #tpu.memory_space<vmem>>, vector<2x10x30xf32>
    %c0_239 = arith.constant 0 : index
    %c301 = arith.constant 301 : index
    %c0_240 = arith.constant 0 : index
    %283 = vector.load %arg9[%c0_239, %c301, %c0_240] : memref<2x311x30xf32, #tpu.memory_space<vmem>>, vector<2x10x30xf32>
    %284 = arith.addf %282, %283 : vector<2x10x30xf32>
    %cst_241 = arith.constant dense<0xFF800000> : vector<2x30xf32>
    %285 = vector.multi_reduction <maximumf>, %284, %cst_241 [1] : vector<2x10x30xf32> to vector<2x30xf32>
    %286 = vector.broadcast %11 : vector<1x30xf32> to vector<2x30xf32>
    %287 = arith.addf %285, %286 : vector<2x30xf32>
    %cst_242 = arith.constant 0.000000e+00 : f32
    %288 = vector.broadcast %cst_242 : f32 to vector<2x30xf32>
    %289 = arith.maximumf %287, %288 : vector<2x30xf32>
    %c0_243 = arith.constant 0 : index
    %c900 = arith.constant 900 : index
    %290 = vector.load %arg10[%c0_243, %c900] : memref<2x930xf32, #tpu.memory_space<vmem>>, vector<2x30xf32>
    tpu.vector_store %arg10[%c0_243, %c900], %289 {strides = array<i32>} : memref<2x930xf32, #tpu.memory_space<vmem>>, vector<2x30xf32>,
    %c0_244 = arith.constant 0 : index
    %c0_245 = arith.constant 0 : index
    %291 = vector.load %arg10[%c0_244, %c0_245] : memref<2x930xf32, #tpu.memory_space<vmem>>, vector<2x930xf32>
    %c0_246 = arith.constant 0 : index
    %c0_247 = arith.constant 0 : index
    %292 = vector.load %arg5[%c0_246, %c0_247] : memref<930x35xf32, #tpu.memory_space<vmem>>, vector<930x35xf32>
    %cst_248 = arith.constant dense<0.000000e+00> : vector<2x35xf32>
    %293 = tpu.matmul %291, %292, %cst_248 {dimension_numbers = #tpu.dot_dimension_numbers<[1], [0], [0], [1], [0, 0, 1, 1], [], []>} : vector<2x930xf32>, vector<930x35xf32>, vector<2x35xf32> -> vector<2x35xf32>
    %c0_249 = arith.constant 0 : index
    %c0_250 = arith.constant 0 : index
    %294 = vector.load %arg6[%c0_249, %c0_250] : memref<1x35xf32, #tpu.memory_space<vmem>>, vector<1x35xf32>
    %295 = vector.broadcast %294 : vector<1x35xf32> to vector<2x35xf32>
    %296 = arith.addf %293, %295 : vector<2x35xf32>
    %cst_251 = arith.constant dense<0xFF800000> : vector<2xf32>
    %297 = vector.multi_reduction <maximumf>, %296, %cst_251 [1] : vector<2x35xf32> to vector<2xf32>
    %298 = vector.shape_cast %297 : vector<2xf32> to vector<2x1xf32>
    %299 = vector.broadcast %298 : vector<2x1xf32> to vector<2x35xf32>
    %300 = arith.subf %296, %299 : vector<2x35xf32>
    %301 = math.exp %300 : vector<2x35xf32>
    %cst_252 = arith.constant dense<0.000000e+00> : vector<2xf32>
    %302 = vector.multi_reduction <add>, %301, %cst_252 [1] : vector<2x35xf32> to vector<2xf32>
    %303 = vector.shape_cast %302 : vector<2xf32> to vector<2x1xf32>
    %304 = math.log %303 : vector<2x1xf32>
    %305 = vector.broadcast %304 : vector<2x1xf32> to vector<2x35xf32>
    %306 = arith.subf %300, %305 : vector<2x35xf32>
    %c0_253 = arith.constant 0 : index
    %c0_254 = arith.constant 0 : index
    %307 = vector.load %arg7[%c0_253, %c0_254] : memref<2x35xf32, #tpu.memory_space<vmem>>, vector<2x35xf32>
    tpu.vector_store %arg7[%c0_253, %c0_254], %306 {strides = array<i32>} : memref<2x35xf32, #tpu.memory_space<vmem>>, vector<2x35xf32>,
    return
  }
  func.func @transform_0(%arg0: i32) -> (i32, i32, i32) {
    %c0_i32 = arith.constant 0 : i32
    %c0_i32_0 = arith.constant 0 : i32
    %c0_i32_1 = arith.constant 0 : i32
    return %arg0, %c0_i32, %c0_i32_0 : i32, i32, i32
  }
  func.func @transform_1(%arg0: i32) -> (i32, i32) {
    %c0_i32 = arith.constant 0 : i32
    %c0_i32_0 = arith.constant 0 : i32
    %c0_i32_1 = arith.constant 0 : i32
    return %c0_i32, %c0_i32_0 : i32, i32
  }
  func.func @transform_2(%arg0: i32) -> (i32, i32) {
    %c0_i32 = arith.constant 0 : i32
    %c0_i32_0 = arith.constant 0 : i32
    %c0_i32_1 = arith.constant 0 : i32
    return %c0_i32, %c0_i32_0 : i32, i32
  }
  func.func @transform_3(%arg0: i32) -> (i32, i32) {
    %c0_i32 = arith.constant 0 : i32
    %c0_i32_0 = arith.constant 0 : i32
    %c0_i32_1 = arith.constant 0 : i32
    return %c0_i32, %c0_i32_0 : i32, i32
  }
  func.func @transform_4(%arg0: i32) -> (i32, i32) {
    %c0_i32 = arith.constant 0 : i32
    %c0_i32_0 = arith.constant 0 : i32
    %c0_i32_1 = arith.constant 0 : i32
    return %c0_i32, %c0_i32_0 : i32, i32
  }
  func.func @transform_5(%arg0: i32) -> (i32, i32) {
    %c0_i32 = arith.constant 0 : i32
    %c0_i32_0 = arith.constant 0 : i32
    %c0_i32_1 = arith.constant 0 : i32
    return %c0_i32, %c0_i32_0 : i32, i32
  }
  func.func @transform_6(%arg0: i32) -> (i32, i32) {
    %c0_i32 = arith.constant 0 : i32
    %c0_i32_0 = arith.constant 0 : i32
    return %arg0, %c0_i32 : i32, i32
  }
}

</mosaic_0001>

<bundles_post_ra>
// kernel: squeeze.3
= control target key start
LH: loop header
LB: loop body
LE: loop exit
PB: predicated region body
PF: predicated region fallthrough
CT: control target
= control target key end

     0   :  { %s4460_s10 = smov 3  ;;  %s4468_s15 = smov 3  ;;  %vm640_vm0 = vcmask 1043458   ;;  %vm645_vm1 = vcmask 1045508   ;;  %vm650_vm2 = vcmask 1047558   ;;  %vm612_vm3 = vcmask 408576   ;;  %s6978_s0 = inlined_call_operand.vmem [shape: f32[2,15550], index: 0, kind: input, shape index: {}]   ;;  %s6979_s1 = inlined_call_operand.vmem [shape: f32[2,311,50], index: 1, kind: output, shape index: {}]  }
   0x1   :  { %v3775_v0 = vld [vmem:[%s6978_s0 + $0xe8] sm:$0x3]  ;;  %v3784_v1 = vld [vmem:[%s6978_s0 + $0xd6] sm:$0x3]  ;;  %v3777_v2 = vld [vmem:[%s6978_s0 + $0xe4] sm:$0x3] }
   0x2   :  { %34 = vst [vmem:[#allocation0 + $0x3a0] sm:$0x3] %v3775_v0  ;;  %79 = vst [vmem:[#allocation0 + $0x358] sm:$0x3] %v3784_v1  ;;  %v3809_v3 = vld [vmem:[%s6978_s0 + $0xa4] sm:$0x3] }
   0x3   :  { %44 = vst [vmem:[#allocation0 + $0x390] sm:$0x3] %v3777_v2  ;;  %204 = vst [vmem:[#allocation0 + $0x290] sm:$0x3] %v3809_v3  ;;  %v3834_v4 = vld [vmem:[%s6978_s0 + $0x72] sm:$0x3] }
   0x4   :  { %v3859_v5 = vld [vmem:[%s6978_s0 + $0x40] sm:$0x3]  ;;  %329 = vst [vmem:[#allocation0 + $0x1c8] sm:$0x3] %v3834_v4  ;;  %v3884_v6 = vld [vmem:[%s6978_s0 + $0xe] sm:$0x3] }
   0x5   :  { %454 = vst [vmem:[#allocation0 + $0x100] sm:$0x3] %v3859_v5  ;;  %579 = vst [vmem:[#allocation0 + $0x38] sm:$0x3] %v3884_v6  ;;  %s4479_s22 = smov 3  ;;  %s4481_s23 = smov 12 }
   0x6   :  { %v3800_v7 = vld [vmem:[%s6978_s0 + $0xb6] sm:$0x3]  ;;  %v3825_v8 = vld [vmem:[%s6978_s0 + $0x84] sm:$0x3]  ;;  %s4489_s28 = smov 48  ;;  %s4491_s29 = smov 192 }
   0x7   :  { %159 = vst [vmem:[#allocation0 + $0x2d8] sm:$0x3] %v3800_v7  ;;  %284 = vst [vmem:[#allocation0 + $0x210] sm:$0x3] %v3825_v8  ;;  %v3850_v9 = vld [vmem:[%s6978_s0 + $0x52] sm:$0x3] }
   0x8   :  { %v3875_v10 = vld [vmem:[%s6978_s0 + $0x20] sm:$0x3]  ;;  %409 = vst [vmem:[#allocation0 + $0x148] sm:$0x3] %v3850_v9  ;;  %s4499_s5 = smov 3  ;;  %s4501_s6 = smov 12 }
   0x9   :  { %534 = vst [vmem:[#allocation0 + $0x80] sm:$0x3] %v3875_v10  ;;  %v3802_v11 = vld [vmem:[%s6978_s0 + $0xb2] sm:$0x3]  ;;  %v3827_v12 = vld [vmem:[%s6978_s0 + $0x80] sm:$0x3] }
   0xa   :  { %169 = vst [vmem:[#allocation0 + $0x2c8] sm:$0x3] %v3802_v11  ;;  %294 = vst [vmem:[#allocation0 + $0x200] sm:$0x3] %v3827_v12  ;;  %v3852_v13 = vld [vmem:[%s6978_s0 + $0x4e] sm:$0x3] }
   0xb   :  { %v3877_v14 = vld [vmem:[%s6978_s0 + $0x1c] sm:$0x3]  ;;  %v3793_v15 = vld [vmem:[%s6978_s0 + $0xc4] sm:$0x3]  ;;  %v702_v17 = vld [vmem:[#allocation0 + $0x359] ss:$-1 sm:%s4468_s15]  }
   0xc   :  { %v665_v16 = vld [vmem:[#allocation0 + $0x3a1] ss:$-1 sm:%s4460_s10]   ;;  %419 = vst [vmem:[#allocation0 + $0x138] sm:$0x3] %v3852_v13  ;;  %544 = vst [vmem:[#allocation0 + $0x70] sm:$0x3] %v3877_v14 }
   0xd   :  { %124 = vst [vmem:[#allocation0 + $0x310] sm:$0x3] %v3793_v15  ;;  %v3818_v18 = vld [vmem:[%s6978_s0 + $0x92] sm:$0x3]  ;;  %s4381_s19 = smov 126   ;;  %s4382_s20 = smov 124  }
   0xe   :  { %666 = vrot.lane.b32.xlu0 %v665_v16, %s4381_s19  ;;  %703 = vrot.lane.b32.xlu1 %v702_v17, %s4382_s20  ;;  %v763_v19 = vld [vmem:[#allocation0 + $0x390] sm:$0x3]   ;;  %s643_s21 = smov 48  ;;  %s648_s24 = smov 192  ;;  %249 = vst [vmem:[#allocation0 + $0x248] sm:$0x3] %v3818_v18 }
   0xf   :  { %v3843_v20 = vld [vmem:[%s6978_s0 + $0x60] sm:$0x3]  ;;  %v681_v22 = vld [vmem:[#allocation0 + $0x1cd] ss:$-1 sm:%s4489_s28]   ;;  %v3868_v23 = vld [vmem:[%s6978_s0 + $0x2e] sm:$0x3] }
  0x10   :  { %v676_v21 = vld [vmem:[#allocation0 + $0x103] ss:$-1 sm:%s4481_s23]   ;;  %374 = vst [vmem:[#allocation0 + $0x180] sm:$0x3] %v3843_v20  ;;  %v673_v24 = vld [vmem:[#allocation0 + $0x39] ss:$-1 sm:%s4479_s22]  }
  0x11   :  { %v686_v25 = vld [vmem:[#allocation0 + $0x297] ss:$-1 sm:%s4491_s29]   ;;  %499 = vst [vmem:[#allocation0 + $0xb8] sm:$0x3] %v3868_v23  ;;  %v3811_v26 = vld [vmem:[%s6978_s0 + $0xa0] sm:$0x3]  ;;  %v678_v27 = vsel %vm640_vm0, %v676_v21, %v673_v24 }
  0x12   :  { %v644_v28 = vld [vmem:[#allocation0 + $0x215] ss:$-1 sm:%s643_s21]   ;;  %v649_v29 = vld [vmem:[#allocation0 + $0x2df] ss:$-1 sm:%s648_s24]   ;;  %s4539_s29 = smov 3  ;;  %s712_s30 = smov 12  ;;  %v683_v30 = vsel %vm645_vm1, %v681_v22, %v678_v27 }
  0x13   :  { %214 = vst [vmem:[#allocation0 + $0x280] sm:$0x3] %v3811_v26  ;;  %s4383_s2 = smov 120   ;;  %v636_v31 = vld [vmem:[#allocation0 + $0x81] ss:$-1 sm:%s4499_s5]   ;;  %s717_s3 = smov 48  ;;  %v688_v33 = vsel %vm650_vm2, %v686_v25, %v683_v30 }
  0x14   :  { %764 = vrot.lane.b32.xlu0 %v763_v19, %s4383_s2  ;;  %v639_v32 = vld [vmem:[#allocation0 + $0x14b] ss:$-1 sm:%s4501_s6]   ;;  %s722_s4 = smov 192  ;;  %v744_v35 = vld [vmem:[#allocation0 + $0x1fc] sm:$0x30]   ;;  %s4550_s7 = smov 3  ;;  %689 = vrot.lane.b32.xlu1 %v688_v33, %s4382_s20 }
  0x15   :  { %v641_v34 = vsel %vm640_vm0, %v639_v32, %v636_v31  ;;  %v3836_v36 = vld [vmem:[%s6978_s0 + $0x6e] sm:$0x3]  ;;  %v738_v38 = vld [vmem:[#allocation0 + $0x70] sm:$0x3]   ;;  %v740_v39 = vld [vmem:[#allocation0 + $0x136] sm:$0xc]  }
  0x16   :  { %v646_v37 = vsel %vm645_vm1, %v644_v28, %v641_v34  ;;  %v748_v40 = vld [vmem:[#allocation0 + $0x2c2] sm:$0xc0]   ;;  %339 = vst [vmem:[#allocation0 + $0x1b8] sm:$0x3] %v3836_v36  ;;  %v742_v42 = vsel %vm640_vm0, %v740_v39, %v738_v38  ;;  %v723_v43 = vld [vmem:[#allocation0 + $0x317] ss:$-1 sm:%s722_s4]  }
  0x17   :  { %v651_v41 = vsel %vm650_vm2, %v649_v29, %v646_v37  ;;  %v3861_v44 = vld [vmem:[%s6978_s0 + $0x3c] sm:$0x3]  ;;  %v3886_v45 = vld [vmem:[%s6978_s0 + $0xa] sm:$0x3]  ;;  %v746_v46 = vsel %vm645_vm1, %v744_v35, %v742_v42  ;;  %v3786_v49 = vld [vmem:[%s6978_s0 + $0xd2] sm:$0x3] }
  0x18   :  { %652 = vrot.lane.b32.xlu0 %v651_v41, %s4381_s19  ;;  %v713_v47 = vld [vmem:[#allocation0 + $0x183] ss:$-1 sm:%s712_s30]   ;;  %v718_v48 = vld [vmem:[#allocation0 + $0x24d] ss:$-1 sm:%s717_s3]   ;;  %464 = vst [vmem:[#allocation0 + $0xf0] sm:$0x3] %v3861_v44  ;;  %v750_v50 = vsel %vm650_vm2, %v748_v40, %v746_v46 }
  0x19   :  { %589 = vst [vmem:[#allocation0 + $0x28] sm:$0x3] %v3886_v45  ;;  %v710_v51 = vld [vmem:[#allocation0 + $0xb9] ss:$-1 sm:%s4539_s29]   ;;  %s4569_s16 = smov 12  ;;  %s778_s17 = smov 48  ;;  %751 = vrot.lane.b32.xlu1 %v750_v50, %s4383_s2 }
  0x1a   :  { %89 = vst [vmem:[#allocation0 + $0x348] sm:$0x3] %v3786_v49  ;;  %v3795_v52 = vld [vmem:[%s6978_s0 + $0xc0] sm:$0x3]  ;;  %v715_v53 = vsel %vm640_vm0, %v713_v47, %v710_v51  ;;  %s783_s15 = smov 192  ;;  %s4580_s21 = smov 3 }
  0x1b   :  { %134 = vst [vmem:[#allocation0 + $0x300] sm:$0x3] %v3795_v52  ;;  %v3820_v54 = vld [vmem:[%s6978_s0 + $0x8e] sm:$0x3]  ;;  %v720_v55 = vsel %vm645_vm1, %v718_v48, %v715_v53  ;;  %v3845_v56 = vld [vmem:[%s6978_s0 + $0x5c] sm:$0x3] }
  0x1c   :  { %259 = vst [vmem:[#allocation0 + $0x238] sm:$0x3] %v3820_v54  ;;  %v3870_v57 = vld [vmem:[%s6978_s0 + $0x2a] sm:$0x3]  ;;  %s4588_s27 = smov 3  ;;  %v725_v58 = vsel %vm650_vm2, %v723_v43, %v720_v55  ;;  %s4591_s22 = smov 12 }
  0x1d   :  { %384 = vst [vmem:[#allocation0 + $0x170] sm:$0x3] %v3845_v56  ;;  %509 = vst [vmem:[#allocation0 + $0xa8] sm:$0x3] %v3870_v57  ;;  %s4593_s28 = smov 48  ;;  %s4384_s4 = smov 122  }
  0x1e   :  { %v3770_v59 = vld [vmem:[%s6978_s0 + $0xf2] sm:$0x3]  ;;  %v3804_v60 = vld [vmem:[%s6978_s0 + $0xae] sm:$0x3]  ;;  %726 = vrot.lane.b32.xlu0 %v725_v58, %s4384_s4  ;;  %v779_v61 = vld [vmem:[#allocation0 + $0x1bd] ss:$-1 sm:%s778_s17]  }
  0x1f   :  { %v784_v62 = vld [vmem:[#allocation0 + $0x287] ss:$-1 sm:%s783_s15]   ;;  %s4601_s5 = smov 192  ;;  %9 = vst [vmem:[#allocation0 + $0x3c8] sm:$0x3] %v3770_v59  ;;  %s4606_s9 = smov 3 }
  0x20   :  { %179 = vst [vmem:[#allocation0 + $0x2b8] sm:$0x3] %v3804_v60  ;;  %v3829_v63 = vld [vmem:[%s6978_s0 + $0x7c] sm:$0x3]  ;;  %v3854_v0 = vld [vmem:[%s6978_s0 + $0x4a] sm:$0x3] }
  0x21   :  { %304 = vst [vmem:[#allocation0 + $0x1f0] sm:$0x3] %v3829_v63  ;;  %v3879_v1 = vld [vmem:[%s6978_s0 + $0x18] sm:$0x3]  ;;  %s4614_s17 = smov 3  ;;  %s857_s18 = smov 192 }
  0x22   :  { %v771_v2 = vld [vmem:[#allocation0 + $0x29] ss:$-1 sm:%s4550_s7]   ;;  %v774_v3 = vld [vmem:[#allocation0 + $0xf3] ss:$-1 sm:%s4569_s16]   ;;  %429 = vst [vmem:[#allocation0 + $0x128] sm:$0x3] %v3854_v0 }
  0x23   :  { %554 = vst [vmem:[#allocation0 + $0x60] sm:$0x3] %v3879_v1  ;;  %s4618_s7 = smov 12  ;;  %s4620_s16 = smov 48  ;;  %v776_v4 = vsel %vm640_vm0, %v774_v3, %v771_v2  ;;  %v800_v5 = vld [vmem:[#allocation0 + $0x349] ss:$-1 sm:%s4580_s21]  }
  0x24   :  { %v3779_v6 = vld [vmem:[%s6978_s0 + $0xe0] sm:$0x3]  ;;  %v781_v7 = vsel %vm645_vm1, %v779_v61, %v776_v4  ;;  %s4385_s19 = smov 118   ;;  %s4628_s20 = smov 3  ;;  %v3813_v8 = vld [vmem:[%s6978_s0 + $0x9c] sm:$0x3] }
  0x25   :  { %801 = vrot.lane.b32.xlu0 %v800_v5, %s4385_s19  ;;  %54 = vst [vmem:[#allocation0 + $0x380] sm:$0x3] %v3779_v6  ;;  %v3838_v9 = vld [vmem:[%s6978_s0 + $0x6a] sm:$0x3]  ;;  %s4636_s23 = smov 3  ;;  %v786_v10 = vsel %vm650_vm2, %v784_v62, %v781_v7  ;;  %s4386_s3 = smov 116  }
  0x26   :  { %v816_v11 = vld [vmem:[#allocation0 + $0x23d] ss:$-1 sm:%s4593_s28]   ;;  %224 = vst [vmem:[#allocation0 + $0x270] sm:$0x3] %v3813_v8  ;;  %349 = vst [vmem:[#allocation0 + $0x1a8] sm:$0x3] %v3838_v9  ;;  %787 = vrot.lane.b32.xlu1 %v786_v10, %s4385_s19 }
  0x27   :  { %v3863_v12 = vld [vmem:[%s6978_s0 + $0x38] sm:$0x3]  ;;  %v3888_v13 = vld [vmem:[%s6978_s0 + $0x6] sm:$0x3]  ;;  %v811_v15 = vld [vmem:[#allocation0 + $0x173] ss:$-1 sm:%s4591_s22]  }
  0x28   :  { %v808_v14 = vld [vmem:[#allocation0 + $0xa9] ss:$-1 sm:%s4588_s27]   ;;  %474 = vst [vmem:[#allocation0 + $0xe0] sm:$0x3] %v3863_v12  ;;  %599 = vst [vmem:[#allocation0 + $0x18] sm:$0x3] %v3888_v13 }
  0x29   :  { %v821_v16 = vld [vmem:[#allocation0 + $0x307] ss:$-1 sm:%s4601_s5]   ;;  %v813_v17 = vsel %vm640_vm0, %v811_v15, %v808_v14  ;;  %v858_v19 = vld [vmem:[#allocation0 + $0x2bf] ss:$-1 sm:%s857_s18]   ;;  %s4651_s27 = smov 12  ;;  %s889_s22 = smov 48 }
  0x2a   :  { %v837_v18 = vld [vmem:[#allocation0 + $0x3c9] ss:$-1 sm:%s4606_s9]   ;;  %v818_v20 = vsel %vm645_vm1, %v816_v11, %v813_v17  ;;  %v853_v21 = vld [vmem:[#allocation0 + $0x1f5] ss:$-1 sm:%s4620_s16]   ;;  %s894_s4 = smov 192  ;;  %s4676_s16 = smov 3 }
  0x2b   :  { %838 = vrot.lane.b32.xlu0 %v837_v18, %s4386_s3  ;;  %v3788_v22 = vld [vmem:[%s6978_s0 + $0xce] sm:$0x3]  ;;  %v823_v23 = vsel %vm650_vm2, %v821_v16, %v818_v20  ;;  %v845_v24 = vld [vmem:[#allocation0 + $0x61] ss:$-1 sm:%s4614_s17]   ;;  %v848_v25 = vld [vmem:[#allocation0 + $0x12b] ss:$-1 sm:%s4618_s7]  }
  0x2c   :  { %99 = vst [vmem:[#allocation0 + $0x338] sm:$0x3] %v3788_v22  ;;  %v3797_v26 = vld [vmem:[%s6978_s0 + $0xbc] sm:$0x3]  ;;  %824 = vrot.lane.b32.xlu1 %v823_v23, %s4386_s3  ;;  %v850_v27 = vsel %vm640_vm0, %v848_v25, %v845_v24  ;;  %v3822_v28 = vld [vmem:[%s6978_s0 + $0x8a] sm:$0x3] }
  0x2d   :  { %144 = vst [vmem:[#allocation0 + $0x2f0] sm:$0x3] %v3797_v26  ;;  %v3847_v29 = vld [vmem:[%s6978_s0 + $0x58] sm:$0x3]  ;;  %v3872_v30 = vld [vmem:[%s6978_s0 + $0x26] sm:$0x3]  ;;  %v855_v31 = vsel %vm645_vm1, %v853_v21, %v850_v27 }
  0x2e   :  { %v874_v32 = vld [vmem:[#allocation0 + $0x381] ss:$-1 sm:%s4628_s20]   ;;  %269 = vst [vmem:[#allocation0 + $0x228] sm:$0x3] %v3822_v28  ;;  %394 = vst [vmem:[#allocation0 + $0x160] sm:$0x3] %v3847_v29  ;;  %v860_v34 = vsel %vm650_vm2, %v858_v19, %v855_v31 }
  0x2f   :  { %519 = vst [vmem:[#allocation0 + $0x98] sm:$0x3] %v3872_v30  ;;  %s4678_s18 = smov 3  ;;  %v3772_v33 = vld [vmem:[%s6978_s0 + $0xee] sm:$0x3]  ;;  %s4387_s19 = smov 114  }
  0x30   :  { %875 = vrot.lane.b32.xlu0 %v874_v32, %s4387_s19  ;;  %v890_v35 = vld [vmem:[#allocation0 + $0x1ad] ss:$-1 sm:%s889_s22]   ;;  %v895_v36 = vld [vmem:[#allocation0 + $0x277] ss:$-1 sm:%s894_s4]   ;;  %s4684_s20 = smov 12  ;;  %s4686_s21 = smov 48  ;;  %861 = vrot.lane.b32.xlu1 %v860_v34, %s4387_s19 }
  0x31   :  { %19 = vst [vmem:[#allocation0 + $0x3b8] sm:$0x3] %v3772_v33  ;;  %v882_v37 = vld [vmem:[#allocation0 + $0x19] ss:$-1 sm:%s4636_s23]   ;;  %v885_v38 = vld [vmem:[#allocation0 + $0xe3] ss:$-1 sm:%s4651_s27]  }
  0x32   :  { %s931_s24 = smov 192  ;;  %v887_v39 = vsel %vm640_vm0, %v885_v38, %v882_v37  ;;  %v3806_v40 = vld [vmem:[%s6978_s0 + $0xaa] sm:$0x3]  ;;  %v3831_v41 = vld [vmem:[%s6978_s0 + $0x78] sm:$0x3]  ;;  %s947_s2 = smov 3 }
  0x33   :  { %v3856_v42 = vld [vmem:[%s6978_s0 + $0x46] sm:$0x3]  ;;  %v892_v43 = vsel %vm645_vm1, %v890_v35, %v887_v39  ;;  %189 = vst [vmem:[#allocation0 + $0x2a8] sm:$0x3] %v3806_v40  ;;  %314 = vst [vmem:[#allocation0 + $0x1e0] sm:$0x3] %v3831_v41 }
  0x34   :  { %439 = vst [vmem:[#allocation0 + $0x118] sm:$0x3] %v3856_v42  ;;  %v3881_v44 = vld [vmem:[%s6978_s0 + $0x14] sm:$0x3]  ;;  %s4704_s3 = smov 3  ;;  %v897_v46 = vsel %vm650_vm2, %v895_v36, %v892_v43  ;;  %s4711_s6 = smov 12 }
  0x35   :  { %v3781_v45 = vld [vmem:[%s6978_s0 + $0xdc] sm:$0x3]  ;;  %v911_v47 = vld [vmem:[#allocation0 + $0x339] ss:$-1 sm:%s4676_s16]   ;;  %564 = vst [vmem:[#allocation0 + $0x50] sm:$0x3] %v3881_v44 }
  0x36   :  { %s4713_s8 = smov 48  ;;  %64 = vst [vmem:[#allocation0 + $0x370] sm:$0x3] %v3781_v45  ;;  %v3815_v48 = vld [vmem:[%s6978_s0 + $0x98] sm:$0x3]  ;;  %s4388_s12 = smov 112  }
  0x37   :  { %912 = vrot.lane.b32.xlu0 %v911_v47, %s4388_s12  ;;  %v932_v49 = vld [vmem:[#allocation0 + $0x2f7] ss:$-1 sm:%s931_s24]   ;;  %s4718_s13 = smov 192  ;;  %s4720_s14 = smov 3  ;;  %234 = vst [vmem:[#allocation0 + $0x260] sm:$0x3] %v3815_v48  ;;  %898 = vrot.lane.b32.xlu1 %v897_v46, %s4388_s12 }
  0x38   :  { %v3840_v50 = vld [vmem:[%s6978_s0 + $0x66] sm:$0x3]  ;;  %v919_v51 = vld [vmem:[#allocation0 + $0x99] ss:$-1 sm:%s4678_s18]   ;;  %v922_v52 = vld [vmem:[#allocation0 + $0x163] ss:$-1 sm:%s4684_s20]  }
  0x39   :  { %v927_v53 = vld [vmem:[#allocation0 + $0x22d] ss:$-1 sm:%s4686_s21]   ;;  %359 = vst [vmem:[#allocation0 + $0x198] sm:$0x3] %v3840_v50  ;;  %v924_v54 = vsel %vm640_vm0, %v922_v52, %v919_v51  ;;  %v948_v55 = vld [vmem:[#allocation0 + $0x3b9] ss:$-1 sm:%s947_s2]  }
  0x3a   :  { %v3865_v56 = vld [vmem:[%s6978_s0 + $0x34] sm:$0x3]  ;;  %v3890_v57 = vld [vmem:[%s6978_s0 + $0x2] sm:$0x3]  ;;  %v929_v58 = vsel %vm645_vm1, %v927_v53, %v924_v54  ;;  %v3790_v59 = vld [vmem:[%s6978_s0 + $0xca] sm:$0x3] }
  0x3b   :  { %484 = vst [vmem:[#allocation0 + $0xd0] sm:$0x3] %v3865_v56  ;;  %608 = vst [vmem:[#allocation0 + $0x8] sm:$0x3] %v3890_v57  ;;  %v3799_v60 = vld [vmem:[%s6978_s0 + $0xb8] sm:$0x3]  ;;  %v934_v62 = vsel %vm650_vm2, %v932_v49, %v929_v58 }
  0x3c   :  { %v3824_v61 = vld [vmem:[%s6978_s0 + $0x86] sm:$0x3]  ;;  %s4389_s23 = smov 110   ;;  %109 = vst [vmem:[#allocation0 + $0x328] sm:$0x3] %v3790_v59  ;;  %s4754_s27 = smov 3 }
  0x3d   :  { %949 = vrot.lane.b32.xlu0 %v948_v55, %s4389_s23  ;;  %154 = vst [vmem:[#allocation0 + $0x2e0] sm:$0x3] %v3799_v60  ;;  %279 = vst [vmem:[#allocation0 + $0x218] sm:$0x3] %v3824_v61  ;;  %v3849_v63 = vld [vmem:[%s6978_s0 + $0x54] sm:$0x3]  ;;  %935 = vrot.lane.b32.xlu1 %v934_v62, %s4389_s23 }
  0x3e   :  { %v3874_v0 = vld [vmem:[%s6978_s0 + $0x22] sm:$0x3]  ;;  %v959_v1 = vld [vmem:[#allocation0 + $0x11b] ss:$-1 sm:%s4711_s6]   ;;  %404 = vst [vmem:[#allocation0 + $0x150] sm:$0x3] %v3849_v63 }
  0x3f   :  { %v964_v2 = vld [vmem:[#allocation0 + $0x1e5] ss:$-1 sm:%s4713_s8]   ;;  %529 = vst [vmem:[#allocation0 + $0x88] sm:$0x3] %v3874_v0  ;;  %s4756_s22 = smov 12  ;;  %s4762_s4 = smov 192 }
  0x40   :  { %v956_v3 = vld [vmem:[#allocation0 + $0x51] ss:$-1 sm:%s4704_s3]   ;;  %s1032_s3 = smov 48  ;;  %s4390_s8 = smov 108   ;;  %v1002_v9 = vld [vmem:[#allocation0 + $0x25a] sm:$0xc0]  }
  0x41   :  { %v969_v4 = vld [vmem:[#allocation0 + $0x2af] ss:$-1 sm:%s4718_s13]   ;;  %v961_v6 = vsel %vm640_vm0, %v959_v1, %v956_v3  ;;  %s4768_s9 = smov 3  ;;  %v3808_v10 = vld [vmem:[%s6978_s0 + $0xa6] sm:$0x3]  ;;  %s4783_s10 = smov 3 }
  0x42   :  { %v985_v5 = vld [vmem:[#allocation0 + $0x371] ss:$-1 sm:%s4720_s14]   ;;  %v966_v8 = vsel %vm645_vm1, %v964_v2, %v961_v6  ;;  %v3833_v11 = vld [vmem:[%s6978_s0 + $0x74] sm:$0x3]  ;;  %v998_v13 = vld [vmem:[#allocation0 + $0x194] sm:$0x30]  }
  0x43   :  { %v3774_v7 = vld [vmem:[%s6978_s0 + $0xea] sm:$0x3]  ;;  %986 = vrot.lane.b32.xlu0 %v985_v5, %s4390_s8  ;;  %v971_v12 = vsel %vm650_vm2, %v969_v4, %v966_v8  ;;  %199 = vst [vmem:[#allocation0 + $0x298] sm:$0x3] %v3808_v10  ;;  %324 = vst [vmem:[#allocation0 + $0x1d0] sm:$0x3] %v3833_v11 }
  0x44   :  { %29 = vst [vmem:[#allocation0 + $0x3a8] sm:$0x3] %v3774_v7  ;;  %v3858_v14 = vld [vmem:[%s6978_s0 + $0x42] sm:$0x3]  ;;  %v3883_v15 = vld [vmem:[%s6978_s0 + $0x10] sm:$0x3]  ;;  %972 = vrot.lane.b32.xlu1 %v971_v12, %s4390_s8 }
  0x45   :  { %v992_v16 = vld [vmem:[#allocation0 + $0x8] sm:$0x3]   ;;  %v994_v17 = vld [vmem:[#allocation0 + $0xce] sm:$0xc]   ;;  %449 = vst [vmem:[#allocation0 + $0x108] sm:$0x3] %v3858_v14 }
  0x46   :  { %574 = vst [vmem:[#allocation0 + $0x40] sm:$0x3] %v3883_v15  ;;  %s4785_s15 = smov 12  ;;  %v996_v18 = vsel %vm640_vm0, %v994_v17, %v992_v16  ;;  %v1017_v19 = vld [vmem:[#allocation0 + $0x328] sm:$0x3]   ;;  %s4788_s19 = smov 48 }
  0x47   :  { %v1033_v20 = vld [vmem:[#allocation0 + $0x21d] ss:$-1 sm:%s1032_s3]   ;;  %s4790_s20 = smov 192  ;;  %v1000_v21 = vsel %vm645_vm1, %v998_v13, %v996_v18  ;;  %s4391_s21 = smov 106   ;;  %v1025_v22 = vld [vmem:[#allocation0 + $0x89] ss:$-1 sm:%s4754_s27]  }
  0x48   :  { %1018 = vrot.lane.b32.xlu0 %v1017_v19, %s4391_s21  ;;  %v1028_v23 = vld [vmem:[#allocation0 + $0x153] ss:$-1 sm:%s4756_s22]   ;;  %v1038_v24 = vld [vmem:[#allocation0 + $0x2e7] ss:$-1 sm:%s4762_s4]   ;;  %v1004_v25 = vsel %vm650_vm2, %v1002_v9, %v1000_v21  ;;  %v3783_v27 = vld [vmem:[%s6978_s0 + $0xd8] sm:$0x3] }
  0x49   :  { %v1030_v26 = vsel %vm640_vm0, %v1028_v23, %v1025_v22  ;;  %v3792_v28 = vld [vmem:[%s6978_s0 + $0xc6] sm:$0x3]  ;;  %v3817_v29 = vld [vmem:[%s6978_s0 + $0x94] sm:$0x3]  ;;  %1005 = vrot.lane.b32.xlu1 %v1004_v25, %s4391_s21  ;;  %74 = vst [vmem:[#allocation0 + $0x360] sm:$0x3] %v3783_v27 }
  0x4a   :  { %v1035_v30 = vsel %vm645_vm1, %v1033_v20, %v1030_v26  ;;  %s4808_s30 = smov 3  ;;  %119 = vst [vmem:[#allocation0 + $0x318] sm:$0x3] %v3792_v28  ;;  %244 = vst [vmem:[#allocation0 + $0x250] sm:$0x3] %v3817_v29  ;;  %s4818_s4 = smov 3 }
  0x4b   :  { %v3842_v31 = vld [vmem:[%s6978_s0 + $0x62] sm:$0x3]  ;;  %v3867_v32 = vld [vmem:[%s6978_s0 + $0x30] sm:$0x3]  ;;  %v1040_v33 = vsel %vm650_vm2, %v1038_v24, %v1035_v30  ;;  %s4820_s5 = smov 12  ;;  %s1106_s11 = smov 48 }
  0x4c   :  { %v1054_v34 = vld [vmem:[#allocation0 + $0x3a9] ss:$-1 sm:%s4768_s9]   ;;  %369 = vst [vmem:[#allocation0 + $0x188] sm:$0x3] %v3842_v31  ;;  %494 = vst [vmem:[#allocation0 + $0xc0] sm:$0x3] %v3867_v32 }
  0x4d   :  { %v3801_v35 = vld [vmem:[%s6978_s0 + $0xb4] sm:$0x3]  ;;  %s4392_s9 = smov 104   ;;  %v1075_v37 = vld [vmem:[#allocation0 + $0x29f] ss:$-1 sm:%s4790_s20]   ;;  %s1111_s12 = smov 192 }
  0x4e   :  { %1055 = vrot.lane.b32.xlu0 %v1054_v34, %s4392_s9  ;;  %v1070_v36 = vld [vmem:[#allocation0 + $0x1d5] ss:$-1 sm:%s4788_s19]   ;;  %164 = vst [vmem:[#allocation0 + $0x2d0] sm:$0x3] %v3801_v35  ;;  %v1062_v38 = vld [vmem:[#allocation0 + $0x41] ss:$-1 sm:%s4783_s10]   ;;  %1041 = vrot.lane.b32.xlu1 %v1040_v33, %s4392_s9 }
  0x4f   :  { %v1065_v39 = vld [vmem:[#allocation0 + $0x10b] ss:$-1 sm:%s4785_s15]   ;;  %v3826_v40 = vld [vmem:[%s6978_s0 + $0x82] sm:$0x3]  ;;  %v3851_v42 = vld [vmem:[%s6978_s0 + $0x50] sm:$0x3] }
  0x50   :  { %v1067_v41 = vsel %vm640_vm0, %v1065_v39, %v1062_v38  ;;  %289 = vst [vmem:[#allocation0 + $0x208] sm:$0x3] %v3826_v40  ;;  %v3876_v43 = vld [vmem:[%s6978_s0 + $0x1e] sm:$0x3]  ;;  %v3776_v44 = vld [vmem:[%s6978_s0 + $0xe6] sm:$0x3] }
  0x51   :  { %v1072_v45 = vsel %vm645_vm1, %v1070_v36, %v1067_v41  ;;  %414 = vst [vmem:[#allocation0 + $0x140] sm:$0x3] %v3851_v42  ;;  %539 = vst [vmem:[#allocation0 + $0x78] sm:$0x3] %v3876_v43  ;;  %v3810_v46 = vld [vmem:[%s6978_s0 + $0xa2] sm:$0x3] }
  0x52   :  { %39 = vst [vmem:[#allocation0 + $0x398] sm:$0x3] %v3776_v44  ;;  %v3835_v47 = vld [vmem:[%s6978_s0 + $0x70] sm:$0x3]  ;;  %v3860_v48 = vld [vmem:[%s6978_s0 + $0x3e] sm:$0x3]  ;;  %v1077_v49 = vsel %vm650_vm2, %v1075_v37, %v1072_v45 }
  0x53   :  { %209 = vst [vmem:[#allocation0 + $0x288] sm:$0x3] %v3810_v46  ;;  %334 = vst [vmem:[#allocation0 + $0x1c0] sm:$0x3] %v3835_v47  ;;  %v3885_v50 = vld [vmem:[%s6978_s0 + $0xc] sm:$0x3] }
  0x54   :  { %459 = vst [vmem:[#allocation0 + $0xf8] sm:$0x3] %v3860_v48  ;;  %v3785_v51 = vld [vmem:[%s6978_s0 + $0xd4] sm:$0x3]  ;;  %v1091_v52 = vld [vmem:[#allocation0 + $0x361] ss:$-1 sm:%s4808_s30]  }
  0x55   :  { %v1107_v53 = vld [vmem:[#allocation0 + $0x255] ss:$-1 sm:%s1106_s11]   ;;  %v1112_v54 = vld [vmem:[#allocation0 + $0x31f] ss:$-1 sm:%s1111_s12]   ;;  %584 = vst [vmem:[#allocation0 + $0x30] sm:$0x3] %v3885_v50 }
  0x56   :  { %84 = vst [vmem:[#allocation0 + $0x350] sm:$0x3] %v3785_v51  ;;  %s4393_s30 = smov 102   ;;  %v1099_v55 = vld [vmem:[#allocation0 + $0xc1] ss:$-1 sm:%s4818_s4]   ;;  %s1159_s27 = smov 3 }
  0x57   :  { %1078 = vrot.lane.b32.xlu1 %v1077_v49, %s4393_s30  ;;  %1092 = vrot.lane.b32.xlu0 %v1091_v52, %s4393_s30  ;;  %v1102_v56 = vld [vmem:[#allocation0 + $0x18b] ss:$-1 sm:%s4820_s5]   ;;  %s1162_s22 = smov 12  ;;  %s1167_s3 = smov 48  ;;  %v3794_v58 = vld [vmem:[%s6978_s0 + $0xc2] sm:$0x3] }
  0x58   :  { %v1104_v57 = vsel %vm640_vm0, %v1102_v56, %v1099_v55  ;;  %s1172_s4 = smov 192  ;;  %129 = vst [vmem:[#allocation0 + $0x308] sm:$0x3] %v3794_v58  ;;  %v3819_v60 = vld [vmem:[%s6978_s0 + $0x90] sm:$0x3]  ;;  %s4394_s16 = smov 100  }
  0x59   :  { %v1109_v59 = vsel %vm645_vm1, %v1107_v53, %v1104_v57  ;;  %v3844_v61 = vld [vmem:[%s6978_s0 + $0x5e] sm:$0x3]  ;;  %v3869_v62 = vld [vmem:[%s6978_s0 + $0x2c] sm:$0x3]  ;;  %v1133_v0 = vld [vmem:[#allocation0 + $0x204] sm:$0x30]  }
  0x5a   :  { %v1114_v63 = vsel %vm650_vm2, %v1112_v54, %v1109_v59  ;;  %v1137_v1 = vld [vmem:[#allocation0 + $0x2ca] sm:$0xc0]   ;;  %254 = vst [vmem:[#allocation0 + $0x240] sm:$0x3] %v3819_v60  ;;  %379 = vst [vmem:[#allocation0 + $0x178] sm:$0x3] %v3844_v61 }
  0x5b   :  { %504 = vst [vmem:[#allocation0 + $0xb0] sm:$0x3] %v3869_v62  ;;  %v3803_v2 = vld [vmem:[%s6978_s0 + $0xb0] sm:$0x3]  ;;  %1115 = vrot.lane.b32.xlu1 %v1114_v63, %s4394_s16  ;;  %v1127_v3 = vld [vmem:[#allocation0 + $0x78] sm:$0x3]  }
  0x5c   :  { %v1129_v4 = vld [vmem:[#allocation0 + $0x13e] sm:$0xc]   ;;  %s1188_s18 = smov 3  ;;  %174 = vst [vmem:[#allocation0 + $0x2c0] sm:$0x3] %v3803_v2  ;;  %s1196_s10 = smov 3 }
  0x5d   :  { %v1131_v5 = vsel %vm640_vm0, %v1129_v4, %v1127_v3  ;;  %v1152_v6 = vld [vmem:[#allocation0 + $0x398] sm:$0x3]   ;;  %v1168_v8 = vld [vmem:[#allocation0 + $0x1c5] ss:$-1 sm:%s1167_s3]   ;;  %v1160_v10 = vld [vmem:[#allocation0 + $0x31] ss:$-1 sm:%s1159_s27]  }
  0x5e   :  { %v1163_v7 = vld [vmem:[#allocation0 + $0xfb] ss:$-1 sm:%s1162_s22]   ;;  %v1135_v9 = vsel %vm645_vm1, %v1133_v0, %v1131_v5  ;;  %v1173_v11 = vld [vmem:[#allocation0 + $0x28f] ss:$-1 sm:%s1172_s4]   ;;  %s1209_s15 = smov 192  ;;  %s1199_s19 = smov 12 }
  0x5f   :  { %v1139_v12 = vsel %vm650_vm2, %v1137_v1, %v1135_v9  ;;  %v1165_v13 = vsel %vm640_vm0, %v1163_v7, %v1160_v10  ;;  %v1189_v14 = vld [vmem:[#allocation0 + $0x351] ss:$-1 sm:%s1188_s18]   ;;  %s1204_s20 = smov 48  ;;  %v3828_v15 = vld [vmem:[%s6978_s0 + $0x7e] sm:$0x3]  ;;  %s4395_s23 = smov 98  }
  0x60   :  { %v3853_v16 = vld [vmem:[%s6978_s0 + $0x4c] sm:$0x3]  ;;  %1140 = vrot.lane.b32.xlu0 %v1139_v12, %s4395_s23  ;;  %1153 = vrot.lane.b32.xlu1 %v1152_v6, %s4395_s23  ;;  %v1170_v17 = vsel %vm645_vm1, %v1168_v8, %v1165_v13  ;;  %299 = vst [vmem:[#allocation0 + $0x1f8] sm:$0x3] %v3828_v15  ;;  %v3878_v18 = vld [vmem:[%s6978_s0 + $0x1a] sm:$0x3] }
  0x61   :  { %424 = vst [vmem:[#allocation0 + $0x130] sm:$0x3] %v3853_v16  ;;  %v3778_v19 = vld [vmem:[%s6978_s0 + $0xe2] sm:$0x3]  ;;  %v1175_v20 = vsel %vm650_vm2, %v1173_v11, %v1170_v17  ;;  %v1210_v21 = vld [vmem:[#allocation0 + $0x30f] ss:$-1 sm:%s1209_s15]  }
  0x62   :  { %549 = vst [vmem:[#allocation0 + $0x68] sm:$0x3] %v3878_v18  ;;  %49 = vst [vmem:[#allocation0 + $0x388] sm:$0x3] %v3778_v19  ;;  %v3812_v22 = vld [vmem:[%s6978_s0 + $0x9e] sm:$0x3] }
  0x63   :  { %v3837_v23 = vld [vmem:[%s6978_s0 + $0x6c] sm:$0x3]  ;;  %v1200_v25 = vld [vmem:[#allocation0 + $0x17b] ss:$-1 sm:%s1199_s19]   ;;  %v1205_v26 = vld [vmem:[#allocation0 + $0x245] ss:$-1 sm:%s1204_s20]  }
  0x64   :  { %v1197_v24 = vld [vmem:[#allocation0 + $0xb1] ss:$-1 sm:%s1196_s10]   ;;  %219 = vst [vmem:[#allocation0 + $0x278] sm:$0x3] %v3812_v22  ;;  %344 = vst [vmem:[#allocation0 + $0x1b0] sm:$0x3] %v3837_v23 }
  0x65   :  { %v1202_v27 = vsel %vm640_vm0, %v1200_v25, %v1197_v24  ;;  %v3862_v28 = vld [vmem:[%s6978_s0 + $0x3a] sm:$0x3]  ;;  %v3887_v29 = vld [vmem:[%s6978_s0 + $0x8] sm:$0x3]  ;;  %s4396_s11 = smov 96   ;;  %s4912_s12 = smov 3 }
  0x66   :  { %1176 = vrot.lane.b32.xlu0 %v1175_v20, %s4396_s11  ;;  %1190 = vrot.lane.b32.xlu1 %v1189_v14, %s4396_s11  ;;  %v1207_v30 = vsel %vm645_vm1, %v1205_v26, %v1202_v27  ;;  %469 = vst [vmem:[#allocation0 + $0xe8] sm:$0x3] %v3862_v28  ;;  %594 = vst [vmem:[#allocation0 + $0x20] sm:$0x3] %v3887_v29  ;;  %v3787_v31 = vld [vmem:[%s6978_s0 + $0xd0] sm:$0x3] }
  0x67   :  { %v3796_v32 = vld [vmem:[%s6978_s0 + $0xbe] sm:$0x3]  ;;  %v1212_v33 = vsel %vm650_vm2, %v1210_v21, %v1207_v30  ;;  %s4921_s16 = smov 12  ;;  %s1265_s18 = smov 48  ;;  %94 = vst [vmem:[#allocation0 + $0x340] sm:$0x3] %v3787_v31 }
  0x68   :  { %139 = vst [vmem:[#allocation0 + $0x2f8] sm:$0x3] %v3796_v32  ;;  %v3821_v34 = vld [vmem:[%s6978_s0 + $0x8c] sm:$0x3]  ;;  %v3846_v35 = vld [vmem:[%s6978_s0 + $0x5a] sm:$0x3] }
  0x69   :  { %v1235_v36 = vld [vmem:[#allocation0 + $0x2ba] sm:$0xc0]   ;;  %s4929_s21 = smov 192  ;;  %264 = vst [vmem:[#allocation0 + $0x230] sm:$0x3] %v3821_v34  ;;  %s4937_s28 = smov 3 }
  0x6a   :  { %389 = vst [vmem:[#allocation0 + $0x168] sm:$0x3] %v3846_v35  ;;  %v3871_v37 = vld [vmem:[%s6978_s0 + $0x28] sm:$0x3]  ;;  %v3771_v38 = vld [vmem:[%s6978_s0 + $0xf0] sm:$0x3] }
  0x6b   :  { %v1227_v39 = vld [vmem:[#allocation0 + $0x12e] sm:$0xc]   ;;  %v1231_v40 = vld [vmem:[#allocation0 + $0x1f4] sm:$0x30]   ;;  %514 = vst [vmem:[#allocation0 + $0xa0] sm:$0x3] %v3871_v37 }
  0x6c   :  { %s4939_s29 = smov 3  ;;  %14 = vst [vmem:[#allocation0 + $0x3c0] sm:$0x3] %v3771_v38  ;;  %s4397_s2 = smov 94   ;;  %v1225_v41 = vld [vmem:[#allocation0 + $0x68] sm:$0x3]  }
  0x6d   :  { %1213 = vrot.lane.b32.xlu0 %v1212_v33, %s4397_s2  ;;  %v1250_v42 = vld [vmem:[#allocation0 + $0x388] sm:$0x3]   ;;  %s1297_s30 = smov 12  ;;  %s1302_s27 = smov 48  ;;  %v1229_v43 = vsel %vm640_vm0, %v1227_v39, %v1225_v41  ;;  %v1266_v44 = vld [vmem:[#allocation0 + $0x1b5] ss:$-1 sm:%s1265_s18]  }
  0x6e   :  { %s1307_s22 = smov 192  ;;  %s4942_s3 = smov 3  ;;  %v3805_v45 = vld [vmem:[%s6978_s0 + $0xac] sm:$0x3]  ;;  %v1233_v46 = vsel %vm645_vm1, %v1231_v40, %v1229_v43  ;;  %v3830_v47 = vld [vmem:[%s6978_s0 + $0x7a] sm:$0x3] }
  0x6f   :  { %184 = vst [vmem:[#allocation0 + $0x2b0] sm:$0x3] %v3805_v45  ;;  %v3855_v48 = vld [vmem:[%s6978_s0 + $0x48] sm:$0x3]  ;;  %v3880_v49 = vld [vmem:[%s6978_s0 + $0x16] sm:$0x3]  ;;  %v1237_v50 = vsel %vm650_vm2, %v1235_v36, %v1233_v46 }
  0x70   :  { %v1258_v51 = vld [vmem:[#allocation0 + $0x21] ss:$-1 sm:%s4912_s12]   ;;  %v1261_v52 = vld [vmem:[#allocation0 + $0xeb] ss:$-1 sm:%s4921_s16]   ;;  %309 = vst [vmem:[#allocation0 + $0x1e8] sm:$0x3] %v3830_v47 }
  0x71   :  { %v1271_v53 = vld [vmem:[#allocation0 + $0x27f] ss:$-1 sm:%s4929_s21]   ;;  %434 = vst [vmem:[#allocation0 + $0x120] sm:$0x3] %v3855_v48  ;;  %559 = vst [vmem:[#allocation0 + $0x58] sm:$0x3] %v3880_v49  ;;  %v1263_v54 = vsel %vm640_vm0, %v1261_v52, %v1258_v51 }
  0x72   :  { %s4398_s12 = smov 92   ;;  %v1287_v55 = vld [vmem:[#allocation0 + $0x341] ss:$-1 sm:%s4937_s28]   ;;  %s4963_s17 = smov 3  ;;  %v1268_v56 = vsel %vm645_vm1, %v1266_v44, %v1263_v54  ;;  %v1298_v57 = vld [vmem:[#allocation0 + $0x16b] ss:$-1 sm:%s1297_s30]  }
  0x73   :  { %1238 = vrot.lane.b32.xlu1 %v1237_v50, %s4398_s12  ;;  %1251 = vrot.lane.b32.xlu0 %v1250_v42, %s4398_s12  ;;  %s4965_s7 = smov 12  ;;  %v1303_v58 = vld [vmem:[#allocation0 + $0x235] ss:$-1 sm:%s1302_s27]   ;;  %v1308_v59 = vld [vmem:[#allocation0 + $0x2ff] ss:$-1 sm:%s1307_s22]   ;;  %v1273_v60 = vsel %vm650_vm2, %v1271_v53, %v1268_v56  ;;  %s1339_s16 = smov 48 }
  0x74   :  { %v1295_v61 = vld [vmem:[#allocation0 + $0xa1] ss:$-1 sm:%s4939_s29]   ;;  %s1344_s18 = smov 192  ;;  %v3839_v2 = vld [vmem:[%s6978_s0 + $0x68] sm:$0x3]  ;;  %s4399_s23 = smov 90  }
  0x75   :  { %v3780_v62 = vld [vmem:[%s6978_s0 + $0xde] sm:$0x3]  ;;  %v1300_v63 = vsel %vm640_vm0, %v1298_v57, %v1295_v61  ;;  %v3814_v1 = vld [vmem:[%s6978_s0 + $0x9a] sm:$0x3]  ;;  %v3864_v3 = vld [vmem:[%s6978_s0 + $0x36] sm:$0x3] }
  0x76   :  { %v1324_v0 = vld [vmem:[#allocation0 + $0x3c1] ss:$-1 sm:%s4942_s3]   ;;  %59 = vst [vmem:[#allocation0 + $0x378] sm:$0x3] %v3780_v62  ;;  %v1305_v4 = vsel %vm645_vm1, %v1303_v58, %v1300_v63  ;;  %229 = vst [vmem:[#allocation0 + $0x268] sm:$0x3] %v3814_v1 }
  0x77   :  { %1274 = vrot.lane.b32.xlu1 %v1273_v60, %s4399_s23  ;;  %1288 = vrot.lane.b32.xlu0 %v1287_v55, %s4399_s23  ;;  %354 = vst [vmem:[#allocation0 + $0x1a0] sm:$0x3] %v3839_v2  ;;  %479 = vst [vmem:[#allocation0 + $0xd8] sm:$0x3] %v3864_v3  ;;  %v3889_v5 = vld [vmem:[%s6978_s0 + $0x4] sm:$0x3]  ;;  %v1310_v7 = vsel %vm650_vm2, %v1308_v59, %v1305_v4 }
  0x78   :  { %v3789_v6 = vld [vmem:[%s6978_s0 + $0xcc] sm:$0x3]  ;;  %v1345_v8 = vld [vmem:[#allocation0 + $0x2b7] ss:$-1 sm:%s1344_s18]   ;;  %604 = vst [vmem:[#allocation0 + $0x10] sm:$0x3] %v3889_v5 }
  0x79   :  { %104 = vst [vmem:[#allocation0 + $0x330] sm:$0x3] %v3789_v6  ;;  %v3798_v9 = vld [vmem:[%s6978_s0 + $0xba] sm:$0x3]  ;;  %v3823_v10 = vld [vmem:[%s6978_s0 + $0x88] sm:$0x3] }
  0x7a   :  { %v1332_v11 = vld [vmem:[#allocation0 + $0x59] ss:$-1 sm:%s4963_s17]   ;;  %v1335_v12 = vld [vmem:[#allocation0 + $0x123] ss:$-1 sm:%s4965_s7]   ;;  %v1340_v13 = vld [vmem:[#allocation0 + $0x1ed] ss:$-1 sm:%s1339_s16]  }
  0x7b   :  { %149 = vst [vmem:[#allocation0 + $0x2e8] sm:$0x3] %v3798_v9  ;;  %274 = vst [vmem:[#allocation0 + $0x220] sm:$0x3] %v3823_v10  ;;  %v1337_v14 = vsel %vm640_vm0, %v1335_v12, %v1332_v11  ;;  %s1360_s5 = smov 3  ;;  %s4400_s13 = smov 88  }
  0x7c   :  { %v3848_v15 = vld [vmem:[%s6978_s0 + $0x56] sm:$0x3]  ;;  %v3873_v16 = vld [vmem:[%s6978_s0 + $0x24] sm:$0x3]  ;;  %1311 = vrot.lane.b32.xlu1 %v1310_v7, %s4400_s13  ;;  %1325 = vrot.lane.b32.xlu0 %v1324_v0, %s4400_s13  ;;  %v1342_v17 = vsel %vm645_vm1, %v1340_v13, %v1337_v14  ;;  %s5008_s14 = smov 3  ;;  %s5010_s12 = smov 12 }
  0x7d   :  { %399 = vst [vmem:[#allocation0 + $0x158] sm:$0x3] %v3848_v15  ;;  %524 = vst [vmem:[#allocation0 + $0x90] sm:$0x3] %v3873_v16  ;;  %v3773_v18 = vld [vmem:[%s6978_s0 + $0xec] sm:$0x3]  ;;  %v1347_v20 = vsel %vm650_vm2, %v1345_v8, %v1342_v17 }
  0x7e   :  { %v3807_v19 = vld [vmem:[%s6978_s0 + $0xa8] sm:$0x3]  ;;  %s1408_s10 = smov 48  ;;  %s1413_s15 = smov 192  ;;  %24 = vst [vmem:[#allocation0 + $0x3b0] sm:$0x3] %v3773_v18 }
  0x7f   :  { %194 = vst [vmem:[#allocation0 + $0x2a0] sm:$0x3] %v3807_v19  ;;  %v3832_v21 = vld [vmem:[%s6978_s0 + $0x76] sm:$0x3]  ;;  %v3857_v22 = vld [vmem:[%s6978_s0 + $0x44] sm:$0x3] }
  0x80   :  { %v1361_v23 = vld [vmem:[#allocation0 + $0x379] ss:$-1 sm:%s1360_s5]   ;;  %s5025_s25 = smov 3  ;;  %319 = vst [vmem:[#allocation0 + $0x1d8] sm:$0x3] %v3832_v21  ;;  %s5030_s28 = smov 3 }
  0x81   :  { %444 = vst [vmem:[#allocation0 + $0x110] sm:$0x3] %v3857_v22  ;;  %v3882_v24 = vld [vmem:[%s6978_s0 + $0x12] sm:$0x3]  ;;  %v1370_v25 = vld [vmem:[#allocation0 + $0xd6] sm:$0xc]  }
  0x82   :  { %v1374_v26 = vld [vmem:[#allocation0 + $0x19c] sm:$0x30]   ;;  %569 = vst [vmem:[#allocation0 + $0x48] sm:$0x3] %v3882_v24  ;;  %s5032_s29 = smov 12  ;;  %s4401_s2 = smov 86  }
  0x83   :  { %1348 = vrot.lane.b32.xlu1 %v1347_v20, %s4401_s2  ;;  %1362 = vrot.lane.b32.xlu0 %v1361_v23, %s4401_s2  ;;  %v1368_v27 = vld [vmem:[#allocation0 + $0x10] sm:$0x3]   ;;  %v1378_v28 = vld [vmem:[#allocation0 + $0x262] sm:$0xc0]   ;;  %v1409_v31 = vld [vmem:[#allocation0 + $0x225] ss:$-1 sm:%s1408_s10]  }
  0x84   :  { %v1393_v29 = vld [vmem:[#allocation0 + $0x330] sm:$0x3]   ;;  %v1372_v30 = vsel %vm640_vm0, %v1370_v25, %v1368_v27  ;;  %s1445_s30 = smov 48  ;;  %s1450_s27 = smov 192  ;;  %v3782_v32 = vld [vmem:[%s6978_s0 + $0xda] sm:$0x3] }
  0x85   :  { %v1376_v33 = vsel %vm645_vm1, %v1374_v26, %v1372_v30  ;;  %v1414_v34 = vld [vmem:[#allocation0 + $0x2ef] ss:$-1 sm:%s1413_s15]   ;;  %69 = vst [vmem:[#allocation0 + $0x368] sm:$0x3] %v3782_v32  ;;  %v3816_v35 = vld [vmem:[%s6978_s0 + $0x96] sm:$0x3] }
  0x86   :  { %v3841_v36 = vld [vmem:[%s6978_s0 + $0x64] sm:$0x3]  ;;  %v1380_v37 = vsel %vm650_vm2, %v1378_v28, %v1376_v33  ;;  %v1401_v38 = vld [vmem:[#allocation0 + $0x91] ss:$-1 sm:%s5008_s14]   ;;  %v1404_v39 = vld [vmem:[#allocation0 + $0x15b] ss:$-1 sm:%s5010_s12]  }
  0x87   :  { %239 = vst [vmem:[#allocation0 + $0x258] sm:$0x3] %v3816_v35  ;;  %364 = vst [vmem:[#allocation0 + $0x190] sm:$0x3] %v3841_v36  ;;  %v3866_v40 = vld [vmem:[%s6978_s0 + $0x32] sm:$0x3]  ;;  %v1406_v41 = vsel %vm640_vm0, %v1404_v39, %v1401_v38 }
  0x88   :  { %s4402_s13 = smov 84   ;;  %v1430_v42 = vld [vmem:[#allocation0 + $0x3b1] ss:$-1 sm:%s5025_s25]   ;;  %s1466_s14 = smov 3  ;;  %489 = vst [vmem:[#allocation0 + $0xc8] sm:$0x3] %v3866_v40  ;;  %v1411_v43 = vsel %vm645_vm1, %v1409_v31, %v1406_v41 }
  0x89   :  { %1381 = vrot.lane.b32.xlu1 %v1380_v37, %s4402_s13  ;;  %1394 = vrot.lane.b32.xlu0 %v1393_v29, %s4402_s13  ;;  %s1505_s12 = smov 3  ;;  %v1441_v44 = vld [vmem:[#allocation0 + $0x113] ss:$-1 sm:%s5032_s29]   ;;  %v1446_v45 = vld [vmem:[#allocation0 + $0x1dd] ss:$-1 sm:%s1445_s30]   ;;  %v1416_v47 = vsel %vm650_vm2, %v1414_v34, %v1411_v43  ;;  %s1513_s10 = smov 48 }
  0x8a   :  { %v609_v46 = vld [vmem:[%s6978_s0] sm:$0x3]  ;;  %v1438_v48 = vld [vmem:[#allocation0 + $0x49] ss:$-1 sm:%s5030_s28]   ;;  %s4403_s15 = smov 82   ;;  %s1542_s19 = smov 3 }
  0x8b   :  { %v1451_v49 = vld [vmem:[#allocation0 + $0x2a7] ss:$-1 sm:%s1450_s27]   ;;  %610 = vst [vmem:[#allocation0] sm:$0x3] %v609_v46  ;;  %v3791_v50 = vld [vmem:[%s6978_s0 + $0xc8] sm:$0x3]  ;;  %v1443_v51 = vsel %vm640_vm0, %v1441_v44, %v1438_v48 }
  0x8c   :  { %114 = vst [vmem:[#allocation0 + $0x320] sm:$0x3] %v3791_v50  ;;  %s1508_s0 = smov 12  ;;  %v1448_v52 = vsel %vm645_vm1, %v1446_v45, %v1443_v51  ;;  %v1506_v53 = vld [vmem:[#allocation0 + $0x81] ss:$-1 sm:%s1505_s12]   ;;  %s1518_s20 = smov 192  ;;  %v667_v50 = vpop.permute.xlu0 %666   ;;  %v704_v51 = vpop.permute.xlu1 %703  }
  0x8d   :  { %1417 = vrot.lane.b32.xlu1 %v1416_v47, %s4403_s15  ;;  %1431 = vrot.lane.b32.xlu0 %v1430_v42, %s4403_s15  ;;  %v1453_v54 = vsel %vm650_vm2, %v1451_v49, %v1448_v52  ;;  %v1467_v55 = vld [vmem:[#allocation0 + $0x369] ss:$-1 sm:%s1466_s14]   ;;  %v1514_v59 = vld [vmem:[#allocation0 + $0x215] ss:$-1 sm:%s1513_s10]   ;;  %s4404_s23 = smov 80   ;;  %s1545_s2 = smov 12 }
  0x8e   :  { %v1509_v56 = vld [vmem:[#allocation0 + $0x14b] ss:$-1 sm:%s1508_s0]   ;;  %v620_v57 = vld [vmem:[#allocation0 + $0x190] sm:$0x3]   ;;  %v625_v58 = vld [vmem:[#allocation0 + $0x258] sm:$0x3]  }
  0x8f   :  { %v615_v60 = vld [vmem:[#allocation0 + $0xc8] sm:$0x3]   ;;  %3892 = vst.msk [vmem:[%s6979_s1 + $0x80] ss:$312 sm:$0x3] %vm612_vm3, %v620_v57   ;;  %v1511_v0 = vsel %vm640_vm0, %v1509_v56, %v1506_v53  ;;  %s1550_s30 = smov 48 }
  0x90   :  { %3893 = vst.msk [vmem:[%s6979_s1 + $0xc0] ss:$312 sm:$0x3] %vm612_vm3, %v625_v58   ;;  %v1475_v61 = vld [vmem:[#allocation0 + $0xc6] sm:$0xc]   ;;  %s1534_s3 = smov 3  ;;  %v1516_v9 = vsel %vm645_vm1, %v1514_v59, %v1511_v0  ;;  %v765_v58 = vpop.permute.xlu0 %764   ;;  %v690_v0 = vpop.permute.xlu1 %689  }
  0x91   :  { %v1479_v62 = vld [vmem:[#allocation0 + $0x18c] sm:$0x30]   ;;  %1454 = vrot.lane.b32.xlu1 %v1453_v54, %s4404_s23  ;;  %1468 = vrot.lane.b32.xlu0 %v1467_v55, %s4404_s23  ;;  %3891 = vst.msk [vmem:[%s6979_s1 + $0x40] ss:$312 sm:$0x3] %vm612_vm3, %v615_v60   ;;  %s4405_s6 = smov 78  }
  0x92   :  { %v1483_v63 = vld [vmem:[#allocation0 + $0x252] sm:$0xc0]   ;;  %v611_v2 = vld [vmem:[#allocation0] sm:$0x3]   ;;  %v1608_v11 = vld [vmem:[#allocation0 + $0x70] sm:$0x3]  }
  0x93   :  { %v1543_v1 = vld [vmem:[#allocation0 + $0x39] ss:$-1 sm:%s1542_s19]   ;;  %v1473_v3 = vld [vmem:[#allocation0] sm:$0x3]   ;;  %v1551_v14 = vld [vmem:[#allocation0 + $0x1cd] ss:$-1 sm:%s1550_s30]  }
  0x94   :  { %v1546_v4 = vld [vmem:[#allocation0 + $0x103] ss:$-1 sm:%s1545_s2]   ;;  %613 = vst.msk [vmem:[%s6979_s1] ss:$312 sm:$0x3] %vm612_vm3, %v611_v2   ;;  %v1477_v5 = vsel %vm640_vm0, %v1475_v61, %v1473_v3  ;;  %s1555_s8 = smov 192 }
  0x95   :  { %v630_v6 = vld [vmem:[#allocation0 + $0x320] sm:$0x3]   ;;  %v1481_v8 = vsel %vm645_vm1, %v1479_v62, %v1477_v5  ;;  %v1519_v10 = vld [vmem:[#allocation0 + $0x2df] ss:$-1 sm:%s1518_s20]   ;;  %v1548_v13 = vsel %vm640_vm0, %v1546_v4, %v1543_v1  ;;  %s1579_s9 = smov 3  ;;  %s1582_s11 = smov 12  ;;  %v653_v4 = vpop.permute.xlu0 %652  }
  0x96   :  { %v1498_v7 = vld [vmem:[#allocation0 + $0x320] sm:$0x3]   ;;  %3894 = vst.msk [vmem:[%s6979_s1 + $0x100] ss:$312 sm:$0x3] %vm612_vm3, %v630_v6   ;;  %v1485_v12 = vsel %vm650_vm2, %v1483_v63, %v1481_v8  ;;  %s1587_s13 = smov 48  ;;  %v1521_v18 = vsel %vm650_vm2, %v1519_v10, %v1516_v9  ;;  %v1553_v20 = vsel %vm645_vm1, %v1551_v14, %v1548_v13  ;;  %v752_v10 = vpop.permute.xlu1 %751  }
  0x97   :  { %1499 = vrot.lane.b32.xlu0 %v1498_v7, %s4405_s6  ;;  %v1610_v15 = vld [vmem:[#allocation0 + $0x136] sm:$0xc]   ;;  %1486 = vrot.lane.b32.xlu1 %v1485_v12, %s4405_s6  ;;  %v1535_v16 = vld [vmem:[#allocation0 + $0x3a1] ss:$-1 sm:%s1534_s3]   ;;  %s1571_s14 = smov 3  ;;  %s1592_s12 = smov 192 }
  0x98   :  { %v1580_v17 = vld [vmem:[#allocation0 + $0xb9] ss:$-1 sm:%s1579_s9]   ;;  %v1583_v19 = vld [vmem:[#allocation0 + $0x183] ss:$-1 sm:%s1582_s11]   ;;  %v1612_v22 = vsel %vm640_vm0, %v1610_v15, %v1608_v11  ;;  %s1640_s17 = smov 3  ;;  %s4406_s7 = smov 76  }
  0x99   :  { %v1556_v21 = vld [vmem:[#allocation0 + $0x297] ss:$-1 sm:%s1555_s8]   ;;  %v1614_v23 = vld [vmem:[#allocation0 + $0x1fc] sm:$0x30]   ;;  %v1585_v24 = vsel %vm640_vm0, %v1583_v19, %v1580_v17  ;;  %v1588_v25 = vld [vmem:[#allocation0 + $0x24d] ss:$-1 sm:%s1587_s13]  }
  0x9a   :  { %v1641_v26 = vld [vmem:[#allocation0 + $0x29] ss:$-1 sm:%s1640_s17]   ;;  %s1643_s16 = smov 12  ;;  %s1648_s18 = smov 48  ;;  %v1572_v27 = vld [vmem:[#allocation0 + $0x359] ss:$-1 sm:%s1571_s14]   ;;  %v1558_v29 = vsel %vm650_vm2, %v1556_v21, %v1553_v20  ;;  %v1616_v30 = vsel %vm645_vm1, %v1614_v23, %v1612_v22  ;;  %v1590_v32 = vsel %vm645_vm1, %v1588_v25, %v1585_v24 }
  0x9b   :  { %1536 = vrot.lane.b32.xlu0 %v1535_v16, %s4406_s7  ;;  %1522 = vrot.lane.b32.xlu1 %v1521_v18, %s4406_s7  ;;  %v1644_v28 = vld [vmem:[#allocation0 + $0xf3] ss:$-1 sm:%s1643_s16]   ;;  %v1618_v31 = vld [vmem:[#allocation0 + $0x2c2] sm:$0xc0]   ;;  %s1677_s0 = smov 3  ;;  %s1653_s10 = smov 192  ;;  %v727_v16 = vpop.permute.xlu0 %726  }
  0x9c   :  { %v1593_v33 = vld [vmem:[#allocation0 + $0x317] ss:$-1 sm:%s1592_s12]   ;;  %v1646_v34 = vsel %vm640_vm0, %v1644_v28, %v1641_v26  ;;  %s1680_s15 = smov 12  ;;  %s4407_s19 = smov 74   ;;  %v1678_v36 = vld [vmem:[#allocation0 + $0xa9] ss:$-1 sm:%s1677_s0]   ;;  %v1620_v38 = vsel %vm650_vm2, %v1618_v31, %v1616_v30 }
  0x9d   :  { %v1649_v35 = vld [vmem:[#allocation0 + $0x1bd] ss:$-1 sm:%s1648_s18]   ;;  %v1681_v37 = vld [vmem:[#allocation0 + $0x173] ss:$-1 sm:%s1680_s15]   ;;  %s1685_s20 = smov 48  ;;  %v1595_v39 = vsel %vm650_vm2, %v1593_v33, %v1590_v32  ;;  %s1690_s21 = smov 192 }
  0x9e   :  { %v1651_v40 = vsel %vm645_vm1, %v1649_v35, %v1646_v34  ;;  %v1654_v41 = vld [vmem:[#allocation0 + $0x287] ss:$-1 sm:%s1653_s10]   ;;  %v1683_v42 = vsel %vm640_vm0, %v1681_v37, %v1678_v36  ;;  %v1686_v43 = vld [vmem:[#allocation0 + $0x23d] ss:$-1 sm:%s1685_s20]   ;;  %s4408_s24 = smov 70   ;;  %s4409_s25 = smov 72  }
  0x9f   :  { %1573 = vrot.lane.b32.xlu0 %v1572_v27, %s4407_s19  ;;  %1559 = vrot.lane.b32.xlu1 %v1558_v29, %s4407_s19  ;;  %v1656_v44 = vsel %vm650_vm2, %v1654_v41, %v1651_v40  ;;  %s1669_s26 = smov 3  ;;  %v1706_v45 = vld [vmem:[#allocation0 + $0x60] sm:$0x3]   ;;  %v1708_v46 = vld [vmem:[#allocation0 + $0x126] sm:$0xc]   ;;  %v1688_v48 = vsel %vm645_vm1, %v1686_v43, %v1683_v42  ;;  %s1738_s23 = smov 3  ;;  %v802_v25 = vpop.permute.xlu0 %801   ;;  %v788_v29 = vpop.permute.xlu1 %787  }
  0xa0   :  { %v1633_v47 = vld [vmem:[#allocation0 + $0x390] sm:$0x3]   ;;  %v1691_v49 = vld [vmem:[#allocation0 + $0x307] ss:$-1 sm:%s1690_s21]   ;;  %s1741_s28 = smov 12  ;;  %s1746_s22 = smov 48  ;;  %v1710_v52 = vsel %vm640_vm0, %v1708_v46, %v1706_v45 }
  0xa1   :  { %3899 = vst.msk [vmem:[%s6979_s1 + $0x261] ss:$-312 sm:$0x3] %vm612_vm3, %v667_v50   ;;  %3904 = vst.msk [vmem:[%s6979_s1 + $0x24a] ss:$-312 sm:$0x3] %vm612_vm3, %v704_v51   ;;  %v1693_v54 = vsel %vm650_vm2, %v1691_v49, %v1688_v48 }
  0xa2   :  { %s4410_s3 = smov 68   ;;  %v1712_v53 = vld [vmem:[#allocation0 + $0x1ec] sm:$0x30]   ;;  %s5115_s4 = smov 192  ;;  %v1739_v55 = vld [vmem:[#allocation0 + $0x19] ss:$-1 sm:%s1738_s23]  }
  0xa3   :  { %1621 = vrot.lane.b32.xlu0 %v1620_v38, %s4408_s24  ;;  %1596 = vrot.lane.b32.xlu1 %v1595_v39, %s4409_s25  ;;  %v1742_v56 = vld [vmem:[#allocation0 + $0xe3] ss:$-1 sm:%s1741_s28]   ;;  %s5118_s5 = smov 3  ;;  %s1775_s6 = smov 3  ;;  %v1714_v59 = vsel %vm645_vm1, %v1712_v53, %v1710_v52  ;;  %v1716_v60 = vld [vmem:[#allocation0 + $0x2b2] sm:$0xc0]   ;;  %v839_v37 = vpop.permute.xlu0 %838   ;;  %v825_v43 = vpop.permute.xlu1 %824  }
  0xa4   :  { %v1670_v57 = vld [vmem:[#allocation0 + $0x349] ss:$-1 sm:%s1669_s26]   ;;  %s1778_s8 = smov 12  ;;  %s5120_s9 = smov 48  ;;  %v1731_v61 = vld [vmem:[#allocation0 + $0x380] sm:$0x3]   ;;  %v1744_v62 = vsel %vm640_vm0, %v1742_v56, %v1739_v55  ;;  %v1718_v3 = vsel %vm650_vm2, %v1716_v60, %v1714_v59 }
  0xa5   :  { %3913 = vst.msk [vmem:[%s6979_s1 + $0x124] ss:$312 sm:$0x3] %vm612_vm3, %v765_v58   ;;  %s5127_s14 = smov 192  ;;  %s4411_s12 = smov 66   ;;  %vm2019_vm4 = vcmask 654336  }
  0xa6   :  { %v1747_v63 = vld [vmem:[#allocation0 + $0x1ad] ss:$-1 sm:%s1746_s22]   ;;  %s5130_s17 = smov 3  ;;  %s5132_s7 = smov 3  ;;  %v1776_v1 = vld [vmem:[#allocation0 + $0x99] ss:$-1 sm:%s1775_s6]  }
  0xa7   :  { %1657 = vrot.lane.b32.xlu0 %v1656_v44, %s4410_s3  ;;  %1634 = vrot.lane.b32.xlu1 %v1633_v47, %s4408_s24  ;;  %3900 = vst.msk [vmem:[%s6979_s1 + $0x14a] ss:$-312 sm:$0x3] %vm612_vm3, %v690_v0   ;;  %3901 = vst.msk [vmem:[%s6979_s1 + $0x3fa] ss:$-312 sm:$0xc] %vm612_vm3, %v690_v0   ;;  %v1749_v5 = vsel %vm645_vm1, %v1747_v63, %v1744_v62  ;;  %v876_v51 = vpop.permute.xlu0 %875  }
  0xa8   :  { %3902 = vst.msk [vmem:[%s6979_s1 + $0x6aa] ss:$-312 sm:$0x30] %vm612_vm3, %v690_v0   ;;  %3903 = vst.msk [vmem:[%s6979_s1 + $0x95a] ss:$-312 sm:$0xc0] %vm612_vm3, %v690_v0  }
  0xa9   :  { %v1779_v2 = vld [vmem:[#allocation0 + $0x163] ss:$-1 sm:%s1778_s8]   ;;  %s1815_s24 = smov 12  ;;  %s5150_s25 = smov 48  ;;  %v1752_v6 = vld [vmem:[#allocation0 + $0x277] ss:$-1 sm:%s5115_s4]  }
  0xaa   :  { %s5153_s26 = smov 192  ;;  %3895 = vst.msk [vmem:[%s6979_s1 + $0x161] ss:$-312 sm:$0x3] %vm612_vm3, %v653_v4   ;;  %s5173_s4 = smov 3  ;;  %v1781_v8 = vsel %vm640_vm0, %v1779_v2, %v1776_v1  ;;  %v1754_v13 = vsel %vm650_vm2, %v1752_v6, %v1749_v5  ;;  %vm2093_vm5 = vcmask 670720  }
  0xab   :  { %1694 = vrot.lane.b32.xlu0 %v1693_v54, %s4411_s12  ;;  %1671 = vrot.lane.b32.xlu1 %v1670_v57, %s4410_s3  ;;  %3896 = vst.msk [vmem:[%s6979_s1 + $0x411] ss:$-312 sm:$0xc] %vm612_vm3, %v653_v4   ;;  %3897 = vst.msk [vmem:[%s6979_s1 + $0x6c1] ss:$-312 sm:$0x30] %vm612_vm3, %v653_v4  }
  0xac   :  { %3898 = vst.msk [vmem:[%s6979_s1 + $0x971] ss:$-312 sm:$0xc0] %vm612_vm3, %v653_v4   ;;  %s4412_s6 = smov 64   ;;  %v1768_v7 = vld [vmem:[#allocation0 + $0x339] ss:$-1 sm:%s5118_s5]  }
  0xad   :  { %v1784_v9 = vld [vmem:[#allocation0 + $0x22d] ss:$-1 sm:%s5120_s9]   ;;  %s5178_s5 = smov 3  ;;  %s5180_s8 = smov 12  ;;  %v1816_v12 = vld [vmem:[#allocation0 + $0x11b] ss:$-1 sm:%s1815_s24]  }
  0xae   :  { %3909 = vst.msk [vmem:[%s6979_s1 + $0x24] ss:$312 sm:$0x3] %vm612_vm3, %v752_v10   ;;  %3910 = vst.msk [vmem:[%s6979_s1 - $0x20c] ss:$312 sm:$0xc] %vm612_vm3, %v752_v10   ;;  %v1786_v14 = vsel %vm645_vm1, %v1784_v9, %v1781_v8 }
  0xaf   :  { %1732 = vrot.lane.b32.xlu0 %v1731_v61, %s4412_s6  ;;  %1719 = vrot.lane.b32.xlu1 %v1718_v3, %s4412_s6  ;;  %3911 = vst.msk [vmem:[%s6979_s1 - $0x43c] ss:$312 sm:$0x30] %vm612_vm3, %v752_v10   ;;  %3912 = vst.msk [vmem:[%s6979_s1 - $0x66c] ss:$312 sm:$0xc0] %vm612_vm3, %v752_v10   ;;  %v862_v61 = vpop.permute.xlu1 %861   ;;  %v913_v10 = vpop.permute.xlu0 %912  }
  0xb0   :  { %v1813_v11 = vld [vmem:[#allocation0 + $0x51] ss:$-1 sm:%s5132_s7]   ;;  %s5199_s7 = smov 48  ;;  %s5201_s15 = smov 192  ;;  %v1821_v18 = vld [vmem:[#allocation0 + $0x1e5] ss:$-1 sm:%s5150_s25]  }
  0xb1   :  { %s5204_s19 = smov 3  ;;  %v1789_v15 = vld [vmem:[#allocation0 + $0x2f7] ss:$-1 sm:%s5127_s14]   ;;  %s5208_s14 = smov 3  ;;  %v1818_v17 = vsel %vm640_vm0, %v1816_v12, %v1813_v11  ;;  %v1849_v19 = vld [vmem:[#allocation0 + $0x8] sm:$0x3]  }
  0xb2   :  { %s5210_s20 = smov 12  ;;  %s4413_s21 = smov 62   ;;  %3905 = vst.msk [vmem:[%s6979_s1 + $0x173] ss:$-312 sm:$0x3] %vm612_vm3, %v727_v16   ;;  %v1791_v22 = vsel %vm650_vm2, %v1789_v15, %v1786_v14  ;;  %v1823_v23 = vsel %vm645_vm1, %v1821_v18, %v1818_v17  ;;  %vm2167_vm6 = vcmask 687104  }
  0xb3   :  { %1769 = vrot.lane.b32.xlu0 %v1768_v7, %s4413_s21  ;;  %3906 = vst.msk [vmem:[%s6979_s1 + $0x423] ss:$-312 sm:$0xc] %vm612_vm3, %v727_v16   ;;  %3907 = vst.msk [vmem:[%s6979_s1 + $0x6d3] ss:$-312 sm:$0x30] %vm612_vm3, %v727_v16   ;;  %1755 = vrot.lane.b32.xlu1 %v1754_v13, %s4413_s21  ;;  %v899_v17 = vpop.permute.xlu1 %898  }
  0xb4   :  { %3908 = vst.msk [vmem:[%s6979_s1 + $0x983] ss:$-312 sm:$0xc0] %vm612_vm3, %v727_v16   ;;  %s5230_s25 = smov 48  ;;  %s5232_s3 = smov 192  ;;  %vm2217_vm7 = vcmask 703488  }
  0xb5   :  { %v1805_v20 = vld [vmem:[#allocation0 + $0x3b9] ss:$-1 sm:%s5130_s17]   ;;  %v1851_v21 = vld [vmem:[#allocation0 + $0xce] sm:$0xc]   ;;  %s5235_s17 = smov 3  ;;  %s5238_s6 = smov 3 }
  0xb6   :  { %s5240_s9 = smov 12  ;;  %v1826_v24 = vld [vmem:[#allocation0 + $0x2af] ss:$-1 sm:%s5153_s26]   ;;  %s5244_s26 = smov 48  ;;  %v1853_v27 = vsel %vm640_vm0, %v1851_v21, %v1849_v19  ;;  %v1855_v28 = vld [vmem:[#allocation0 + $0x194] sm:$0x30]  }
  0xb7   :  { %s5246_s11 = smov 192  ;;  %s4414_s13 = smov 60   ;;  %v1842_v26 = vld [vmem:[#allocation0 + $0x371] ss:$-1 sm:%s5173_s4]   ;;  %v1882_v30 = vld [vmem:[#allocation0 + $0x89] ss:$-1 sm:%s5178_s5]   ;;  %v1828_v32 = vsel %vm650_vm2, %v1826_v24, %v1823_v23  ;;  %v1857_v35 = vsel %vm645_vm1, %v1855_v28, %v1853_v27 }
  0xb8   :  { %1806 = vrot.lane.b32.xlu0 %v1805_v20, %s4414_s13  ;;  %3918 = vst.msk [vmem:[%s6979_s1 + $0x245] ss:$-312 sm:$0x3] %vm612_vm3, %v802_v25   ;;  %s1984_s16 = smov 3  ;;  %1792 = vrot.lane.b32.xlu1 %v1791_v22, %s4414_s13  ;;  %v1885_v31 = vld [vmem:[#allocation0 + $0x153] ss:$-1 sm:%s5180_s8]  }
  0xb9   :  { %s1987_s5 = smov 12  ;;  %s5256_s8 = smov 48  ;;  %3914 = vst.msk [vmem:[%s6979_s1 + $0x145] ss:$-312 sm:$0x3] %vm612_vm3, %v788_v29   ;;  %v1887_v40 = vsel %vm640_vm0, %v1885_v31, %v1882_v30  ;;  %vm2289_vm8 = vcmask 719872  }
  0xba   :  { %3915 = vst.msk [vmem:[%s6979_s1 + $0x3f5] ss:$-312 sm:$0xc] %vm612_vm3, %v788_v29   ;;  %3916 = vst.msk [vmem:[%s6979_s1 + $0x6a5] ss:$-312 sm:$0x30] %vm612_vm3, %v788_v29  }
  0xbb   :  { %3917 = vst.msk [vmem:[%s6979_s1 + $0x955] ss:$-312 sm:$0xc0] %vm612_vm3, %v788_v29   ;;  %v1859_v33 = vld [vmem:[#allocation0 + $0x25a] sm:$0xc0]   ;;  %s2005_s2 = smov 12  ;;  %v950_v29 = vpop.permute.xlu0 %949  }
  0xbc   :  { %v1890_v34 = vld [vmem:[#allocation0 + $0x21d] ss:$-1 sm:%s5199_s7]   ;;  %s2002_s7 = smov 3  ;;  %v1874_v36 = vld [vmem:[#allocation0 + $0x328] sm:$0x3]   ;;  %s4415_s30 = smov 58   ;;  %v1861_v46 = vsel %vm650_vm2, %v1859_v33, %v1857_v35 }
  0xbd   :  { %v1919_v38 = vld [vmem:[#allocation0 + $0x41] ss:$-1 sm:%s5208_s14]   ;;  %v1922_v39 = vld [vmem:[#allocation0 + $0x10b] ss:$-1 sm:%s5210_s20]   ;;  %s5279_s14 = smov 192  ;;  %s5281_s20 = smov 48  ;;  %1843 = vrot.lane.b32.xlu0 %v1842_v26, %s4415_s30  ;;  %1829 = vrot.lane.b32.xlu1 %v1828_v32, %s4415_s30  ;;  %v1892_v49 = vsel %vm645_vm1, %v1890_v34, %v1887_v40 }
  0xbe   :  { %3923 = vst.msk [vmem:[%s6979_s1 + $0x26e] ss:$-312 sm:$0x3] %vm612_vm3, %v839_v37   ;;  %v1985_v41 = vld [vmem:[#allocation0 + $0x79] ss:$-1 sm:%s1984_s16]   ;;  %s5288_s13 = smov 192  ;;  %v1924_v56 = vsel %vm640_vm0, %v1922_v39, %v1919_v38  ;;  %v936_v37 = vpop.permute.xlu1 %935  }
  0xbf   :  { %v1988_v42 = vld [vmem:[#allocation0 + $0x143] ss:$-1 sm:%s1987_s5]   ;;  %v2006_v45 = vld [vmem:[#allocation0 + $0x14b] ss:$-1 sm:%s2005_s2]   ;;  %s2058_s4 = smov 3  ;;  %s2061_s12 = smov 12 }
  0xc0   :  { %v2003_v44 = vld [vmem:[#allocation0 + $0x81] ss:$-1 sm:%s2002_s7]   ;;  %3919 = vst.msk [vmem:[%s6979_s1 + $0x16e] ss:$-312 sm:$0x3] %vm612_vm3, %v825_v43   ;;  %v1990_v57 = vsel %vm640_vm0, %v1988_v42, %v1985_v41  ;;  %s2066_s29 = smov 48 }
  0xc1   :  { %3920 = vst.msk [vmem:[%s6979_s1 + $0x41e] ss:$-312 sm:$0xc] %vm612_vm3, %v825_v43   ;;  %3921 = vst.msk [vmem:[%s6979_s1 + $0x6ce] ss:$-312 sm:$0x30] %vm612_vm3, %v825_v43   ;;  %v2008_v58 = vsel %vm640_vm0, %v2006_v45, %v2003_v44 }
  0xc2   :  { %3922 = vst.msk [vmem:[%s6979_s1 + $0x97e] ss:$-312 sm:$0xc0] %vm612_vm3, %v825_v43   ;;  %v1895_v47 = vld [vmem:[#allocation0 + $0x2e7] ss:$-1 sm:%s5201_s15]   ;;  %s2076_s15 = smov 3 }
  0xc3   :  { %v1927_v48 = vld [vmem:[#allocation0 + $0x1d5] ss:$-1 sm:%s5230_s25]   ;;  %s2079_s25 = smov 12  ;;  %v1911_v50 = vld [vmem:[#allocation0 + $0x3a9] ss:$-1 sm:%s5204_s19]   ;;  %s5315_s19 = smov 3  ;;  %v1897_v1 = vsel %vm650_vm2, %v1895_v47, %v1892_v49  ;;  %v987_v49 = vpop.permute.xlu0 %986  }
  0xc4   :  { %v1956_v52 = vld [vmem:[#allocation0 + $0xc1] ss:$-1 sm:%s5238_s6]   ;;  %v1959_v53 = vld [vmem:[#allocation0 + $0x18b] ss:$-1 sm:%s5240_s9]   ;;  %v2011_v55 = vld [vmem:[#allocation0 + $0x215] ss:$-1 sm:%s5281_s20]   ;;  %v1929_v4 = vsel %vm645_vm1, %v1927_v48, %v1924_v56 }
  0xc5   :  { %v1993_v54 = vld [vmem:[#allocation0 + $0x20d] ss:$-1 sm:%s5256_s8]   ;;  %s5317_s6 = smov 3  ;;  %s4416_s9 = smov 56   ;;  %v2062_v60 = vld [vmem:[#allocation0 + $0xfb] ss:$-1 sm:%s2061_s12]   ;;  %v2013_v7 = vsel %vm645_vm1, %v2011_v55, %v2008_v58  ;;  %v1961_v11 = vsel %vm640_vm0, %v1959_v53, %v1956_v52 }
  0xc6   :  { %1875 = vrot.lane.b32.xlu0 %v1874_v36, %s4416_s9  ;;  %3928 = vst.msk [vmem:[%s6979_s1 + $0x257] ss:$-312 sm:$0x3] %vm612_vm3, %v876_v51   ;;  %v2059_v59 = vld [vmem:[#allocation0 + $0x31] ss:$-1 sm:%s2058_s4]   ;;  %s5326_s7 = smov 48  ;;  %1862 = vrot.lane.b32.xlu1 %v1861_v46, %s4416_s9  ;;  %v1995_v6 = vsel %vm645_vm1, %v1993_v54, %v1990_v57 }
  0xc7   :  { %v1932_v62 = vld [vmem:[#allocation0 + $0x29f] ss:$-1 sm:%s5232_s3]   ;;  %s2132_s3 = smov 3  ;;  %s2135_s2 = smov 12  ;;  %v1964_v2 = vld [vmem:[#allocation0 + $0x255] ss:$-1 sm:%s5244_s26]   ;;  %v2064_v12 = vsel %vm640_vm0, %v2062_v60, %v2059_v59  ;;  %v973_v59 = vpop.permute.xlu1 %972  }
  0xc8   :  { %v2077_v63 = vld [vmem:[#allocation0 + $0x39] ss:$-1 sm:%s2076_s15]   ;;  %v2080_v0 = vld [vmem:[#allocation0 + $0x103] ss:$-1 sm:%s2079_s25]   ;;  %s2150_s26 = smov 3  ;;  %s4417_s18 = smov 54   ;;  %v1934_v20 = vsel %vm650_vm2, %v1932_v62, %v1929_v4  ;;  %v1966_v24 = vsel %vm645_vm1, %v1964_v2, %v1961_v11 }
  0xc9   :  { %3924 = vst.msk [vmem:[%s6979_s1 + $0x157] ss:$-312 sm:$0x3] %vm612_vm3, %v862_v61   ;;  %3925 = vst.msk [vmem:[%s6979_s1 + $0x407] ss:$-312 sm:$0xc] %vm612_vm3, %v862_v61   ;;  %v2082_v13 = vsel %vm640_vm0, %v2080_v0, %v2077_v63 }
  0xca   :  { %3926 = vst.msk [vmem:[%s6979_s1 + $0x6b7] ss:$-312 sm:$0x30] %vm612_vm3, %v862_v61   ;;  %3927 = vst.msk [vmem:[%s6979_s1 + $0x967] ss:$-312 sm:$0xc0] %vm612_vm3, %v862_v61   ;;  %1912 = vrot.lane.b32.xlu0 %v1911_v50, %s4417_s18  ;;  %1898 = vrot.lane.b32.xlu1 %v1897_v1, %s4417_s18 }
  0xcb   :  { %v1998_v3 = vld [vmem:[#allocation0 + $0x2d7] ss:$-1 sm:%s5279_s14]   ;;  %s2153_s14 = smov 12  ;;  %v1948_v5 = vld [vmem:[#allocation0 + $0x361] ss:$-1 sm:%s5235_s17]   ;;  %s2071_s17 = smov 192 }
  0xcc   :  { %v2016_v8 = vld [vmem:[#allocation0 + $0x2df] ss:$-1 sm:%s5288_s13]   ;;  %s5353_s13 = smov 192  ;;  %v2085_v14 = vld [vmem:[#allocation0 + $0x1cd] ss:$-1 sm:%s5326_s7]   ;;  %s2140_s21 = smov 48  ;;  %v2000_v22 = vsel %vm650_vm2, %v1998_v3, %v1995_v6  ;;  %v1019_v3 = vpop.permute.xlu0 %1018  }
  0xcd   :  { %v2067_v9 = vld [vmem:[#allocation0 + $0x1c5] ss:$-1 sm:%s2066_s29]   ;;  %v2133_v15 = vld [vmem:[#allocation0 + $0xb1] ss:$-1 sm:%s2132_s3]   ;;  %v2136_v16 = vld [vmem:[#allocation0 + $0x17b] ss:$-1 sm:%s2135_s2]   ;;  %v2018_v23 = vsel %vm650_vm2, %v2016_v8, %v2013_v7  ;;  %v2087_v27 = vsel %vm645_vm1, %v2085_v14, %v2082_v13 }
  0xce   :  { %3933 = vst.msk [vmem:[%s6979_s1 + $0x240] ss:$-312 sm:$0x3] %vm612_vm3, %v913_v10   ;;  %v2151_v18 = vld [vmem:[#allocation0 + $0xb9] ss:$-1 sm:%s2150_s26]   ;;  %s2158_s24 = smov 48  ;;  %v2069_v25 = vsel %vm645_vm1, %v2067_v9, %v2064_v12  ;;  %v2138_v30 = vsel %vm640_vm0, %v2136_v16, %v2133_v15  ;;  %v2020_v36 = vsel %vm2019_vm4, %v2018_v23, %v2000_v22  ;;  %v1006_v16 = vpop.permute.xlu1 %1005  }
  0xcf   :  { %v2154_v19 = vld [vmem:[#allocation0 + $0x183] ss:$-1 sm:%s2153_s14]   ;;  %3929 = vst.msk [vmem:[%s6979_s1 + $0x140] ss:$-312 sm:$0x3] %vm612_vm3, %v899_v17   ;;  %s5389_s3 = smov 3 }
  0xd0   :  { %3930 = vst.msk [vmem:[%s6979_s1 + $0x3f0] ss:$-312 sm:$0xc] %vm612_vm3, %v899_v17   ;;  %3931 = vst.msk [vmem:[%s6979_s1 + $0x6a0] ss:$-312 sm:$0x30] %vm612_vm3, %v899_v17   ;;  %v2156_v32 = vsel %vm640_vm0, %v2154_v19, %v2151_v18  ;;  %v1056_v23 = vpop.permute.xlu0 %1055  }
  0xd1   :  { %3932 = vst.msk [vmem:[%s6979_s1 + $0x950] ss:$-312 sm:$0xc0] %vm612_vm3, %v899_v17   ;;  %v1969_v21 = vld [vmem:[#allocation0 + $0x31f] ss:$-1 sm:%s5246_s11]   ;;  %s5383_s11 = smov 3 }
  0xd2   :  { %v2072_v26 = vld [vmem:[#allocation0 + $0x28f] ss:$-1 sm:%s2071_s17]   ;;  %v2090_v28 = vld [vmem:[#allocation0 + $0x297] ss:$-1 sm:%s5353_s13]   ;;  %s5391_s2 = smov 192  ;;  %s4418_s20 = smov 52   ;;  %v1971_v40 = vsel %vm650_vm2, %v1969_v21, %v1966_v24 }
  0xd3   :  { %1949 = vrot.lane.b32.xlu0 %v1948_v5, %s4418_s20  ;;  %v2141_v31 = vld [vmem:[#allocation0 + $0x245] ss:$-1 sm:%s2140_s21]   ;;  %v2159_v33 = vld [vmem:[#allocation0 + $0x24d] ss:$-1 sm:%s2158_s24]   ;;  %s2163_s30 = smov 192  ;;  %1935 = vrot.lane.b32.xlu1 %v1934_v20, %s4418_s20  ;;  %v2074_v41 = vsel %vm650_vm2, %v2072_v26, %v2069_v25  ;;  %v2092_v42 = vsel %vm650_vm2, %v2090_v28, %v2087_v27  ;;  %s2257_s13 = smov 12 }
  0xd4   :  { %v2190_v34 = vld [vmem:[#allocation0 + $0x68] sm:$0x3]   ;;  %v2192_v35 = vld [vmem:[#allocation0 + $0x12e] sm:$0xc]   ;;  %v2043_v38 = vld [vmem:[#allocation0 + $0x399] ss:$-1 sm:%s5315_s19]   ;;  %v2143_v45 = vsel %vm645_vm1, %v2141_v31, %v2138_v30  ;;  %v2161_v47 = vsel %vm645_vm1, %v2159_v33, %v2156_v32  ;;  %v2094_v52 = vsel %vm2093_vm5, %v2092_v42, %v2074_v41 }
  0xd5   :  { %3938 = vst.msk [vmem:[%s6979_s1 + $0x269] ss:$-312 sm:$0x3] %vm612_vm3, %v950_v29   ;;  %v2046_v39 = vld [vmem:[#allocation0 + $0x3a1] ss:$-1 sm:%s5317_s6]   ;;  %s5402_s19 = smov 3  ;;  %v2194_v54 = vsel %vm640_vm0, %v2192_v35, %v2190_v34 }
  0xd6   :  { %3934 = vst.msk [vmem:[%s6979_s1 + $0x169] ss:$-312 sm:$0x3] %vm612_vm3, %v936_v37   ;;  %3935 = vst.msk [vmem:[%s6979_s1 + $0x419] ss:$-312 sm:$0xc] %vm612_vm3, %v936_v37   ;;  %v2048_v58 = vsel %vm2019_vm4, %v2046_v39, %v2043_v38 }
  0xd7   :  { %3936 = vst.msk [vmem:[%s6979_s1 + $0x6c9] ss:$-312 sm:$0x30] %vm612_vm3, %v936_v37   ;;  %3937 = vst.msk [vmem:[%s6979_s1 + $0x979] ss:$-312 sm:$0xc0] %vm612_vm3, %v936_v37  }
  0xd8   :  { %v2204_v43 = vld [vmem:[#allocation0 + $0x70] sm:$0x3]   ;;  %v2206_v44 = vld [vmem:[#allocation0 + $0x136] sm:$0xc]   ;;  %s5423_s18 = smov 48  ;;  %s2272_s0 = smov 3 }
  0xd9   :  { %v2146_v46 = vld [vmem:[#allocation0 + $0x30f] ss:$-1 sm:%s5391_s2]   ;;  %v2164_v48 = vld [vmem:[#allocation0 + $0x317] ss:$-1 sm:%s2163_s30]   ;;  %s2275_s10 = smov 12  ;;  %s4419_s21 = smov 48   ;;  %v2208_v55 = vsel %vm640_vm0, %v2206_v44, %v2204_v43 }
  0xda   :  { %2021 = vrot.lane.b32.xlu0 %v2020_v36, %s4419_s21  ;;  %v2196_v50 = vld [vmem:[#allocation0 + $0x1f4] sm:$0x30]   ;;  %v2210_v51 = vld [vmem:[#allocation0 + $0x1fc] sm:$0x30]   ;;  %s5429_s24 = smov 192  ;;  %s5431_s23 = smov 48  ;;  %v2148_v60 = vsel %vm650_vm2, %v2146_v46, %v2143_v45  ;;  %v2166_v61 = vsel %vm650_vm2, %v2164_v48, %v2161_v47  ;;  %v1042_v36 = vpop.permute.xlu1 %1041  }
  0xdb   :  { %s4420_s15 = smov 50   ;;  %3943 = vst.msk [vmem:[%s6979_s1 + $0x252] ss:$-312 sm:$0x3] %vm612_vm3, %v987_v49   ;;  %v2117_v53 = vld [vmem:[#allocation0 + $0x351] ss:$-1 sm:%s5383_s11]   ;;  %v2198_v4 = vsel %vm645_vm1, %v2196_v50, %v2194_v54  ;;  %v2212_v5 = vsel %vm645_vm1, %v2210_v51, %v2208_v55  ;;  %v2168_v10 = vsel %vm2167_vm6, %v2166_v61, %v2148_v60 }
  0xdc   :  { %1972 = vrot.lane.b32.xlu1 %v1971_v40, %s4420_s15  ;;  %v2255_v56 = vld [vmem:[#allocation0 + $0x21] ss:$-1 sm:%s5402_s19]   ;;  %v2258_v57 = vld [vmem:[#allocation0 + $0xeb] ss:$-1 sm:%s2257_s13]   ;;  %s5442_s8 = smov 192  ;;  %s2328_s28 = smov 3 }
  0xdd   :  { %v2200_v62 = vld [vmem:[#allocation0 + $0x2ba] sm:$0xc0]   ;;  %v2273_v63 = vld [vmem:[#allocation0 + $0x29] ss:$-1 sm:%s2272_s0]   ;;  %v2276_v0 = vld [vmem:[#allocation0 + $0xf3] ss:$-1 sm:%s2275_s10]   ;;  %v2260_v11 = vsel %vm640_vm0, %v2258_v57, %v2255_v56  ;;  %v1093_v56 = vpop.permute.xlu0 %1092  }
  0xde   :  { %s2331_s29 = smov 12  ;;  %3939 = vst.msk [vmem:[%s6979_s1 + $0x152] ss:$-312 sm:$0x3] %vm612_vm3, %v973_v59   ;;  %v2120_v1 = vld [vmem:[#allocation0 + $0x359] ss:$-1 sm:%s5389_s3]   ;;  %v2278_v12 = vsel %vm640_vm0, %v2276_v0, %v2273_v63  ;;  %v2202_v20 = vsel %vm650_vm2, %v2200_v62, %v2198_v4  ;;  %v1079_v55 = vpop.permute.xlu1 %1078  }
  0xdf   :  { %3940 = vst.msk [vmem:[%s6979_s1 + $0x402] ss:$-312 sm:$0xc] %vm612_vm3, %v973_v59   ;;  %3941 = vst.msk [vmem:[%s6979_s1 + $0x6b2] ss:$-312 sm:$0x30] %vm612_vm3, %v973_v59   ;;  %v2122_v15 = vsel %vm2093_vm5, %v2120_v1, %v2117_v53 }
  0xe0   :  { %3942 = vst.msk [vmem:[%s6979_s1 + $0x962] ss:$-312 sm:$0xc0] %vm612_vm3, %v973_v59   ;;  %v2214_v2 = vld [vmem:[#allocation0 + $0x2c2] sm:$0xc0]   ;;  %s2346_s3 = smov 3  ;;  %2049 = vrot.lane.b32.xlu1 %v2048_v58, %s4419_s21 }
  0xe1   :  { %s2349_s6 = smov 12  ;;  %s4421_s4 = smov 46   ;;  %v2240_v6 = vld [vmem:[#allocation0 + $0x388] sm:$0x3]   ;;  %v2242_v7 = vld [vmem:[#allocation0 + $0x390] sm:$0x3]   ;;  %v2216_v21 = vsel %vm650_vm2, %v2214_v2, %v2212_v5 }
  0xe2   :  { %2095 = vrot.lane.b32.xlu0 %v2094_v52, %s4421_s4  ;;  %v2263_v8 = vld [vmem:[#allocation0 + $0x1b5] ss:$-1 sm:%s5423_s18]   ;;  %v2281_v9 = vld [vmem:[#allocation0 + $0x1bd] ss:$-1 sm:%s5431_s23]   ;;  %s5469_s12 = smov 3  ;;  %s5471_s16 = smov 3  ;;  %v2244_v30 = vsel %vm2217_vm7, %v2242_v7, %v2240_v6  ;;  %v2218_v35 = vsel %vm2217_vm7, %v2216_v21, %v2202_v20 }
  0xe3   :  { %3948 = vst.msk [vmem:[%s6979_s1 + $0x103] ss:$312 sm:$0x3] %vm612_vm3, %v1019_v3   ;;  %v2329_v13 = vld [vmem:[#allocation0 + $0xa1] ss:$-1 sm:%s2328_s28]   ;;  %s2336_s14 = smov 48  ;;  %v2265_v24 = vsel %vm645_vm1, %v2263_v8, %v2260_v11  ;;  %v2283_v25 = vsel %vm645_vm1, %v2281_v9, %v2278_v12  ;;  %v1116_v11 = vpop.permute.xlu1 %1115  }
  0xe4   :  { %v2332_v14 = vld [vmem:[#allocation0 + $0x16b] ss:$-1 sm:%s2331_s29]   ;;  %s2354_s17 = smov 48  ;;  %v2268_v17 = vld [vmem:[#allocation0 + $0x27f] ss:$-1 sm:%s5429_s24]   ;;  %s5483_s13 = smov 3  ;;  %2123 = vrot.lane.b32.xlu1 %v2122_v15, %s4421_s4 }
  0xe5   :  { %v2347_v18 = vld [vmem:[#allocation0 + $0xa9] ss:$-1 sm:%s2346_s3]   ;;  %v2350_v19 = vld [vmem:[#allocation0 + $0x173] ss:$-1 sm:%s2349_s6]   ;;  %s5485_s18 = smov 12  ;;  %vm2363_vm9 = vcmask 736256   ;;  %v2334_v31 = vsel %vm640_vm0, %v2332_v14, %v2329_v13  ;;  %v2270_v39 = vsel %vm650_vm2, %v2268_v17, %v2265_v24 }
  0xe6   :  { %3944 = vst.msk [vmem:[%s6979_s1 + $0x3] ss:$312 sm:$0x3] %vm612_vm3, %v1006_v16   ;;  %3945 = vst.msk [vmem:[%s6979_s1 - $0x22d] ss:$312 sm:$0xc] %vm612_vm3, %v1006_v16   ;;  %v2352_v32 = vsel %vm640_vm0, %v2350_v19, %v2347_v18 }
  0xe7   :  { %3946 = vst.msk [vmem:[%s6979_s1 - $0x45d] ss:$312 sm:$0x30] %vm612_vm3, %v1006_v16   ;;  %3947 = vst.msk [vmem:[%s6979_s1 - $0x68d] ss:$312 sm:$0xc0] %vm612_vm3, %v1006_v16  }
  0xe8   :  { %v2286_v22 = vld [vmem:[#allocation0 + $0x287] ss:$-1 sm:%s5442_s8]   ;;  %s2420_s8 = smov 3  ;;  %s2423_s28 = smov 12  ;;  %v2337_v28 = vld [vmem:[#allocation0 + $0x235] ss:$-1 sm:%s2336_s14]  }
  0xe9   :  { %s4422_s29 = smov 44   ;;  %v2313_v26 = vld [vmem:[#allocation0 + $0x341] ss:$-1 sm:%s5469_s12]   ;;  %v2316_v27 = vld [vmem:[#allocation0 + $0x349] ss:$-1 sm:%s5471_s16]   ;;  %s2341_s7 = smov 192  ;;  %v2288_v40 = vsel %vm650_vm2, %v2286_v22, %v2283_v25  ;;  %v2339_v43 = vsel %vm645_vm1, %v2337_v28, %v2334_v31  ;;  %v1154_v31 = vpop.permute.xlu1 %1153  }
  0xea   :  { %2169 = vrot.lane.b32.xlu0 %v2168_v10, %s4422_s29  ;;  %v2355_v29 = vld [vmem:[#allocation0 + $0x23d] ss:$-1 sm:%s2354_s17]   ;;  %s2359_s11 = smov 192  ;;  %3953 = vst.msk [vmem:[%s6979_s1 + $0x264] ss:$-312 sm:$0x3] %vm612_vm3, %v1056_v23   ;;  %v2318_v49 = vsel %vm2289_vm8, %v2316_v27, %v2313_v26  ;;  %v2290_v54 = vsel %vm2289_vm8, %v2288_v40, %v2270_v39 }
  0xeb   :  { %s2386_s30 = smov 3  ;;  %s2389_s27 = smov 3  ;;  %v2403_v33 = vld [vmem:[#allocation0 + $0x59] ss:$-1 sm:%s5483_s13]   ;;  %v2406_v34 = vld [vmem:[#allocation0 + $0x123] ss:$-1 sm:%s5485_s18]   ;;  %v2357_v44 = vsel %vm645_vm1, %v2355_v29, %v2352_v32  ;;  %v1141_v29 = vpop.permute.xlu0 %1140  }
  0xec   :  { %s2410_s22 = smov 48  ;;  %v2421_v37 = vld [vmem:[#allocation0 + $0x61] ss:$-1 sm:%s2420_s8]   ;;  %v2424_v38 = vld [vmem:[#allocation0 + $0x12b] ss:$-1 sm:%s2423_s28]   ;;  %s2428_s19 = smov 48  ;;  %v2408_v50 = vsel %vm640_vm0, %v2406_v34, %v2403_v33 }
  0xed   :  { %3949 = vst.msk [vmem:[%s6979_s1 + $0x164] ss:$-312 sm:$0x3] %vm612_vm3, %v1042_v36   ;;  %3950 = vst.msk [vmem:[%s6979_s1 + $0x414] ss:$-312 sm:$0xc] %vm612_vm3, %v1042_v36   ;;  %v2426_v52 = vsel %vm640_vm0, %v2424_v38, %v2421_v37 }
  0xee   :  { %3951 = vst.msk [vmem:[%s6979_s1 + $0x6c4] ss:$-312 sm:$0x30] %vm612_vm3, %v1042_v36   ;;  %3952 = vst.msk [vmem:[%s6979_s1 + $0x974] ss:$-312 sm:$0xc0] %vm612_vm3, %v1042_v36  }
  0xef   :  { %v2342_v41 = vld [vmem:[#allocation0 + $0x2ff] ss:$-1 sm:%s2341_s7]   ;;  %v2360_v42 = vld [vmem:[#allocation0 + $0x307] ss:$-1 sm:%s2359_s11]   ;;  %s2415_s17 = smov 192  ;;  %vm2437_vm10 = vcmask 752640  }
  0xf0   :  { %s4423_s13 = smov 42   ;;  %v2387_v45 = vld [vmem:[#allocation0 + $0x3c1] ss:$-1 sm:%s2386_s30]   ;;  %v2390_v46 = vld [vmem:[#allocation0 + $0x3c9] ss:$-1 sm:%s2389_s27]   ;;  %s2433_s18 = smov 192  ;;  %v2344_v60 = vsel %vm650_vm2, %v2342_v41, %v2339_v43  ;;  %v2362_v61 = vsel %vm650_vm2, %v2360_v42, %v2357_v44 }
  0xf1   :  { %2245 = vrot.lane.b32.xlu0 %v2244_v30, %s4423_s13  ;;  %v2476_v47 = vld [vmem:[#allocation0 + $0x10] sm:$0x3]   ;;  %v2478_v48 = vld [vmem:[#allocation0 + $0xd6] sm:$0xc]   ;;  %2219 = vrot.lane.b32.xlu1 %v2218_v35, %s4423_s13  ;;  %v2411_v51 = vld [vmem:[#allocation0 + $0x1ed] ss:$-1 sm:%s2410_s22]   ;;  %v2392_v5 = vsel %vm2363_vm9, %v2390_v46, %v2387_v45  ;;  %v2364_v10 = vsel %vm2363_vm9, %v2362_v61, %v2344_v60 }
  0xf2   :  { %v2429_v53 = vld [vmem:[#allocation0 + $0x1f5] ss:$-1 sm:%s2428_s19]   ;;  %s2460_s0 = smov 3  ;;  %s2463_s10 = smov 3  ;;  %v2490_v58 = vld [vmem:[#allocation0 + $0x18] sm:$0x3]   ;;  %v2413_v0 = vsel %vm645_vm1, %v2411_v51, %v2408_v50  ;;  %v2480_v6 = vsel %vm640_vm0, %v2478_v48, %v2476_v47  ;;  %v1177_v48 = vpop.permute.xlu0 %1176   ;;  %v1191_v50 = vpop.permute.xlu1 %1190  }
  0xf3   :  { %v2416_v57 = vld [vmem:[#allocation0 + $0x2b7] ss:$-1 sm:%s2415_s17]   ;;  %v2492_v59 = vld [vmem:[#allocation0 + $0xde] sm:$0xc]   ;;  %s2540_s21 = smov 3  ;;  %s2543_s24 = smov 12  ;;  %v2431_v1 = vsel %vm645_vm1, %v2429_v53, %v2426_v52 }
  0xf4   :  { %3954 = vst.msk [vmem:[%s6979_s1 + $0x14d] ss:$-312 sm:$0x3] %vm612_vm3, %v1079_v55   ;;  %3955 = vst.msk [vmem:[%s6979_s1 + $0x3fd] ss:$-312 sm:$0xc] %vm612_vm3, %v1079_v55   ;;  %v2494_v7 = vsel %vm640_vm0, %v2492_v59, %v2490_v58  ;;  %v2418_v15 = vsel %vm650_vm2, %v2416_v57, %v2413_v0 }
  0xf5   :  { %3956 = vst.msk [vmem:[%s6979_s1 + $0x6ad] ss:$-312 sm:$0x30] %vm612_vm3, %v1079_v55   ;;  %3957 = vst.msk [vmem:[%s6979_s1 + $0x95d] ss:$-312 sm:$0xc0] %vm612_vm3, %v1079_v55  }
  0xf6   :  { %3958 = vst.msk [vmem:[%s6979_s1 + $0x24d] ss:$-312 sm:$0x3] %vm612_vm3, %v1093_v56   ;;  %v2434_v62 = vld [vmem:[#allocation0 + $0x2bf] ss:$-1 sm:%s2433_s18]   ;;  %s2558_s20 = smov 3 }
  0xf7   :  { %v2482_v63 = vld [vmem:[#allocation0 + $0x19c] sm:$0x30]   ;;  %s4424_s30 = smov 40   ;;  %v2461_v2 = vld [vmem:[#allocation0 + $0x379] ss:$-1 sm:%s2460_s0]   ;;  %s2561_s27 = smov 12  ;;  %v2436_v16 = vsel %vm650_vm2, %v2434_v62, %v2431_v1 }
  0xf8   :  { %2319 = vrot.lane.b32.xlu0 %v2318_v49, %s4424_s30  ;;  %v2464_v3 = vld [vmem:[#allocation0 + $0x381] ss:$-1 sm:%s2463_s10]   ;;  %v2496_v4 = vld [vmem:[#allocation0 + $0x1a4] sm:$0x30]   ;;  %2291 = vrot.lane.b32.xlu1 %v2290_v54, %s4424_s30  ;;  %v2541_v8 = vld [vmem:[#allocation0 + $0x91] ss:$-1 sm:%s2540_s21]   ;;  %v2484_v18 = vsel %vm645_vm1, %v2482_v63, %v2480_v6  ;;  %v2438_v30 = vsel %vm2437_vm10, %v2436_v16, %v2418_v15 }
  0xf9   :  { %v2544_v9 = vld [vmem:[#allocation0 + $0x15b] ss:$-1 sm:%s2543_s24]   ;;  %s2548_s22 = smov 48  ;;  %s2566_s19 = smov 48  ;;  %v2486_v12 = vld [vmem:[#allocation0 + $0x262] sm:$0xc0]   ;;  %v2498_v19 = vsel %vm645_vm1, %v2496_v4, %v2494_v7  ;;  %v2466_v24 = vsel %vm2437_vm10, %v2464_v3, %v2461_v2  ;;  %v1214_v4 = vpop.permute.xlu0 %1213  }
  0xfa   :  { %s5573_s3 = smov 192  ;;  %v2559_v13 = vld [vmem:[#allocation0 + $0x99] ss:$-1 sm:%s2558_s20]   ;;  %v2562_v14 = vld [vmem:[#allocation0 + $0x163] ss:$-1 sm:%s2561_s27]   ;;  %s5575_s6 = smov 192  ;;  %v2546_v25 = vsel %vm640_vm0, %v2544_v9, %v2541_v8  ;;  %v2488_v34 = vsel %vm650_vm2, %v2486_v12, %v2484_v18 }
  0xfb   :  { %3959 = vst.msk [vmem:[%s6979_s1 + $0x176] ss:$-312 sm:$0x3] %vm612_vm3, %v1116_v11   ;;  %3960 = vst.msk [vmem:[%s6979_s1 + $0x426] ss:$-312 sm:$0xc] %vm612_vm3, %v1116_v11   ;;  %v2564_v26 = vsel %vm640_vm0, %v2562_v14, %v2559_v13 }
  0xfc   :  { %3961 = vst.msk [vmem:[%s6979_s1 + $0x6d6] ss:$-312 sm:$0x30] %vm612_vm3, %v1116_v11   ;;  %3962 = vst.msk [vmem:[%s6979_s1 + $0x986] ss:$-312 sm:$0xc0] %vm612_vm3, %v1116_v11  }
  0xfd   :  { %v2500_v17 = vld [vmem:[#allocation0 + $0x26a] sm:$0xc0]   ;;  %vm2503_vm11 = vcmask 769024   ;;  %vm2575_vm12 = vcmask 785408   ;;  %s2614_s18 = smov 3  ;;  %s2617_s0 = smov 12 }
  0xfe   :  { %s4425_s10 = smov 38   ;;  %v2526_v20 = vld [vmem:[#allocation0 + $0x330] sm:$0x3]   ;;  %v2528_v21 = vld [vmem:[#allocation0 + $0x338] sm:$0x3]   ;;  %s5597_s21 = smov 3  ;;  %v2502_v35 = vsel %vm650_vm2, %v2500_v17, %v2498_v19 }
  0xff   :  { %2393 = vrot.lane.b32.xlu0 %v2392_v5, %s4425_s10  ;;  %v2549_v22 = vld [vmem:[#allocation0 + $0x225] ss:$-1 sm:%s2548_s22]   ;;  %v2567_v23 = vld [vmem:[#allocation0 + $0x22d] ss:$-1 sm:%s2566_s19]   ;;  %s5599_s24 = smov 3  ;;  %2365 = vrot.lane.b32.xlu1 %v2364_v10, %s4425_s10  ;;  %s2632_s23 = smov 3  ;;  %v2530_v43 = vsel %vm2503_vm11, %v2528_v21, %v2526_v20  ;;  %v2504_v49 = vsel %vm2503_vm11, %v2502_v35, %v2488_v34 }
 0x100   :  { %v2615_v27 = vld [vmem:[#allocation0 + $0x49] ss:$-1 sm:%s2614_s18]   ;;  %v2618_v28 = vld [vmem:[#allocation0 + $0x113] ss:$-1 sm:%s2617_s0]   ;;  %s2635_s15 = smov 12  ;;  %s2622_s25 = smov 48  ;;  %v2551_v38 = vsel %vm645_vm1, %v2549_v22, %v2546_v25  ;;  %v2569_v39 = vsel %vm645_vm1, %v2567_v23, %v2564_v26  ;;  %v1239_v22 = vpop.permute.xlu1 %1238   ;;  %v1252_v23 = vpop.permute.xlu0 %1251  }
 0x101   :  { %v2633_v32 = vld [vmem:[#allocation0 + $0x51] ss:$-1 sm:%s2632_s23]   ;;  %v2636_v33 = vld [vmem:[#allocation0 + $0x11b] ss:$-1 sm:%s2635_s15]   ;;  %s2640_s9 = smov 48  ;;  %vm2649_vm13 = vcmask 801792   ;;  %v2620_v44 = vsel %vm640_vm0, %v2618_v28, %v2615_v27 }
 0x102   :  { %3963 = vst.msk [vmem:[%s6979_s1 + $0x27] ss:$312 sm:$0x3] %vm612_vm3, %v1141_v29   ;;  %3964 = vst.msk [vmem:[%s6979_s1 - $0x209] ss:$312 sm:$0xc] %vm612_vm3, %v1141_v29   ;;  %v2638_v46 = vsel %vm640_vm0, %v2636_v33, %v2633_v32 }
 0x103   :  { %3965 = vst.msk [vmem:[%s6979_s1 - $0x439] ss:$312 sm:$0x30] %vm612_vm3, %v1141_v29   ;;  %3966 = vst.msk [vmem:[%s6979_s1 - $0x669] ss:$312 sm:$0xc0] %vm612_vm3, %v1141_v29  }
 0x104   :  { %3967 = vst.msk [vmem:[%s6979_s1 + $0x127] ss:$312 sm:$0x3] %vm612_vm3, %v1154_v31   ;;  %v2554_v36 = vld [vmem:[#allocation0 + $0x2ef] ss:$-1 sm:%s5573_s3]   ;;  %s4426_s19 = smov 36  }
 0x105   :  { %v2572_v37 = vld [vmem:[#allocation0 + $0x2f7] ss:$-1 sm:%s5575_s6]   ;;  %2467 = vrot.lane.b32.xlu0 %v2466_v24, %s4426_s19  ;;  %s2627_s3 = smov 192  ;;  %s2645_s6 = smov 192  ;;  %v2687_v42 = vld [vmem:[#allocation0] sm:$0x3]   ;;  %2439 = vrot.lane.b32.xlu1 %v2438_v30, %s4426_s19  ;;  %v2556_v54 = vsel %vm650_vm2, %v2554_v36, %v2551_v38 }
 0x106   :  { %v2599_v40 = vld [vmem:[#allocation0 + $0x3b1] ss:$-1 sm:%s5597_s21]   ;;  %v2602_v41 = vld [vmem:[#allocation0 + $0x3b9] ss:$-1 sm:%s5599_s24]   ;;  %v2641_v47 = vld [vmem:[#allocation0 + $0x1e5] ss:$-1 sm:%s2640_s9]   ;;  %v2574_v55 = vsel %vm650_vm2, %v2572_v37, %v2569_v39 }
 0x107   :  { %v2623_v45 = vld [vmem:[#allocation0 + $0x1dd] ss:$-1 sm:%s2622_s25]   ;;  %s2672_s4 = smov 3  ;;  %s2675_s12 = smov 3  ;;  %v2689_v51 = vld [vmem:[#allocation0 + $0xc6] sm:$0xc]   ;;  %v2643_v59 = vsel %vm645_vm1, %v2641_v47, %v2638_v46  ;;  %v2604_v63 = vsel %vm2575_vm12, %v2602_v41, %v2599_v40  ;;  %v2576_v5 = vsel %vm2575_vm12, %v2574_v55, %v2556_v54  ;;  %v1275_v41 = vpop.permute.xlu1 %1274  }
 0x108   :  { %v2701_v52 = vld [vmem:[#allocation0 + $0x8] sm:$0x3]   ;;  %v2703_v53 = vld [vmem:[#allocation0 + $0xce] sm:$0xc]   ;;  %v2628_v56 = vld [vmem:[#allocation0 + $0x2a7] ss:$-1 sm:%s2627_s3]   ;;  %v2625_v58 = vsel %vm645_vm1, %v2623_v45, %v2620_v44  ;;  %v2691_v0 = vsel %vm640_vm0, %v2689_v51, %v2687_v42  ;;  %v1289_v42 = vpop.permute.xlu0 %1288  }
 0x109   :  { %3968 = vst.msk [vmem:[%s6979_s1 + $0x148] ss:$-312 sm:$0x3] %vm612_vm3, %v1177_v48   ;;  %3969 = vst.msk [vmem:[%s6979_s1 + $0x3f8] ss:$-312 sm:$0xc] %vm612_vm3, %v1177_v48   ;;  %v2705_v1 = vsel %vm640_vm0, %v2703_v53, %v2701_v52  ;;  %v2630_v9 = vsel %vm650_vm2, %v2628_v56, %v2625_v58 }
 0x10a   :  { %3970 = vst.msk [vmem:[%s6979_s1 + $0x6a8] ss:$-312 sm:$0x30] %vm612_vm3, %v1177_v48   ;;  %3971 = vst.msk [vmem:[%s6979_s1 + $0x958] ss:$-312 sm:$0xc0] %vm612_vm3, %v1177_v48  }
 0x10b   :  { %3972 = vst.msk [vmem:[%s6979_s1 + $0x248] ss:$-312 sm:$0x3] %vm612_vm3, %v1191_v50   ;;  %v2646_v57 = vld [vmem:[#allocation0 + $0x2af] ss:$-1 sm:%s2645_s6]   ;;  %s2751_s24 = smov 3 }
 0x10c   :  { %s4427_s23 = smov 34   ;;  %v2673_v60 = vld [vmem:[#allocation0 + $0x369] ss:$-1 sm:%s2672_s4]   ;;  %v2676_v61 = vld [vmem:[#allocation0 + $0x371] ss:$-1 sm:%s2675_s12]   ;;  %s2754_s15 = smov 12  ;;  %v2648_v10 = vsel %vm650_vm2, %v2646_v57, %v2643_v59 }
 0x10d   :  { %2531 = vrot.lane.b32.xlu0 %v2530_v43, %s4427_s23  ;;  %v2693_v62 = vld [vmem:[#allocation0 + $0x18c] sm:$0x30]   ;;  %2505 = vrot.lane.b32.xlu1 %v2504_v49, %s4427_s23  ;;  %v2707_v2 = vld [vmem:[#allocation0 + $0x194] sm:$0x30]   ;;  %v2752_v3 = vld [vmem:[#allocation0 + $0x81] ss:$-1 sm:%s2751_s24]   ;;  %v2678_v17 = vsel %vm2649_vm13, %v2676_v61, %v2673_v60  ;;  %v2650_v24 = vsel %vm2649_vm13, %v2648_v10, %v2630_v9  ;;  %v1312_v60 = vpop.permute.xlu1 %1311   ;;  %v1326_v61 = vpop.permute.xlu0 %1325  }
 0x10e   :  { %s2759_s25 = smov 48  ;;  %s2769_s9 = smov 3  ;;  %v2697_v6 = vld [vmem:[#allocation0 + $0x252] sm:$0xc0]   ;;  %v2755_v7 = vld [vmem:[#allocation0 + $0x14b] ss:$-1 sm:%s2754_s15]   ;;  %v2695_v13 = vsel %vm645_vm1, %v2693_v62, %v2691_v0  ;;  %v2709_v14 = vsel %vm645_vm1, %v2707_v2, %v2705_v1 }
 0x10f   :  { %v2770_v8 = vld [vmem:[#allocation0 + $0x89] ss:$-1 sm:%s2769_s9]   ;;  %s2772_s8 = smov 12  ;;  %s2777_s28 = smov 48  ;;  %v2711_v11 = vld [vmem:[#allocation0 + $0x25a] sm:$0xc0]   ;;  %v2757_v18 = vsel %vm640_vm0, %v2755_v7, %v2752_v3  ;;  %v2699_v27 = vsel %vm650_vm2, %v2697_v6, %v2695_v13 }
 0x110   :  { %3973 = vst.msk [vmem:[%s6979_s1 + $0x171] ss:$-312 sm:$0x3] %vm612_vm3, %v1214_v4   ;;  %3974 = vst.msk [vmem:[%s6979_s1 + $0x421] ss:$-312 sm:$0xc] %vm612_vm3, %v1214_v4   ;;  %v2713_v28 = vsel %vm650_vm2, %v2711_v11, %v2709_v14 }
 0x111   :  { %3975 = vst.msk [vmem:[%s6979_s1 + $0x6d1] ss:$-312 sm:$0x30] %vm612_vm3, %v1214_v4   ;;  %3976 = vst.msk [vmem:[%s6979_s1 + $0x981] ss:$-312 sm:$0xc0] %vm612_vm3, %v1214_v4  }
 0x112   :  { %s2764_s19 = smov 192  ;;  %v2773_v12 = vld [vmem:[#allocation0 + $0x153] ss:$-1 sm:%s2772_s8]   ;;  %s5683_s3 = smov 192  ;;  %v2737_v15 = vld [vmem:[#allocation0 + $0x320] sm:$0x3]  }
 0x113   :  { %s4428_s6 = smov 32   ;;  %v2739_v16 = vld [vmem:[#allocation0 + $0x328] sm:$0x3]   ;;  %s5687_s4 = smov 3  ;;  %v2760_v19 = vld [vmem:[#allocation0 + $0x215] ss:$-1 sm:%s2759_s25]   ;;  %v2775_v20 = vsel %vm640_vm0, %v2773_v12, %v2770_v8 }
 0x114   :  { %2605 = vrot.lane.b32.xlu0 %v2604_v63, %s4428_s6  ;;  %2577 = vrot.lane.b32.xlu1 %v2576_v5, %s4428_s6  ;;  %v2778_v21 = vld [vmem:[#allocation0 + $0x21d] ss:$-1 sm:%s2777_s28]   ;;  %s5692_s12 = smov 3  ;;  %s2825_s16 = smov 3  ;;  %vm2714_vm14 = vcmask 818176   ;;  %vm2786_vm15 = vcmask 834560   ;;  %v2762_v31 = vsel %vm645_vm1, %v2760_v19, %v2757_v18  ;;  %v1349_v18 = vpop.permute.xlu1 %1348   ;;  %v1363_v19 = vpop.permute.xlu0 %1362  }
 0x115   :  { %v2765_v25 = vld [vmem:[#allocation0 + $0x2df] ss:$-1 sm:%s2764_s19]   ;;  %s2828_s5 = smov 12  ;;  %s2833_s26 = smov 48  ;;  %v2783_v29 = vld [vmem:[#allocation0 + $0x2e7] ss:$-1 sm:%s5683_s3]   ;;  %v2780_v32 = vsel %vm645_vm1, %v2778_v21, %v2775_v20  ;;  %v2741_v36 = vsel %vm2714_vm14, %v2739_v16, %v2737_v15  ;;  %v2715_v43 = vsel %vm2714_vm14, %v2713_v28, %v2699_v27 }
 0x116   :  { %v2826_v26 = vld [vmem:[#allocation0 + $0x39] ss:$-1 sm:%s2825_s16]   ;;  %3977 = vst.msk [vmem:[%s6979_s1 + $0x22] ss:$312 sm:$0x3] %vm612_vm3, %v1239_v22   ;;  %s2838_s25 = smov 192  ;;  %v2767_v47 = vsel %vm650_vm2, %v2765_v25, %v2762_v31  ;;  %v2785_v48 = vsel %vm650_vm2, %v2783_v29, %v2780_v32 }
 0x117   :  { %3978 = vst.msk [vmem:[%s6979_s1 - $0x20e] ss:$312 sm:$0xc] %vm612_vm3, %v1239_v22   ;;  %3979 = vst.msk [vmem:[%s6979_s1 - $0x43e] ss:$312 sm:$0x30] %vm612_vm3, %v1239_v22   ;;  %v2787_v62 = vsel %vm2786_vm15, %v2785_v48, %v2767_v47 }
 0x118   :  { %3980 = vst.msk [vmem:[%s6979_s1 - $0x66e] ss:$312 sm:$0xc0] %vm612_vm3, %v1239_v22   ;;  %3981 = vst.msk [vmem:[%s6979_s1 + $0x122] ss:$312 sm:$0x3] %vm612_vm3, %v1252_v23  }
 0x119   :  { %v2829_v30 = vld [vmem:[#allocation0 + $0x103] ss:$-1 sm:%s2828_s5]   ;;  %s2843_s9 = smov 3  ;;  %s4429_s8 = smov 30   ;;  %v2834_v34 = vld [vmem:[#allocation0 + $0x1cd] ss:$-1 sm:%s2833_s26]  }
 0x11a   :  { %2679 = vrot.lane.b32.xlu0 %v2678_v17, %s4429_s8  ;;  %v2810_v33 = vld [vmem:[#allocation0 + $0x3a1] ss:$-1 sm:%s5687_s4]   ;;  %s2846_s28 = smov 12  ;;  %s2851_s29 = smov 48  ;;  %2651 = vrot.lane.b32.xlu1 %v2650_v24, %s4429_s8  ;;  %v2831_v37 = vsel %vm640_vm0, %v2829_v30, %v2826_v26  ;;  %vm2860_vm4 = vcmask 850944   ;;  %vm2984_vm5 = vcmask 883712  }
 0x11b   :  { %v2844_v35 = vld [vmem:[#allocation0 + $0x41] ss:$-1 sm:%s2843_s9]   ;;  %v2847_v38 = vld [vmem:[#allocation0 + $0x10b] ss:$-1 sm:%s2846_s28]   ;;  %v2852_v39 = vld [vmem:[#allocation0 + $0x1d5] ss:$-1 sm:%s2851_s29]   ;;  %v2836_v51 = vsel %vm645_vm1, %v2834_v34, %v2831_v37  ;;  %v1395_v37 = vpop.permute.xlu0 %1394  }
 0x11c   :  { %s2856_s7 = smov 192  ;;  %v2957_v40 = vld [vmem:[#allocation0 + $0x70] sm:$0x3]   ;;  %v2813_v44 = vld [vmem:[#allocation0 + $0x3a9] ss:$-1 sm:%s5692_s12]   ;;  %v2849_v46 = vsel %vm640_vm0, %v2847_v38, %v2844_v35  ;;  %s2883_s11 = smov 3 }
 0x11d   :  { %v2839_v45 = vld [vmem:[#allocation0 + $0x297] ss:$-1 sm:%s2838_s25]   ;;  %s2886_s2 = smov 3  ;;  %3982 = vst.msk [vmem:[%s6979_s1 + $0x143] ss:$-312 sm:$0x3] %vm612_vm3, %v1275_v41   ;;  %v2854_v52 = vsel %vm645_vm1, %v2852_v39, %v2849_v46  ;;  %v2815_v56 = vsel %vm2786_vm15, %v2813_v44, %v2810_v33 }
 0x11e   :  { %3983 = vst.msk [vmem:[%s6979_s1 + $0x3f3] ss:$-312 sm:$0xc] %vm612_vm3, %v1275_v41   ;;  %3984 = vst.msk [vmem:[%s6979_s1 + $0x6a3] ss:$-312 sm:$0x30] %vm612_vm3, %v1275_v41   ;;  %v2841_v3 = vsel %vm650_vm2, %v2839_v45, %v2836_v51 }
 0x11f   :  { %3985 = vst.msk [vmem:[%s6979_s1 + $0x953] ss:$-312 sm:$0xc0] %vm612_vm3, %v1275_v41   ;;  %3986 = vst.msk [vmem:[%s6979_s1 + $0x243] ss:$-312 sm:$0x3] %vm612_vm3, %v1289_v42  }
 0x120   :  { %v2857_v49 = vld [vmem:[#allocation0 + $0x29f] ss:$-1 sm:%s2856_s7]   ;;  %s2899_s5 = smov 3  ;;  %s2902_s26 = smov 12  ;;  %v2963_v10 = vld [vmem:[#allocation0 + $0x1fc] sm:$0x30]  }
 0x121   :  { %v2959_v50 = vld [vmem:[#allocation0 + $0x136] sm:$0xc]   ;;  %s4430_s14 = smov 28   ;;  %v2903_v55 = vld [vmem:[#allocation0 + $0x183] ss:$-1 sm:%s2902_s26]   ;;  %s2907_s17 = smov 48  ;;  %v2859_v4 = vsel %vm650_vm2, %v2857_v49, %v2854_v52 }
 0x122   :  { %2742 = vrot.lane.b32.xlu0 %v2741_v36, %s4430_s14  ;;  %v2884_v53 = vld [vmem:[#allocation0 + $0x359] ss:$-1 sm:%s2883_s11]   ;;  %s2912_s13 = smov 192  ;;  %2716 = vrot.lane.b32.xlu1 %v2715_v43, %s4430_s14  ;;  %v2887_v57 = vld [vmem:[#allocation0 + $0x361] ss:$-1 sm:%s2886_s2]   ;;  %s2917_s18 = smov 3  ;;  %v2961_v2 = vsel %vm640_vm0, %v2959_v50, %v2957_v40  ;;  %v2861_v20 = vsel %vm2860_vm4, %v2859_v4, %v2841_v3  ;;  %v1382_v36 = vpop.permute.xlu1 %1381  }
 0x123   :  { %v2900_v54 = vld [vmem:[#allocation0 + $0xb9] ss:$-1 sm:%s2899_s5]   ;;  %v2908_v59 = vld [vmem:[#allocation0 + $0x24d] ss:$-1 sm:%s2907_s17]   ;;  %s2920_s0 = smov 12  ;;  %s2925_s10 = smov 48  ;;  %v2889_v13 = vsel %vm2860_vm4, %v2887_v57, %v2884_v53  ;;  %v2965_v14 = vsel %vm645_vm1, %v2963_v10, %v2961_v2  ;;  %v1432_v53 = vpop.permute.xlu0 %1431  }
 0x124   :  { %v2905_v58 = vsel %vm640_vm0, %v2903_v55, %v2900_v54  ;;  %v2913_v63 = vld [vmem:[#allocation0 + $0x317] ss:$-1 sm:%s2912_s13]   ;;  %v2918_v0 = vld [vmem:[#allocation0 + $0xc1] ss:$-1 sm:%s2917_s18]   ;;  %v2921_v1 = vld [vmem:[#allocation0 + $0x18b] ss:$-1 sm:%s2920_s0]  }
 0x125   :  { %s2930_s21 = smov 192  ;;  %3987 = vst.msk [vmem:[%s6979_s1 + $0x16c] ss:$-312 sm:$0x3] %vm612_vm3, %v1312_v60   ;;  %v2923_v5 = vsel %vm640_vm0, %v2921_v1, %v2918_v0  ;;  %v2926_v6 = vld [vmem:[#allocation0 + $0x255] ss:$-1 sm:%s2925_s10]   ;;  %v2910_v8 = vsel %vm645_vm1, %v2908_v59, %v2905_v58 }
 0x126   :  { %3988 = vst.msk [vmem:[%s6979_s1 + $0x41c] ss:$-312 sm:$0xc] %vm612_vm3, %v1312_v60   ;;  %3989 = vst.msk [vmem:[%s6979_s1 + $0x6cc] ss:$-312 sm:$0x30] %vm612_vm3, %v1312_v60   ;;  %v2928_v9 = vsel %vm645_vm1, %v2926_v6, %v2923_v5  ;;  %v2915_v23 = vsel %vm650_vm2, %v2913_v63, %v2910_v8  ;;  %v1418_v52 = vpop.permute.xlu1 %1417  }
 0x127   :  { %3990 = vst.msk [vmem:[%s6979_s1 + $0x97c] ss:$-312 sm:$0xc0] %vm612_vm3, %v1312_v60   ;;  %3991 = vst.msk [vmem:[%s6979_s1 + $0x26c] ss:$-312 sm:$0x3] %vm612_vm3, %v1326_v61  }
 0x128   :  { %v2931_v7 = vld [vmem:[#allocation0 + $0x31f] ss:$-1 sm:%s2930_s21]   ;;  %s4431_s2 = smov 26   ;;  %v2967_v11 = vld [vmem:[#allocation0 + $0x2c2] sm:$0xc0]   ;;  %s3021_s20 = smov 3 }
 0x129   :  { %2816 = vrot.lane.b32.xlu0 %v2815_v56, %s4431_s2  ;;  %v2971_v12 = vld [vmem:[#allocation0 + $0x78] sm:$0x3]   ;;  %2788 = vrot.lane.b32.xlu1 %v2787_v62, %s4431_s2  ;;  %v2973_v15 = vld [vmem:[#allocation0 + $0x13e] sm:$0xc]   ;;  %v2977_v16 = vld [vmem:[#allocation0 + $0x204] sm:$0x30]   ;;  %v2969_v21 = vsel %vm650_vm2, %v2967_v11, %v2965_v14  ;;  %v2933_v24 = vsel %vm650_vm2, %v2931_v7, %v2928_v9  ;;  %v1469_v7 = vpop.permute.xlu0 %1468  }
 0x12a   :  { %v2981_v17 = vld [vmem:[#allocation0 + $0x2ca] sm:$0xc0]   ;;  %v2975_v22 = vsel %vm640_vm0, %v2973_v15, %v2971_v12  ;;  %3992 = vst.msk [vmem:[%s6979_s1 + $0x155] ss:$-312 sm:$0x3] %vm612_vm3, %v1349_v18   ;;  %vm2934_vm6 = vcmask 867328   ;;  %v1455_v6 = vpop.permute.xlu1 %1454  }
 0x12b   :  { %3993 = vst.msk [vmem:[%s6979_s1 + $0x405] ss:$-312 sm:$0xc] %vm612_vm3, %v1349_v18   ;;  %3994 = vst.msk [vmem:[%s6979_s1 + $0x6b5] ss:$-312 sm:$0x30] %vm612_vm3, %v1349_v18   ;;  %v2979_v25 = vsel %vm645_vm1, %v2977_v16, %v2975_v22  ;;  %v2935_v38 = vsel %vm2934_vm6, %v2933_v24, %v2915_v23 }
 0x12c   :  { %3995 = vst.msk [vmem:[%s6979_s1 + $0x965] ss:$-312 sm:$0xc0] %vm612_vm3, %v1349_v18   ;;  %3996 = vst.msk [vmem:[%s6979_s1 + $0x255] ss:$-312 sm:$0x3] %vm612_vm3, %v1363_v19   ;;  %v2983_v27 = vsel %vm650_vm2, %v2981_v17, %v2979_v25 }
 0x12d   :  { %v3022_v26 = vld [vmem:[#allocation0 + $0x29] ss:$-1 sm:%s3021_s20]   ;;  %s3024_s26 = smov 12  ;;  %s3029_s14 = smov 48  ;;  %v2985_v30 = vsel %vm2984_vm5, %v2983_v27, %v2969_v21  ;;  %v3007_v31 = vld [vmem:[#allocation0 + $0x390] sm:$0x3]   ;;  %v1500_v27 = vpop.permute.xlu0 %1499  }
 0x12e   :  { %s4432_s17 = smov 24   ;;  %v3025_v28 = vld [vmem:[#allocation0 + $0xf3] ss:$-1 sm:%s3024_s26]   ;;  %v3030_v29 = vld [vmem:[#allocation0 + $0x1bd] ss:$-1 sm:%s3029_s14]   ;;  %s3034_s13 = smov 192 }
 0x12f   :  { %2890 = vrot.lane.b32.xlu0 %v2889_v13, %s4432_s17  ;;  %s3039_s18 = smov 3  ;;  %2862 = vrot.lane.b32.xlu1 %v2861_v20, %s4432_s17  ;;  %v3009_v32 = vld [vmem:[#allocation0 + $0x398] sm:$0x3]   ;;  %v3027_v33 = vsel %vm640_vm0, %v3025_v28, %v3022_v26  ;;  %v3035_v34 = vld [vmem:[#allocation0 + $0x287] ss:$-1 sm:%s3034_s13]   ;;  %s3042_s0 = smov 12 }
 0x130   :  { %v3040_v35 = vld [vmem:[#allocation0 + $0x31] ss:$-1 sm:%s3039_s18]   ;;  %s3047_s10 = smov 48  ;;  %v3032_v39 = vsel %vm645_vm1, %v3030_v29, %v3027_v33  ;;  %v3043_v40 = vld [vmem:[#allocation0 + $0xfb] ss:$-1 sm:%s3042_s0]   ;;  %s3052_s21 = smov 192  ;;  %v3011_v54 = vsel %vm2984_vm5, %v3009_v32, %v3007_v31  ;;  %v1487_v32 = vpop.permute.xlu1 %1486  }
 0x131   :  { %v3048_v41 = vld [vmem:[#allocation0 + $0x1c5] ss:$-1 sm:%s3047_s10]   ;;  %3997 = vst.msk [vmem:[%s6979_s1 + $0x6] ss:$312 sm:$0x3] %vm612_vm3, %v1382_v36   ;;  %v3037_v42 = vsel %vm650_vm2, %v3035_v34, %v3032_v39  ;;  %v3045_v43 = vsel %vm640_vm0, %v3043_v40, %v3040_v35  ;;  %vm3056_vm7 = vcmask 900096  }
 0x132   :  { %3998 = vst.msk [vmem:[%s6979_s1 - $0x22a] ss:$312 sm:$0xc] %vm612_vm3, %v1382_v36   ;;  %3999 = vst.msk [vmem:[%s6979_s1 - $0x45a] ss:$312 sm:$0x30] %vm612_vm3, %v1382_v36   ;;  %v3050_v45 = vsel %vm645_vm1, %v3048_v41, %v3045_v43  ;;  %v1537_v41 = vpop.permute.xlu0 %1536  }
 0x133   :  { %4000 = vst.msk [vmem:[%s6979_s1 - $0x68a] ss:$312 sm:$0xc0] %vm612_vm3, %v1382_v36   ;;  %4001 = vst.msk [vmem:[%s6979_s1 + $0x106] ss:$312 sm:$0x3] %vm612_vm3, %v1395_v37  }
 0x134   :  { %v3053_v44 = vld [vmem:[#allocation0 + $0x28f] ss:$-1 sm:%s3052_s21]   ;;  %s3079_s2 = smov 3  ;;  %s3082_s20 = smov 3  ;;  %vm3130_vm8 = vcmask 916480   ;;  %vm3180_vm9 = vcmask 932864  }
 0x135   :  { %s4433_s30 = smov 20   ;;  %s3095_s27 = smov 3  ;;  %v3055_v46 = vsel %vm650_vm2, %v3053_v44, %v3050_v45  ;;  %v3080_v47 = vld [vmem:[#allocation0 + $0x349] ss:$-1 sm:%s3079_s2]   ;;  %v3083_v48 = vld [vmem:[#allocation0 + $0x351] ss:$-1 sm:%s3082_s20]   ;;  %v1523_v45 = vpop.permute.xlu1 %1522  }
 0x136   :  { %2986 = vrot.lane.b32.xlu0 %v2985_v30, %s4433_s30  ;;  %s3098_s22 = smov 12  ;;  %s4434_s19 = smov 22   ;;  %v3096_v49 = vld [vmem:[#allocation0 + $0xa9] ss:$-1 sm:%s3095_s27]   ;;  %v3153_v51 = vld [vmem:[#allocation0 + $0x60] sm:$0x3]   ;;  %v3057_v55 = vsel %vm3056_vm7, %v3055_v46, %v3037_v42  ;;  %v3085_v8 = vsel %vm3056_vm7, %v3083_v48, %v3080_v47 }
 0x137   :  { %2936 = vrot.lane.b32.xlu1 %v2935_v38, %s4434_s19  ;;  %v3099_v50 = vld [vmem:[#allocation0 + $0x173] ss:$-1 sm:%s3098_s22]   ;;  %s3103_s3 = smov 48  ;;  %s3108_s6 = smov 192  ;;  %v3155_v3 = vld [vmem:[#allocation0 + $0x126] sm:$0xc]  }
 0x138   :  { %v3101_v56 = vsel %vm640_vm0, %v3099_v50, %v3096_v49  ;;  %v3104_v57 = vld [vmem:[#allocation0 + $0x23d] ss:$-1 sm:%s3103_s3]   ;;  %v3109_v58 = vld [vmem:[#allocation0 + $0x307] ss:$-1 sm:%s3108_s6]   ;;  %s3113_s4 = smov 3  ;;  %s3116_s12 = smov 12  ;;  %v3157_v10 = vsel %vm640_vm0, %v3155_v3, %v3153_v51 }
 0x139   :  { %4002 = vst.msk [vmem:[%s6979_s1 + $0x167] ss:$-312 sm:$0x3] %vm612_vm3, %v1418_v52   ;;  %4003 = vst.msk [vmem:[%s6979_s1 + $0x417] ss:$-312 sm:$0xc] %vm612_vm3, %v1418_v52   ;;  %v3106_v59 = vsel %vm645_vm1, %v3104_v57, %v3101_v56  ;;  %v1574_v57 = vpop.permute.xlu0 %1573  }
 0x13a   :  { %4004 = vst.msk [vmem:[%s6979_s1 + $0x6c7] ss:$-312 sm:$0x30] %vm612_vm3, %v1418_v52   ;;  %4005 = vst.msk [vmem:[%s6979_s1 + $0x977] ss:$-312 sm:$0xc0] %vm612_vm3, %v1418_v52   ;;  %v3111_v62 = vsel %vm650_vm2, %v3109_v58, %v3106_v59 }
 0x13b   :  { %4006 = vst.msk [vmem:[%s6979_s1 + $0x267] ss:$-312 sm:$0x3] %vm612_vm3, %v1432_v53   ;;  %v3114_v60 = vld [vmem:[#allocation0 + $0xb1] ss:$-1 sm:%s3113_s4]   ;;  %s3121_s24 = smov 48  ;;  %3012 = vrot.lane.b32.xlu1 %v3011_v54, %s4433_s30 }
 0x13c   :  { %v3117_v61 = vld [vmem:[#allocation0 + $0x17b] ss:$-1 sm:%s3116_s12]   ;;  %s3126_s23 = smov 192  ;;  %s4435_s15 = smov 18   ;;  %v3122_v0 = vld [vmem:[#allocation0 + $0x245] ss:$-1 sm:%s3121_s24]  }
 0x13d   :  { %3058 = vrot.lane.b32.xlu0 %v3057_v55, %s4435_s15  ;;  %v3119_v63 = vsel %vm640_vm0, %v3117_v61, %v3114_v60  ;;  %v3127_v1 = vld [vmem:[#allocation0 + $0x30f] ss:$-1 sm:%s3126_s23]   ;;  %v3159_v4 = vld [vmem:[#allocation0 + $0x1ec] sm:$0x30]   ;;  %v3163_v5 = vld [vmem:[#allocation0 + $0x2b2] sm:$0xc0]  }
 0x13e   :  { %v3124_v2 = vsel %vm645_vm1, %v3122_v0, %v3119_v63  ;;  %v3167_v11 = vld [vmem:[#allocation0 + $0x68] sm:$0x3]   ;;  %v3169_v12 = vld [vmem:[#allocation0 + $0x12e] sm:$0xc]   ;;  %v3173_v13 = vld [vmem:[#allocation0 + $0x1f4] sm:$0x30]   ;;  %v3161_v15 = vsel %vm645_vm1, %v3159_v4, %v3157_v10  ;;  %v1622_v10 = vpop.permute.xlu0 %1621  }
 0x13f   :  { %v3129_v9 = vsel %vm650_vm2, %v3127_v1, %v3124_v2  ;;  %4007 = vst.msk [vmem:[%s6979_s1 + $0x150] ss:$-312 sm:$0x3] %vm612_vm3, %v1455_v6   ;;  %4008 = vst.msk [vmem:[%s6979_s1 + $0x400] ss:$-312 sm:$0xc] %vm612_vm3, %v1455_v6   ;;  %v3171_v16 = vsel %vm640_vm0, %v3169_v12, %v3167_v11  ;;  %v3165_v19 = vsel %vm650_vm2, %v3163_v5, %v3161_v15  ;;  %3086 = vrot.lane.b32.xlu1 %v3085_v8, %s4435_s15 }
 0x140   :  { %4009 = vst.msk [vmem:[%s6979_s1 + $0x6b0] ss:$-312 sm:$0x30] %vm612_vm3, %v1455_v6   ;;  %4010 = vst.msk [vmem:[%s6979_s1 + $0x960] ss:$-312 sm:$0xc0] %vm612_vm3, %v1455_v6   ;;  %v3131_v14 = vsel %vm3130_vm8, %v3129_v9, %v3111_v62  ;;  %v3175_v20 = vsel %vm645_vm1, %v3173_v13, %v3171_v16  ;;  %v1560_v62 = vpop.permute.xlu1 %1559  }
 0x141   :  { %4011 = vst.msk [vmem:[%s6979_s1 + $0x250] ss:$-312 sm:$0x3] %vm612_vm3, %v1469_v7   ;;  %v3177_v17 = vld [vmem:[#allocation0 + $0x2ba] sm:$0xc0]   ;;  %s3217_s27 = smov 3 }
 0x142   :  { %v3203_v18 = vld [vmem:[#allocation0 + $0x380] sm:$0x3]   ;;  %s4436_s22 = smov 16   ;;  %v3205_v21 = vld [vmem:[#allocation0 + $0x388] sm:$0x3]   ;;  %s3220_s19 = smov 12  ;;  %v3179_v23 = vsel %vm650_vm2, %v3177_v17, %v3175_v20 }
 0x143   :  { %3132 = vrot.lane.b32.xlu0 %v3131_v14, %s4436_s22  ;;  %v3218_v22 = vld [vmem:[#allocation0 + $0x19] ss:$-1 sm:%s3217_s27]   ;;  %s3225_s3 = smov 48  ;;  %v3207_v24 = vsel %vm3180_vm9, %v3205_v21, %v3203_v18  ;;  %v3221_v25 = vld [vmem:[#allocation0 + $0xe3] ss:$-1 sm:%s3220_s19]   ;;  %s3230_s6 = smov 192  ;;  %v3181_v28 = vsel %vm3180_vm9, %v3179_v23, %v3165_v19 }
 0x144   :  { %v3226_v26 = vld [vmem:[#allocation0 + $0x1ad] ss:$-1 sm:%s3225_s3]   ;;  %s3235_s4 = smov 3  ;;  %v3223_v29 = vsel %vm640_vm0, %v3221_v25, %v3218_v22  ;;  %v3231_v30 = vld [vmem:[#allocation0 + $0x277] ss:$-1 sm:%s3230_s6]   ;;  %s3238_s12 = smov 12  ;;  %v1597_v15 = vpop.permute.xlu1 %1596  }
 0x145   :  { %v3236_v31 = vld [vmem:[#allocation0 + $0x21] ss:$-1 sm:%s3235_s4]   ;;  %s3243_s16 = smov 48  ;;  %4016 = vst.msk [vmem:[%s6979_s1 + $0x101] ss:$312 sm:$0x3] %vm612_vm3, %v1500_v27   ;;  %v3228_v33 = vsel %vm645_vm1, %v3226_v26, %v3223_v29 }
 0x146   :  { %v3239_v34 = vld [vmem:[#allocation0 + $0xeb] ss:$-1 sm:%s3238_s12]   ;;  %v3244_v35 = vld [vmem:[#allocation0 + $0x1b5] ss:$-1 sm:%s3243_s16]   ;;  %s3248_s14 = smov 192  ;;  %s4437_s15 = smov 14   ;;  %v3233_v36 = vsel %vm650_vm2, %v3231_v30, %v3228_v33  ;;  %v1658_v30 = vpop.permute.xlu0 %1657  }
 0x147   :  { %4012 = vst.msk [vmem:[%s6979_s1 + $0x1] ss:$312 sm:$0x3] %vm612_vm3, %v1487_v32   ;;  %4013 = vst.msk [vmem:[%s6979_s1 - $0x22f] ss:$312 sm:$0xc] %vm612_vm3, %v1487_v32   ;;  %3208 = vrot.lane.b32.xlu0 %v3207_v24, %s4437_s15  ;;  %v3241_v37 = vsel %vm640_vm0, %v3239_v34, %v3236_v31  ;;  %3182 = vrot.lane.b32.xlu1 %v3181_v28, %s4437_s15 }
 0x148   :  { %4014 = vst.msk [vmem:[%s6979_s1 - $0x45f] ss:$312 sm:$0x30] %vm612_vm3, %v1487_v32   ;;  %4015 = vst.msk [vmem:[%s6979_s1 - $0x68f] ss:$312 sm:$0xc0] %vm612_vm3, %v1487_v32   ;;  %v3246_v39 = vsel %vm645_vm1, %v3244_v35, %v3241_v37  ;;  %v1635_v34 = vpop.permute.xlu1 %1634  }
 0x149   :  { %v3249_v38 = vld [vmem:[#allocation0 + $0x27f] ss:$-1 sm:%s3248_s14]   ;;  %vm3252_vm10 = vcmask 949248   ;;  %s3275_s25 = smov 3  ;;  %s3278_s9 = smov 3  ;;  %vm3326_vm11 = vcmask 965632  }
 0x14a   :  { %v3276_v40 = vld [vmem:[#allocation0 + $0x339] ss:$-1 sm:%s3275_s25]   ;;  %s3291_s8 = smov 3  ;;  %v3251_v42 = vsel %vm650_vm2, %v3249_v38, %v3246_v39  ;;  %v3279_v43 = vld [vmem:[#allocation0 + $0x341] ss:$-1 sm:%s3278_s9]   ;;  %s3294_s28 = smov 12 }
 0x14b   :  { %v3292_v44 = vld [vmem:[#allocation0 + $0x99] ss:$-1 sm:%s3291_s8]   ;;  %s3299_s29 = smov 48  ;;  %4021 = vst.msk [vmem:[%s6979_s1 + $0x262] ss:$-312 sm:$0x3] %vm612_vm3, %v1537_v41   ;;  %v3253_v46 = vsel %vm3252_vm10, %v3251_v42, %v3233_v36  ;;  %v3281_v47 = vsel %vm3252_vm10, %v3279_v43, %v3276_v40 }
 0x14c   :  { %v3295_v48 = vld [vmem:[#allocation0 + $0x163] ss:$-1 sm:%s3294_s28]   ;;  %v3300_v49 = vld [vmem:[#allocation0 + $0x22d] ss:$-1 sm:%s3299_s29]   ;;  %s3304_s2 = smov 192  ;;  %s3309_s20 = smov 3 }
 0x14d   :  { %vm3400_vm12 = vcmask 982016   ;;  %4017 = vst.msk [vmem:[%s6979_s1 + $0x162] ss:$-312 sm:$0x3] %vm612_vm3, %v1523_v45   ;;  %s4438_s16 = smov 12   ;;  %v3297_v50 = vsel %vm640_vm0, %v3295_v48, %v3292_v44  ;;  %s3312_s5 = smov 12 }
 0x14e   :  { %4018 = vst.msk [vmem:[%s6979_s1 + $0x412] ss:$-312 sm:$0xc] %vm612_vm3, %v1523_v45   ;;  %4019 = vst.msk [vmem:[%s6979_s1 + $0x6c2] ss:$-312 sm:$0x30] %vm612_vm3, %v1523_v45   ;;  %3282 = vrot.lane.b32.xlu0 %v3281_v47, %s4438_s16  ;;  %3254 = vrot.lane.b32.xlu1 %v3253_v46, %s4438_s16  ;;  %v3302_v53 = vsel %vm645_vm1, %v3300_v49, %v3297_v50  ;;  %v1695_v46 = vpop.permute.xlu0 %1694   ;;  %v1672_v50 = vpop.permute.xlu1 %1671  }
 0x14f   :  { %4020 = vst.msk [vmem:[%s6979_s1 + $0x972] ss:$-312 sm:$0xc0] %vm612_vm3, %v1523_v45   ;;  %v3305_v51 = vld [vmem:[#allocation0 + $0x2f7] ss:$-1 sm:%s3304_s2]   ;;  %s3317_s26 = smov 48 }
 0x150   :  { %v3310_v52 = vld [vmem:[#allocation0 + $0xa1] ss:$-1 sm:%s3309_s20]   ;;  %v3313_v54 = vld [vmem:[#allocation0 + $0x16b] ss:$-1 sm:%s3312_s5]   ;;  %v3318_v55 = vld [vmem:[#allocation0 + $0x235] ss:$-1 sm:%s3317_s26]   ;;  %v3307_v58 = vsel %vm650_vm2, %v3305_v51, %v3302_v53 }
 0x151   :  { %s3322_s14 = smov 192  ;;  %v3439_v56 = vld [vmem:[#allocation0 + $0x8] sm:$0x3]   ;;  %v3315_v59 = vsel %vm640_vm0, %v3313_v54, %v3310_v52  ;;  %s3349_s17 = smov 3  ;;  %v3441_v61 = vld [vmem:[#allocation0 + $0xce] sm:$0xc]  }
 0x152   :  { %v3323_v60 = vld [vmem:[#allocation0 + $0x2ff] ss:$-1 sm:%s3322_s14]   ;;  %s3352_s13 = smov 3  ;;  %4026 = vst.msk [vmem:[%s6979_s1 + $0x24b] ss:$-312 sm:$0x3] %vm612_vm3, %v1574_v57   ;;  %v3320_v63 = vsel %vm645_vm1, %v3318_v55, %v3315_v59  ;;  %v3443_v14 = vsel %vm640_vm0, %v3441_v61, %v3439_v56 }
 0x153   :  { %v3350_v0 = vld [vmem:[#allocation0 + $0x3b9] ss:$-1 sm:%s3349_s17]   ;;  %v3353_v1 = vld [vmem:[#allocation0 + $0x3c1] ss:$-1 sm:%s3352_s13]   ;;  %s3365_s10 = smov 3  ;;  %s3368_s21 = smov 12  ;;  %v3325_v2 = vsel %vm650_vm2, %v3323_v60, %v3320_v63 }
 0x154   :  { %4022 = vst.msk [vmem:[%s6979_s1 + $0x14b] ss:$-312 sm:$0x3] %vm612_vm3, %v1560_v62   ;;  %4023 = vst.msk [vmem:[%s6979_s1 + $0x3fb] ss:$-312 sm:$0xc] %vm612_vm3, %v1560_v62   ;;  %v3355_v3 = vsel %vm3326_vm11, %v3353_v1, %v3350_v0  ;;  %v3327_v6 = vsel %vm3326_vm11, %v3325_v2, %v3307_v58  ;;  %v1720_v2 = vpop.permute.xlu1 %1719  }
 0x155   :  { %4024 = vst.msk [vmem:[%s6979_s1 + $0x6ab] ss:$-312 sm:$0x30] %vm612_vm3, %v1560_v62   ;;  %4025 = vst.msk [vmem:[%s6979_s1 + $0x95b] ss:$-312 sm:$0xc0] %vm612_vm3, %v1560_v62   ;;  %v1733_v62 = vpop.permute.xlu0 %1732  }
 0x156   :  { %v3366_v4 = vld [vmem:[#allocation0 + $0x51] ss:$-1 sm:%s3365_s10]   ;;  %v3369_v5 = vld [vmem:[#allocation0 + $0x11b] ss:$-1 sm:%s3368_s21]   ;;  %s3373_s7 = smov 48  ;;  %s3378_s11 = smov 192 }
 0x157   :  { %s4439_s2 = smov 10   ;;  %v3371_v7 = vsel %vm640_vm0, %v3369_v5, %v3366_v4  ;;  %v3374_v8 = vld [vmem:[#allocation0 + $0x1e5] ss:$-1 sm:%s3373_s7]   ;;  %v3379_v9 = vld [vmem:[#allocation0 + $0x2af] ss:$-1 sm:%s3378_s11]   ;;  %s3383_s20 = smov 3 }
 0x158   :  { %3356 = vrot.lane.b32.xlu0 %v3355_v3, %s4439_s2  ;;  %s3386_s30 = smov 12  ;;  %3328 = vrot.lane.b32.xlu1 %v3327_v6, %s4439_s2  ;;  %v3376_v11 = vsel %vm645_vm1, %v3374_v8, %v3371_v7  ;;  %v3384_v12 = vld [vmem:[#allocation0 + $0x59] ss:$-1 sm:%s3383_s20]   ;;  %s3391_s27 = smov 48  ;;  %vm3466_vm13 = vcmask 998400   ;;  %vm3538_vm14 = vcmask 1014784  }
 0x159   :  { %v3387_v13 = vld [vmem:[#allocation0 + $0x123] ss:$-1 sm:%s3386_s30]   ;;  %s3396_s22 = smov 192  ;;  %4031 = vst.msk [vmem:[%s6979_s1 + $0x25] ss:$312 sm:$0x3] %vm612_vm3, %v1622_v10   ;;  %v3381_v16 = vsel %vm650_vm2, %v3379_v9, %v3376_v11 }
 0x15a   :  { %4032 = vst.msk [vmem:[%s6979_s1 - $0x20b] ss:$312 sm:$0xc] %vm612_vm3, %v1622_v10   ;;  %4033 = vst.msk [vmem:[%s6979_s1 - $0x43b] ss:$312 sm:$0x30] %vm612_vm3, %v1622_v10   ;;  %v3389_v17 = vsel %vm640_vm0, %v3387_v13, %v3384_v12 }
 0x15b   :  { %4034 = vst.msk [vmem:[%s6979_s1 - $0x66b] ss:$312 sm:$0xc0] %vm612_vm3, %v1622_v10   ;;  %v3392_v18 = vld [vmem:[#allocation0 + $0x1ed] ss:$-1 sm:%s3391_s27]   ;;  %s3423_s14 = smov 3 }
 0x15c   :  { %v3397_v19 = vld [vmem:[#allocation0 + $0x2b7] ss:$-1 sm:%s3396_s22]   ;;  %4027 = vst.msk [vmem:[%s6979_s1 + $0x174] ss:$-312 sm:$0x3] %vm612_vm3, %v1597_v15   ;;  %v3394_v20 = vsel %vm645_vm1, %v3392_v18, %v3389_v17  ;;  %s3426_s15 = smov 3  ;;  %v1756_v18 = vpop.permute.xlu1 %1755  }
 0x15d   :  { %4028 = vst.msk [vmem:[%s6979_s1 + $0x424] ss:$-312 sm:$0xc] %vm612_vm3, %v1597_v15   ;;  %4029 = vst.msk [vmem:[%s6979_s1 + $0x6d4] ss:$-312 sm:$0x30] %vm612_vm3, %v1597_v15   ;;  %v3399_v23 = vsel %vm650_vm2, %v3397_v19, %v3394_v20 }
 0x15e   :  { %4030 = vst.msk [vmem:[%s6979_s1 + $0x984] ss:$-312 sm:$0xc0] %vm612_vm3, %v1597_v15   ;;  %v3424_v21 = vld [vmem:[#allocation0 + $0x371] ss:$-1 sm:%s3423_s14]   ;;  %v3401_v28 = vsel %vm3400_vm12, %v3399_v23, %v3381_v16  ;;  %s4440_s25 = smov 8   ;;  %v1770_v15 = vpop.permute.xlu0 %1769  }
 0x15f   :  { %v3445_v22 = vld [vmem:[#allocation0 + $0x194] sm:$0x30]   ;;  %v3449_v26 = vld [vmem:[#allocation0 + $0x25a] sm:$0xc0]   ;;  %v3453_v27 = vld [vmem:[#allocation0 + $0x10] sm:$0x3]   ;;  %3402 = vrot.lane.b32.xlu1 %v3401_v28, %s4440_s25 }
 0x160   :  { %v3427_v24 = vld [vmem:[#allocation0 + $0x379] ss:$-1 sm:%s3426_s15]   ;;  %v3447_v25 = vsel %vm645_vm1, %v3445_v22, %v3443_v14  ;;  %v3459_v32 = vld [vmem:[#allocation0 + $0x19c] sm:$0x30]   ;;  %v3463_v33 = vld [vmem:[#allocation0 + $0x262] sm:$0xc0]   ;;  %v1793_v22 = vpop.permute.xlu1 %1792  }
 0x161   :  { %v3429_v29 = vsel %vm3400_vm12, %v3427_v24, %v3424_v21  ;;  %v3455_v31 = vld [vmem:[#allocation0 + $0xd6] sm:$0xc]   ;;  %4036 = vst.msk [vmem:[%s6979_s1 + $0x146] ss:$-312 sm:$0x3] %vm612_vm3, %v1658_v30   ;;  %v3451_v35 = vsel %vm650_vm2, %v3449_v26, %v3447_v25  ;;  %s3503_s30 = smov 3 }
 0x162   :  { %3430 = vrot.lane.b32.xlu0 %v3429_v29, %s4440_s25  ;;  %4037 = vst.msk [vmem:[%s6979_s1 + $0x3f6] ss:$-312 sm:$0xc] %vm612_vm3, %v1658_v30   ;;  %4038 = vst.msk [vmem:[%s6979_s1 + $0x6a6] ss:$-312 sm:$0x30] %vm612_vm3, %v1658_v30   ;;  %v3457_v36 = vsel %vm640_vm0, %v3455_v31, %v3453_v27  ;;  %v1807_v21 = vpop.permute.xlu0 %1806  }
 0x163   :  { %4039 = vst.msk [vmem:[%s6979_s1 + $0x956] ss:$-312 sm:$0xc0] %vm612_vm3, %v1658_v30   ;;  %v3489_v37 = vld [vmem:[#allocation0 + $0x328] sm:$0x3]   ;;  %v3461_v39 = vsel %vm645_vm1, %v3459_v32, %v3457_v36  ;;  %s3506_s19 = smov 12 }
 0x164   :  { %v3491_v38 = vld [vmem:[#allocation0 + $0x330] sm:$0x3]   ;;  %4035 = vst.msk [vmem:[%s6979_s1 + $0x125] ss:$312 sm:$0x3] %vm612_vm3, %v1635_v34   ;;  %s3511_s3 = smov 48  ;;  %v3465_v42 = vsel %vm650_vm2, %v3463_v33, %v3461_v39  ;;  %v1830_v24 = vpop.permute.xlu1 %1829  }
 0x165   :  { %v3493_v40 = vsel %vm3466_vm13, %v3491_v38, %v3489_v37  ;;  %v3504_v41 = vld [vmem:[#allocation0 + $0x89] ss:$-1 sm:%s3503_s30]   ;;  %v3507_v43 = vld [vmem:[#allocation0 + $0x153] ss:$-1 sm:%s3506_s19]   ;;  %v3512_v44 = vld [vmem:[#allocation0 + $0x21d] ss:$-1 sm:%s3511_s3]   ;;  %v3467_v45 = vsel %vm3466_vm13, %v3465_v42, %v3451_v35 }
 0x166   :  { %s3516_s6 = smov 192  ;;  %s3521_s4 = smov 3  ;;  %v3509_v47 = vsel %vm640_vm0, %v3507_v43, %v3504_v41  ;;  %4041 = vst.msk [vmem:[%s6979_s1 + $0x16f] ss:$-312 sm:$0x3] %vm612_vm3, %v1695_v46   ;;  %v1844_v23 = vpop.permute.xlu0 %1843   ;;  %vm2106_vm15 = vcmask 408944  }
 0x167   :  { %v3517_v48 = vld [vmem:[#allocation0 + $0x2e7] ss:$-1 sm:%s3516_s6]   ;;  %v3522_v49 = vld [vmem:[#allocation0 + $0x91] ss:$-1 sm:%s3521_s4]   ;;  %s3524_s12 = smov 12  ;;  %s3529_s16 = smov 48  ;;  %v3514_v51 = vsel %vm645_vm1, %v3512_v44, %v3509_v47 }
 0x168   :  { %s4441_s5 = smov 6   ;;  %4042 = vst.msk [vmem:[%s6979_s1 + $0x41f] ss:$-312 sm:$0xc] %vm612_vm3, %v1695_v46   ;;  %v3525_v52 = vld [vmem:[#allocation0 + $0x15b] ss:$-1 sm:%s3524_s12]   ;;  %v3519_v54 = vsel %vm650_vm2, %v3517_v48, %v3514_v51  ;;  %v1863_v26 = vpop.permute.xlu1 %1862  }
 0x169   :  { %3468 = vrot.lane.b32.xlu1 %v3467_v45, %s4441_s5  ;;  %3494 = vrot.lane.b32.xlu0 %v3493_v40, %s4441_s5  ;;  %4043 = vst.msk [vmem:[%s6979_s1 + $0x6cf] ss:$-312 sm:$0x30] %vm612_vm3, %v1695_v46   ;;  %4044 = vst.msk [vmem:[%s6979_s1 + $0x97f] ss:$-312 sm:$0xc0] %vm612_vm3, %v1695_v46   ;;  %v3527_v55 = vsel %vm640_vm0, %v3525_v52, %v3522_v49 }
 0x16a   :  { %v3530_v53 = vld [vmem:[#allocation0 + $0x225] ss:$-1 sm:%s3529_s16]   ;;  %s3534_s24 = smov 192  ;;  %4040 = vst.msk [vmem:[%s6979_s1 + $0x246] ss:$-312 sm:$0x3] %vm612_vm3, %v1672_v50   ;;  %v1876_v25 = vpop.permute.xlu0 %1875  }
 0x16b   :  { %v3535_v56 = vld [vmem:[#allocation0 + $0x2ef] ss:$-1 sm:%s3534_s24]   ;;  %s3561_s25 = smov 3  ;;  %s3564_s9 = smov 3  ;;  %v3532_v57 = vsel %vm645_vm1, %v3530_v53, %v3527_v55  ;;  %vm2171_vm4 = vcmask 359424   ;;  %vm2180_vm5 = vcmask 408928  }
 0x16c   :  { %v3562_v58 = vld [vmem:[#allocation0 + $0x3a9] ss:$-1 sm:%s3561_s25]   ;;  %v3565_v59 = vld [vmem:[#allocation0 + $0x3b1] ss:$-1 sm:%s3564_s9]   ;;  %s3577_s8 = smov 3  ;;  %s3580_s28 = smov 12  ;;  %v3537_v60 = vsel %vm650_vm2, %v3535_v56, %v3532_v57  ;;  %v1899_v28 = vpop.permute.xlu1 %1898  }
 0x16d   :  { %v3567_v61 = vsel %vm3538_vm14, %v3565_v59, %v3562_v58  ;;  %v3578_v63 = vld [vmem:[#allocation0 + $0x41] ss:$-1 sm:%s3577_s8]   ;;  %v3581_v0 = vld [vmem:[#allocation0 + $0x10b] ss:$-1 sm:%s3580_s28]   ;;  %s3585_s29 = smov 48  ;;  %s3590_s7 = smov 192  ;;  %v3539_v1 = vsel %vm3538_vm14, %v3537_v60, %v3519_v54 }
 0x16e   :  { %s4442_s11 = smov 4   ;;  %4049 = vst.msk [vmem:[%s6979_s1 + $0x120] ss:$312 sm:$0x3] %vm612_vm3, %v1733_v62   ;;  %v3583_v3 = vsel %vm640_vm0, %v3581_v0, %v3578_v63  ;;  %v3586_v4 = vld [vmem:[#allocation0 + $0x1d5] ss:$-1 sm:%s3585_s29]   ;;  %v1913_v27 = vpop.permute.xlu0 %1912  }
 0x16f   :  { %3568 = vrot.lane.b32.xlu0 %v3567_v61, %s4442_s11  ;;  %v3591_v5 = vld [vmem:[#allocation0 + $0x29f] ss:$-1 sm:%s3590_s7]   ;;  %s3595_s30 = smov 3  ;;  %s3598_s27 = smov 12  ;;  %3540 = vrot.lane.b32.xlu1 %v3539_v1, %s4442_s11  ;;  %v3588_v6 = vsel %vm645_vm1, %v3586_v4, %v3583_v3  ;;  %vm2221_vm6 = vcmask 343040   ;;  %vm2230_vm7 = vcmask 408912  }
 0x170   :  { %4045 = vst.msk [vmem:[%s6979_s1 + $0x20] ss:$312 sm:$0x3] %vm612_vm3, %v1720_v2   ;;  %4046 = vst.msk [vmem:[%s6979_s1 - $0x210] ss:$312 sm:$0xc] %vm612_vm3, %v1720_v2   ;;  %v3593_v9 = vsel %vm650_vm2, %v3591_v5, %v3588_v6  ;;  %v1936_v30 = vpop.permute.xlu1 %1935  }
 0x171   :  { %4047 = vst.msk [vmem:[%s6979_s1 - $0x440] ss:$312 sm:$0x30] %vm612_vm3, %v1720_v2   ;;  %4048 = vst.msk [vmem:[%s6979_s1 - $0x670] ss:$312 sm:$0xc0] %vm612_vm3, %v1720_v2  }
 0x172   :  { %v3596_v7 = vld [vmem:[#allocation0 + $0x49] ss:$-1 sm:%s3595_s30]   ;;  %v3599_v8 = vld [vmem:[#allocation0 + $0x113] ss:$-1 sm:%s3598_s27]   ;;  %s3603_s26 = smov 48  ;;  %s3608_s14 = smov 192  ;;  %v1950_v29 = vpop.permute.xlu0 %1949  }
 0x173   :  { %v3601_v10 = vsel %vm640_vm0, %v3599_v8, %v3596_v7  ;;  %v3604_v11 = vld [vmem:[#allocation0 + $0x1dd] ss:$-1 sm:%s3603_s26]   ;;  %v3609_v12 = vld [vmem:[#allocation0 + $0x2a7] ss:$-1 sm:%s3608_s14]   ;;  %vm3612_vm0 = vcmask 1031168   ;;  %s3635_s17 = smov 3 }
 0x174   :  { %v3606_v13 = vsel %vm645_vm1, %v3604_v11, %v3601_v10  ;;  %v3636_v14 = vld [vmem:[#allocation0 + $0x361] ss:$-1 sm:%s3635_s17]   ;;  %s3638_s13 = smov 3  ;;  %4054 = vst.msk [vmem:[%s6979_s1 + $0x241] ss:$-312 sm:$0x3] %vm612_vm3, %v1770_v15   ;;  %v1973_v32 = vpop.permute.xlu1 %1972  }
 0x175   :  { %v3611_v16 = vsel %vm650_vm2, %v3609_v12, %v3606_v13  ;;  %v3639_v17 = vld [vmem:[#allocation0 + $0x369] ss:$-1 sm:%s3638_s13]   ;;  %4050 = vst.msk [vmem:[%s6979_s1 + $0x141] ss:$-312 sm:$0x3] %vm612_vm3, %v1756_v18   ;;  %s4443_s28 = smov 2  }
 0x176   :  { %v3613_v19 = vsel %vm3612_vm0, %v3611_v16, %v3593_v9  ;;  %v3641_v20 = vsel %vm3612_vm0, %v3639_v17, %v3636_v14  ;;  %4051 = vst.msk [vmem:[%s6979_s1 + $0x3f1] ss:$-312 sm:$0xc] %vm612_vm3, %v1756_v18   ;;  %4052 = vst.msk [vmem:[%s6979_s1 + $0x6a1] ss:$-312 sm:$0x30] %vm612_vm3, %v1756_v18   ;;  %v2022_v31 = vpop.permute.xlu0 %2021  }
 0x177   :  { %4053 = vst.msk [vmem:[%s6979_s1 + $0x951] ss:$-312 sm:$0xc0] %vm612_vm3, %v1756_v18   ;;  %3614 = vrot.lane.b32.xlu1 %v3613_v19, %s4443_s28  ;;  %3642 = vrot.lane.b32.xlu0 %v3641_v20, %s4443_s28  ;;  %4059 = vst.msk [vmem:[%s6979_s1 + $0x26a] ss:$-312 sm:$0x3] %vm612_vm3, %v1807_v21  }
 0x178   :  { %4055 = vst.msk [vmem:[%s6979_s1 + $0x16a] ss:$-312 sm:$0x3] %vm612_vm3, %v1793_v22   ;;  %4056 = vst.msk [vmem:[%s6979_s1 + $0x41a] ss:$-312 sm:$0xc] %vm612_vm3, %v1793_v22   ;;  %v2050_v34 = vpop.permute.xlu1 %2049  }
 0x179   :  { %4057 = vst.msk [vmem:[%s6979_s1 + $0x6ca] ss:$-312 sm:$0x30] %vm612_vm3, %v1793_v22   ;;  %4058 = vst.msk [vmem:[%s6979_s1 + $0x97a] ss:$-312 sm:$0xc0] %vm612_vm3, %v1793_v22  }
 0x17a   :  { %4064 = vst.msk [vmem:[%s6979_s1 + $0x253] ss:$-312 sm:$0x3] %vm612_vm3, %v1844_v23   ;;  %4060 = vst.msk [vmem:[%s6979_s1 + $0x153] ss:$-312 sm:$0x3] %vm612_vm3, %v1830_v24   ;;  %v2096_v33 = vpop.permute.xlu0 %2095  }
 0x17b   :  { %4061 = vst.msk [vmem:[%s6979_s1 + $0x403] ss:$-312 sm:$0xc] %vm612_vm3, %v1830_v24   ;;  %4062 = vst.msk [vmem:[%s6979_s1 + $0x6b3] ss:$-312 sm:$0x30] %vm612_vm3, %v1830_v24  }
 0x17c   :  { %4063 = vst.msk [vmem:[%s6979_s1 + $0x963] ss:$-312 sm:$0xc0] %vm612_vm3, %v1830_v24   ;;  %4069 = vst.msk [vmem:[%s6979_s1 + $0x104] ss:$312 sm:$0x3] %vm612_vm3, %v1876_v25   ;;  %v2124_v36 = vpop.permute.xlu1 %2123  }
 0x17d   :  { %4065 = vst.msk [vmem:[%s6979_s1 + $0x4] ss:$312 sm:$0x3] %vm612_vm3, %v1863_v26   ;;  %4066 = vst.msk [vmem:[%s6979_s1 - $0x22c] ss:$312 sm:$0xc] %vm612_vm3, %v1863_v26  }
 0x17e   :  { %4067 = vst.msk [vmem:[%s6979_s1 - $0x45c] ss:$312 sm:$0x30] %vm612_vm3, %v1863_v26   ;;  %4068 = vst.msk [vmem:[%s6979_s1 - $0x68c] ss:$312 sm:$0xc0] %vm612_vm3, %v1863_v26   ;;  %v2170_v35 = vpop.permute.xlu0 %2169  }
 0x17f   :  { %4074 = vst.msk [vmem:[%s6979_s1 + $0x265] ss:$-312 sm:$0x3] %vm612_vm3, %v1913_v27   ;;  %4070 = vst.msk [vmem:[%s6979_s1 + $0x165] ss:$-312 sm:$0x3] %vm612_vm3, %v1899_v28  }
 0x180   :  { %4071 = vst.msk [vmem:[%s6979_s1 + $0x415] ss:$-312 sm:$0xc] %vm612_vm3, %v1899_v28   ;;  %4072 = vst.msk [vmem:[%s6979_s1 + $0x6c5] ss:$-312 sm:$0x30] %vm612_vm3, %v1899_v28   ;;  %v2220_v38 = vpop.permute.xlu1 %2219  }
 0x181   :  { %4073 = vst.msk [vmem:[%s6979_s1 + $0x975] ss:$-312 sm:$0xc0] %vm612_vm3, %v1899_v28   ;;  %4079 = vst.msk [vmem:[%s6979_s1 + $0x24e] ss:$-312 sm:$0x3] %vm612_vm3, %v1950_v29  }
 0x182   :  { %4075 = vst.msk [vmem:[%s6979_s1 + $0x14e] ss:$-312 sm:$0x3] %vm612_vm3, %v1936_v30   ;;  %4076 = vst.msk [vmem:[%s6979_s1 + $0x3fe] ss:$-312 sm:$0xc] %vm612_vm3, %v1936_v30   ;;  %v2246_v37 = vpop.permute.xlu0 %2245  }
 0x183   :  { %4077 = vst.msk [vmem:[%s6979_s1 + $0x6ae] ss:$-312 sm:$0x30] %vm612_vm3, %v1936_v30   ;;  %4078 = vst.msk [vmem:[%s6979_s1 + $0x95e] ss:$-312 sm:$0xc0] %vm612_vm3, %v1936_v30  }
 0x184   :  { %vm2023_vm1 = vcmask 392192   ;;  %vm2032_vm2 = vcmask 408960   ;;  %4080 = vst.msk [vmem:[%s6979_s1 + $0x177] ss:$-312 sm:$0x3] %vm612_vm3, %v1973_v32   ;;  %vm2293_vm8 = vcmask 326656   ;;  %v2292_v40 = vpop.permute.xlu1 %2291  }
 0x185   :  { %4084 = vst.msk [vmem:[%s6979_s1 + $0x160] ss:$-312 sm:$0x3] %vm2023_vm1, %v2022_v31   ;;  %4085 = vst.msk [vmem:[%s6979_s1 + $0x410] ss:$-312 sm:$0xc] %vm2023_vm1, %v2022_v31  }
 0x186   :  { %4086 = vst.msk [vmem:[%s6979_s1 + $0x6c0] ss:$-312 sm:$0x30] %vm2023_vm1, %v2022_v31   ;;  %4087 = vst.msk [vmem:[%s6979_s1 + $0x970] ss:$-312 sm:$0xc0] %vm2023_vm1, %v2022_v31   ;;  %v2320_v39 = vpop.permute.xlu0 %2319  }
 0x187   :  { %4081 = vst.msk [vmem:[%s6979_s1 + $0x427] ss:$-312 sm:$0xc] %vm612_vm3, %v1973_v32   ;;  %4082 = vst.msk [vmem:[%s6979_s1 + $0x6d7] ss:$-312 sm:$0x30] %vm612_vm3, %v1973_v32  }
 0x188   :  { %4083 = vst.msk [vmem:[%s6979_s1 + $0x987] ss:$-312 sm:$0xc0] %vm612_vm3, %v1973_v32   ;;  %vm2097_vm3 = vcmask 375808   ;;  %vm2302_vm9 = vcmask 408896   ;;  %vm2367_vm10 = vcmask 310272   ;;  %v2366_v42 = vpop.permute.xlu1 %2365  }
 0x189   :  { %4088 = vst.msk [vmem:[%s6979_s1 + $0x160] ss:$-312 sm:$0x3] %vm2032_vm2, %v2022_v31   ;;  %4089 = vst.msk [vmem:[%s6979_s1 + $0x410] ss:$-312 sm:$0xc] %vm2032_vm2, %v2022_v31  }
 0x18a   :  { %4090 = vst.msk [vmem:[%s6979_s1 + $0x6c0] ss:$-312 sm:$0x30] %vm2032_vm2, %v2022_v31   ;;  %4091 = vst.msk [vmem:[%s6979_s1 + $0x970] ss:$-312 sm:$0xc0] %vm2032_vm2, %v2022_v31   ;;  %v2394_v41 = vpop.permute.xlu0 %2393  }
 0x18b   :  { %4094 = vst.msk [vmem:[%s6979_s1 + $0x149] ss:$-312 sm:$0x3] %vm2097_vm3, %v2096_v33   ;;  %4095 = vst.msk [vmem:[%s6979_s1 + $0x3f9] ss:$-312 sm:$0xc] %vm2097_vm3, %v2096_v33  }
 0x18c   :  { %4096 = vst.msk [vmem:[%s6979_s1 + $0x6a9] ss:$-312 sm:$0x30] %vm2097_vm3, %v2096_v33   ;;  %4097 = vst.msk [vmem:[%s6979_s1 + $0x959] ss:$-312 sm:$0xc0] %vm2097_vm3, %v2096_v33   ;;  %v2440_v44 = vpop.permute.xlu1 %2439  }
 0x18d   :  { %4092 = vst.msk [vmem:[%s6979_s1 + $0x260] ss:$-312 sm:$0x3] %vm2023_vm1, %v2050_v34   ;;  %vm2376_vm11 = vcmask 408880   ;;  %vm2441_vm12 = vcmask 293888   ;;  %vm2450_vm13 = vcmask 408864  }
 0x18e   :  { %4098 = vst.msk [vmem:[%s6979_s1 + $0x149] ss:$-312 sm:$0x3] %vm2106_vm15, %v2096_v33   ;;  %4099 = vst.msk [vmem:[%s6979_s1 + $0x3f9] ss:$-312 sm:$0xc] %vm2106_vm15, %v2096_v33   ;;  %v2468_v43 = vpop.permute.xlu0 %2467  }
 0x18f   :  { %4100 = vst.msk [vmem:[%s6979_s1 + $0x6a9] ss:$-312 sm:$0x30] %vm2106_vm15, %v2096_v33   ;;  %4101 = vst.msk [vmem:[%s6979_s1 + $0x959] ss:$-312 sm:$0xc0] %vm2106_vm15, %v2096_v33  }
 0x190   :  { %4093 = vst.msk [vmem:[%s6979_s1 + $0x260] ss:$-312 sm:$0x3] %vm2032_vm2, %v2050_v34   ;;  %vm2507_vm14 = vcmask 277504   ;;  %vm2516_vm0 = vcmask 408848   ;;  %v2506_v46 = vpop.permute.xlu1 %2505   ;;  %vm2579_vm1 = vcmask 261120  }
 0x191   :  { %4104 = vst.msk [vmem:[%s6979_s1 + $0x172] ss:$-312 sm:$0x3] %vm2171_vm4, %v2170_v35   ;;  %4105 = vst.msk [vmem:[%s6979_s1 + $0x422] ss:$-312 sm:$0xc] %vm2171_vm4, %v2170_v35  }
 0x192   :  { %4106 = vst.msk [vmem:[%s6979_s1 + $0x6d2] ss:$-312 sm:$0x30] %vm2171_vm4, %v2170_v35   ;;  %4107 = vst.msk [vmem:[%s6979_s1 + $0x982] ss:$-312 sm:$0xc0] %vm2171_vm4, %v2170_v35   ;;  %v2532_v45 = vpop.permute.xlu0 %2531  }
 0x193   :  { %4102 = vst.msk [vmem:[%s6979_s1 + $0x249] ss:$-312 sm:$0x3] %vm2097_vm3, %v2124_v36   ;;  %vm2588_vm2 = vcmask 408832   ;;  %vm2653_vm3 = vcmask 244736   ;;  %vm2718_vm4 = vcmask 228352  }
 0x194   :  { %4108 = vst.msk [vmem:[%s6979_s1 + $0x172] ss:$-312 sm:$0x3] %vm2180_vm5, %v2170_v35   ;;  %4109 = vst.msk [vmem:[%s6979_s1 + $0x422] ss:$-312 sm:$0xc] %vm2180_vm5, %v2170_v35   ;;  %v2578_v48 = vpop.permute.xlu1 %2577  }
 0x195   :  { %4110 = vst.msk [vmem:[%s6979_s1 + $0x6d2] ss:$-312 sm:$0x30] %vm2180_vm5, %v2170_v35   ;;  %4111 = vst.msk [vmem:[%s6979_s1 + $0x982] ss:$-312 sm:$0xc0] %vm2180_vm5, %v2170_v35  }
 0x196   :  { %4103 = vst.msk [vmem:[%s6979_s1 + $0x249] ss:$-312 sm:$0x3] %vm2106_vm15, %v2124_v36   ;;  %v2606_v47 = vpop.permute.xlu0 %2605   ;;  %vm2662_vm15 = vcmask 408816   ;;  %vm2727_vm5 = vcmask 408800  }
 0x197   :  { %4120 = vst.msk [vmem:[%s6979_s1 + $0x123] ss:$312 sm:$0x3] %vm2221_vm6, %v2246_v37   ;;  %4112 = vst.msk [vmem:[%s6979_s1 + $0x23] ss:$312 sm:$0x3] %vm2221_vm6, %v2220_v38  }
 0x198   :  { %4113 = vst.msk [vmem:[%s6979_s1 - $0x20d] ss:$312 sm:$0xc] %vm2221_vm6, %v2220_v38   ;;  %4114 = vst.msk [vmem:[%s6979_s1 - $0x43d] ss:$312 sm:$0x30] %vm2221_vm6, %v2220_v38   ;;  %v2652_v50 = vpop.permute.xlu1 %2651  }
 0x199   :  { %4115 = vst.msk [vmem:[%s6979_s1 - $0x66d] ss:$312 sm:$0xc0] %vm2221_vm6, %v2220_v38   ;;  %vm2790_vm6 = vcmask 211968  }
 0x19a   :  { %4121 = vst.msk [vmem:[%s6979_s1 + $0x123] ss:$312 sm:$0x3] %vm2230_vm7, %v2246_v37   ;;  %4116 = vst.msk [vmem:[%s6979_s1 + $0x23] ss:$312 sm:$0x3] %vm2230_vm7, %v2220_v38   ;;  %v2680_v49 = vpop.permute.xlu0 %2679  }
 0x19b   :  { %4117 = vst.msk [vmem:[%s6979_s1 - $0x20d] ss:$312 sm:$0xc] %vm2230_vm7, %v2220_v38   ;;  %4118 = vst.msk [vmem:[%s6979_s1 - $0x43d] ss:$312 sm:$0x30] %vm2230_vm7, %v2220_v38  }
 0x19c   :  { %4119 = vst.msk [vmem:[%s6979_s1 - $0x66d] ss:$312 sm:$0xc0] %vm2230_vm7, %v2220_v38   ;;  %v2717_v52 = vpop.permute.xlu1 %2716   ;;  %vm2799_vm7 = vcmask 408784  }
 0x19d   :  { %4130 = vst.msk [vmem:[%s6979_s1 + $0x244] ss:$-312 sm:$0x3] %vm2293_vm8, %v2320_v39   ;;  %4122 = vst.msk [vmem:[%s6979_s1 + $0x144] ss:$-312 sm:$0x3] %vm2293_vm8, %v2292_v40  }
 0x19e   :  { %4123 = vst.msk [vmem:[%s6979_s1 + $0x3f4] ss:$-312 sm:$0xc] %vm2293_vm8, %v2292_v40   ;;  %4124 = vst.msk [vmem:[%s6979_s1 + $0x6a4] ss:$-312 sm:$0x30] %vm2293_vm8, %v2292_v40   ;;  %v2743_v51 = vpop.permute.xlu0 %2742  }
 0x19f   :  { %4125 = vst.msk [vmem:[%s6979_s1 + $0x954] ss:$-312 sm:$0xc0] %vm2293_vm8, %v2292_v40   ;;  %vm2864_vm8 = vcmask 195584  }
 0x1a0   :  { %4131 = vst.msk [vmem:[%s6979_s1 + $0x244] ss:$-312 sm:$0x3] %vm2302_vm9, %v2320_v39   ;;  %4126 = vst.msk [vmem:[%s6979_s1 + $0x144] ss:$-312 sm:$0x3] %vm2302_vm9, %v2292_v40   ;;  %v2789_v54 = vpop.permute.xlu1 %2788  }
 0x1a1   :  { %4127 = vst.msk [vmem:[%s6979_s1 + $0x3f4] ss:$-312 sm:$0xc] %vm2302_vm9, %v2292_v40   ;;  %4128 = vst.msk [vmem:[%s6979_s1 + $0x6a4] ss:$-312 sm:$0x30] %vm2302_vm9, %v2292_v40  }
 0x1a2   :  { %4129 = vst.msk [vmem:[%s6979_s1 + $0x954] ss:$-312 sm:$0xc0] %vm2302_vm9, %v2292_v40   ;;  %v2817_v53 = vpop.permute.xlu0 %2816   ;;  %vm2873_vm9 = vcmask 408768  }
 0x1a3   :  { %4140 = vst.msk [vmem:[%s6979_s1 + $0x26d] ss:$-312 sm:$0x3] %vm2367_vm10, %v2394_v41   ;;  %4132 = vst.msk [vmem:[%s6979_s1 + $0x16d] ss:$-312 sm:$0x3] %vm2367_vm10, %v2366_v42  }
 0x1a4   :  { %4133 = vst.msk [vmem:[%s6979_s1 + $0x41d] ss:$-312 sm:$0xc] %vm2367_vm10, %v2366_v42   ;;  %4134 = vst.msk [vmem:[%s6979_s1 + $0x6cd] ss:$-312 sm:$0x30] %vm2367_vm10, %v2366_v42   ;;  %v2863_v56 = vpop.permute.xlu1 %2862  }
 0x1a5   :  { %4135 = vst.msk [vmem:[%s6979_s1 + $0x97d] ss:$-312 sm:$0xc0] %vm2367_vm10, %v2366_v42   ;;  %vm2988_vm10 = vcmask 162816  }
 0x1a6   :  { %4141 = vst.msk [vmem:[%s6979_s1 + $0x26d] ss:$-312 sm:$0x3] %vm2376_vm11, %v2394_v41   ;;  %4136 = vst.msk [vmem:[%s6979_s1 + $0x16d] ss:$-312 sm:$0x3] %vm2376_vm11, %v2366_v42   ;;  %v2891_v55 = vpop.permute.xlu0 %2890  }
 0x1a7   :  { %4137 = vst.msk [vmem:[%s6979_s1 + $0x41d] ss:$-312 sm:$0xc] %vm2376_vm11, %v2366_v42   ;;  %4138 = vst.msk [vmem:[%s6979_s1 + $0x6cd] ss:$-312 sm:$0x30] %vm2376_vm11, %v2366_v42  }
 0x1a8   :  { %4139 = vst.msk [vmem:[%s6979_s1 + $0x97d] ss:$-312 sm:$0xc0] %vm2376_vm11, %v2366_v42   ;;  %vm2938_vm11 = vcmask 179200  }
 0x1a9   :  { %4150 = vst.msk [vmem:[%s6979_s1 + $0x256] ss:$-312 sm:$0x3] %vm2441_vm12, %v2468_v43   ;;  %4142 = vst.msk [vmem:[%s6979_s1 + $0x156] ss:$-312 sm:$0x3] %vm2441_vm12, %v2440_v44   ;;  %v2937_v58 = vpop.permute.xlu1 %2936  }
 0x1aa   :  { %4143 = vst.msk [vmem:[%s6979_s1 + $0x406] ss:$-312 sm:$0xc] %vm2441_vm12, %v2440_v44   ;;  %4144 = vst.msk [vmem:[%s6979_s1 + $0x6b6] ss:$-312 sm:$0x30] %vm2441_vm12, %v2440_v44   ;;  %v2987_v57 = vpop.permute.xlu0 %2986  }
 0x1ab   :  { %4145 = vst.msk [vmem:[%s6979_s1 + $0x966] ss:$-312 sm:$0xc0] %vm2441_vm12, %v2440_v44   ;;  %vm2997_vm12 = vcmask 408736  }
 0x1ac   :  { %4151 = vst.msk [vmem:[%s6979_s1 + $0x256] ss:$-312 sm:$0x3] %vm2450_vm13, %v2468_v43   ;;  %4146 = vst.msk [vmem:[%s6979_s1 + $0x156] ss:$-312 sm:$0x3] %vm2450_vm13, %v2440_v44  }
 0x1ad   :  { %4147 = vst.msk [vmem:[%s6979_s1 + $0x406] ss:$-312 sm:$0xc] %vm2450_vm13, %v2440_v44   ;;  %4148 = vst.msk [vmem:[%s6979_s1 + $0x6b6] ss:$-312 sm:$0x30] %vm2450_vm13, %v2440_v44   ;;  %v3013_v60 = vpop.permute.xlu1 %3012  }
 0x1ae   :  { %4149 = vst.msk [vmem:[%s6979_s1 + $0x966] ss:$-312 sm:$0xc0] %vm2450_vm13, %v2440_v44   ;;  %vm2947_vm13 = vcmask 408752  }
 0x1af   :  { %4160 = vst.msk [vmem:[%s6979_s1 + $0x107] ss:$312 sm:$0x3] %vm2507_vm14, %v2532_v45   ;;  %4152 = vst.msk [vmem:[%s6979_s1 + $0x7] ss:$312 sm:$0x3] %vm2507_vm14, %v2506_v46   ;;  %v3059_v59 = vpop.permute.xlu0 %3058  }
 0x1b0   :  { %4153 = vst.msk [vmem:[%s6979_s1 - $0x229] ss:$312 sm:$0xc] %vm2507_vm14, %v2506_v46   ;;  %4154 = vst.msk [vmem:[%s6979_s1 - $0x459] ss:$312 sm:$0x30] %vm2507_vm14, %v2506_v46  }
 0x1b1   :  { %4155 = vst.msk [vmem:[%s6979_s1 - $0x689] ss:$312 sm:$0xc0] %vm2507_vm14, %v2506_v46   ;;  %vm3060_vm14 = vcmask 146432   ;;  %v3087_v62 = vpop.permute.xlu1 %3086  }
 0x1b2   :  { %4161 = vst.msk [vmem:[%s6979_s1 + $0x107] ss:$312 sm:$0x3] %vm2516_vm0, %v2532_v45   ;;  %4156 = vst.msk [vmem:[%s6979_s1 + $0x7] ss:$312 sm:$0x3] %vm2516_vm0, %v2506_v46  }
 0x1b3   :  { %4157 = vst.msk [vmem:[%s6979_s1 - $0x229] ss:$312 sm:$0xc] %vm2516_vm0, %v2506_v46   ;;  %4158 = vst.msk [vmem:[%s6979_s1 - $0x459] ss:$312 sm:$0x30] %vm2516_vm0, %v2506_v46  }
 0x1b4   :  { %4159 = vst.msk [vmem:[%s6979_s1 - $0x689] ss:$312 sm:$0xc0] %vm2516_vm0, %v2506_v46   ;;  %vm3069_vm0 = vcmask 408720  }
 0x1b5   :  { %4170 = vst.msk [vmem:[%s6979_s1 + $0x268] ss:$-312 sm:$0x3] %vm2579_vm1, %v2606_v47   ;;  %4162 = vst.msk [vmem:[%s6979_s1 + $0x168] ss:$-312 sm:$0x3] %vm2579_vm1, %v2578_v48   ;;  %v3133_v61 = vpop.permute.xlu0 %3132  }
 0x1b6   :  { %4163 = vst.msk [vmem:[%s6979_s1 + $0x418] ss:$-312 sm:$0xc] %vm2579_vm1, %v2578_v48   ;;  %4164 = vst.msk [vmem:[%s6979_s1 + $0x6c8] ss:$-312 sm:$0x30] %vm2579_vm1, %v2578_v48  }
 0x1b7   :  { %4165 = vst.msk [vmem:[%s6979_s1 + $0x978] ss:$-312 sm:$0xc0] %vm2579_vm1, %v2578_v48   ;;  %vm3134_vm1 = vcmask 130048  }
 0x1b8   :  { %4171 = vst.msk [vmem:[%s6979_s1 + $0x268] ss:$-312 sm:$0x3] %vm2588_vm2, %v2606_v47   ;;  %4166 = vst.msk [vmem:[%s6979_s1 + $0x168] ss:$-312 sm:$0x3] %vm2588_vm2, %v2578_v48  }
 0x1b9   :  { %4167 = vst.msk [vmem:[%s6979_s1 + $0x418] ss:$-312 sm:$0xc] %vm2588_vm2, %v2578_v48   ;;  %4168 = vst.msk [vmem:[%s6979_s1 + $0x6c8] ss:$-312 sm:$0x30] %vm2588_vm2, %v2578_v48   ;;  %v3209_v63 = vpop.permute.xlu0 %3208   ;;  %v3183_v0 = vpop.permute.xlu1 %3182  }
 0x1ba   :  { %4169 = vst.msk [vmem:[%s6979_s1 + $0x978] ss:$-312 sm:$0xc0] %vm2588_vm2, %v2578_v48   ;;  %vm3143_vm2 = vcmask 408704  }
 0x1bb   :  { %4180 = vst.msk [vmem:[%s6979_s1 + $0x251] ss:$-312 sm:$0x3] %vm2653_vm3, %v2680_v49   ;;  %4172 = vst.msk [vmem:[%s6979_s1 + $0x151] ss:$-312 sm:$0x3] %vm2653_vm3, %v2652_v50  }
 0x1bc   :  { %4173 = vst.msk [vmem:[%s6979_s1 + $0x401] ss:$-312 sm:$0xc] %vm2653_vm3, %v2652_v50   ;;  %4174 = vst.msk [vmem:[%s6979_s1 + $0x6b1] ss:$-312 sm:$0x30] %vm2653_vm3, %v2652_v50  }
 0x1bd   :  { %4175 = vst.msk [vmem:[%s6979_s1 + $0x961] ss:$-312 sm:$0xc0] %vm2653_vm3, %v2652_v50   ;;  %vm3184_vm3 = vcmask 113664  }
 0x1be   :  { %4181 = vst.msk [vmem:[%s6979_s1 + $0x251] ss:$-312 sm:$0x3] %vm2662_vm15, %v2680_v49   ;;  %4176 = vst.msk [vmem:[%s6979_s1 + $0x151] ss:$-312 sm:$0x3] %vm2662_vm15, %v2652_v50  }
 0x1bf   :  { %4177 = vst.msk [vmem:[%s6979_s1 + $0x401] ss:$-312 sm:$0xc] %vm2662_vm15, %v2652_v50   ;;  %4178 = vst.msk [vmem:[%s6979_s1 + $0x6b1] ss:$-312 sm:$0x30] %vm2662_vm15, %v2652_v50  }
 0x1c0   :  { %4179 = vst.msk [vmem:[%s6979_s1 + $0x961] ss:$-312 sm:$0xc0] %vm2662_vm15, %v2652_v50   ;;  %vm3193_vm15 = vcmask 408688   ;;  %v3283_v1 = vpop.permute.xlu0 %3282   ;;  %v3255_v2 = vpop.permute.xlu1 %3254  }
 0x1c1   :  { %4190 = vst.msk [vmem:[%s6979_s1 + $0x102] ss:$312 sm:$0x3] %vm2718_vm4, %v2743_v51   ;;  %4182 = vst.msk [vmem:[%s6979_s1 + $0x2] ss:$312 sm:$0x3] %vm2718_vm4, %v2717_v52  }
 0x1c2   :  { %4183 = vst.msk [vmem:[%s6979_s1 - $0x22e] ss:$312 sm:$0xc] %vm2718_vm4, %v2717_v52   ;;  %4184 = vst.msk [vmem:[%s6979_s1 - $0x45e] ss:$312 sm:$0x30] %vm2718_vm4, %v2717_v52  }
 0x1c3   :  { %4185 = vst.msk [vmem:[%s6979_s1 - $0x68e] ss:$312 sm:$0xc0] %vm2718_vm4, %v2717_v52   ;;  %vm3256_vm4 = vcmask 97280  }
 0x1c4   :  { %4191 = vst.msk [vmem:[%s6979_s1 + $0x102] ss:$312 sm:$0x3] %vm2727_vm5, %v2743_v51   ;;  %4186 = vst.msk [vmem:[%s6979_s1 + $0x2] ss:$312 sm:$0x3] %vm2727_vm5, %v2717_v52  }
 0x1c5   :  { %4187 = vst.msk [vmem:[%s6979_s1 - $0x22e] ss:$312 sm:$0xc] %vm2727_vm5, %v2717_v52   ;;  %4188 = vst.msk [vmem:[%s6979_s1 - $0x45e] ss:$312 sm:$0x30] %vm2727_vm5, %v2717_v52  }
 0x1c6   :  { %4189 = vst.msk [vmem:[%s6979_s1 - $0x68e] ss:$312 sm:$0xc0] %vm2727_vm5, %v2717_v52   ;;  %vm3265_vm5 = vcmask 408672  }
 0x1c7   :  { %4200 = vst.msk [vmem:[%s6979_s1 + $0x263] ss:$-312 sm:$0x3] %vm2790_vm6, %v2817_v53   ;;  %4192 = vst.msk [vmem:[%s6979_s1 + $0x163] ss:$-312 sm:$0x3] %vm2790_vm6, %v2789_v54  }
 0x1c8   :  { %4193 = vst.msk [vmem:[%s6979_s1 + $0x413] ss:$-312 sm:$0xc] %vm2790_vm6, %v2789_v54   ;;  %4194 = vst.msk [vmem:[%s6979_s1 + $0x6c3] ss:$-312 sm:$0x30] %vm2790_vm6, %v2789_v54  }
 0x1c9   :  { %4195 = vst.msk [vmem:[%s6979_s1 + $0x973] ss:$-312 sm:$0xc0] %vm2790_vm6, %v2789_v54   ;;  %vm3330_vm6 = vcmask 80896  }
 0x1ca   :  { %4201 = vst.msk [vmem:[%s6979_s1 + $0x263] ss:$-312 sm:$0x3] %vm2799_vm7, %v2817_v53   ;;  %4196 = vst.msk [vmem:[%s6979_s1 + $0x163] ss:$-312 sm:$0x3] %vm2799_vm7, %v2789_v54   ;;  %v3357_v3 = vpop.permute.xlu0 %3356   ;;  %v3329_v4 = vpop.permute.xlu1 %3328  }
 0x1cb   :  { %4197 = vst.msk [vmem:[%s6979_s1 + $0x413] ss:$-312 sm:$0xc] %vm2799_vm7, %v2789_v54   ;;  %4198 = vst.msk [vmem:[%s6979_s1 + $0x6c3] ss:$-312 sm:$0x30] %vm2799_vm7, %v2789_v54  }
 0x1cc   :  { %4199 = vst.msk [vmem:[%s6979_s1 + $0x973] ss:$-312 sm:$0xc0] %vm2799_vm7, %v2789_v54   ;;  %vm3339_vm7 = vcmask 408656  }
 0x1cd   :  { %4210 = vst.msk [vmem:[%s6979_s1 + $0x24c] ss:$-312 sm:$0x3] %vm2864_vm8, %v2891_v55   ;;  %4202 = vst.msk [vmem:[%s6979_s1 + $0x14c] ss:$-312 sm:$0x3] %vm2864_vm8, %v2863_v56  }
 0x1ce   :  { %4203 = vst.msk [vmem:[%s6979_s1 + $0x3fc] ss:$-312 sm:$0xc] %vm2864_vm8, %v2863_v56   ;;  %4204 = vst.msk [vmem:[%s6979_s1 + $0x6ac] ss:$-312 sm:$0x30] %vm2864_vm8, %v2863_v56  }
 0x1cf   :  { %4205 = vst.msk [vmem:[%s6979_s1 + $0x95c] ss:$-312 sm:$0xc0] %vm2864_vm8, %v2863_v56   ;;  %vm3404_vm8 = vcmask 64512  }
 0x1d0   :  { %4211 = vst.msk [vmem:[%s6979_s1 + $0x24c] ss:$-312 sm:$0x3] %vm2873_vm9, %v2891_v55   ;;  %4206 = vst.msk [vmem:[%s6979_s1 + $0x14c] ss:$-312 sm:$0x3] %vm2873_vm9, %v2863_v56  }
 0x1d1   :  { %4207 = vst.msk [vmem:[%s6979_s1 + $0x3fc] ss:$-312 sm:$0xc] %vm2873_vm9, %v2863_v56   ;;  %4208 = vst.msk [vmem:[%s6979_s1 + $0x6ac] ss:$-312 sm:$0x30] %vm2873_vm9, %v2863_v56   ;;  %v3403_v5 = vpop.permute.xlu1 %3402  }
 0x1d2   :  { %4209 = vst.msk [vmem:[%s6979_s1 + $0x95c] ss:$-312 sm:$0xc0] %vm2873_vm9, %v2863_v56   ;;  %vm3413_vm9 = vcmask 408640  }
 0x1d3   :  { %4220 = vst.msk [vmem:[%s6979_s1 + $0x26] ss:$312 sm:$0x3] %vm2988_vm10, %v2987_v57   ;;  %4221 = vst.msk [vmem:[%s6979_s1 - $0x20a] ss:$312 sm:$0xc] %vm2988_vm10, %v2987_v57  }
 0x1d4   :  { %4222 = vst.msk [vmem:[%s6979_s1 - $0x43a] ss:$312 sm:$0x30] %vm2988_vm10, %v2987_v57   ;;  %4223 = vst.msk [vmem:[%s6979_s1 - $0x66a] ss:$312 sm:$0xc0] %vm2988_vm10, %v2987_v57   ;;  %v3431_v6 = vpop.permute.xlu0 %3430  }
 0x1d5   :  { %4212 = vst.msk [vmem:[%s6979_s1 + $0x175] ss:$-312 sm:$0x3] %vm2938_vm11, %v2937_v58   ;;  %4213 = vst.msk [vmem:[%s6979_s1 + $0x425] ss:$-312 sm:$0xc] %vm2938_vm11, %v2937_v58  }
 0x1d6   :  { %4214 = vst.msk [vmem:[%s6979_s1 + $0x6d5] ss:$-312 sm:$0x30] %vm2938_vm11, %v2937_v58   ;;  %4215 = vst.msk [vmem:[%s6979_s1 + $0x985] ss:$-312 sm:$0xc0] %vm2938_vm11, %v2937_v58  }
 0x1d7   :  { %4224 = vst.msk [vmem:[%s6979_s1 + $0x26] ss:$312 sm:$0x3] %vm2997_vm12, %v2987_v57   ;;  %4225 = vst.msk [vmem:[%s6979_s1 - $0x20a] ss:$312 sm:$0xc] %vm2997_vm12, %v2987_v57  }
 0x1d8   :  { %4226 = vst.msk [vmem:[%s6979_s1 - $0x43a] ss:$312 sm:$0x30] %vm2997_vm12, %v2987_v57   ;;  %4227 = vst.msk [vmem:[%s6979_s1 - $0x66a] ss:$312 sm:$0xc0] %vm2997_vm12, %v2987_v57  }
 0x1d9   :  { %4216 = vst.msk [vmem:[%s6979_s1 + $0x175] ss:$-312 sm:$0x3] %vm2947_vm13, %v2937_v58   ;;  %4217 = vst.msk [vmem:[%s6979_s1 + $0x425] ss:$-312 sm:$0xc] %vm2947_vm13, %v2937_v58  }
 0x1da   :  { %4218 = vst.msk [vmem:[%s6979_s1 + $0x6d5] ss:$-312 sm:$0x30] %vm2947_vm13, %v2937_v58   ;;  %4219 = vst.msk [vmem:[%s6979_s1 + $0x985] ss:$-312 sm:$0xc0] %vm2947_vm13, %v2937_v58  }
 0x1db   :  { %4230 = vst.msk [vmem:[%s6979_s1 + $0x147] ss:$-312 sm:$0x3] %vm3060_vm14, %v3059_v59   ;;  %4231 = vst.msk [vmem:[%s6979_s1 + $0x3f7] ss:$-312 sm:$0xc] %vm3060_vm14, %v3059_v59   ;;  %v3469_v7 = vpop.permute.xlu1 %3468   ;;  %v3495_v8 = vpop.permute.xlu0 %3494  }
 0x1dc   :  { %4232 = vst.msk [vmem:[%s6979_s1 + $0x6a7] ss:$-312 sm:$0x30] %vm3060_vm14, %v3059_v59   ;;  %4233 = vst.msk [vmem:[%s6979_s1 + $0x957] ss:$-312 sm:$0xc0] %vm3060_vm14, %v3059_v59  }
 0x1dd   :  { %4228 = vst.msk [vmem:[%s6979_s1 + $0x126] ss:$312 sm:$0x3] %vm2988_vm10, %v3013_v60   ;;  %vm3470_vm10 = vcmask 48128   ;;  %vm3479_vm11 = vcmask 408624   ;;  %vm3551_vm13 = vcmask 408608  }
 0x1de   :  { %4234 = vst.msk [vmem:[%s6979_s1 + $0x147] ss:$-312 sm:$0x3] %vm3069_vm0, %v3059_v59   ;;  %4235 = vst.msk [vmem:[%s6979_s1 + $0x3f7] ss:$-312 sm:$0xc] %vm3069_vm0, %v3059_v59  }
 0x1df   :  { %4236 = vst.msk [vmem:[%s6979_s1 + $0x6a7] ss:$-312 sm:$0x30] %vm3069_vm0, %v3059_v59   ;;  %4237 = vst.msk [vmem:[%s6979_s1 + $0x957] ss:$-312 sm:$0xc0] %vm3069_vm0, %v3059_v59  }
 0x1e0   :  { %4229 = vst.msk [vmem:[%s6979_s1 + $0x126] ss:$312 sm:$0x3] %vm2997_vm12, %v3013_v60   ;;  %vm3542_vm12 = vcmask 31744  }
 0x1e1   :  { %4240 = vst.msk [vmem:[%s6979_s1 + $0x170] ss:$-312 sm:$0x3] %vm3134_vm1, %v3133_v61   ;;  %4241 = vst.msk [vmem:[%s6979_s1 + $0x420] ss:$-312 sm:$0xc] %vm3134_vm1, %v3133_v61   ;;  %v3569_v9 = vpop.permute.xlu0 %3568   ;;  %v3541_v10 = vpop.permute.xlu1 %3540  }
 0x1e2   :  { %4242 = vst.msk [vmem:[%s6979_s1 + $0x6d0] ss:$-312 sm:$0x30] %vm3134_vm1, %v3133_v61   ;;  %4243 = vst.msk [vmem:[%s6979_s1 + $0x980] ss:$-312 sm:$0xc0] %vm3134_vm1, %v3133_v61  }
 0x1e3   :  { %4238 = vst.msk [vmem:[%s6979_s1 + $0x247] ss:$-312 sm:$0x3] %vm3060_vm14, %v3087_v62   ;;  %vm3616_vm14 = vcmask 15360  }
 0x1e4   :  { %4244 = vst.msk [vmem:[%s6979_s1 + $0x170] ss:$-312 sm:$0x3] %vm3143_vm2, %v3133_v61   ;;  %4245 = vst.msk [vmem:[%s6979_s1 + $0x420] ss:$-312 sm:$0xc] %vm3143_vm2, %v3133_v61  }
 0x1e5   :  { %4246 = vst.msk [vmem:[%s6979_s1 + $0x6d0] ss:$-312 sm:$0x30] %vm3143_vm2, %v3133_v61   ;;  %4247 = vst.msk [vmem:[%s6979_s1 + $0x980] ss:$-312 sm:$0xc0] %vm3143_vm2, %v3133_v61  }
 0x1e6   :  { %4239 = vst.msk [vmem:[%s6979_s1 + $0x247] ss:$-312 sm:$0x3] %vm3069_vm0, %v3087_v62   ;;  %vm3625_vm0 = vcmask 408592  }
 0x1e7   :  { %4256 = vst.msk [vmem:[%s6979_s1 + $0x121] ss:$312 sm:$0x3] %vm3184_vm3, %v3209_v63   ;;  %4248 = vst.msk [vmem:[%s6979_s1 + $0x21] ss:$312 sm:$0x3] %vm3184_vm3, %v3183_v0  }
 0x1e8   :  { %4249 = vst.msk [vmem:[%s6979_s1 - $0x20f] ss:$312 sm:$0xc] %vm3184_vm3, %v3183_v0   ;;  %4250 = vst.msk [vmem:[%s6979_s1 - $0x43f] ss:$312 sm:$0x30] %vm3184_vm3, %v3183_v0  }
 0x1e9   :  { %4251 = vst.msk [vmem:[%s6979_s1 - $0x66f] ss:$312 sm:$0xc0] %vm3184_vm3, %v3183_v0   ;;  %v3615_v11 = vpop.permute.xlu1 %3614   ;;  %v3643_v12 = vpop.permute.xlu0 %3642  }
 0x1ea   :  { %4257 = vst.msk [vmem:[%s6979_s1 + $0x121] ss:$312 sm:$0x3] %vm3193_vm15, %v3209_v63   ;;  %4252 = vst.msk [vmem:[%s6979_s1 + $0x21] ss:$312 sm:$0x3] %vm3193_vm15, %v3183_v0  }
 0x1eb   :  { %4253 = vst.msk [vmem:[%s6979_s1 - $0x20f] ss:$312 sm:$0xc] %vm3193_vm15, %v3183_v0   ;;  %4254 = vst.msk [vmem:[%s6979_s1 - $0x43f] ss:$312 sm:$0x30] %vm3193_vm15, %v3183_v0  }
 0x1ec   :  { %4255 = vst.msk [vmem:[%s6979_s1 - $0x66f] ss:$312 sm:$0xc0] %vm3193_vm15, %v3183_v0  }
 0x1ed   :  { %4266 = vst.msk [vmem:[%s6979_s1 + $0x242] ss:$-312 sm:$0x3] %vm3256_vm4, %v3283_v1   ;;  %4258 = vst.msk [vmem:[%s6979_s1 + $0x142] ss:$-312 sm:$0x3] %vm3256_vm4, %v3255_v2  }
 0x1ee   :  { %4259 = vst.msk [vmem:[%s6979_s1 + $0x3f2] ss:$-312 sm:$0xc] %vm3256_vm4, %v3255_v2   ;;  %4260 = vst.msk [vmem:[%s6979_s1 + $0x6a2] ss:$-312 sm:$0x30] %vm3256_vm4, %v3255_v2  }
 0x1ef   :  { %4261 = vst.msk [vmem:[%s6979_s1 + $0x952] ss:$-312 sm:$0xc0] %vm3256_vm4, %v3255_v2  }
 0x1f0   :  { %4267 = vst.msk [vmem:[%s6979_s1 + $0x242] ss:$-312 sm:$0x3] %vm3265_vm5, %v3283_v1   ;;  %4262 = vst.msk [vmem:[%s6979_s1 + $0x142] ss:$-312 sm:$0x3] %vm3265_vm5, %v3255_v2  }
 0x1f1   :  { %4263 = vst.msk [vmem:[%s6979_s1 + $0x3f2] ss:$-312 sm:$0xc] %vm3265_vm5, %v3255_v2   ;;  %4264 = vst.msk [vmem:[%s6979_s1 + $0x6a2] ss:$-312 sm:$0x30] %vm3265_vm5, %v3255_v2  }
 0x1f2   :  { %4265 = vst.msk [vmem:[%s6979_s1 + $0x952] ss:$-312 sm:$0xc0] %vm3265_vm5, %v3255_v2  }
 0x1f3   :  { %4276 = vst.msk [vmem:[%s6979_s1 + $0x26b] ss:$-312 sm:$0x3] %vm3330_vm6, %v3357_v3   ;;  %4268 = vst.msk [vmem:[%s6979_s1 + $0x16b] ss:$-312 sm:$0x3] %vm3330_vm6, %v3329_v4  }
 0x1f4   :  { %4269 = vst.msk [vmem:[%s6979_s1 + $0x41b] ss:$-312 sm:$0xc] %vm3330_vm6, %v3329_v4   ;;  %4270 = vst.msk [vmem:[%s6979_s1 + $0x6cb] ss:$-312 sm:$0x30] %vm3330_vm6, %v3329_v4  }
 0x1f5   :  { %4271 = vst.msk [vmem:[%s6979_s1 + $0x97b] ss:$-312 sm:$0xc0] %vm3330_vm6, %v3329_v4  }
 0x1f6   :  { %4277 = vst.msk [vmem:[%s6979_s1 + $0x26b] ss:$-312 sm:$0x3] %vm3339_vm7, %v3357_v3   ;;  %4272 = vst.msk [vmem:[%s6979_s1 + $0x16b] ss:$-312 sm:$0x3] %vm3339_vm7, %v3329_v4  }
 0x1f7   :  { %4273 = vst.msk [vmem:[%s6979_s1 + $0x41b] ss:$-312 sm:$0xc] %vm3339_vm7, %v3329_v4   ;;  %4274 = vst.msk [vmem:[%s6979_s1 + $0x6cb] ss:$-312 sm:$0x30] %vm3339_vm7, %v3329_v4  }
 0x1f8   :  { %4275 = vst.msk [vmem:[%s6979_s1 + $0x97b] ss:$-312 sm:$0xc0] %vm3339_vm7, %v3329_v4  }
 0x1f9   :  { %4278 = vst.msk [vmem:[%s6979_s1 + $0x154] ss:$-312 sm:$0x3] %vm3404_vm8, %v3403_v5   ;;  %4279 = vst.msk [vmem:[%s6979_s1 + $0x404] ss:$-312 sm:$0xc] %vm3404_vm8, %v3403_v5  }
 0x1fa   :  { %4280 = vst.msk [vmem:[%s6979_s1 + $0x6b4] ss:$-312 sm:$0x30] %vm3404_vm8, %v3403_v5   ;;  %4281 = vst.msk [vmem:[%s6979_s1 + $0x964] ss:$-312 sm:$0xc0] %vm3404_vm8, %v3403_v5  }
 0x1fb   :  { %4286 = vst.msk [vmem:[%s6979_s1 + $0x254] ss:$-312 sm:$0x3] %vm3404_vm8, %v3431_v6  }
 0x1fc   :  { %4282 = vst.msk [vmem:[%s6979_s1 + $0x154] ss:$-312 sm:$0x3] %vm3413_vm9, %v3403_v5   ;;  %4283 = vst.msk [vmem:[%s6979_s1 + $0x404] ss:$-312 sm:$0xc] %vm3413_vm9, %v3403_v5  }
 0x1fd   :  { %4284 = vst.msk [vmem:[%s6979_s1 + $0x6b4] ss:$-312 sm:$0x30] %vm3413_vm9, %v3403_v5   ;;  %4285 = vst.msk [vmem:[%s6979_s1 + $0x964] ss:$-312 sm:$0xc0] %vm3413_vm9, %v3403_v5  }
 0x1fe   :  { %4287 = vst.msk [vmem:[%s6979_s1 + $0x254] ss:$-312 sm:$0x3] %vm3413_vm9, %v3431_v6  }
 0x1ff   :  { %4288 = vst.msk [vmem:[%s6979_s1 + $0x5] ss:$312 sm:$0x3] %vm3470_vm10, %v3469_v7   ;;  %4289 = vst.msk [vmem:[%s6979_s1 - $0x22b] ss:$312 sm:$0xc] %vm3470_vm10, %v3469_v7  }
 0x200   :  { %4290 = vst.msk [vmem:[%s6979_s1 - $0x45b] ss:$312 sm:$0x30] %vm3470_vm10, %v3469_v7   ;;  %4291 = vst.msk [vmem:[%s6979_s1 - $0x68b] ss:$312 sm:$0xc0] %vm3470_vm10, %v3469_v7  }
 0x201   :  { %4296 = vst.msk [vmem:[%s6979_s1 + $0x105] ss:$312 sm:$0x3] %vm3470_vm10, %v3495_v8  }
 0x202   :  { %4292 = vst.msk [vmem:[%s6979_s1 + $0x5] ss:$312 sm:$0x3] %vm3479_vm11, %v3469_v7   ;;  %4293 = vst.msk [vmem:[%s6979_s1 - $0x22b] ss:$312 sm:$0xc] %vm3479_vm11, %v3469_v7  }
 0x203   :  { %4294 = vst.msk [vmem:[%s6979_s1 - $0x45b] ss:$312 sm:$0x30] %vm3479_vm11, %v3469_v7   ;;  %4295 = vst.msk [vmem:[%s6979_s1 - $0x68b] ss:$312 sm:$0xc0] %vm3479_vm11, %v3469_v7  }
 0x204   :  { %4297 = vst.msk [vmem:[%s6979_s1 + $0x105] ss:$312 sm:$0x3] %vm3479_vm11, %v3495_v8  }
 0x205   :  { %4306 = vst.msk [vmem:[%s6979_s1 + $0x266] ss:$-312 sm:$0x3] %vm3542_vm12, %v3569_v9   ;;  %4298 = vst.msk [vmem:[%s6979_s1 + $0x166] ss:$-312 sm:$0x3] %vm3542_vm12, %v3541_v10  }
 0x206   :  { %4299 = vst.msk [vmem:[%s6979_s1 + $0x416] ss:$-312 sm:$0xc] %vm3542_vm12, %v3541_v10   ;;  %4300 = vst.msk [vmem:[%s6979_s1 + $0x6c6] ss:$-312 sm:$0x30] %vm3542_vm12, %v3541_v10  }
 0x207   :  { %4301 = vst.msk [vmem:[%s6979_s1 + $0x976] ss:$-312 sm:$0xc0] %vm3542_vm12, %v3541_v10  }
 0x208   :  { %4307 = vst.msk [vmem:[%s6979_s1 + $0x266] ss:$-312 sm:$0x3] %vm3551_vm13, %v3569_v9   ;;  %4302 = vst.msk [vmem:[%s6979_s1 + $0x166] ss:$-312 sm:$0x3] %vm3551_vm13, %v3541_v10  }
 0x209   :  { %4303 = vst.msk [vmem:[%s6979_s1 + $0x416] ss:$-312 sm:$0xc] %vm3551_vm13, %v3541_v10   ;;  %4304 = vst.msk [vmem:[%s6979_s1 + $0x6c6] ss:$-312 sm:$0x30] %vm3551_vm13, %v3541_v10  }
 0x20a   :  { %4305 = vst.msk [vmem:[%s6979_s1 + $0x976] ss:$-312 sm:$0xc0] %vm3551_vm13, %v3541_v10  }
 0x20b   :  { %4308 = vst.msk [vmem:[%s6979_s1 + $0x14f] ss:$-312 sm:$0x3] %vm3616_vm14, %v3615_v11   ;;  %4309 = vst.msk [vmem:[%s6979_s1 + $0x3ff] ss:$-312 sm:$0xc] %vm3616_vm14, %v3615_v11  }
 0x20c   :  { %4310 = vst.msk [vmem:[%s6979_s1 + $0x6af] ss:$-312 sm:$0x30] %vm3616_vm14, %v3615_v11   ;;  %4311 = vst.msk [vmem:[%s6979_s1 + $0x95f] ss:$-312 sm:$0xc0] %vm3616_vm14, %v3615_v11  }
 0x20d   :  { %4316 = vst.msk [vmem:[%s6979_s1 + $0x24f] ss:$-312 sm:$0x3] %vm3616_vm14, %v3643_v12  }
 0x20e   :  { %4312 = vst.msk [vmem:[%s6979_s1 + $0x14f] ss:$-312 sm:$0x3] %vm3625_vm0, %v3615_v11   ;;  %4313 = vst.msk [vmem:[%s6979_s1 + $0x3ff] ss:$-312 sm:$0xc] %vm3625_vm0, %v3615_v11  }
 0x20f   :  { %4314 = vst.msk [vmem:[%s6979_s1 + $0x6af] ss:$-312 sm:$0x30] %vm3625_vm0, %v3615_v11   ;;  %4315 = vst.msk [vmem:[%s6979_s1 + $0x95f] ss:$-312 sm:$0xc0] %vm3625_vm0, %v3615_v11  }
 0x210   :  { %4317 = vst.msk [vmem:[%s6979_s1 + $0x24f] ss:$-312 sm:$0x3] %vm3625_vm0, %v3643_v12  }

// kernel: sound_forward.1
= control target key start
LH: loop header
LB: loop body
LE: loop exit
PB: predicated region body
PF: predicated region fallthrough
CT: control target
= control target key end

     0   :  { %vm234_vm0 = vcmask 1041408   ;;  %v5049_v1 = vmov 0.0   ;;  %vm116_vm1 = vcmask 408576   ;;  %vm5050_vm2 = vmmov 0   ;;  %s7155_s0 = inlined_call_operand.vmem [shape: f32[2,311,50], index: 0, kind: input, shape index: {}]   ;;  %s7156_s1 = inlined_call_operand.vmem [shape: f32[50,30], index: 1, kind: input, shape index: {}]   ;;  %s7157_s2 = inlined_call_operand.vmem [shape: f32[50,30], index: 2, kind: input, shape index: {}]   ;;  %s7158_s3 = inlined_call_operand.vmem [shape: f32[1,30], index: 3, kind: input, shape index: {}]   ;;  %s7159_s4 = inlined_call_operand.vmem [shape: f32[930,35], index: 4, kind: input, shape index: {}]   ;;  %s7160_s5 = inlined_call_operand.vmem [shape: f32[1,35], index: 5, kind: input, shape index: {}]   ;;  %s7161_s6 = inlined_call_operand.hbm [shape: f32[2,35], index: 6, kind: output, shape index: {}]  }
   0x1   :  { %v108_v0 = vld [vmem:[%s7156_s1 + $0x30] sm:$0x3]  ;;  %4460 = vmatprep.subr.mxu0 %v5049_v1  ;;  %4591 = vmatprep.subr.mxu1 %v5049_v1  ;;  %v107_v2 = vld [vmem:[%s7156_s1 + $0x28] sm:$0xff]  ;;  %v106_v3 = vld [vmem:[%s7156_s1 + $0x20] sm:$0xff] }
   0x2   :  { %4461 = vmatpush3.msk.msra.mxu0 %vm234_vm0, %v108_v0  ;;  %4592 = vmatpush3.msk.msra.mxu1 %vm234_vm0, %v108_v0  ;;  %v105_v4 = vld [vmem:[%s7156_s1 + $0x18] sm:$0xff]  ;;  %v104_v5 = vld [vmem:[%s7156_s1 + $0x10] sm:$0xff]  ;;  %v103_v6 = vld [vmem:[%s7156_s1 + $0x8] sm:$0xff] }
   0x3   :  { %4462 = vmatprep.subr.mxu0 %v5049_v1  ;;  %4593 = vmatprep.subr.mxu1 %v5049_v1  ;;  %v102_v7 = vld [vmem:[%s7156_s1] sm:$0xff]  ;;  %v5163_v9 = vld [vmem:[%s7155_s0 + $0x138] sm:$0xff]  ;;  %v115_v10 = vld [vmem:[%s7157_s2 + $0x30] sm:$0x3] }
   0x4   :  { %4463 = vmatpush3.msra.mxu0 %v107_v2  ;;  %4594 = vmatpush3.msra.mxu1 %v107_v2  ;;  %v5158_v8 = vld [vmem:[%s7155_s0] sm:$0xff]  ;;  %v5181_v11 = vld [vmem:[%s7155_s0 + $0x8] sm:$0xff]  ;;  %v5208_v14 = vld [vmem:[%s7155_s0 + $0x10] sm:$0xff] }
   0x5   :  { %4464 = vmatprep.subr.mxu0 %v5049_v1  ;;  %4595 = vmatprep.subr.mxu1 %v5049_v1  ;;  %v5186_v12 = vld [vmem:[%s7155_s0 + $0x140] sm:$0xff]  ;;  %v114_v13 = vld [vmem:[%s7157_s2 + $0x28] sm:$0xff]  ;;  %v5231_v17 = vld [vmem:[%s7155_s0 + $0x18] sm:$0xff] }
   0x6   :  { %4465 = vmatpush3.msra.mxu0 %v106_v3  ;;  %4596 = vmatpush3.msra.mxu1 %v106_v3  ;;  %v5213_v15 = vld [vmem:[%s7155_s0 + $0x148] sm:$0xff]  ;;  %v113_v16 = vld [vmem:[%s7157_s2 + $0x20] sm:$0xff]  ;;  %v5236_v18 = vld [vmem:[%s7155_s0 + $0x150] sm:$0xff] }
   0x7   :  { %4466 = vmatprep.subr.mxu0 %v5049_v1  ;;  %4597 = vmatprep.subr.mxu1 %v5049_v1  ;;  %v112_v19 = vld [vmem:[%s7157_s2 + $0x18] sm:$0xff] }
   0x8   :  { %4467 = vmatpush3.msra.mxu0 %v105_v4  ;;  %4598 = vmatpush3.msra.mxu1 %v105_v4 }
   0x9   :  { %4468 = vmatprep.subr.mxu0 %v5049_v1  ;;  %4599 = vmatprep.subr.mxu1 %v5049_v1 }
   0xa   :  { %4469 = vmatpush3.msra.mxu0 %v104_v5  ;;  %4600 = vmatpush3.msra.mxu1 %v104_v5 }
   0xb   :  { %4470 = vmatprep.subr.mxu0 %v5049_v1  ;;  %4601 = vmatprep.subr.mxu1 %v5049_v1 }
   0xc   :  { %4471 = vmatpush3.msra.mxu0 %v103_v6  ;;  %4602 = vmatpush3.msra.mxu1 %v103_v6 }
   0xd   :  { %4472 = vmatprep.subr.mxu0 %v5049_v1  ;;  %4603 = vmatprep.subr.mxu1 %v5049_v1 }
   0xe   :  { %4473 = vmatpush3.msra.mxu0 %v102_v7  ;;  %4474 = vmatprep.mubr.msk.f32.mxu0 %vm5050_vm2, %v5049_v1 }
   0xf   :  { %4604 = vmatpush3.msra.mxu1 %v102_v7  ;;  %4605 = vmatprep.mubr.msk.f32.mxu1 %vm5050_vm2, %v5049_v1 }
  0x10   :  { %4475 = vmatmul.mubr.msk.f32.vlgmr.msra.gmra.mxu0 %vm116_vm1, %v5158_v8  ;;  %4606 = vmatmul.mubr.msk.f32.vlgmr.msra.gmra.mxu1 %vm116_vm1, %v5163_v9 }
  0x11   :  { %4853 = vmatprep.subr.mxu1 %v5049_v1  ;;  %4722 = vmatprep.subr.mxu0 %v5049_v1 }
  0x12   :  { %4854 = vmatpush3.msk.msra.mxu1 %vm234_vm0, %v115_v10  ;;  %4477 = vmatprep.mubr.msk.f32.mxu0 %vm5050_vm2, %v5049_v1 }
  0x13   :  { %4608 = vmatprep.mubr.msk.f32.mxu1 %vm5050_vm2, %v5049_v1  ;;  %4723 = vmatpush3.msk.msra.mxu0 %vm234_vm0, %v115_v10 }
  0x14   :  { %4478 = vmatmul.mubr.msk.f32.gmra.mxu0 %vm116_vm1, %v5181_v11  ;;  %4609 = vmatmul.mubr.msk.f32.gmra.mxu1 %vm116_vm1, %v5186_v12 }
  0x15   :  { %4480 = vmatprep.mubr.msk.f32.mxu0 %vm5050_vm2, %v5049_v1  ;;  %4611 = vmatprep.mubr.msk.f32.mxu1 %vm5050_vm2, %v5049_v1 }
  0x16   :  { %4855 = vmatprep.subr.mxu1 %v5049_v1  ;;  %4724 = vmatprep.subr.mxu0 %v5049_v1 }
  0x17   :  { %4856 = vmatpush3.msra.mxu1 %v114_v13  ;;  %4725 = vmatpush3.msra.mxu0 %v114_v13 }
  0x18   :  { %4481 = vmatmul.mubr.msk.f32.gmra.mxu0 %vm116_vm1, %v5208_v14  ;;  %4612 = vmatmul.mubr.msk.f32.gmra.mxu1 %vm116_vm1, %v5213_v15 }
  0x19   :  { %4483 = vmatprep.mubr.msk.f32.mxu0 %vm5050_vm2, %v5049_v1  ;;  %4614 = vmatprep.mubr.msk.f32.mxu1 %vm5050_vm2, %v5049_v1 }
  0x1a   :  { %4857 = vmatprep.subr.mxu1 %v5049_v1  ;;  %4726 = vmatprep.subr.mxu0 %v5049_v1 }
  0x1b   :  { %4858 = vmatpush3.msra.mxu1 %v113_v16  ;;  %4727 = vmatpush3.msra.mxu0 %v113_v16 }
  0x1c   :  { %4484 = vmatmul.mubr.msk.f32.gmra.mxu0 %vm116_vm1, %v5231_v17  ;;  %4615 = vmatmul.mubr.msk.f32.gmra.mxu1 %vm116_vm1, %v5236_v18 }
  0x1d   :  { %11 = vsyncpa [#allocation6], 0  ;;  %4486 = vmatprep.mubr.msk.f32.mxu0 %vm5050_vm2, %v5049_v1  ;;  %4617 = vmatprep.mubr.msk.f32.mxu1 %vm5050_vm2, %v5049_v1  ;;  %v5254_v20 = vld [vmem:[%s7155_s0 + $0x20] sm:$0xff]  ;;  %v5259_v21 = vld [vmem:[%s7155_s0 + $0x158] sm:$0xff]  ;;  %vm875_vm3 = vcmask 244736   ;;  %vm914_vm4 = vcmask 243712  }
  0x1e   :  { %4859 = vmatprep.subr.mxu1 %v5049_v1  ;;  %4728 = vmatprep.subr.mxu0 %v5049_v1  ;;  %v111_v22 = vld [vmem:[%s7157_s2 + $0x10] sm:$0xff]  ;;  %v5277_v23 = vld [vmem:[%s7155_s0 + $0x28] sm:$0xff]  ;;  %v5282_v24 = vld [vmem:[%s7155_s0 + $0x160] sm:$0xff]  ;;  %vm1570_vm5 = vcmask 238592   ;;  %vm1619_vm6 = vcmask 1041409   ;;  %vm1621_vm7 = vcmask 1043459  }
  0x1f   :  { %4860 = vmatpush3.msra.mxu1 %v112_v19  ;;  %4729 = vmatpush3.msra.mxu0 %v112_v19  ;;  %v110_v25 = vld [vmem:[%s7157_s2 + $0x8] sm:$0xff]  ;;  %v5300_v26 = vld [vmem:[%s7155_s0 + $0x30] sm:$0xff]  ;;  %v109_v28 = vld [vmem:[%s7157_s2] sm:$0xff]  ;;  %vm1623_vm8 = vcmask 1045509   ;;  %vm1625_vm9 = vcmask 1047559   ;;  %s5052_s30 = smov 30  }
  0x20   :  { %4487 = vmatmul.mubr.msk.f32.gmra.mxu0 %vm116_vm1, %v5254_v20  ;;  %4618 = vmatmul.mubr.msk.f32.gmra.mxu1 %vm116_vm1, %v5259_v21  ;;  %v5305_v27 = vld [vmem:[%s7155_s0 + $0x168] sm:$0xff]  ;;  %v5323_v29 = vld [vmem:[%s7155_s0 + $0x38] sm:$0xff]  ;;  %v5328_v30 = vld [vmem:[%s7155_s0 + $0x170] sm:$0xff]  ;;  %s5053_s2 = smov 60   ;;  %s5054_s11 = smov 90   ;;  %vm1689_vm10 = vcmask 484592  }
  0x21   :  { %4489 = vmatprep.mubr.msk.f32.mxu0 %vm5050_vm2, %v5049_v1  ;;  %4620 = vmatprep.mubr.msk.f32.mxu1 %vm5050_vm2, %v5049_v1  ;;  %v5343_v31 = vld [vmem:[%s7155_s0 + $0x40] sm:$0xff]  ;;  %v5348_v32 = vld [vmem:[%s7155_s0 + $0x178] sm:$0xff]  ;;  %v5361_v33 = vld [vmem:[%s7155_s0 + $0x48] sm:$0xff]  ;;  %s5055_s15 = smov 120   ;;  %s5056_s20 = smov 22   ;;  %vm1751_vm11 = vcmask 730592  }
  0x22   :  { %4861 = vmatprep.subr.mxu1 %v5049_v1  ;;  %4730 = vmatprep.subr.mxu0 %v5049_v1  ;;  %v5366_v34 = vld [vmem:[%s7155_s0 + $0x180] sm:$0xff]  ;;  %v5379_v35 = vld [vmem:[%s7155_s0 + $0x50] sm:$0xff]  ;;  %v5384_v36 = vld [vmem:[%s7155_s0 + $0x188] sm:$0xff]  ;;  %s5058_s29 = smov 82   ;;  %s5059_s9 = smov 112   ;;  %vm1813_vm12 = vcmask 976592  }
  0x23   :  { %4862 = vmatpush3.msra.mxu1 %v111_v22  ;;  %4731 = vmatpush3.msra.mxu0 %v111_v22  ;;  %v5397_v37 = vld [vmem:[%s7155_s0 + $0x58] sm:$0xff]  ;;  %v5402_v38 = vld [vmem:[%s7155_s0 + $0x190] sm:$0xff]  ;;  %v5415_v39 = vld [vmem:[%s7155_s0 + $0x60] sm:$0xff]  ;;  %s5060_s12 = smov 14   ;;  %s5061_s16 = smov 44   ;;  %vm1875_vm13 = vcmask 982016  }
  0x24   :  { %4490 = vmatmul.mubr.msk.f32.gmra.mxu0 %vm116_vm1, %v5277_v23  ;;  %4621 = vmatmul.mubr.msk.f32.gmra.mxu1 %vm116_vm1, %v5282_v24  ;;  %v5420_v40 = vld [vmem:[%s7155_s0 + $0x198] sm:$0xff]  ;;  %v5433_v41 = vld [vmem:[%s7155_s0 + $0x68] sm:$0xff]  ;;  %v5438_v42 = vld [vmem:[%s7155_s0 + $0x1a0] sm:$0xff]  ;;  %s5062_s26 = smov 74   ;;  %s5063_s27 = smov 104   ;;  %vm1878_vm14 = vcmask 1042368  }
  0x25   :  { %4492 = vmatprep.mubr.msk.f32.mxu0 %vm5050_vm2, %v5049_v1  ;;  %4623 = vmatprep.mubr.msk.f32.mxu1 %vm5050_vm2, %v5049_v1  ;;  %v5451_v43 = vld [vmem:[%s7155_s0 + $0x70] sm:$0xff]  ;;  %v5456_v44 = vld [vmem:[%s7155_s0 + $0x1a8] sm:$0xff]  ;;  %v5469_v45 = vld [vmem:[%s7155_s0 + $0x78] sm:$0xff]  ;;  %s5065_s14 = smov 36   ;;  %s5066_s1 = smov 66   ;;  %vm1879_vm15 = vcmask 175106  }
  0x26   :  { %4863 = vmatprep.subr.mxu1 %v5049_v1  ;;  %4732 = vmatprep.subr.mxu0 %v5049_v1  ;;  %v5474_v46 = vld [vmem:[%s7155_s0 + $0x1b0] sm:$0xff]  ;;  %v5487_v47 = vld [vmem:[%s7155_s0 + $0x80] sm:$0xff]  ;;  %v5492_v48 = vld [vmem:[%s7155_s0 + $0x1b8] sm:$0xff]  ;;  %s5067_s25 = smov 126   ;;  %s5069_s28 = smov 28  }
  0x27   :  { %4864 = vmatpush3.msra.mxu1 %v110_v25  ;;  %4733 = vmatpush3.msra.mxu0 %v110_v25  ;;  %v5505_v49 = vld [vmem:[%s7155_s0 + $0x88] sm:$0xff]  ;;  %v5510_v50 = vld [vmem:[%s7155_s0 + $0x1c0] sm:$0xff]  ;;  %v5523_v51 = vld [vmem:[%s7155_s0 + $0x90] sm:$0xff]  ;;  %s5072_s17 = smov 118   ;;  %s5073_s18 = smov 20  }
  0x28   :  { %4493 = vmatmul.mubr.msk.f32.gmra.mxu0 %vm116_vm1, %v5300_v26  ;;  %4624 = vmatmul.mubr.msk.f32.gmra.mxu1 %vm116_vm1, %v5305_v27  ;;  %v5528_v52 = vld [vmem:[%s7155_s0 + $0x1c8] sm:$0xff]  ;;  %v5541_v53 = vld [vmem:[%s7155_s0 + $0x98] sm:$0xff]  ;;  %v5546_v54 = vld [vmem:[%s7155_s0 + $0x1d0] sm:$0xff]  ;;  %s5074_s19 = smov 50   ;;  %s5076_s23 = smov 110  }
  0x29   :  { %4495 = vmatprep.mubr.msk.f32.mxu0 %vm5050_vm2, %v5049_v1  ;;  %4626 = vmatprep.mubr.msk.f32.mxu1 %vm5050_vm2, %v5049_v1  ;;  %v5559_v55 = vld [vmem:[%s7155_s0 + $0xa0] sm:$0xff]  ;;  %v5564_v56 = vld [vmem:[%s7155_s0 + $0x1d8] sm:$0xff]  ;;  %v5577_v57 = vld [vmem:[%s7155_s0 + $0xa8] sm:$0xff]  ;;  %s5077_s24 = smov 12  }
  0x2a   :  { %4865 = vmatprep.subr.mxu1 %v5049_v1  ;;  %4734 = vmatprep.subr.mxu0 %v5049_v1  ;;  %v5582_v58 = vld [vmem:[%s7155_s0 + $0x1e0] sm:$0xff]  ;;  %v5595_v59 = vld [vmem:[%s7155_s0 + $0xb0] sm:$0xff]  ;;  %v5600_v60 = vld [vmem:[%s7155_s0 + $0x1e8] sm:$0xff] }
  0x2b   :  { %4866 = vmatpush3.msra.mxu1 %v109_v28  ;;  %4735 = vmatpush3.msra.mxu0 %v109_v28  ;;  %v5613_v61 = vld [vmem:[%s7155_s0 + $0xb8] sm:$0xff]  ;;  %v5618_v62 = vld [vmem:[%s7155_s0 + $0x1f0] sm:$0xff]  ;;  %v5631_v63 = vld [vmem:[%s7155_s0 + $0xc0] sm:$0xff] }
  0x2c   :  { %4496 = vmatmul.mubr.msk.f32.gmra.mxu0 %vm116_vm1, %v5323_v29  ;;  %4627 = vmatmul.mubr.msk.f32.gmra.mxu1 %vm116_vm1, %v5328_v30  ;;  %v5636_v0 = vld [vmem:[%s7155_s0 + $0x1f8] sm:$0xff]  ;;  %v5649_v2 = vld [vmem:[%s7155_s0 + $0xc8] sm:$0xff]  ;;  %v5654_v3 = vld [vmem:[%s7155_s0 + $0x200] sm:$0xff] }
  0x2d   :  { %4498 = vmatprep.mubr.msk.f32.mxu0 %vm5050_vm2, %v5049_v1  ;;  %4629 = vmatprep.mubr.msk.f32.mxu1 %vm5050_vm2, %v5049_v1  ;;  %v5667_v4 = vld [vmem:[%s7155_s0 + $0xd0] sm:$0xff]  ;;  %v5672_v5 = vld [vmem:[%s7155_s0 + $0x208] sm:$0xff]  ;;  %v5685_v6 = vld [vmem:[%s7155_s0 + $0xd8] sm:$0xff] }
  0x2e   :  { %v5690_v7 = vld [vmem:[%s7155_s0 + $0x210] sm:$0xff]  ;;  %v5703_v10 = vld [vmem:[%s7155_s0 + $0xe0] sm:$0xff]  ;;  %v5708_v13 = vld [vmem:[%s7155_s0 + $0x218] sm:$0xff] }
  0x2f   :  { %v5721_v16 = vld [vmem:[%s7155_s0 + $0xe8] sm:$0xff]  ;;  %v5726_v19 = vld [vmem:[%s7155_s0 + $0x220] sm:$0xff]  ;;  %v5739_v22 = vld [vmem:[%s7155_s0 + $0xf0] sm:$0xff] }
  0x30   :  { %4499 = vmatmul.mubr.msk.f32.gmra.mxu0 %vm116_vm1, %v5343_v31  ;;  %4630 = vmatmul.mubr.msk.f32.gmra.mxu1 %vm116_vm1, %v5348_v32  ;;  %7177 = vst [vmem:[#allocation8_spill] sm:$0xff] %v5726_v19  ;;  %7178 = vst [vmem:[#allocation9_spill] sm:$0xff] %v5739_v22  ;;  %v5744_v25 = vld [vmem:[%s7155_s0 + $0x228] sm:$0xff]  ;;  %v5757_v28 = vld [vmem:[%s7155_s0 + $0xf8] sm:$0xff] }
  0x31   :  { %4501 = vmatprep.mubr.msk.f32.mxu0 %vm5050_vm2, %v5049_v1  ;;  %4632 = vmatprep.mubr.msk.f32.mxu1 %vm5050_vm2, %v5049_v1  ;;  %7179 = vst [vmem:[#allocation10_spill] sm:$0xff] %v5744_v25  ;;  %7180 = vst [vmem:[#allocation11_spill] sm:$0xff] %v5757_v28 }
  0x34   :  { %4502 = vmatmul.mubr.msk.f32.gmra.mxu0 %vm116_vm1, %v5361_v33  ;;  %4633 = vmatmul.mubr.msk.f32.gmra.mxu1 %vm116_vm1, %v5366_v34 }
  0x35   :  { %4504 = vmatprep.mubr.msk.f32.mxu0 %vm5050_vm2, %v5049_v1  ;;  %4635 = vmatprep.mubr.msk.f32.mxu1 %vm5050_vm2, %v5049_v1 }
  0x38   :  { %4505 = vmatmul.mubr.msk.f32.gmra.mxu0 %vm116_vm1, %v5379_v35  ;;  %4636 = vmatmul.mubr.msk.f32.gmra.mxu1 %vm116_vm1, %v5384_v36 }
  0x39   :  { %4507 = vmatprep.mubr.msk.f32.mxu0 %vm5050_vm2, %v5049_v1  ;;  %4638 = vmatprep.mubr.msk.f32.mxu1 %vm5050_vm2, %v5049_v1 }
  0x3c   :  { %4508 = vmatmul.mubr.msk.f32.gmra.mxu0 %vm116_vm1, %v5397_v37  ;;  %4639 = vmatmul.mubr.msk.f32.gmra.mxu1 %vm116_vm1, %v5402_v38 }
  0x3d   :  { %4510 = vmatprep.mubr.msk.f32.mxu0 %vm5050_vm2, %v5049_v1  ;;  %4641 = vmatprep.mubr.msk.f32.mxu1 %vm5050_vm2, %v5049_v1 }
  0x40   :  { %4511 = vmatmul.mubr.msk.f32.gmra.mxu0 %vm116_vm1, %v5415_v39  ;;  %4642 = vmatmul.mubr.msk.f32.gmra.mxu1 %vm116_vm1, %v5420_v40 }
  0x41   :  { %4513 = vmatprep.mubr.msk.f32.mxu0 %vm5050_vm2, %v5049_v1  ;;  %4644 = vmatprep.mubr.msk.f32.mxu1 %vm5050_vm2, %v5049_v1 }
  0x44   :  { %4514 = vmatmul.mubr.msk.f32.gmra.mxu0 %vm116_vm1, %v5433_v41  ;;  %4645 = vmatmul.mubr.msk.f32.gmra.mxu1 %vm116_vm1, %v5438_v42 }
  0x45   :  { %4516 = vmatprep.mubr.msk.f32.mxu0 %vm5050_vm2, %v5049_v1  ;;  %4647 = vmatprep.mubr.msk.f32.mxu1 %vm5050_vm2, %v5049_v1 }
  0x48   :  { %4517 = vmatmul.mubr.msk.f32.gmra.mxu0 %vm116_vm1, %v5451_v43  ;;  %4648 = vmatmul.mubr.msk.f32.gmra.mxu1 %vm116_vm1, %v5456_v44 }
  0x49   :  { %4519 = vmatprep.mubr.msk.f32.mxu0 %vm5050_vm2, %v5049_v1  ;;  %4650 = vmatprep.mubr.msk.f32.mxu1 %vm5050_vm2, %v5049_v1 }
  0x4c   :  { %4520 = vmatmul.mubr.msk.f32.gmra.mxu0 %vm116_vm1, %v5469_v45  ;;  %4651 = vmatmul.mubr.msk.f32.gmra.mxu1 %vm116_vm1, %v5474_v46 }
  0x4d   :  { %4522 = vmatprep.mubr.msk.f32.mxu0 %vm5050_vm2, %v5049_v1  ;;  %4653 = vmatprep.mubr.msk.f32.mxu1 %vm5050_vm2, %v5049_v1 }
  0x50   :  { %4523 = vmatmul.mubr.msk.f32.gmra.mxu0 %vm116_vm1, %v5487_v47  ;;  %4654 = vmatmul.mubr.msk.f32.gmra.mxu1 %vm116_vm1, %v5492_v48 }
  0x51   :  { %4525 = vmatprep.mubr.msk.f32.mxu0 %vm5050_vm2, %v5049_v1  ;;  %4656 = vmatprep.mubr.msk.f32.mxu1 %vm5050_vm2, %v5049_v1 }
  0x54   :  { %4526 = vmatmul.mubr.msk.f32.gmra.mxu0 %vm116_vm1, %v5505_v49  ;;  %4657 = vmatmul.mubr.msk.f32.gmra.mxu1 %vm116_vm1, %v5510_v50 }
  0x55   :  { %4528 = vmatprep.mubr.msk.f32.mxu0 %vm5050_vm2, %v5049_v1  ;;  %4659 = vmatprep.mubr.msk.f32.mxu1 %vm5050_vm2, %v5049_v1 }
  0x58   :  { %4529 = vmatmul.mubr.msk.f32.gmra.mxu0 %vm116_vm1, %v5523_v51  ;;  %4660 = vmatmul.mubr.msk.f32.gmra.mxu1 %vm116_vm1, %v5528_v52 }
  0x59   :  { %4531 = vmatprep.mubr.msk.f32.mxu0 %vm5050_vm2, %v5049_v1  ;;  %4662 = vmatprep.mubr.msk.f32.mxu1 %vm5050_vm2, %v5049_v1 }
  0x5c   :  { %4532 = vmatmul.mubr.msk.f32.gmra.mxu0 %vm116_vm1, %v5541_v53  ;;  %4663 = vmatmul.mubr.msk.f32.gmra.mxu1 %vm116_vm1, %v5546_v54 }
  0x5d   :  { %4534 = vmatprep.mubr.msk.f32.mxu0 %vm5050_vm2, %v5049_v1  ;;  %4665 = vmatprep.mubr.msk.f32.mxu1 %vm5050_vm2, %v5049_v1 }
  0x60   :  { %4535 = vmatmul.mubr.msk.f32.gmra.mxu0 %vm116_vm1, %v5559_v55  ;;  %4666 = vmatmul.mubr.msk.f32.gmra.mxu1 %vm116_vm1, %v5564_v56 }
  0x61   :  { %4537 = vmatprep.mubr.msk.f32.mxu0 %vm5050_vm2, %v5049_v1  ;;  %4668 = vmatprep.mubr.msk.f32.mxu1 %vm5050_vm2, %v5049_v1 }
  0x64   :  { %4538 = vmatmul.mubr.msk.f32.gmra.mxu0 %vm116_vm1, %v5577_v57  ;;  %4669 = vmatmul.mubr.msk.f32.gmra.mxu1 %vm116_vm1, %v5582_v58 }
  0x65   :  { %4540 = vmatprep.mubr.msk.f32.mxu0 %vm5050_vm2, %v5049_v1  ;;  %4671 = vmatprep.mubr.msk.f32.mxu1 %vm5050_vm2, %v5049_v1 }
  0x68   :  { %4541 = vmatmul.mubr.msk.f32.gmra.mxu0 %vm116_vm1, %v5595_v59  ;;  %4672 = vmatmul.mubr.msk.f32.gmra.mxu1 %vm116_vm1, %v5600_v60 }
  0x69   :  { %4543 = vmatprep.mubr.msk.f32.mxu0 %vm5050_vm2, %v5049_v1  ;;  %4674 = vmatprep.mubr.msk.f32.mxu1 %vm5050_vm2, %v5049_v1 }
  0x6c   :  { %4544 = vmatmul.mubr.msk.f32.gmra.mxu0 %vm116_vm1, %v5613_v61  ;;  %4675 = vmatmul.mubr.msk.f32.gmra.mxu1 %vm116_vm1, %v5618_v62 }
  0x6d   :  { %4546 = vmatprep.mubr.msk.f32.mxu0 %vm5050_vm2, %v5049_v1  ;;  %4677 = vmatprep.mubr.msk.f32.mxu1 %vm5050_vm2, %v5049_v1 }
  0x70   :  { %4547 = vmatmul.mubr.msk.f32.gmra.mxu0 %vm116_vm1, %v5631_v63  ;;  %4678 = vmatmul.mubr.msk.f32.gmra.mxu1 %vm116_vm1, %v5636_v0 }
  0x71   :  { %4549 = vmatprep.mubr.msk.f32.mxu0 %vm5050_vm2, %v5049_v1  ;;  %4680 = vmatprep.mubr.msk.f32.mxu1 %vm5050_vm2, %v5049_v1 }
  0x74   :  { %4550 = vmatmul.mubr.msk.f32.gmra.mxu0 %vm116_vm1, %v5649_v2  ;;  %4681 = vmatmul.mubr.msk.f32.gmra.mxu1 %vm116_vm1, %v5654_v3 }
  0x75   :  { %4552 = vmatprep.mubr.msk.f32.mxu0 %vm5050_vm2, %v5049_v1  ;;  %4683 = vmatprep.mubr.msk.f32.mxu1 %vm5050_vm2, %v5049_v1 }
  0x78   :  { %4553 = vmatmul.mubr.msk.f32.gmra.mxu0 %vm116_vm1, %v5667_v4  ;;  %4684 = vmatmul.mubr.msk.f32.gmra.mxu1 %vm116_vm1, %v5672_v5 }
  0x79   :  { %4555 = vmatprep.mubr.msk.f32.mxu0 %vm5050_vm2, %v5049_v1  ;;  %4686 = vmatprep.mubr.msk.f32.mxu1 %vm5050_vm2, %v5049_v1 }
  0x7c   :  { %4556 = vmatmul.mubr.msk.f32.gmra.mxu0 %vm116_vm1, %v5685_v6  ;;  %4687 = vmatmul.mubr.msk.f32.gmra.mxu1 %vm116_vm1, %v5690_v7 }
  0x7d   :  { %4558 = vmatprep.mubr.msk.f32.mxu0 %vm5050_vm2, %v5049_v1  ;;  %4689 = vmatprep.mubr.msk.f32.mxu1 %vm5050_vm2, %v5049_v1 }
  0x80   :  { %4559 = vmatmul.mubr.msk.f32.gmra.mxu0 %vm116_vm1, %v5703_v10  ;;  %4690 = vmatmul.mubr.msk.f32.gmra.mxu1 %vm116_vm1, %v5708_v13 }
  0x81   :  { %4561 = vmatprep.mubr.msk.f32.mxu0 %vm5050_vm2, %v5049_v1  ;;  %4692 = vmatprep.mubr.msk.f32.mxu1 %vm5050_vm2, %v5049_v1 }
  0x84   :  { %4562 = vmatmul.mubr.msk.f32.gmra.mxu0 %vm116_vm1, %v5721_v16  ;;  %4693 = vmatmul.mubr.msk.f32.gmra.mxu1 %vm116_vm1, %v5726_v19  ;;  %v5762_v19 = vld [vmem:[%s7155_s0 + $0x230] sm:$0xff] }
  0x85   :  { %4564 = vmatprep.mubr.msk.f32.mxu0 %vm5050_vm2, %v5049_v1  ;;  %4695 = vmatprep.mubr.msk.f32.mxu1 %vm5050_vm2, %v5049_v1  ;;  %7181 = vst [vmem:[#allocation12_spill] sm:$0xff] %v5762_v19 }
  0x88   :  { %4565 = vmatmul.mubr.msk.f32.gmra.mxu0 %vm116_vm1, %v5739_v22  ;;  %4696 = vmatmul.mubr.msk.f32.gmra.mxu1 %vm116_vm1, %v5744_v25  ;;  %v5775_v25 = vld [vmem:[%s7155_s0 + $0x100] sm:$0xff]  ;;  %v5780_v22 = vld [vmem:[%s7155_s0 + $0x238] sm:$0xff] }
  0x89   :  { %4567 = vmatprep.mubr.msk.f32.mxu0 %vm5050_vm2, %v5049_v1  ;;  %4698 = vmatprep.mubr.msk.f32.mxu1 %vm5050_vm2, %v5049_v1  ;;  %7182 = vst [vmem:[#allocation13_spill] sm:$0xff] %v5775_v25  ;;  %7183 = vst [vmem:[#allocation14_spill] sm:$0xff] %v5780_v22 }
  0x8c   :  { %4568 = vmatmul.mubr.msk.f32.gmra.mxu0 %vm116_vm1, %v5757_v28  ;;  %4699 = vmatmul.mubr.msk.f32.gmra.mxu1 %vm116_vm1, %v5762_v19  ;;  %v5793_v19 = vld [vmem:[%s7155_s0 + $0x108] sm:$0xff]  ;;  %v5798_v28 = vld [vmem:[%s7155_s0 + $0x240] sm:$0xff] }
  0x8d   :  { %4570 = vmatprep.mubr.msk.f32.mxu0 %vm5050_vm2, %v5049_v1  ;;  %4701 = vmatprep.mubr.msk.f32.mxu1 %vm5050_vm2, %v5049_v1  ;;  %7184 = vst [vmem:[#allocation15_spill] sm:$0xff] %v5793_v19  ;;  %7185 = vst [vmem:[#allocation16_spill] sm:$0xff] %v5798_v28 }
  0x90   :  { %4571 = vmatmul.mubr.msk.f32.gmra.mxu0 %vm116_vm1, %v5775_v25  ;;  %4702 = vmatmul.mubr.msk.f32.gmra.mxu1 %vm116_vm1, %v5780_v22  ;;  %v5811_v22 = vld [vmem:[%s7155_s0 + $0x110] sm:$0xff]  ;;  %v5816_v25 = vld [vmem:[%s7155_s0 + $0x248] sm:$0xff] }
  0x91   :  { %4573 = vmatprep.mubr.msk.f32.mxu0 %vm5050_vm2, %v5049_v1  ;;  %4704 = vmatprep.mubr.msk.f32.mxu1 %vm5050_vm2, %v5049_v1  ;;  %7186 = vst [vmem:[#allocation17_spill] sm:$0xff] %v5811_v22  ;;  %7187 = vst [vmem:[#allocation18_spill] sm:$0xff] %v5816_v25 }
  0x94   :  { %4574 = vmatmul.mubr.msk.f32.gmra.mxu0 %vm116_vm1, %v5793_v19  ;;  %4705 = vmatmul.mubr.msk.f32.gmra.mxu1 %vm116_vm1, %v5798_v28  ;;  %v5829_v28 = vld [vmem:[%s7155_s0 + $0x118] sm:$0xff]  ;;  %v5834_v19 = vld [vmem:[%s7155_s0 + $0x250] sm:$0xff] }
  0x95   :  { %4576 = vmatprep.mubr.msk.f32.mxu0 %vm5050_vm2, %v5049_v1  ;;  %4707 = vmatprep.mubr.msk.f32.mxu1 %vm5050_vm2, %v5049_v1  ;;  %7188 = vst [vmem:[#allocation19_spill] sm:$0xff] %v5829_v28  ;;  %7189 = vst [vmem:[#allocation20_spill] sm:$0xff] %v5834_v19 }
  0x98   :  { %4577 = vmatmul.mubr.msk.f32.gmra.mxu0 %vm116_vm1, %v5811_v22  ;;  %4708 = vmatmul.mubr.msk.f32.gmra.mxu1 %vm116_vm1, %v5816_v25  ;;  %v5847_v25 = vld [vmem:[%s7155_s0 + $0x120] sm:$0xff]  ;;  %v5852_v22 = vld [vmem:[%s7155_s0 + $0x258] sm:$0xff] }
  0x99   :  { %4579 = vmatprep.mubr.msk.f32.mxu0 %vm5050_vm2, %v5049_v1  ;;  %4710 = vmatprep.mubr.msk.f32.mxu1 %vm5050_vm2, %v5049_v1  ;;  %7190 = vst [vmem:[#allocation21_spill] sm:$0xff] %v5847_v25  ;;  %7191 = vst [vmem:[#allocation22_spill] sm:$0xff] %v5852_v22 }
  0x9c   :  { %4580 = vmatmul.mubr.msk.f32.gmra.mxu0 %vm116_vm1, %v5829_v28  ;;  %4711 = vmatmul.mubr.msk.f32.gmra.mxu1 %vm116_vm1, %v5834_v19  ;;  %v5865_v19 = vld [vmem:[%s7155_s0 + $0x128] sm:$0xff]  ;;  %v5870_v28 = vld [vmem:[%s7155_s0 + $0x260] sm:$0xff] }
  0x9d   :  { %4582 = vmatprep.mubr.msk.f32.mxu0 %vm5050_vm2, %v5049_v1  ;;  %4713 = vmatprep.mubr.msk.f32.mxu1 %vm5050_vm2, %v5049_v1 }
  0xa0   :  { %4583 = vmatmul.mubr.msk.f32.gmra.mxu0 %vm116_vm1, %v5847_v25  ;;  %4714 = vmatmul.mubr.msk.f32.gmra.mxu1 %vm116_vm1, %v5852_v22  ;;  %v5883_v22 = vld [vmem:[%s7155_s0 + $0x130] sm:$0x7f]  ;;  %v5888_v25 = vld [vmem:[%s7155_s0 + $0x268] sm:$0x7f]  ;;  %s5057_s0 = smov 52  }
  0xa1   :  { %4585 = vmatprep.mubr.msk.f32.mxu0 %vm5050_vm2, %v5049_v1  ;;  %4716 = vmatprep.mubr.msk.f32.mxu1 %vm5050_vm2, %v5049_v1 }
  0xa4   :  { %4586 = vmatmul.mubr.msk.f32.gmra.mxu0 %vm116_vm1, %v5865_v19  ;;  %4717 = vmatmul.mubr.msk.f32.gmra.mxu1 %vm116_vm1, %v5870_v28 }
  0xa5   :  { %4588 = vmatprep.mubr.msk.f32.mxu0 %vm5050_vm2, %v5049_v1  ;;  %4719 = vmatprep.mubr.msk.f32.mxu1 %vm5050_vm2, %v5049_v1 }
  0xa8   :  { %4589 = vmatmul.mubr.msk.f32.gmra.mxu0 %vm116_vm1, %v5883_v22  ;;  %4720 = vmatmul.mubr.msk.f32.gmra.mxu1 %vm116_vm1, %v5888_v25 }
  0xa9   :  { %4736 = vmatprep.mubr.msk.f32.mxu0 %vm5050_vm2, %v5049_v1  ;;  %4867 = vmatprep.mubr.msk.f32.mxu1 %vm5050_vm2, %v5049_v1 }
  0xac   :  { %4737 = vmatmul.mubr.msk.f32.vlgmr.msra.gmra.mxu0 %vm116_vm1, %v5158_v8  ;;  %4868 = vmatmul.mubr.msk.f32.vlgmr.msra.gmra.mxu1 %vm116_vm1, %v5163_v9 }
  0xad   :  { %4739 = vmatprep.mubr.msk.f32.mxu0 %vm5050_vm2, %v5049_v1  ;;  %4870 = vmatprep.mubr.msk.f32.mxu1 %vm5050_vm2, %v5049_v1 }
  0xb0   :  { %4740 = vmatmul.mubr.msk.f32.gmra.mxu0 %vm116_vm1, %v5181_v11  ;;  %4871 = vmatmul.mubr.msk.f32.gmra.mxu1 %vm116_vm1, %v5186_v12 }
  0xb1   :  { %4742 = vmatprep.mubr.msk.f32.mxu0 %vm5050_vm2, %v5049_v1  ;;  %4873 = vmatprep.mubr.msk.f32.mxu1 %vm5050_vm2, %v5049_v1 }
  0xb4   :  { %4743 = vmatmul.mubr.msk.f32.gmra.mxu0 %vm116_vm1, %v5208_v14  ;;  %4874 = vmatmul.mubr.msk.f32.gmra.mxu1 %vm116_vm1, %v5213_v15 }
  0xb5   :  { %4745 = vmatprep.mubr.msk.f32.mxu0 %vm5050_vm2, %v5049_v1  ;;  %4876 = vmatprep.mubr.msk.f32.mxu1 %vm5050_vm2, %v5049_v1 }
  0xb8   :  { %4746 = vmatmul.mubr.msk.f32.gmra.mxu0 %vm116_vm1, %v5231_v17  ;;  %4877 = vmatmul.mubr.msk.f32.gmra.mxu1 %vm116_vm1, %v5236_v18 }
  0xb9   :  { %4748 = vmatprep.mubr.msk.f32.mxu0 %vm5050_vm2, %v5049_v1  ;;  %4879 = vmatprep.mubr.msk.f32.mxu1 %vm5050_vm2, %v5049_v1 }
  0xbc   :  { %4749 = vmatmul.mubr.msk.f32.gmra.mxu0 %vm116_vm1, %v5254_v20  ;;  %4880 = vmatmul.mubr.msk.f32.gmra.mxu1 %vm116_vm1, %v5259_v21 }
  0xbd   :  { %4751 = vmatprep.mubr.msk.f32.mxu0 %vm5050_vm2, %v5049_v1  ;;  %4882 = vmatprep.mubr.msk.f32.mxu1 %vm5050_vm2, %v5049_v1 }
  0xc0   :  { %4752 = vmatmul.mubr.msk.f32.gmra.mxu0 %vm116_vm1, %v5277_v23  ;;  %4883 = vmatmul.mubr.msk.f32.gmra.mxu1 %vm116_vm1, %v5282_v24 }
  0xc1   :  { %4754 = vmatprep.mubr.msk.f32.mxu0 %vm5050_vm2, %v5049_v1  ;;  %4885 = vmatprep.mubr.msk.f32.mxu1 %vm5050_vm2, %v5049_v1 }
  0xc4   :  { %4755 = vmatmul.mubr.msk.f32.gmra.mxu0 %vm116_vm1, %v5300_v26  ;;  %4886 = vmatmul.mubr.msk.f32.gmra.mxu1 %vm116_vm1, %v5305_v27 }
  0xc5   :  { %4757 = vmatprep.mubr.msk.f32.mxu0 %vm5050_vm2, %v5049_v1  ;;  %4888 = vmatprep.mubr.msk.f32.mxu1 %vm5050_vm2, %v5049_v1 }
  0xc8   :  { %4758 = vmatmul.mubr.msk.f32.gmra.mxu0 %vm116_vm1, %v5323_v29  ;;  %4889 = vmatmul.mubr.msk.f32.gmra.mxu1 %vm116_vm1, %v5328_v30 }
  0xc9   :  { %4760 = vmatprep.mubr.msk.f32.mxu0 %vm5050_vm2, %v5049_v1  ;;  %4891 = vmatprep.mubr.msk.f32.mxu1 %vm5050_vm2, %v5049_v1 }
  0xcc   :  { %4761 = vmatmul.mubr.msk.f32.gmra.mxu0 %vm116_vm1, %v5343_v31  ;;  %4892 = vmatmul.mubr.msk.f32.gmra.mxu1 %vm116_vm1, %v5348_v32 }
  0xcd   :  { %4763 = vmatprep.mubr.msk.f32.mxu0 %vm5050_vm2, %v5049_v1  ;;  %4894 = vmatprep.mubr.msk.f32.mxu1 %vm5050_vm2, %v5049_v1 }
  0xd0   :  { %v304_v8 = vpop.f32.mrf.mxu0  ;;  %v681_v9 = vpop.f32.mrf.mxu1  ;;  %4764 = vmatmul.mubr.msk.f32.gmra.mxu0 %vm116_vm1, %v5361_v33  ;;  %4895 = vmatmul.mubr.msk.f32.gmra.mxu1 %vm116_vm1, %v5366_v34 }
  0xd1   :  { %876 = vst.msk [vmem:[#allocation2] sm:$0xff] %vm875_vm3, %v304_v8  ;;  %916 = vst.msk [vmem:[#allocation2 + $0x138] sm:$0xff] %vm875_vm3, %v681_v9  ;;  %4766 = vmatprep.mubr.msk.f32.mxu0 %vm5050_vm2, %v5049_v1  ;;  %4897 = vmatprep.mubr.msk.f32.mxu1 %vm5050_vm2, %v5049_v1 }
  0xd2   :  { %v4476_v11 = vpop.f32.mrf.mxu0  ;;  %v4607_v12 = vpop.f32.mrf.mxu1 }
  0xd4   :  { %v309_v14 = vpop.f32.mrf.mxu0  ;;  %v686_v15 = vpop.f32.mrf.mxu1  ;;  %4767 = vmatmul.mubr.msk.f32.gmra.mxu0 %vm116_vm1, %v5379_v35  ;;  %4898 = vmatmul.mubr.msk.f32.gmra.mxu1 %vm116_vm1, %v5384_v36 }
  0xd5   :  { %877 = vst.msk [vmem:[#allocation2 + $0x8] sm:$0xff] %vm875_vm3, %v309_v14  ;;  %917 = vst.msk [vmem:[#allocation2 + $0x140] sm:$0xff] %vm875_vm3, %v686_v15  ;;  %4769 = vmatprep.mubr.msk.f32.mxu0 %vm5050_vm2, %v5049_v1  ;;  %4900 = vmatprep.mubr.msk.f32.mxu1 %vm5050_vm2, %v5049_v1 }
  0xd6   :  { %v4479_v17 = vpop.f32.mrf.mxu0  ;;  %v4610_v18 = vpop.f32.mrf.mxu1 }
  0xd8   :  { %v314_v20 = vpop.f32.mrf.mxu0  ;;  %v691_v21 = vpop.f32.mrf.mxu1  ;;  %4770 = vmatmul.mubr.msk.f32.gmra.mxu0 %vm116_vm1, %v5397_v37  ;;  %4901 = vmatmul.mubr.msk.f32.gmra.mxu1 %vm116_vm1, %v5402_v38 }
  0xd9   :  { %878 = vst.msk [vmem:[#allocation2 + $0x10] sm:$0xff] %vm875_vm3, %v314_v20  ;;  %918 = vst.msk [vmem:[#allocation2 + $0x148] sm:$0xff] %vm875_vm3, %v691_v21  ;;  %4772 = vmatprep.mubr.msk.f32.mxu0 %vm5050_vm2, %v5049_v1  ;;  %4903 = vmatprep.mubr.msk.f32.mxu1 %vm5050_vm2, %v5049_v1 }
  0xda   :  { %v4482_v23 = vpop.f32.mrf.mxu0  ;;  %v4613_v24 = vpop.f32.mrf.mxu1 }
  0xdc   :  { %v319_v26 = vpop.f32.mrf.mxu0  ;;  %v696_v27 = vpop.f32.mrf.mxu1  ;;  %4773 = vmatmul.mubr.msk.f32.gmra.mxu0 %vm116_vm1, %v5415_v39  ;;  %4904 = vmatmul.mubr.msk.f32.gmra.mxu1 %vm116_vm1, %v5420_v40 }
  0xdd   :  { %879 = vst.msk [vmem:[#allocation2 + $0x18] sm:$0xff] %vm875_vm3, %v319_v26  ;;  %919 = vst.msk [vmem:[#allocation2 + $0x150] sm:$0xff] %vm875_vm3, %v696_v27  ;;  %4775 = vmatprep.mubr.msk.f32.mxu0 %vm5050_vm2, %v5049_v1  ;;  %4906 = vmatprep.mubr.msk.f32.mxu1 %vm5050_vm2, %v5049_v1 }
  0xde   :  { %v4485_v29 = vpop.f32.mrf.mxu0  ;;  %v4616_v30 = vpop.f32.mrf.mxu1 }
  0xe0   :  { %v324_v31 = vpop.f32.mrf.mxu0  ;;  %v701_v32 = vpop.f32.mrf.mxu1  ;;  %4776 = vmatmul.mubr.msk.f32.gmra.mxu0 %vm116_vm1, %v5433_v41  ;;  %4907 = vmatmul.mubr.msk.f32.gmra.mxu1 %vm116_vm1, %v5438_v42 }
  0xe1   :  { %880 = vst.msk [vmem:[#allocation2 + $0x20] sm:$0xff] %vm875_vm3, %v324_v31  ;;  %920 = vst.msk [vmem:[#allocation2 + $0x158] sm:$0xff] %vm875_vm3, %v701_v32  ;;  %4778 = vmatprep.mubr.msk.f32.mxu0 %vm5050_vm2, %v5049_v1  ;;  %4909 = vmatprep.mubr.msk.f32.mxu1 %vm5050_vm2, %v5049_v1 }
  0xe2   :  { %v4488_v33 = vpop.f32.mrf.mxu0  ;;  %v4619_v34 = vpop.f32.mrf.mxu1 }
  0xe4   :  { %v329_v35 = vpop.f32.mrf.mxu0  ;;  %v706_v36 = vpop.f32.mrf.mxu1  ;;  %4779 = vmatmul.mubr.msk.f32.gmra.mxu0 %vm116_vm1, %v5451_v43  ;;  %4910 = vmatmul.mubr.msk.f32.gmra.mxu1 %vm116_vm1, %v5456_v44 }
  0xe5   :  { %881 = vst.msk [vmem:[#allocation2 + $0x28] sm:$0xff] %vm875_vm3, %v329_v35  ;;  %921 = vst.msk [vmem:[#allocation2 + $0x160] sm:$0xff] %vm875_vm3, %v706_v36  ;;  %4781 = vmatprep.mubr.msk.f32.mxu0 %vm5050_vm2, %v5049_v1  ;;  %4912 = vmatprep.mubr.msk.f32.mxu1 %vm5050_vm2, %v5049_v1 }
  0xe6   :  { %v4491_v37 = vpop.f32.mrf.mxu0  ;;  %v4622_v38 = vpop.f32.mrf.mxu1 }
  0xe8   :  { %v334_v39 = vpop.f32.mrf.mxu0  ;;  %v711_v40 = vpop.f32.mrf.mxu1  ;;  %4782 = vmatmul.mubr.msk.f32.gmra.mxu0 %vm116_vm1, %v5469_v45  ;;  %4913 = vmatmul.mubr.msk.f32.gmra.mxu1 %vm116_vm1, %v5474_v46 }
  0xe9   :  { %882 = vst.msk [vmem:[#allocation2 + $0x30] sm:$0xff] %vm875_vm3, %v334_v39  ;;  %922 = vst.msk [vmem:[#allocation2 + $0x168] sm:$0xff] %vm875_vm3, %v711_v40  ;;  %4784 = vmatprep.mubr.msk.f32.mxu0 %vm5050_vm2, %v5049_v1  ;;  %4915 = vmatprep.mubr.msk.f32.mxu1 %vm5050_vm2, %v5049_v1 }
  0xea   :  { %v4494_v41 = vpop.f32.mrf.mxu0  ;;  %v4625_v42 = vpop.f32.mrf.mxu1 }
  0xec   :  { %v339_v43 = vpop.f32.mrf.mxu0  ;;  %v716_v44 = vpop.f32.mrf.mxu1  ;;  %4785 = vmatmul.mubr.msk.f32.gmra.mxu0 %vm116_vm1, %v5487_v47  ;;  %4916 = vmatmul.mubr.msk.f32.gmra.mxu1 %vm116_vm1, %v5492_v48 }
  0xed   :  { %883 = vst.msk [vmem:[#allocation2 + $0x38] sm:$0xff] %vm875_vm3, %v339_v43  ;;  %923 = vst.msk [vmem:[#allocation2 + $0x170] sm:$0xff] %vm875_vm3, %v716_v44  ;;  %4787 = vmatprep.mubr.msk.f32.mxu0 %vm5050_vm2, %v5049_v1  ;;  %4918 = vmatprep.mubr.msk.f32.mxu1 %vm5050_vm2, %v5049_v1  ;;  %v7193_v44 = vld [vmem:[#allocation9_spill] sm:$0xff] }
  0xee   :  { %v4497_v45 = vpop.f32.mrf.mxu0  ;;  %v4628_v46 = vpop.f32.mrf.mxu1 }
  0xf0   :  { %v344_v8 = vpop.f32.mrf.mxu0  ;;  %v721_v9 = vpop.f32.mrf.mxu1  ;;  %4788 = vmatmul.mubr.msk.f32.gmra.mxu0 %vm116_vm1, %v5505_v49  ;;  %4919 = vmatmul.mubr.msk.f32.gmra.mxu1 %vm116_vm1, %v5510_v50 }
  0xf1   :  { %884 = vst.msk [vmem:[#allocation2 + $0x40] sm:$0xff] %vm875_vm3, %v344_v8  ;;  %924 = vst.msk [vmem:[#allocation2 + $0x178] sm:$0xff] %vm875_vm3, %v721_v9  ;;  %4790 = vmatprep.mubr.msk.f32.mxu0 %vm5050_vm2, %v5049_v1  ;;  %4921 = vmatprep.mubr.msk.f32.mxu1 %vm5050_vm2, %v5049_v1 }
  0xf2   :  { %v4500_v47 = vpop.f32.mrf.mxu0  ;;  %v4631_v48 = vpop.f32.mrf.mxu1 }
  0xf3   :  { %v7195_v47 = vld [vmem:[#allocation11_spill] sm:$0xff]  ;;  %v7196_v48 = vld [vmem:[#allocation12_spill] sm:$0xff] }
  0xf4   :  { %v349_v11 = vpop.f32.mrf.mxu0  ;;  %v726_v12 = vpop.f32.mrf.mxu1  ;;  %4791 = vmatmul.mubr.msk.f32.gmra.mxu0 %vm116_vm1, %v5523_v51  ;;  %4922 = vmatmul.mubr.msk.f32.gmra.mxu1 %vm116_vm1, %v5528_v52 }
  0xf5   :  { %885 = vst.msk [vmem:[#allocation2 + $0x48] sm:$0xff] %vm875_vm3, %v349_v11  ;;  %925 = vst.msk [vmem:[#allocation2 + $0x180] sm:$0xff] %vm875_vm3, %v726_v12  ;;  %4793 = vmatprep.mubr.msk.f32.mxu0 %vm5050_vm2, %v5049_v1  ;;  %4924 = vmatprep.mubr.msk.f32.mxu1 %vm5050_vm2, %v5049_v1 }
  0xf6   :  { %v4503_v49 = vpop.f32.mrf.mxu0  ;;  %v4634_v50 = vpop.f32.mrf.mxu1 }
  0xf8   :  { %v354_v14 = vpop.f32.mrf.mxu0  ;;  %v731_v15 = vpop.f32.mrf.mxu1  ;;  %4794 = vmatmul.mubr.msk.f32.gmra.mxu0 %vm116_vm1, %v5541_v53  ;;  %4925 = vmatmul.mubr.msk.f32.gmra.mxu1 %vm116_vm1, %v5546_v54 }
  0xf9   :  { %886 = vst.msk [vmem:[#allocation2 + $0x50] sm:$0xff] %vm875_vm3, %v354_v14  ;;  %926 = vst.msk [vmem:[#allocation2 + $0x188] sm:$0xff] %vm875_vm3, %v731_v15  ;;  %4796 = vmatprep.mubr.msk.f32.mxu0 %vm5050_vm2, %v5049_v1  ;;  %4927 = vmatprep.mubr.msk.f32.mxu1 %vm5050_vm2, %v5049_v1  ;;  %v7197_v14 = vld [vmem:[#allocation13_spill] sm:$0xff]  ;;  %v7198_v15 = vld [vmem:[#allocation14_spill] sm:$0xff] }
  0xfa   :  { %v4506_v51 = vpop.f32.mrf.mxu0  ;;  %v4637_v52 = vpop.f32.mrf.mxu1 }
  0xfc   :  { %v359_v17 = vpop.f32.mrf.mxu0  ;;  %v736_v18 = vpop.f32.mrf.mxu1  ;;  %4797 = vmatmul.mubr.msk.f32.gmra.mxu0 %vm116_vm1, %v5559_v55  ;;  %4928 = vmatmul.mubr.msk.f32.gmra.mxu1 %vm116_vm1, %v5564_v56 }
  0xfd   :  { %887 = vst.msk [vmem:[#allocation2 + $0x58] sm:$0xff] %vm875_vm3, %v359_v17  ;;  %927 = vst.msk [vmem:[#allocation2 + $0x190] sm:$0xff] %vm875_vm3, %v736_v18  ;;  %4799 = vmatprep.mubr.msk.f32.mxu0 %vm5050_vm2, %v5049_v1  ;;  %4930 = vmatprep.mubr.msk.f32.mxu1 %vm5050_vm2, %v5049_v1 }
  0xfe   :  { %v4509_v53 = vpop.f32.mrf.mxu0  ;;  %v4640_v54 = vpop.f32.mrf.mxu1 }
  0xff   :  { %v7199_v53 = vld [vmem:[#allocation15_spill] sm:$0xff]  ;;  %v7200_v54 = vld [vmem:[#allocation16_spill] sm:$0xff] }
 0x100   :  { %v364_v20 = vpop.f32.mrf.mxu0  ;;  %v741_v21 = vpop.f32.mrf.mxu1  ;;  %4800 = vmatmul.mubr.msk.f32.gmra.mxu0 %vm116_vm1, %v5577_v57  ;;  %4931 = vmatmul.mubr.msk.f32.gmra.mxu1 %vm116_vm1, %v5582_v58 }
 0x101   :  { %888 = vst.msk [vmem:[#allocation2 + $0x60] sm:$0xff] %vm875_vm3, %v364_v20  ;;  %928 = vst.msk [vmem:[#allocation2 + $0x198] sm:$0xff] %vm875_vm3, %v741_v21  ;;  %4802 = vmatprep.mubr.msk.f32.mxu0 %vm5050_vm2, %v5049_v1  ;;  %4933 = vmatprep.mubr.msk.f32.mxu1 %vm5050_vm2, %v5049_v1 }
 0x102   :  { %v4512_v55 = vpop.f32.mrf.mxu0  ;;  %v4643_v56 = vpop.f32.mrf.mxu1 }
 0x104   :  { %v369_v23 = vpop.f32.mrf.mxu0  ;;  %v746_v24 = vpop.f32.mrf.mxu1  ;;  %4803 = vmatmul.mubr.msk.f32.gmra.mxu0 %vm116_vm1, %v5595_v59  ;;  %4934 = vmatmul.mubr.msk.f32.gmra.mxu1 %vm116_vm1, %v5600_v60 }
 0x105   :  { %889 = vst.msk [vmem:[#allocation2 + $0x68] sm:$0xff] %vm875_vm3, %v369_v23  ;;  %929 = vst.msk [vmem:[#allocation2 + $0x1a0] sm:$0xff] %vm875_vm3, %v746_v24  ;;  %4805 = vmatprep.mubr.msk.f32.mxu0 %vm5050_vm2, %v5049_v1  ;;  %4936 = vmatprep.mubr.msk.f32.mxu1 %vm5050_vm2, %v5049_v1  ;;  %v7201_v23 = vld [vmem:[#allocation17_spill] sm:$0xff]  ;;  %v7202_v24 = vld [vmem:[#allocation18_spill] sm:$0xff] }
 0x106   :  { %v4515_v57 = vpop.f32.mrf.mxu0  ;;  %v4646_v58 = vpop.f32.mrf.mxu1 }
 0x108   :  { %v374_v26 = vpop.f32.mrf.mxu0  ;;  %v751_v27 = vpop.f32.mrf.mxu1  ;;  %4806 = vmatmul.mubr.msk.f32.gmra.mxu0 %vm116_vm1, %v5613_v61  ;;  %4937 = vmatmul.mubr.msk.f32.gmra.mxu1 %vm116_vm1, %v5618_v62 }
 0x109   :  { %890 = vst.msk [vmem:[#allocation2 + $0x70] sm:$0xff] %vm875_vm3, %v374_v26  ;;  %930 = vst.msk [vmem:[#allocation2 + $0x1a8] sm:$0xff] %vm875_vm3, %v751_v27  ;;  %4808 = vmatprep.mubr.msk.f32.mxu0 %vm5050_vm2, %v5049_v1  ;;  %4939 = vmatprep.mubr.msk.f32.mxu1 %vm5050_vm2, %v5049_v1 }
 0x10a   :  { %v4518_v59 = vpop.f32.mrf.mxu0  ;;  %v4649_v60 = vpop.f32.mrf.mxu1 }
 0x10b   :  { %v7203_v59 = vld [vmem:[#allocation19_spill] sm:$0xff]  ;;  %v7204_v60 = vld [vmem:[#allocation20_spill] sm:$0xff] }
 0x10c   :  { %v379_v29 = vpop.f32.mrf.mxu0  ;;  %v756_v30 = vpop.f32.mrf.mxu1  ;;  %4809 = vmatmul.mubr.msk.f32.gmra.mxu0 %vm116_vm1, %v5631_v63  ;;  %4940 = vmatmul.mubr.msk.f32.gmra.mxu1 %vm116_vm1, %v5636_v0 }
 0x10d   :  { %891 = vst.msk [vmem:[#allocation2 + $0x78] sm:$0xff] %vm875_vm3, %v379_v29  ;;  %931 = vst.msk [vmem:[#allocation2 + $0x1b0] sm:$0xff] %vm875_vm3, %v756_v30  ;;  %4811 = vmatprep.mubr.msk.f32.mxu0 %vm5050_vm2, %v5049_v1  ;;  %4942 = vmatprep.mubr.msk.f32.mxu1 %vm5050_vm2, %v5049_v1 }
 0x10e   :  { %v4521_v61 = vpop.f32.mrf.mxu0  ;;  %v4652_v62 = vpop.f32.mrf.mxu1 }
 0x110   :  { %v384_v31 = vpop.f32.mrf.mxu0  ;;  %v761_v32 = vpop.f32.mrf.mxu1  ;;  %4812 = vmatmul.mubr.msk.f32.gmra.mxu0 %vm116_vm1, %v5649_v2  ;;  %4943 = vmatmul.mubr.msk.f32.gmra.mxu1 %vm116_vm1, %v5654_v3 }
 0x111   :  { %892 = vst.msk [vmem:[#allocation2 + $0x80] sm:$0xff] %vm875_vm3, %v384_v31  ;;  %932 = vst.msk [vmem:[#allocation2 + $0x1b8] sm:$0xff] %vm875_vm3, %v761_v32  ;;  %4814 = vmatprep.mubr.msk.f32.mxu0 %vm5050_vm2, %v5049_v1  ;;  %4945 = vmatprep.mubr.msk.f32.mxu1 %vm5050_vm2, %v5049_v1  ;;  %v7205_v31 = vld [vmem:[#allocation21_spill] sm:$0xff]  ;;  %v7206_v32 = vld [vmem:[#allocation22_spill] sm:$0xff] }
 0x112   :  { %v4524_v63 = vpop.f32.mrf.mxu0  ;;  %v4655_v0 = vpop.f32.mrf.mxu1 }
 0x114   :  { %v389_v33 = vpop.f32.mrf.mxu0  ;;  %v766_v34 = vpop.f32.mrf.mxu1  ;;  %4815 = vmatmul.mubr.msk.f32.gmra.mxu0 %vm116_vm1, %v5667_v4  ;;  %4946 = vmatmul.mubr.msk.f32.gmra.mxu1 %vm116_vm1, %v5672_v5 }
 0x115   :  { %893 = vst.msk [vmem:[#allocation2 + $0x88] sm:$0xff] %vm875_vm3, %v389_v33  ;;  %933 = vst.msk [vmem:[#allocation2 + $0x1c0] sm:$0xff] %vm875_vm3, %v766_v34  ;;  %4817 = vmatprep.mubr.msk.f32.mxu0 %vm5050_vm2, %v5049_v1  ;;  %4948 = vmatprep.mubr.msk.f32.mxu1 %vm5050_vm2, %v5049_v1 }
 0x116   :  { %v4527_v2 = vpop.f32.mrf.mxu0  ;;  %v4658_v3 = vpop.f32.mrf.mxu1 }
 0x118   :  { %v394_v35 = vpop.f32.mrf.mxu0  ;;  %v771_v36 = vpop.f32.mrf.mxu1  ;;  %4818 = vmatmul.mubr.msk.f32.gmra.mxu0 %vm116_vm1, %v5685_v6  ;;  %4949 = vmatmul.mubr.msk.f32.gmra.mxu1 %vm116_vm1, %v5690_v7 }
 0x119   :  { %894 = vst.msk [vmem:[#allocation2 + $0x90] sm:$0xff] %vm875_vm3, %v394_v35  ;;  %934 = vst.msk [vmem:[#allocation2 + $0x1c8] sm:$0xff] %vm875_vm3, %v771_v36  ;;  %4820 = vmatprep.mubr.msk.f32.mxu0 %vm5050_vm2, %v5049_v1  ;;  %4951 = vmatprep.mubr.msk.f32.mxu1 %vm5050_vm2, %v5049_v1 }
 0x11a   :  { %v4530_v4 = vpop.f32.mrf.mxu0  ;;  %v4661_v5 = vpop.f32.mrf.mxu1 }
 0x11c   :  { %v399_v37 = vpop.f32.mrf.mxu0  ;;  %v776_v38 = vpop.f32.mrf.mxu1  ;;  %4821 = vmatmul.mubr.msk.f32.gmra.mxu0 %vm116_vm1, %v5703_v10  ;;  %4952 = vmatmul.mubr.msk.f32.gmra.mxu1 %vm116_vm1, %v5708_v13  ;;  %v7192_v10 = vld [vmem:[#allocation8_spill] sm:$0xff] }
 0x11d   :  { %895 = vst.msk [vmem:[#allocation2 + $0x98] sm:$0xff] %vm875_vm3, %v399_v37  ;;  %935 = vst.msk [vmem:[#allocation2 + $0x1d0] sm:$0xff] %vm875_vm3, %v776_v38  ;;  %4823 = vmatprep.mubr.msk.f32.mxu0 %vm5050_vm2, %v5049_v1  ;;  %4954 = vmatprep.mubr.msk.f32.mxu1 %vm5050_vm2, %v5049_v1 }
 0x11e   :  { %v4533_v6 = vpop.f32.mrf.mxu0  ;;  %v4664_v7 = vpop.f32.mrf.mxu1 }
 0x120   :  { %v404_v39 = vpop.f32.mrf.mxu0  ;;  %v781_v40 = vpop.f32.mrf.mxu1  ;;  %4824 = vmatmul.mubr.msk.f32.gmra.mxu0 %vm116_vm1, %v5721_v16  ;;  %4955 = vmatmul.mubr.msk.f32.gmra.mxu1 %vm116_vm1, %v7192_v10  ;;  %v7194_v16 = vld [vmem:[#allocation10_spill] sm:$0xff] }
 0x121   :  { %896 = vst.msk [vmem:[#allocation2 + $0xa0] sm:$0xff] %vm875_vm3, %v404_v39  ;;  %936 = vst.msk [vmem:[#allocation2 + $0x1d8] sm:$0xff] %vm875_vm3, %v781_v40  ;;  %4826 = vmatprep.mubr.msk.f32.mxu0 %vm5050_vm2, %v5049_v1  ;;  %4957 = vmatprep.mubr.msk.f32.mxu1 %vm5050_vm2, %v5049_v1 }
 0x122   :  { %v4536_v13 = vpop.f32.mrf.mxu0  ;;  %v4667_v41 = vpop.f32.mrf.mxu1 }
 0x124   :  { %v409_v42 = vpop.f32.mrf.mxu0  ;;  %v786_v43 = vpop.f32.mrf.mxu1  ;;  %4827 = vmatmul.mubr.msk.f32.gmra.mxu0 %vm116_vm1, %v7193_v44  ;;  %4958 = vmatmul.mubr.msk.f32.gmra.mxu1 %vm116_vm1, %v7194_v16 }
 0x125   :  { %897 = vst.msk [vmem:[#allocation2 + $0xa8] sm:$0xff] %vm875_vm3, %v409_v42  ;;  %937 = vst.msk [vmem:[#allocation2 + $0x1e0] sm:$0xff] %vm875_vm3, %v786_v43  ;;  %4829 = vmatprep.mubr.msk.f32.mxu0 %vm5050_vm2, %v5049_v1  ;;  %4960 = vmatprep.mubr.msk.f32.mxu1 %vm5050_vm2, %v5049_v1 }
 0x126   :  { %v4539_v45 = vpop.f32.mrf.mxu0  ;;  %v4670_v46 = vpop.f32.mrf.mxu1 }
 0x128   :  { %v414_v8 = vpop.f32.mrf.mxu0  ;;  %v791_v9 = vpop.f32.mrf.mxu1  ;;  %4830 = vmatmul.mubr.msk.f32.gmra.mxu0 %vm116_vm1, %v7195_v47  ;;  %4961 = vmatmul.mubr.msk.f32.gmra.mxu1 %vm116_vm1, %v7196_v48 }
 0x129   :  { %898 = vst.msk [vmem:[#allocation2 + $0xb0] sm:$0xff] %vm875_vm3, %v414_v8  ;;  %938 = vst.msk [vmem:[#allocation2 + $0x1e8] sm:$0xff] %vm875_vm3, %v791_v9  ;;  %4832 = vmatprep.mubr.msk.f32.mxu0 %vm5050_vm2, %v5049_v1  ;;  %4963 = vmatprep.mubr.msk.f32.mxu1 %vm5050_vm2, %v5049_v1 }
 0x12a   :  { %v4542_v11 = vpop.f32.mrf.mxu0  ;;  %v4673_v12 = vpop.f32.mrf.mxu1 }
 0x12c   :  { %v419_v49 = vpop.f32.mrf.mxu0  ;;  %v796_v50 = vpop.f32.mrf.mxu1  ;;  %4833 = vmatmul.mubr.msk.f32.gmra.mxu0 %vm116_vm1, %v7197_v14  ;;  %4964 = vmatmul.mubr.msk.f32.gmra.mxu1 %vm116_vm1, %v7198_v15 }
 0x12d   :  { %899 = vst.msk [vmem:[#allocation2 + $0xb8] sm:$0xff] %vm875_vm3, %v419_v49  ;;  %939 = vst.msk [vmem:[#allocation2 + $0x1f0] sm:$0xff] %vm875_vm3, %v796_v50  ;;  %4835 = vmatprep.mubr.msk.f32.mxu0 %vm5050_vm2, %v5049_v1  ;;  %4966 = vmatprep.mubr.msk.f32.mxu1 %vm5050_vm2, %v5049_v1 }
 0x12e   :  { %v4545_v51 = vpop.f32.mrf.mxu0  ;;  %v4676_v52 = vpop.f32.mrf.mxu1 }
 0x130   :  { %v424_v17 = vpop.f32.mrf.mxu0  ;;  %v801_v18 = vpop.f32.mrf.mxu1  ;;  %4836 = vmatmul.mubr.msk.f32.gmra.mxu0 %vm116_vm1, %v7199_v53  ;;  %4967 = vmatmul.mubr.msk.f32.gmra.mxu1 %vm116_vm1, %v7200_v54 }
 0x131   :  { %900 = vst.msk [vmem:[#allocation2 + $0xc0] sm:$0xff] %vm875_vm3, %v424_v17  ;;  %940 = vst.msk [vmem:[#allocation2 + $0x1f8] sm:$0xff] %vm875_vm3, %v801_v18  ;;  %4838 = vmatprep.mubr.msk.f32.mxu0 %vm5050_vm2, %v5049_v1  ;;  %4969 = vmatprep.mubr.msk.f32.mxu1 %vm5050_vm2, %v5049_v1 }
 0x132   :  { %v4548_v20 = vpop.f32.mrf.mxu0  ;;  %v4679_v21 = vpop.f32.mrf.mxu1 }
 0x134   :  { %v429_v55 = vpop.f32.mrf.mxu0  ;;  %v806_v56 = vpop.f32.mrf.mxu1  ;;  %4839 = vmatmul.mubr.msk.f32.gmra.mxu0 %vm116_vm1, %v7201_v23  ;;  %4970 = vmatmul.mubr.msk.f32.gmra.mxu1 %vm116_vm1, %v7202_v24 }
 0x135   :  { %901 = vst.msk [vmem:[#allocation2 + $0xc8] sm:$0xff] %vm875_vm3, %v429_v55  ;;  %941 = vst.msk [vmem:[#allocation2 + $0x200] sm:$0xff] %vm875_vm3, %v806_v56  ;;  %4841 = vmatprep.mubr.msk.f32.mxu0 %vm5050_vm2, %v5049_v1  ;;  %4972 = vmatprep.mubr.msk.f32.mxu1 %vm5050_vm2, %v5049_v1 }
 0x136   :  { %v4551_v57 = vpop.f32.mrf.mxu0  ;;  %v4682_v58 = vpop.f32.mrf.mxu1 }
 0x138   :  { %v434_v26 = vpop.f32.mrf.mxu0  ;;  %v811_v27 = vpop.f32.mrf.mxu1  ;;  %4842 = vmatmul.mubr.msk.f32.gmra.mxu0 %vm116_vm1, %v7203_v59  ;;  %4973 = vmatmul.mubr.msk.f32.gmra.mxu1 %vm116_vm1, %v7204_v60 }
 0x139   :  { %902 = vst.msk [vmem:[#allocation2 + $0xd0] sm:$0xff] %vm875_vm3, %v434_v26  ;;  %942 = vst.msk [vmem:[#allocation2 + $0x208] sm:$0xff] %vm875_vm3, %v811_v27  ;;  %4844 = vmatprep.mubr.msk.f32.mxu0 %vm5050_vm2, %v5049_v1  ;;  %4975 = vmatprep.mubr.msk.f32.mxu1 %vm5050_vm2, %v5049_v1 }
 0x13a   :  { %v4554_v29 = vpop.f32.mrf.mxu0  ;;  %v4685_v30 = vpop.f32.mrf.mxu1 }
 0x13b   :  { %v1557_v30 = vld [vmem:[#allocation2] sm:$0xff] }
 0x13c   :  { %v439_v61 = vpop.f32.mrf.mxu0  ;;  %v816_v62 = vpop.f32.mrf.mxu1  ;;  %4845 = vmatmul.mubr.msk.f32.gmra.mxu0 %vm116_vm1, %v7205_v31  ;;  %4976 = vmatmul.mubr.msk.f32.gmra.mxu1 %vm116_vm1, %v7206_v32 }
 0x13d   :  { %903 = vst.msk [vmem:[#allocation2 + $0xd8] sm:$0xff] %vm875_vm3, %v439_v61  ;;  %943 = vst.msk [vmem:[#allocation2 + $0x210] sm:$0xff] %vm875_vm3, %v816_v62  ;;  %4847 = vmatprep.mubr.msk.f32.mxu0 %vm5050_vm2, %v5049_v1  ;;  %4978 = vmatprep.mubr.msk.f32.mxu1 %vm5050_vm2, %v5049_v1  ;;  %v1559_v61 = vld [vmem:[#allocation2 + $0x138] sm:$0xff]  ;;  %v1558_v62 = vld [vmem:[#allocation2 + $0x8] sm:$0x3] }
 0x13e   :  { %v4557_v63 = vpop.f32.mrf.mxu0  ;;  %v4688_v0 = vpop.f32.mrf.mxu1 }
 0x140   :  { %v444_v33 = vpop.f32.mrf.mxu0  ;;  %v821_v34 = vpop.f32.mrf.mxu1  ;;  %4848 = vmatmul.mubr.msk.f32.gmra.mxu0 %vm116_vm1, %v5865_v19  ;;  %4979 = vmatmul.mubr.msk.f32.gmra.mxu1 %vm116_vm1, %v5870_v28 }
 0x141   :  { %904 = vst.msk [vmem:[#allocation2 + $0xe0] sm:$0xff] %vm875_vm3, %v444_v33  ;;  %944 = vst.msk [vmem:[#allocation2 + $0x218] sm:$0xff] %vm875_vm3, %v821_v34  ;;  %4850 = vmatprep.mubr.msk.f32.mxu0 %vm5050_vm2, %v5049_v1  ;;  %4981 = vmatprep.mubr.msk.f32.mxu1 %vm5050_vm2, %v5049_v1  ;;  %v1560_v34 = vld [vmem:[#allocation2 + $0x140] sm:$0x3]  ;;  %vm1942_vm2 = vcmask 418992  }
 0x142   :  { %v4560_v2 = vpop.f32.mrf.mxu0  ;;  %v4691_v3 = vpop.f32.mrf.mxu1 }
 0x144   :  { %v449_v35 = vpop.f32.mrf.mxu0  ;;  %v826_v36 = vpop.f32.mrf.mxu1  ;;  %4851 = vmatmul.mubr.msk.f32.gmra.mxu0 %vm116_vm1, %v5883_v22  ;;  %4982 = vmatmul.mubr.msk.f32.gmra.mxu1 %vm116_vm1, %v5888_v25  ;;  %vm1880_vm1 = vmor %vm1879_vm15, %vm1878_vm14  ;;  %vm2257_vm14 = vcmask 599392   ;;  %vm2319_vm15 = vcmask 845392  }
 0x145   :  { %905 = vst.msk [vmem:[#allocation2 + $0xe8] sm:$0xff] %vm875_vm3, %v449_v35  ;;  %945 = vst.msk [vmem:[#allocation2 + $0x220] sm:$0xff] %vm875_vm3, %v826_v36 }
 0x146   :  { %v4563_v19 = vpop.f32.mrf.mxu0  ;;  %v4694_v28 = vpop.f32.mrf.mxu1 }
 0x148   :  { %v454_v4 = vpop.f32.mrf.mxu0  ;;  %v831_v5 = vpop.f32.mrf.mxu1 }
 0x149   :  { %906 = vst.msk [vmem:[#allocation2 + $0xf0] sm:$0xff] %vm875_vm3, %v454_v4  ;;  %946 = vst.msk [vmem:[#allocation2 + $0x228] sm:$0xff] %vm875_vm3, %v831_v5  ;;  %v5051_v5 = vmov 1983009808  }
 0x14a   :  { %v4566_v37 = vpop.f32.mrf.mxu0  ;;  %v4697_v38 = vpop.f32.mrf.mxu1 }
 0x14b   :  { %v6292_v37 = vunpack.c.l.s4 %v5051_v5  ;;  %v1629_v38 = vld [vmem:[#allocation2 + $0xa] sm:$0xff] }
 0x14c   :  { %v459_v6 = vpop.f32.mrf.mxu0  ;;  %v836_v7 = vpop.f32.mrf.mxu1 }
 0x14d   :  { %907 = vst.msk [vmem:[#allocation2 + $0xf8] sm:$0xff] %vm875_vm3, %v459_v6  ;;  %947 = vst.msk [vmem:[#allocation2 + $0x230] sm:$0xff] %vm875_vm3, %v836_v7  ;;  %v1630_v7 = vld [vmem:[#allocation2 + $0x12] sm:$0x3] }
 0x14e   :  { %v4569_v22 = vpop.f32.mrf.mxu0  ;;  %v4700_v25 = vpop.f32.mrf.mxu1 }
 0x14f   :  { %v1631_v22 = vld [vmem:[#allocation2 + $0x142] sm:$0xff] }
 0x150   :  { %v464_v39 = vpop.f32.mrf.mxu0  ;;  %v841_v40 = vpop.f32.mrf.mxu1 }
 0x151   :  { %908 = vst.msk [vmem:[#allocation2 + $0x100] sm:$0xff] %vm875_vm3, %v464_v39  ;;  %948 = vst.msk [vmem:[#allocation2 + $0x238] sm:$0xff] %vm875_vm3, %v841_v40 }
 0x152   :  { %v4572_v10 = vpop.f32.mrf.mxu0  ;;  %v4703_v13 = vpop.f32.mrf.mxu1 }
 0x154   :  { %v469_v41 = vpop.f32.mrf.mxu0  ;;  %v846_v42 = vpop.f32.mrf.mxu1 }
 0x155   :  { %909 = vst.msk [vmem:[#allocation2 + $0x108] sm:$0xff] %vm875_vm3, %v469_v41  ;;  %949 = vst.msk [vmem:[#allocation2 + $0x240] sm:$0xff] %vm875_vm3, %v846_v42  ;;  %v1603_v41 = vlaneseq }
 0x156   :  { %v4575_v43 = vpop.f32.mrf.mxu0  ;;  %v4706_v44 = vpop.f32.mrf.mxu1 }
 0x158   :  { %v474_v16 = vpop.f32.mrf.mxu0  ;;  %v851_v45 = vpop.f32.mrf.mxu1 }
 0x159   :  { %910 = vst.msk [vmem:[#allocation2 + $0x110] sm:$0xff] %vm875_vm3, %v474_v16  ;;  %950 = vst.msk [vmem:[#allocation2 + $0x248] sm:$0xff] %vm875_vm3, %v851_v45 }
 0x15a   :  { %v4578_v46 = vpop.f32.mrf.mxu0  ;;  %v4709_v8 = vpop.f32.mrf.mxu1 }
 0x15b   :  { %v1632_v46 = vld [vmem:[#allocation2 + $0x14a] sm:$0x3] }
 0x15c   :  { %v479_v9 = vpop.f32.mrf.mxu0  ;;  %v856_v47 = vpop.f32.mrf.mxu1 }
 0x15d   :  { %911 = vst.msk [vmem:[#allocation2 + $0x118] sm:$0xff] %vm875_vm3, %v479_v9  ;;  %951 = vst.msk [vmem:[#allocation2 + $0x250] sm:$0xff] %vm875_vm3, %v856_v47 }
 0x15e   :  { %v4581_v48 = vpop.f32.mrf.mxu0  ;;  %v4712_v11 = vpop.f32.mrf.mxu1 }
 0x160   :  { %v484_v12 = vpop.f32.mrf.mxu0  ;;  %v861_v49 = vpop.f32.mrf.mxu1 }
 0x161   :  { %912 = vst.msk [vmem:[#allocation2 + $0x120] sm:$0xff] %vm875_vm3, %v484_v12  ;;  %952 = vst.msk [vmem:[#allocation2 + $0x258] sm:$0xff] %vm875_vm3, %v861_v49  ;;  %v1602_v49 = vunpack.c.0.s8 %v6292_v37 }
 0x162   :  { %v4584_v50 = vpop.f32.mrf.mxu0  ;;  %v4715_v14 = vpop.f32.mrf.mxu1 }
 0x163   :  { %v1691_v14 = vld [vmem:[#allocation2 + $0x14] sm:$0xff] }
 0x164   :  { %v489_v15 = vpop.f32.mrf.mxu0  ;;  %v866_v51 = vpop.f32.mrf.mxu1 }
 0x165   :  { %913 = vst.msk [vmem:[#allocation2 + $0x128] sm:$0xff] %vm875_vm3, %v489_v15  ;;  %953 = vst.msk [vmem:[#allocation2 + $0x260] sm:$0xff] %vm875_vm3, %v866_v51 }
 0x166   :  { %v4587_v52 = vpop.f32.mrf.mxu0  ;;  %v4718_v17 = vpop.f32.mrf.mxu1 }
 0x168   :  { %v494_v18 = vpop.f32.mrf.mxu0  ;;  %v871_v53 = vpop.f32.mrf.mxu1 }
 0x169   :  { %915 = vst.msk [vmem:[#allocation2 + $0x130] sm:$0x7f] %vm914_vm4, %v494_v18  ;;  %954 = vst.msk [vmem:[#allocation2 + $0x268] sm:$0x7f] %vm914_vm4, %v871_v53  ;;  %v1692_v53 = vld [vmem:[#allocation2 + $0x1c] sm:$0x3] }
 0x16a   :  { %v4590_v54 = vpop.f32.mrf.mxu0  ;;  %v4721_v20 = vpop.f32.mrf.mxu1 }
 0x16c   :  { %v1024_v21 = vpop.f32.mrf.mxu0  ;;  %v1284_v55 = vpop.f32.mrf.mxu1 }
 0x16d   :  { %1478 = vst.msk [vmem:[#allocation3] sm:$0xff] %vm875_vm3, %v1024_v21  ;;  %1517 = vst.msk [vmem:[#allocation3 + $0x138] sm:$0xff] %vm875_vm3, %v1284_v55  ;;  %v1604_v21 = vshrl.u32 %v1603_v41, 7 }
 0x16e   :  { %v4738_v56 = vpop.f32.mrf.mxu0  ;;  %v4869_v23 = vpop.f32.mrf.mxu1 }
 0x170   :  { %v1029_v24 = vpop.f32.mrf.mxu0  ;;  %v1289_v57 = vpop.f32.mrf.mxu1 }
 0x171   :  { %1479 = vst.msk [vmem:[#allocation3 + $0x8] sm:$0xff] %vm875_vm3, %v1029_v24  ;;  %1518 = vst.msk [vmem:[#allocation3 + $0x140] sm:$0xff] %vm875_vm3, %v1289_v57 }
 0x172   :  { %v4741_v58 = vpop.f32.mrf.mxu0  ;;  %v4872_v26 = vpop.f32.mrf.mxu1 }
 0x174   :  { %v1034_v27 = vpop.f32.mrf.mxu0  ;;  %v1294_v59 = vpop.f32.mrf.mxu1 }
 0x175   :  { %1480 = vst.msk [vmem:[#allocation3 + $0x10] sm:$0xff] %vm875_vm3, %v1034_v27  ;;  %1519 = vst.msk [vmem:[#allocation3 + $0x148] sm:$0xff] %vm875_vm3, %v1294_v59  ;;  %v1693_v59 = vld [vmem:[#allocation2 + $0x14c] sm:$0xff] }
 0x176   :  { %v4744_v60 = vpop.f32.mrf.mxu0  ;;  %v4875_v29 = vpop.f32.mrf.mxu1 }
 0x177   :  { %v1694_v60 = vld [vmem:[#allocation2 + $0x154] sm:$0x3] }
 0x178   :  { %v1561_v31 = vld [vmem:[#allocation3 + $0x1] sm:$0xff]  ;;  %v1562_v32 = vld [vmem:[#allocation3 + $0x9] sm:$0x3]  ;;  %v1563_v63 = vld [vmem:[#allocation3 + $0x139] sm:$0xff]  ;;  %v1039_v0 = vpop.f32.mrf.mxu0  ;;  %v1299_v33 = vpop.f32.mrf.mxu1 }
 0x179   :  { %v1565_v2 = vadd.f32 %v1561_v31, %v1557_v30  ;;  %v1566_v3 = vadd.f32 %v1562_v32, %v1558_v62  ;;  %v1564_v35 = vld [vmem:[#allocation3 + $0x141] sm:$0x3]  ;;  %v1567_v36 = vadd.f32 %v1563_v63, %v1559_v61  ;;  %1481 = vst.msk [vmem:[#allocation3 + $0x18] sm:$0xff] %vm875_vm3, %v1039_v0  ;;  %1520 = vst.msk [vmem:[#allocation3 + $0x150] sm:$0xff] %vm875_vm3, %v1299_v33 }
 0x17a   :  { %v1568_v19 = vadd.f32 %v1564_v35, %v1560_v34  ;;  %v4747_v28 = vpop.f32.mrf.mxu0  ;;  %v4878_v4 = vpop.f32.mrf.mxu1 }
 0x17b   :  { %v1579_v6 = vsel %vm875_vm3, %v1567_v36, -inf  ;;  %v1569_v25 = vsel %vm875_vm3, %v1565_v2, -inf  ;;  %v1571_v39 = vsel %vm1570_vm5, %v1566_v3, -inf }
 0x17c   :  { %v1580_v40 = vsel %vm1570_vm5, %v1568_v19, -inf  ;;  %v1044_v10 = vpop.f32.mrf.mxu0  ;;  %v1304_v13 = vpop.f32.mrf.mxu1  ;;  %v1633_v42 = vld [vmem:[#allocation3 + $0xb] sm:$0xff]  ;;  %v1634_v43 = vld [vmem:[#allocation3 + $0x13] sm:$0x3]  ;;  %v1635_v44 = vld [vmem:[#allocation3 + $0x143] sm:$0xff]  ;;  %v1572_v16 = vmax.f32 %v1569_v25, %v1571_v39 }
 0x17d   :  { %v1581_v45 = vmax.f32 %v1579_v6, %v1580_v40  ;;  %1482 = vst.msk [vmem:[#allocation3 + $0x20] sm:$0xff] %vm875_vm3, %v1044_v10  ;;  %1521 = vst.msk [vmem:[#allocation3 + $0x158] sm:$0xff] %vm875_vm3, %v1304_v13  ;;  %v1636_v8 = vld [vmem:[#allocation3 + $0x14b] sm:$0x3]  ;;  %v1637_v9 = vadd.f32 %v1633_v42, %v1629_v38  ;;  %v1638_v47 = vadd.f32 %v1634_v43, %v1630_v7  ;;  %v1753_v38 = vld [vmem:[#allocation2 + $0x1e] sm:$0xff] }
 0x17e   :  { %v1639_v48 = vadd.f32 %v1635_v44, %v1631_v22  ;;  %v4750_v11 = vpop.f32.mrf.mxu0  ;;  %v4881_v12 = vpop.f32.mrf.mxu1  ;;  %v1640_v50 = vadd.f32 %v1636_v8, %v1632_v46  ;;  %v1573_v15 = vrot.slane %v1572_v16, 4  ;;  %v1755_v40 = vld [vmem:[#allocation2 + $0x156] sm:$0xff]  ;;  %v6313_v46 = vsub.s32 %v1602_v49, %v1604_v21  ;;  %v1756_v49 = vld [vmem:[#allocation2 + $0x15e] sm:$0x3] }
 0x17f   :  { %v1582_v51 = vrot.slane %v1581_v45, 4  ;;  %v1641_v52 = vsel %vm875_vm3, %v1637_v9, -inf  ;;  %v1642_v17 = vsel %vm1570_vm5, %v1638_v47, -inf  ;;  %v1754_v47 = vld [vmem:[#allocation2 + $0x26] sm:$0x3] }
 0x180   :  { %v1650_v18 = vsel %vm875_vm3, %v1639_v48, -inf  ;;  %v1049_v54 = vpop.f32.mrf.mxu0  ;;  %v1309_v20 = vpop.f32.mrf.mxu1  ;;  %v1643_v55 = vmax.f32 %v1641_v52, %v1642_v17  ;;  %v1651_v56 = vsel %vm1570_vm5, %v1640_v50, -inf  ;;  %v1695_v23 = vld [vmem:[#allocation3 + $0x15] sm:$0xff]  ;;  %v1696_v24 = vld [vmem:[#allocation3 + $0x1d] sm:$0x3]  ;;  %v1697_v57 = vld [vmem:[#allocation3 + $0x14d] sm:$0xff]  ;;  %v1574_v58 = vmax.f32 %v1572_v16, %v1573_v15 }
 0x181   :  { %v1583_v26 = vmax.f32 %v1581_v45, %v1582_v51  ;;  %1483 = vst.msk [vmem:[#allocation3 + $0x28] sm:$0xff] %vm875_vm3, %v1049_v54  ;;  %1522 = vst.msk [vmem:[#allocation3 + $0x160] sm:$0xff] %vm875_vm3, %v1309_v20  ;;  %v1652_v27 = vmax.f32 %v1650_v18, %v1651_v56  ;;  %v1698_v29 = vld [vmem:[#allocation3 + $0x155] sm:$0x3]  ;;  %v1699_v30 = vadd.f32 %v1695_v23, %v1691_v14 }
 0x182   :  { %v1700_v61 = vadd.f32 %v1696_v24, %v1692_v53  ;;  %v4753_v62 = vpop.f32.mrf.mxu0  ;;  %v4884_v31 = vpop.f32.mrf.mxu1  ;;  %v1644_v32 = vrot.slane %v1643_v55, 4  ;;  %v1701_v63 = vadd.f32 %v1697_v57, %v1693_v59  ;;  %v1702_v0 = vadd.f32 %v1698_v29, %v1694_v60 }
 0x183   :  { %v1575_v33 = vrot.slane %v1574_v58, 2  ;;  %v1584_v34 = vrot.slane %v1583_v26, 2  ;;  %v1653_v2 = vrot.slane %v1652_v27, 4  ;;  %v1703_v3 = vsel %vm875_vm3, %v1699_v30, -inf }
 0x184   :  { %v1704_v35 = vsel %vm1570_vm5, %v1700_v61, -inf  ;;  %v1054_v36 = vpop.f32.mrf.mxu0  ;;  %v1314_v19 = vpop.f32.mrf.mxu1  ;;  %v1645_v28 = vmax.f32 %v1643_v55, %v1644_v32  ;;  %v1712_v5 = vsel %vm875_vm3, %v1701_v63, -inf  ;;  %v1713_v37 = vsel %vm1570_vm5, %v1702_v0, -inf  ;;  %v1757_v6 = vld [vmem:[#allocation3 + $0x1f] sm:$0xff]  ;;  %v1759_v7 = vld [vmem:[#allocation3 + $0x157] sm:$0xff] }
 0x185   :  { %v1705_v4 = vmax.f32 %v1703_v3, %v1704_v35  ;;  %v1585_v22 = vmax.f32 %v1583_v26, %v1584_v34  ;;  %1484 = vst.msk [vmem:[#allocation3 + $0x30] sm:$0xff] %vm875_vm3, %v1054_v36  ;;  %1523 = vst.msk [vmem:[#allocation3 + $0x168] sm:$0xff] %vm875_vm3, %v1314_v19  ;;  %v1654_v25 = vmax.f32 %v1652_v27, %v1653_v2  ;;  %v1815_v27 = vld [vmem:[#allocation2 + $0x28] sm:$0xff]  ;;  %v1816_v35 = vld [vmem:[#allocation2 + $0x30] sm:$0x3] }
 0x186   :  { %v1714_v39 = vmax.f32 %v1712_v5, %v1713_v37  ;;  %v1761_v10 = vadd.f32 %v1757_v6, %v1753_v38  ;;  %v4756_v13 = vpop.f32.mrf.mxu0  ;;  %v4887_v41 = vpop.f32.mrf.mxu1  ;;  %v1646_v42 = vrot.slane %v1645_v28, 2  ;;  %v1763_v44 = vadd.f32 %v1759_v7, %v1755_v40  ;;  %v1817_v6 = vld [vmem:[#allocation2 + $0x160] sm:$0xff]  ;;  %v1818_v40 = vld [vmem:[#allocation2 + $0x168] sm:$0x3] }
 0x187   :  { %v1706_v43 = vrot.slane %v1705_v4, 4  ;;  %v1576_v16 = vmax.f32 %v1574_v58, %v1575_v33  ;;  %v1586_v45 = vrot.slane %v1585_v22, 1  ;;  %v1655_v8 = vrot.slane %v1654_v25, 2  ;;  %v6330_v33 = vld [vmem:[%s7158_s3] ss:$0 sm:$0xff] }
 0x188   :  { %v1715_v9 = vrot.slane %v1714_v39, 4  ;;  %v1059_v48 = vpop.f32.mrf.mxu0  ;;  %v1319_v11 = vpop.f32.mrf.mxu1  ;;  %v1647_v12 = vmax.f32 %v1645_v28, %v1646_v42  ;;  %v1758_v14 = vld [vmem:[#allocation3 + $0x27] sm:$0x3]  ;;  %v1760_v15 = vld [vmem:[#allocation3 + $0x15f] sm:$0x3]  ;;  %v1765_v51 = vsel %vm875_vm3, %v1761_v10, -inf }
 0x189   :  { %v1707_v50 = vmax.f32 %v1705_v4, %v1706_v43  ;;  %v1577_v52 = vrot.slane %v1576_v16, 1  ;;  %1485 = vst.msk [vmem:[#allocation3 + $0x38] sm:$0xff] %vm875_vm3, %v1059_v48  ;;  %1524 = vst.msk [vmem:[#allocation3 + $0x170] sm:$0xff] %vm875_vm3, %v1319_v11  ;;  %v1656_v17 = vmax.f32 %v1654_v25, %v1655_v8  ;;  %v1762_v53 = vadd.f32 %v1758_v14, %v1754_v47 }
 0x18a   :  { %v1716_v18 = vmax.f32 %v1714_v39, %v1715_v9  ;;  %v1774_v54 = vsel %vm875_vm3, %v1763_v44, -inf  ;;  %v6319_v20 = vmax.f32 %v1585_v22, %v1586_v45  ;;  %v4759_v21 = vpop.f32.mrf.mxu0  ;;  %v4890_v55 = vpop.f32.mrf.mxu1  ;;  %v1648_v56 = vrot.slane %v1647_v12, 1 }
 0x18b   :  { %v1708_v23 = vrot.slane %v1707_v50, 2  ;;  %v1764_v24 = vadd.f32 %v1760_v15, %v1756_v49  ;;  %v1657_v57 = vrot.slane %v1656_v17, 1  ;;  %v1766_v26 = vsel %vm1570_vm5, %v1762_v53, -inf }
 0x18c   :  { %v1717_v58 = vrot.slane %v1716_v18, 2  ;;  %v6322_v59 = vmax.f32 %v1576_v16, %v1577_v52  ;;  %v1064_v60 = vpop.f32.mrf.mxu0  ;;  %v1324_v29 = vpop.f32.mrf.mxu1  ;;  %v1649_v30 = vmax.f32 %v1647_v12, %v1648_v56  ;;  %v1767_v62 = vmax.f32 %v1765_v51, %v1766_v26  ;;  %v1819_v32 = vld [vmem:[#allocation3 + $0x29] sm:$0xff]  ;;  %v1820_v63 = vld [vmem:[#allocation3 + $0x31] sm:$0x3]  ;;  %v1821_v0 = vld [vmem:[#allocation3 + $0x161] sm:$0xff] }
 0x18d   :  { %v1709_v61 = vmax.f32 %v1707_v50, %v1708_v23  ;;  %v1775_v31 = vsel %vm1570_vm5, %v1764_v24, -inf  ;;  %1486 = vst.msk [vmem:[#allocation3 + $0x40] sm:$0xff] %vm875_vm3, %v1064_v60  ;;  %1525 = vst.msk [vmem:[#allocation3 + $0x178] sm:$0xff] %vm875_vm3, %v1324_v29  ;;  %v1658_v34 = vmax.f32 %v1656_v17, %v1657_v57  ;;  %v1822_v36 = vld [vmem:[#allocation3 + $0x169] sm:$0x3]  ;;  %v1823_v19 = vadd.f32 %v1819_v32, %v1815_v27 }
 0x18e   :  { %v1718_v2 = vmax.f32 %v1716_v18, %v1717_v58  ;;  %v1776_v3 = vmax.f32 %v1774_v54, %v1775_v31  ;;  %v4762_v28 = vpop.f32.mrf.mxu0  ;;  %v4893_v4 = vpop.f32.mrf.mxu1  ;;  %v1659_v5 = vadd.f32 %v6330_v33, %v1649_v30  ;;  %v1768_v38 = vrot.slane %v1767_v62, 4  ;;  %v1882_v27 = vld [vmem:[#allocation2 + $0x32] sm:$0xff] }
 0x18f   :  { %v1710_v37 = vrot.slane %v1709_v61, 1  ;;  %v1824_v7 = vadd.f32 %v1820_v63, %v1816_v35  ;;  %v1660_v22 = vadd.f32 %v6330_v33, %v1658_v34  ;;  %v1825_v10 = vadd.f32 %v1821_v0, %v1817_v6  ;;  %v3589_v63 = vld [vmem:[%s7159_s4 + $0x1f8] sm:$0xff] }
 0x190   :  { %v1719_v25 = vrot.slane %v1718_v2, 1  ;;  %v1777_v39 = vrot.slane %v1776_v3, 4  ;;  %v1069_v13 = vpop.f32.mrf.mxu0  ;;  %v1329_v41 = vpop.f32.mrf.mxu1  ;;  %v1661_v42 = vmax.f32 %v1659_v5, 0.0  ;;  %v1769_v44 = vmax.f32 %v1767_v62, %v1768_v38  ;;  %v1886_v49 = vld [vmem:[#allocation3 + $0x33] sm:$0xff]  ;;  %v1887_v60 = vld [vmem:[#allocation3 + $0x3b] sm:$0x3]  ;;  %4390 = vmatprep.subr.mxu1 %v3589_v63 }
 0x191   :  { %v1711_v43 = vmax.f32 %v1709_v61, %v1710_v37  ;;  %v1826_v16 = vadd.f32 %v1822_v36, %v1818_v40  ;;  %1487 = vst.msk [vmem:[#allocation3 + $0x48] sm:$0xff] %vm875_vm3, %v1069_v13  ;;  %1526 = vst.msk [vmem:[#allocation3 + $0x180] sm:$0xff] %vm875_vm3, %v1329_v41  ;;  %v1662_v45 = vmax.f32 %v1660_v22, 0.0  ;;  %v1827_v47 = vsel %vm875_vm3, %v1823_v19, -inf  ;;  %v3573_v0 = vld [vmem:[%s7159_s4 + $0x178] sm:$0xff] }
 0x192   :  { %v1720_v8 = vmax.f32 %v1718_v2, %v1719_v25  ;;  %v1778_v9 = vmax.f32 %v1776_v3, %v1777_v39  ;;  %v4765_v48 = vpop.f32.mrf.mxu0  ;;  %v4896_v11 = vpop.f32.mrf.mxu1  ;;  %v1671_v12 = vrot.slane %v1661_v42, %v6313_v46  ;;  %v1770_v14 = vrot.slane %v1769_v44, 2  ;;  %v1883_v36 = vld [vmem:[#allocation2 + $0x3a] sm:$0x3]  ;;  %v1889_v6 = vld [vmem:[#allocation3 + $0x173] sm:$0x3]  ;;  %4391 = vmatpush3.msra.mxu1 %v3573_v0 }
 0x193   :  { %v1721_v50 = vadd.f32 %v6330_v33, %v1711_v43  ;;  %v1828_v15 = vsel %vm1570_vm5, %v1824_v7, -inf  ;;  %v1678_v51 = vrot.slane %v1662_v45, %v6313_v46  ;;  %v1836_v56 = vsel %vm875_vm3, %v1825_v10, -inf  ;;  %v1888_v19 = vld [vmem:[#allocation3 + $0x16b] sm:$0xff]  ;;  %v1884_v10 = vld [vmem:[#allocation2 + $0x16a] sm:$0xff] }
 0x194   :  { %v1722_v52 = vadd.f32 %v6330_v33, %v1720_v8  ;;  %v1779_v17 = vrot.slane %v1778_v9, 2  ;;  %v1829_v18 = vmax.f32 %v1827_v47, %v1828_v15  ;;  %v1074_v53 = vpop.f32.mrf.mxu0  ;;  %v1334_v54 = vpop.f32.mrf.mxu1  ;;  %v1771_v55 = vmax.f32 %v1769_v44, %v1770_v14 }
 0x195   :  { %v1723_v21 = vmax.f32 %v1721_v50, 0.0  ;;  %v1837_v23 = vsel %vm1570_vm5, %v1826_v16, -inf  ;;  %1488 = vst.msk [vmem:[#allocation3 + $0x50] sm:$0xff] %vm875_vm3, %v1074_v53  ;;  %1527 = vst.msk [vmem:[#allocation3 + $0x188] sm:$0xff] %vm875_vm3, %v1334_v54  ;;  %v1681_v24 = vrot.slane %v1678_v51, 7  ;;  %v1890_v32 = vadd.f32 %v1886_v49, %v1882_v27  ;;  %v1948_v53 = vld [vmem:[#allocation3 + $0x3d] sm:$0xff] }
 0x196   :  { %v1724_v57 = vmax.f32 %v1722_v52, 0.0  ;;  %v1780_v58 = vmax.f32 %v1778_v9, %v1779_v17  ;;  %v1830_v26 = vrot.slane %v1829_v18, 4  ;;  %v4768_v29 = vpop.f32.mrf.mxu0  ;;  %v4899_v30 = vpop.f32.mrf.mxu1  ;;  %v1772_v62 = vrot.slane %v1771_v55, 1  ;;  %v1885_v16 = vld [vmem:[#allocation2 + $0x172] sm:$0x3] }
 0x197   :  { %v1733_v61 = vrot.slane %v1723_v21, %v6313_v46  ;;  %v1838_v31 = vmax.f32 %v1836_v56, %v1837_v23  ;;  %v1682_v34 = vsel %vm1619_vm6, %v1681_v24, %v1671_v12  ;;  %v1891_v7 = vadd.f32 %v1887_v60, %v1883_v36  ;;  %v1944_v30 = vld [vmem:[#allocation2 + $0x3c] sm:$0xff] }
 0x198   :  { %v1740_v2 = vrot.slane %v1724_v57, %v6313_v46  ;;  %v1781_v3 = vrot.slane %v1780_v58, 1  ;;  %v1831_v35 = vmax.f32 %v1829_v18, %v1830_v26  ;;  %v1079_v28 = vpop.f32.mrf.mxu0  ;;  %v1339_v4 = vpop.f32.mrf.mxu1  ;;  %v1683_v5 = vsel %vm1621_vm7, %v1681_v24, %v1682_v34  ;;  %v1949_v57 = vld [vmem:[#allocation3 + $0x45] sm:$0x3]  ;;  %v1945_v34 = vld [vmem:[#allocation2 + $0x44] sm:$0x3] }
 0x199   :  { %v1773_v37 = vmax.f32 %v1771_v55, %v1772_v62  ;;  %v1839_v38 = vrot.slane %v1838_v31, 4  ;;  %1489 = vst.msk [vmem:[#allocation3 + $0x58] sm:$0xff] %vm875_vm3, %v1079_v28  ;;  %1528 = vst.msk [vmem:[#allocation3 + $0x190] sm:$0xff] %vm875_vm3, %v1339_v4  ;;  %v1684_v22 = vsel %vm1623_vm8, %v1681_v24, %v1683_v5  ;;  %v1892_v45 = vadd.f32 %v1888_v19, %v1884_v10  ;;  %v1947_v19 = vld [vmem:[#allocation2 + $0x17c] sm:$0x3] }
 0x19a   :  { %v1743_v25 = vrot.slane %v1740_v2, 7  ;;  %v1782_v39 = vmax.f32 %v1780_v58, %v1781_v3  ;;  %v1832_v40 = vrot.slane %v1831_v35, 2  ;;  %v4902_v13 = vpop.f32.mrf.mxu1  ;;  %v1685_v41 = vsel %vm1625_vm9, %v1681_v24, %v1684_v22  ;;  %v4771_v42 = vpop.f32.mrf.mxu0  ;;  %v1950_v58 = vld [vmem:[#allocation3 + $0x175] sm:$0xff]  ;;  %v1946_v2 = vld [vmem:[#allocation2 + $0x174] sm:$0xff] }
 0x19b   :  { %v1783_v43 = vadd.f32 %v6330_v33, %v1773_v37  ;;  %v1840_v44 = vmax.f32 %v1838_v31, %v1839_v38  ;;  %1686 = vrot.lane.b32.xlu0 %v1685_v41, %s5052_s30  ;;  %v1893_v48 = vadd.f32 %v1889_v6, %v1885_v16  ;;  %v1894_v51 = vsel %vm875_vm3, %v1890_v32, -inf }
 0x19c   :  { %v1744_v8 = vsel %vm1619_vm6, %v1743_v25, %v1733_v61  ;;  %v1784_v9 = vadd.f32 %v6330_v33, %v1782_v39  ;;  %v1833_v47 = vmax.f32 %v1831_v35, %v1832_v40  ;;  %v1084_v11 = vpop.f32.mrf.mxu0  ;;  %v1344_v12 = vpop.f32.mrf.mxu1  ;;  %v1895_v49 = vsel %vm1570_vm5, %v1891_v7, -inf  ;;  %v1951_v61 = vld [vmem:[#allocation3 + $0x17d] sm:$0x3] }
 0x19d   :  { %v1745_v50 = vsel %vm1621_vm7, %v1743_v25, %v1744_v8  ;;  %v1785_v14 = vmax.f32 %v1783_v43, 0.0  ;;  %v1841_v15 = vrot.slane %v1840_v44, 2  ;;  %1490 = vst.msk [vmem:[#allocation3 + $0x60] sm:$0xff] %vm875_vm3, %v1084_v11  ;;  %1529 = vst.msk [vmem:[#allocation3 + $0x198] sm:$0xff] %vm875_vm3, %v1344_v12  ;;  %v1896_v24 = vmax.f32 %v1894_v51, %v1895_v49  ;;  %v2011_v8 = vld [vmem:[#allocation3 + $0x4f] sm:$0x3] }
 0x19e   :  { %v1746_v52 = vsel %vm1623_vm8, %v1743_v25, %v1745_v50  ;;  %v1786_v17 = vmax.f32 %v1784_v9, 0.0  ;;  %v1834_v18 = vrot.slane %v1833_v47, 1  ;;  %v4905_v54 = vpop.f32.mrf.mxu1  ;;  %v4774_v55 = vpop.f32.mrf.mxu0  ;;  %v1903_v60 = vsel %vm875_vm3, %v1892_v45, -inf  ;;  %v2010_v45 = vld [vmem:[#allocation3 + $0x47] sm:$0xff]  ;;  %v2007_v12 = vld [vmem:[#allocation2 + $0x4e] sm:$0x3] }
 0x19f   :  { %v1747_v21 = vsel %vm1625_vm9, %v1743_v25, %v1746_v52  ;;  %v1795_v56 = vrot.slane %v1785_v14, %v6313_v46  ;;  %v1842_v23 = vmax.f32 %v1840_v44, %v1841_v15  ;;  %v1904_v29 = vsel %vm1570_vm5, %v1893_v48, -inf  ;;  %v3557_v50 = vld [vmem:[%s7159_s4 + $0xf8] sm:$0xff]  ;;  %v2012_v54 = vld [vmem:[#allocation3 + $0x17f] sm:$0xff] }
 0x1a0   :  { %1748 = vrot.lane.b32.xlu1 %v1747_v21, %s5053_s2  ;;  %v1802_v26 = vrot.slane %v1786_v17, %v6313_v46  ;;  %v1835_v27 = vmax.f32 %v1833_v47, %v1834_v18  ;;  %v1089_v62 = vpop.f32.mrf.mxu0  ;;  %v1349_v31 = vpop.f32.mrf.mxu1  ;;  %v1897_v63 = vrot.slane %v1896_v24, 4  ;;  %v1905_v0 = vmax.f32 %v1903_v60, %v1904_v29  ;;  %v3541_v14 = vld [vmem:[%s7159_s4 + $0x78] sm:$0xff]  ;;  %4355 = vmatprep.subr.mxu0 %v3557_v50 }
 0x1a1   :  { %v1843_v32 = vrot.slane %v1842_v23, 1  ;;  %v1952_v3 = vadd.f32 %v1948_v53, %v1944_v30  ;;  %1491 = vst.msk [vmem:[#allocation3 + $0x68] sm:$0xff] %vm875_vm3, %v1089_v62  ;;  %1530 = vst.msk [vmem:[#allocation3 + $0x1a0] sm:$0xff] %vm875_vm3, %v1349_v31  ;;  %v1953_v28 = vadd.f32 %v1949_v57, %v1945_v34  ;;  %v1954_v4 = vadd.f32 %v1950_v58, %v1946_v2  ;;  %v2006_v53 = vld [vmem:[#allocation2 + $0x46] sm:$0xff]  ;;  %v2013_v21 = vld [vmem:[#allocation3 + $0x187] sm:$0x3] }
 0x1a2   :  { %v1805_v35 = vrot.slane %v1802_v26, 7  ;;  %v1845_v36 = vadd.f32 %v6330_v33, %v1835_v27  ;;  %v4777_v5 = vpop.f32.mrf.mxu0  ;;  %v4908_v37 = vpop.f32.mrf.mxu1  ;;  %v1898_v6 = vmax.f32 %v1896_v24, %v1897_v63  ;;  %v1906_v7 = vrot.slane %v1905_v0, 4  ;;  %4356 = vmatpush3.msra.mxu0 %v3541_v14  ;;  %v2008_v30 = vld [vmem:[#allocation2 + $0x17e] sm:$0xff] }
 0x1a3   :  { %v1844_v38 = vmax.f32 %v1842_v23, %v1843_v32  ;;  %v1955_v22 = vadd.f32 %v1951_v61, %v1947_v19  ;;  %v1956_v40 = vsel %vm875_vm3, %v1952_v3, -inf  ;;  %v1957_v10 = vsel %vm1570_vm5, %v1953_v28, -inf  ;;  %v2009_v61 = vld [vmem:[#allocation2 + $0x186] sm:$0x3] }
 0x1a4   :  { %v1806_v25 = vsel %vm1619_vm6, %v1805_v35, %v1795_v56  ;;  %v1847_v39 = vmax.f32 %v1845_v36, 0.0  ;;  %v1094_v13 = vpop.f32.mrf.mxu0  ;;  %v1354_v41 = vpop.f32.mrf.mxu1  ;;  %v1899_v44 = vrot.slane %v1898_v6, 2  ;;  %v1907_v16 = vmax.f32 %v1905_v0, %v1906_v7 }
 0x1a5   :  { %v1807_v42 = vsel %vm1621_vm7, %v1805_v35, %v1806_v25  ;;  %v1846_v43 = vadd.f32 %v6330_v33, %v1844_v38  ;;  %1492 = vst.msk [vmem:[#allocation3 + $0x70] sm:$0xff] %vm875_vm3, %v1094_v13  ;;  %1531 = vst.msk [vmem:[#allocation3 + $0x1a8] sm:$0xff] %vm875_vm3, %v1354_v41  ;;  %v1958_v48 = vmax.f32 %v1956_v40, %v1957_v10  ;;  %v1965_v11 = vsel %vm875_vm3, %v1954_v4, -inf }
 0x1a6   :  { %v1808_v9 = vsel %vm1623_vm8, %v1805_v35, %v1807_v42  ;;  %v1857_v47 = vrot.slane %v1847_v39, %v6313_v46  ;;  %v4911_v15 = vpop.f32.mrf.mxu1  ;;  %v4780_v52 = vpop.f32.mrf.mxu0  ;;  %v1900_v18 = vmax.f32 %v1898_v6, %v1899_v44  ;;  %v1908_v49 = vrot.slane %v1907_v16, 2  ;;  %v3588_v39 = vld [vmem:[%s7159_s4 + $0x1f0] sm:$0xff]  ;;  %v2072_v42 = vld [vmem:[#allocation3 + $0x51] sm:$0xff] }
 0x1a7   :  { %v1809_v51 = vsel %vm1625_vm9, %v1805_v35, %v1808_v9  ;;  %v1848_v17 = vmax.f32 %v1846_v43, 0.0  ;;  %v1959_v55 = vrot.slane %v1958_v48, 4  ;;  %v1966_v56 = vsel %vm1570_vm5, %v1955_v22, -inf  ;;  %4392 = vmatprep.subr.mxu1 %v3588_v39  ;;  %v3572_v43 = vld [vmem:[%s7159_s4 + $0x170] sm:$0xff]  ;;  %v2075_v52 = vld [vmem:[#allocation3 + $0x191] sm:$0x3] }
 0x1a8   :  { %1810 = vrot.lane.b32.xlu1 %v1809_v51, %s5054_s11  ;;  %v2014_v23 = vadd.f32 %v2010_v45, %v2006_v53  ;;  %v2015_v24 = vadd.f32 %v2011_v8, %v2007_v12  ;;  %v1099_v57 = vpop.f32.mrf.mxu0  ;;  %v1359_v58 = vpop.f32.mrf.mxu1  ;;  %v1901_v27 = vrot.slane %v1900_v18, 1  ;;  %v1909_v60 = vmax.f32 %v1907_v16, %v1908_v49  ;;  %4393 = vmatpush3.msra.mxu1 %v3572_v43  ;;  %v2074_v51 = vld [vmem:[#allocation3 + $0x189] sm:$0xff] }
 0x1a9   :  { %v1864_v26 = vrot.slane %v1848_v17, %v6313_v46  ;;  %v1967_v29 = vmax.f32 %v1965_v11, %v1966_v56  ;;  %1493 = vst.msk [vmem:[#allocation3 + $0x78] sm:$0xff] %vm875_vm3, %v1099_v57  ;;  %1532 = vst.msk [vmem:[#allocation3 + $0x1b0] sm:$0xff] %vm875_vm3, %v1359_v58  ;;  %v1960_v62 = vmax.f32 %v1958_v48, %v1959_v55  ;;  %v2068_v48 = vld [vmem:[#allocation2 + $0x50] sm:$0xff]  ;;  %v2073_v11 = vld [vmem:[#allocation3 + $0x59] sm:$0x3] }
 0x1aa   :  { %v2016_v31 = vadd.f32 %v2012_v54, %v2008_v30  ;;  %v2017_v32 = vadd.f32 %v2013_v21, %v2009_v61  ;;  %v2018_v63 = vsel %vm875_vm3, %v2014_v23, -inf  ;;  %v4914_v0 = vpop.f32.mrf.mxu1  ;;  %v4783_v2 = vpop.f32.mrf.mxu0  ;;  %v1902_v3 = vmax.f32 %v1900_v18, %v1901_v27  ;;  %v2069_v21 = vld [vmem:[#allocation2 + $0x58] sm:$0x3]  ;;  %v2070_v57 = vld [vmem:[#allocation2 + $0x188] sm:$0xff]  ;;  %v2071_v58 = vld [vmem:[#allocation2 + $0x190] sm:$0x3] }
 0x1ab   :  { %v1867_v34 = vrot.slane %v1864_v26, 7  ;;  %v1910_v35 = vrot.slane %v1909_v60, 1  ;;  %v1968_v36 = vrot.slane %v1967_v29, 4  ;;  %v1961_v19 = vrot.slane %v1960_v62, 2 }
 0x1ac   :  { %v2019_v28 = vsel %vm1570_vm5, %v2015_v24, -inf  ;;  %v2027_v4 = vsel %vm875_vm3, %v2016_v31, -inf  ;;  %v2028_v5 = vsel %vm1570_vm5, %v2017_v32, -inf  ;;  %v1104_v38 = vpop.f32.mrf.mxu0  ;;  %v1364_v6 = vpop.f32.mrf.mxu1  ;;  %v1912_v22 = vadd.f32 %v6330_v33, %v1902_v3 }
 0x1ad   :  { %v1868_v37 = vsel %vm1619_vm6, %v1867_v34, %v1857_v47  ;;  %v1911_v7 = vmax.f32 %v1909_v60, %v1910_v35  ;;  %v1969_v25 = vmax.f32 %v1967_v29, %v1968_v36  ;;  %1494 = vst.msk [vmem:[#allocation3 + $0x80] sm:$0xff] %vm875_vm3, %v1104_v38  ;;  %1533 = vst.msk [vmem:[#allocation3 + $0x1b8] sm:$0xff] %vm875_vm3, %v1364_v6  ;;  %v2135_v6 = vld [vmem:[#allocation2 + $0x5a] sm:$0xff] }
 0x1ae   :  { %v1869_v40 = vsel %vm1621_vm7, %v1867_v34, %v1868_v37  ;;  %v1962_v10 = vmax.f32 %v1960_v62, %v1961_v19  ;;  %v2020_v13 = vmax.f32 %v2018_v63, %v2019_v28  ;;  %v2029_v41 = vmax.f32 %v2027_v4, %v2028_v5  ;;  %v4917_v16 = vpop.f32.mrf.mxu1  ;;  %v4786_v9 = vpop.f32.mrf.mxu0 }
 0x1af   :  { %v1870_v44 = vsel %vm1623_vm8, %v1867_v34, %v1869_v40  ;;  %v1913_v45 = vadd.f32 %v6330_v33, %v1911_v7  ;;  %v1914_v8 = vmax.f32 %v1912_v22, 0.0  ;;  %v1970_v47 = vrot.slane %v1969_v25, 2  ;;  %v3556_v7 = vld [vmem:[%s7159_s4 + $0xf0] sm:$0xff] }
 0x1b0   :  { %v1871_v12 = vsel %vm1625_vm9, %v1867_v34, %v1870_v44  ;;  %v1963_v50 = vrot.slane %v1962_v10, 1  ;;  %v2021_v14 = vrot.slane %v2020_v13, 4  ;;  %v2030_v15 = vrot.slane %v2029_v41, 4  ;;  %v1109_v49 = vpop.f32.mrf.mxu0  ;;  %v1369_v53 = vpop.f32.mrf.mxu1  ;;  %v2139_v34 = vld [vmem:[#allocation3 + $0x5b] sm:$0xff]  ;;  %4357 = vmatprep.subr.mxu0 %v3556_v7 }
 0x1b1   :  { %1872 = vrot.lane.b32.xlu0 %v1871_v12, %s5055_s15  ;;  %v1915_v17 = vmax.f32 %v1913_v45, 0.0  ;;  %v1924_v18 = vrot.slane %v1914_v8, %v6313_v46  ;;  %v1971_v54 = vmax.f32 %v1969_v25, %v1970_v47  ;;  %v2076_v55 = vadd.f32 %v2072_v42, %v2068_v48  ;;  %1495 = vst.msk [vmem:[#allocation3 + $0x88] sm:$0xff] %vm875_vm3, %v1109_v49  ;;  %v3540_v42 = vld [vmem:[%s7159_s4 + $0x70] sm:$0xff]  ;;  %v2141_v8 = vld [vmem:[#allocation3 + $0x193] sm:$0xff]  ;;  %s5070_s15 = smov 58  }
 0x1b2   :  { %1534 = vst.msk [vmem:[#allocation3 + $0x1c0] sm:$0xff] %vm875_vm3, %v1369_v53  ;;  %v1964_v56 = vmax.f32 %v1962_v10, %v1963_v50  ;;  %v2022_v23 = vmax.f32 %v2020_v13, %v2021_v14  ;;  %v2031_v24 = vmax.f32 %v2029_v41, %v2030_v15  ;;  %v2077_v26 = vadd.f32 %v2073_v11, %v2069_v21  ;;  %v4920_v60 = vpop.f32.mrf.mxu1  ;;  %v4789_v30 = vpop.f32.mrf.mxu0  ;;  %v2140_v13 = vld [vmem:[#allocation3 + $0x63] sm:$0x3]  ;;  %v2136_v14 = vld [vmem:[#allocation2 + $0x62] sm:$0x3] }
 0x1b3   :  { %v1931_v27 = vrot.slane %v1915_v17, %v6313_v46  ;;  %v1972_v29 = vrot.slane %v1971_v54, 1  ;;  %v2078_v61 = vadd.f32 %v2074_v51, %v2070_v57  ;;  %v2079_v62 = vadd.f32 %v2075_v52, %v2071_v58  ;;  %4358 = vmatpush3.msra.mxu0 %v3540_v42  ;;  %v2142_v15 = vld [vmem:[#allocation3 + $0x19b] sm:$0x3] }
 0x1b4   :  { %v1974_v31 = vadd.f32 %v6330_v33, %v1964_v56  ;;  %v2023_v32 = vrot.slane %v2022_v23, 2  ;;  %v2032_v63 = vrot.slane %v2031_v24, 2  ;;  %v2080_v0 = vsel %vm875_vm3, %v2076_v55, -inf  ;;  %v1114_v35 = vpop.f32.mrf.mxu0  ;;  %v1374_v36 = vpop.f32.mrf.mxu1 }
 0x1b5   :  { %v1934_v2 = vrot.slane %v1931_v27, 7  ;;  %v1973_v3 = vmax.f32 %v1971_v54, %v1972_v29  ;;  %v2081_v19 = vsel %vm1570_vm5, %v2077_v26, -inf  ;;  %v2089_v28 = vsel %vm875_vm3, %v2078_v61, -inf  ;;  %1496 = vst.msk [vmem:[#allocation3 + $0x90] sm:$0xff] %vm875_vm3, %v1114_v35  ;;  %1535 = vst.msk [vmem:[#allocation3 + $0x1c8] sm:$0xff] %vm875_vm3, %v1374_v36 }
 0x1b6   :  { %v1976_v4 = vmax.f32 %v1974_v31, 0.0  ;;  %v2024_v5 = vmax.f32 %v2022_v23, %v2023_v32  ;;  %v2033_v37 = vmax.f32 %v2031_v24, %v2032_v63  ;;  %v2082_v38 = vmax.f32 %v2080_v0, %v2081_v19  ;;  %v4792_v39 = vpop.f32.mrf.mxu0  ;;  %v4923_v40 = vpop.f32.mrf.mxu1  ;;  %v2138_v23 = vld [vmem:[#allocation2 + $0x19a] sm:$0x3] }
 0x1b7   :  { %v1935_v22 = vsel %vm1619_vm6, %v1934_v2, %v1924_v18  ;;  %v1975_v25 = vadd.f32 %v6330_v33, %v1973_v3  ;;  %v2090_v10 = vsel %vm1570_vm5, %v2079_v62, -inf  ;;  %v2143_v41 = vadd.f32 %v2139_v34, %v2135_v6  ;;  %v2137_v18 = vld [vmem:[#allocation2 + $0x192] sm:$0xff] }
 0x1b8   :  { %v1936_v43 = vsel %vm1621_vm7, %v1934_v2, %v1935_v22  ;;  %v1986_v44 = vrot.slane %v1976_v4, %v6313_v46  ;;  %v2025_v16 = vrot.slane %v2024_v5, 1  ;;  %v2034_v45 = vrot.slane %v2033_v37, 1  ;;  %v1119_v48 = vpop.f32.mrf.mxu0  ;;  %v1379_v11 = vpop.f32.mrf.mxu1  ;;  %v2201_v4 = vld [vmem:[#allocation3 + $0x65] sm:$0xff] }
 0x1b9   :  { %v1937_v9 = vsel %vm1623_vm8, %v1934_v2, %v1936_v43  ;;  %v1977_v47 = vmax.f32 %v1975_v25, 0.0  ;;  %v2083_v12 = vrot.slane %v2082_v38, 4  ;;  %v2091_v50 = vmax.f32 %v2089_v28, %v2090_v10  ;;  %1497 = vst.msk [vmem:[#allocation3 + $0x98] sm:$0xff] %vm875_vm3, %v1119_v48  ;;  %1536 = vst.msk [vmem:[#allocation3 + $0x1d0] sm:$0xff] %vm875_vm3, %v1379_v11  ;;  %v2202_v25 = vld [vmem:[#allocation3 + $0x6d] sm:$0x3] }
 0x1ba   :  { %v1938_v51 = vsel %vm1625_vm9, %v1934_v2, %v1937_v9  ;;  %v2026_v52 = vmax.f32 %v2024_v5, %v2025_v16  ;;  %v2035_v17 = vmax.f32 %v2033_v37, %v2034_v45  ;;  %v2144_v49 = vadd.f32 %v2140_v13, %v2136_v14  ;;  %v4926_v54 = vpop.f32.mrf.mxu1  ;;  %v4795_v21 = vpop.f32.mrf.mxu0  ;;  %v3587_v5 = vld [vmem:[%s7159_s4 + $0x1e8] sm:$0xff]  ;;  %v2204_v16 = vld [vmem:[#allocation3 + $0x1a5] sm:$0x3] }
 0x1bb   :  { %1939 = vrot.lane.b32.xlu0 %v1938_v51, %s5056_s20  ;;  %v1993_v53 = vrot.slane %v1977_v47, %v6313_v46  ;;  %v2084_v55 = vmax.f32 %v2082_v38, %v2083_v12  ;;  %v2092_v56 = vrot.slane %v2091_v50, 4  ;;  %v2145_v24 = vadd.f32 %v2141_v8, %v2137_v18  ;;  %v3571_v37 = vld [vmem:[%s7159_s4 + $0x168] sm:$0xff]  ;;  %4394 = vmatprep.subr.mxu1 %v3587_v5  ;;  %v2199_v51 = vld [vmem:[#allocation2 + $0x19c] sm:$0xff]  ;;  %s5075_s20 = smov 80  }
 0x1bc   :  { %v2036_v57 = vadd.f32 %v6330_v33, %v2026_v52  ;;  %v2037_v58 = vadd.f32 %v6330_v33, %v2035_v17  ;;  %v2146_v26 = vadd.f32 %v2142_v15, %v2138_v23  ;;  %v2147_v27 = vsel %vm875_vm3, %v2143_v41, -inf  ;;  %v1124_v29 = vpop.f32.mrf.mxu0  ;;  %v1384_v30 = vpop.f32.mrf.mxu1  ;;  %v2197_v43 = vld [vmem:[#allocation2 + $0x64] sm:$0xff]  ;;  %4395 = vmatpush3.msra.mxu1 %v3571_v37  ;;  %v2198_v47 = vld [vmem:[#allocation2 + $0x6c] sm:$0x3] }
 0x1bd   :  { %v1996_v60 = vrot.slane %v1993_v53, 7  ;;  %v2085_v61 = vrot.slane %v2084_v55, 2  ;;  %v2093_v62 = vmax.f32 %v2091_v50, %v2092_v56  ;;  %v2148_v31 = vsel %vm1570_vm5, %v2144_v49, -inf  ;;  %1498 = vst.msk [vmem:[#allocation3 + $0xa0] sm:$0xff] %vm875_vm3, %v1124_v29  ;;  %1537 = vst.msk [vmem:[#allocation3 + $0x1d8] sm:$0xff] %vm875_vm3, %v1384_v30  ;;  %v2263_v29 = vld [vmem:[#allocation3 + $0x6f] sm:$0xff] }
 0x1be   :  { %v2038_v32 = vmax.f32 %v2036_v57, 0.0  ;;  %v2039_v63 = vmax.f32 %v2037_v58, 0.0  ;;  %v2149_v0 = vmax.f32 %v2147_v27, %v2148_v31  ;;  %v2156_v34 = vsel %vm875_vm3, %v2145_v24, -inf  ;;  %v4929_v3 = vpop.f32.mrf.mxu1  ;;  %v4798_v19 = vpop.f32.mrf.mxu0  ;;  %v2200_v52 = vld [vmem:[#allocation2 + $0x1a4] sm:$0x3] }
 0x1bf   :  { %v1997_v2 = vsel %vm1619_vm6, %v1996_v60, %v1986_v44  ;;  %v2086_v35 = vmax.f32 %v2084_v55, %v2085_v61  ;;  %v2094_v36 = vrot.slane %v2093_v62, 2  ;;  %v2157_v28 = vsel %vm1570_vm5, %v2146_v26, -inf  ;;  %v2203_v44 = vld [vmem:[#allocation3 + $0x19d] sm:$0xff] }
 0x1c0   :  { %v1998_v38 = vsel %vm1621_vm7, %v1996_v60, %v1997_v2  ;;  %v2048_v6 = vrot.slane %v2038_v32, %v6313_v46  ;;  %v2055_v7 = vrot.slane %v2039_v63, %v6313_v46  ;;  %v2150_v22 = vrot.slane %v2149_v0, 4  ;;  %v1129_v13 = vpop.f32.mrf.mxu0  ;;  %v1389_v41 = vpop.f32.mrf.mxu1  ;;  %v3539_v2 = vld [vmem:[%s7159_s4 + $0x68] sm:$0xff] }
 0x1c1   :  { %v1999_v39 = vsel %vm1623_vm8, %v1996_v60, %v1998_v38  ;;  %v2087_v40 = vrot.slane %v2086_v35, 1  ;;  %v2095_v10 = vmax.f32 %v2093_v62, %v2094_v36  ;;  %v2158_v42 = vmax.f32 %v2156_v34, %v2157_v28  ;;  %1499 = vst.msk [vmem:[#allocation3 + $0xa8] sm:$0xff] %vm875_vm3, %v1129_v13  ;;  %1538 = vst.msk [vmem:[#allocation3 + $0x1e0] sm:$0xff] %vm875_vm3, %v1389_v41  ;;  %v3555_v34 = vld [vmem:[%s7159_s4 + $0xe8] sm:$0xff]  ;;  %v2265_v28 = vld [vmem:[#allocation3 + $0x1a7] sm:$0xff] }
 0x1c2   :  { %v2000_v45 = vsel %vm1625_vm9, %v1996_v60, %v1999_v39  ;;  %v2058_v8 = vrot.slane %v2055_v7, 7  ;;  %v2151_v9 = vmax.f32 %v2149_v0, %v2150_v22  ;;  %v2205_v48 = vadd.f32 %v2201_v4, %v2197_v43  ;;  %v4932_v50 = vpop.f32.mrf.mxu1  ;;  %v4801_v15 = vpop.f32.mrf.mxu0  ;;  %v2264_v0 = vld [vmem:[#allocation3 + $0x77] sm:$0x3]  ;;  %4359 = vmatprep.subr.mxu0 %v3555_v34  ;;  %v2259_v22 = vld [vmem:[#allocation2 + $0x6e] sm:$0xff]  ;;  %v2266_v39 = vld [vmem:[#allocation3 + $0x1af] sm:$0x3] }
 0x1c3   :  { %2001 = vrot.lane.b32.xlu0 %v2000_v45, %s5057_s0  ;;  %v2088_v11 = vmax.f32 %v2086_v35, %v2087_v40  ;;  %v2096_v12 = vrot.slane %v2095_v10, 1  ;;  %v2159_v14 = vrot.slane %v2158_v42, 4  ;;  %v2206_v17 = vadd.f32 %v2202_v25, %v2198_v47  ;;  %v2260_v25 = vld [vmem:[#allocation2 + $0x76] sm:$0x3]  ;;  %4360 = vmatpush3.msra.mxu0 %v3539_v2  ;;  %v2261_v13 = vld [vmem:[#allocation2 + $0x1a6] sm:$0xff]  ;;  %s5078_s0 = smov 42  }
 0x1c4   :  { %v2059_v18 = vsel %vm1619_vm6, %v2058_v8, %v2048_v6  ;;  %v2152_v49 = vrot.slane %v2151_v9, 2  ;;  %v2207_v53 = vadd.f32 %v2203_v44, %v2199_v51  ;;  %v2208_v54 = vadd.f32 %v2204_v16, %v2200_v52  ;;  %v1134_v24 = vpop.f32.mrf.mxu0  ;;  %v1394_v57 = vpop.f32.mrf.mxu1 }
 0x1c5   :  { %v2060_v21 = vsel %vm1621_vm7, %v2058_v8, %v2059_v18  ;;  %v2097_v55 = vmax.f32 %v2095_v10, %v2096_v12  ;;  %v2098_v56 = vadd.f32 %v6330_v33, %v2088_v11  ;;  %v2160_v23 = vmax.f32 %v2158_v42, %v2159_v14  ;;  %1500 = vst.msk [vmem:[#allocation3 + $0xb0] sm:$0xff] %vm875_vm3, %v1134_v24 }
 0x1c6   :  { %v2061_v58 = vsel %vm1623_vm8, %v2058_v8, %v2060_v21  ;;  %v2153_v26 = vmax.f32 %v2151_v9, %v2152_v49  ;;  %1539 = vst.msk [vmem:[#allocation3 + $0x1e8] sm:$0xff] %vm875_vm3, %v1394_v57  ;;  %v2209_v27 = vsel %vm875_vm3, %v2205_v48, -inf  ;;  %v2210_v60 = vsel %vm1570_vm5, %v2206_v17, -inf  ;;  %v4935_v32 = vpop.f32.mrf.mxu1  ;;  %v4804_v63 = vpop.f32.mrf.mxu0  ;;  %v2262_v9 = vld [vmem:[#allocation2 + $0x1ae] sm:$0x3] }
 0x1c7   :  { %v2062_v30 = vsel %vm1625_vm9, %v2058_v8, %v2061_v58  ;;  %v2099_v61 = vadd.f32 %v6330_v33, %v2097_v55  ;;  %v2100_v62 = vmax.f32 %v2098_v56, 0.0  ;;  %v2161_v31 = vrot.slane %v2160_v23, 2 }
 0x1c8   :  { %2063 = vrot.lane.b32.xlu1 %v2062_v30, %s5058_s29  ;;  %v2154_v3 = vrot.slane %v2153_v26, 1  ;;  %v2211_v35 = vmax.f32 %v2209_v27, %v2210_v60  ;;  %v2218_v36 = vsel %vm875_vm3, %v2207_v53, -inf  ;;  %v2219_v19 = vsel %vm1570_vm5, %v2208_v54, -inf  ;;  %v1139_v6 = vpop.f32.mrf.mxu0  ;;  %v1399_v7 = vpop.f32.mrf.mxu1  ;;  %v3586_v27 = vld [vmem:[%s7159_s4 + $0x1e0] sm:$0xff] }
 0x1c9   :  { %v2101_v4 = vmax.f32 %v2099_v61, 0.0  ;;  %v2110_v5 = vrot.slane %v2100_v62, %v6313_v46  ;;  %v2162_v37 = vmax.f32 %v2160_v23, %v2161_v31  ;;  %v2220_v38 = vmax.f32 %v2218_v36, %v2219_v19  ;;  %1501 = vst.msk [vmem:[#allocation3 + $0xb8] sm:$0xff] %vm875_vm3, %v1139_v6  ;;  %1540 = vst.msk [vmem:[#allocation3 + $0x1f0] sm:$0xff] %vm875_vm3, %v1399_v7  ;;  %v3570_v60 = vld [vmem:[%s7159_s4 + $0x160] sm:$0xff]  ;;  %v2326_v31 = vld [vmem:[#allocation3 + $0x81] sm:$0x3] }
 0x1ca   :  { %v2155_v40 = vmax.f32 %v2153_v26, %v2154_v3  ;;  %v2212_v10 = vrot.slane %v2211_v35, 4  ;;  %v2267_v41 = vadd.f32 %v2263_v29, %v2259_v22  ;;  %v2268_v42 = vadd.f32 %v2264_v0, %v2260_v25  ;;  %v4807_v45 = vpop.f32.mrf.mxu0  ;;  %v4938_v8 = vpop.f32.mrf.mxu1  ;;  %v2325_v26 = vld [vmem:[#allocation3 + $0x79] sm:$0xff]  ;;  %4396 = vmatprep.subr.mxu1 %v3586_v27  ;;  %v2327_v36 = vld [vmem:[#allocation3 + $0x1b1] sm:$0xff] }
 0x1cb   :  { %v2117_v43 = vrot.slane %v2101_v4, %v6313_v46  ;;  %v2163_v44 = vrot.slane %v2162_v37, 1  ;;  %v2221_v16 = vrot.slane %v2220_v38, 4  ;;  %v2269_v47 = vadd.f32 %v2265_v28, %v2261_v13  ;;  %v2328_v19 = vld [vmem:[#allocation3 + $0x1b9] sm:$0x3]  ;;  %4397 = vmatpush3.msra.mxu1 %v3570_v60  ;;  %v2394_v27 = vld [vmem:[#allocation3 + $0x1bb] sm:$0xff] }
 0x1cc   :  { %v2165_v48 = vadd.f32 %v6330_v33, %v2155_v40  ;;  %v2213_v11 = vmax.f32 %v2211_v35, %v2212_v10  ;;  %v2270_v12 = vadd.f32 %v2266_v39, %v2262_v9  ;;  %v2271_v50 = vsel %vm875_vm3, %v2267_v41, -inf  ;;  %v1144_v52 = vpop.f32.mrf.mxu0  ;;  %v1404_v17 = vpop.f32.mrf.mxu1  ;;  %v2321_v35 = vld [vmem:[#allocation2 + $0x78] sm:$0xff]  ;;  %v2323_v39 = vld [vmem:[#allocation2 + $0x1b0] sm:$0xff] }
 0x1cd   :  { %v2120_v14 = vrot.slane %v2117_v43, 7  ;;  %v2164_v15 = vmax.f32 %v2162_v37, %v2163_v44  ;;  %v2222_v51 = vmax.f32 %v2220_v38, %v2221_v16  ;;  %v2272_v18 = vsel %vm1570_vm5, %v2268_v42, -inf  ;;  %1502 = vst.msk [vmem:[#allocation3 + $0xc0] sm:$0xff] %vm875_vm3, %v1144_v52  ;;  %1541 = vst.msk [vmem:[#allocation3 + $0x1f8] sm:$0xff] %vm875_vm3, %v1404_v17  ;;  %v2322_v37 = vld [vmem:[#allocation2 + $0x80] sm:$0x3] }
 0x1ce   :  { %v2167_v49 = vmax.f32 %v2165_v48, 0.0  ;;  %v2214_v53 = vrot.slane %v2213_v11, 2  ;;  %v2273_v54 = vmax.f32 %v2271_v50, %v2272_v18  ;;  %v2280_v21 = vsel %vm875_vm3, %v2269_v47, -inf  ;;  %v4941_v24 = vpop.f32.mrf.mxu1  ;;  %v4810_v58 = vpop.f32.mrf.mxu0  ;;  %v2324_v40 = vld [vmem:[#allocation2 + $0x1b8] sm:$0x3] }
 0x1cf   :  { %v2121_v55 = vsel %vm1619_vm6, %v2120_v14, %v2110_v5  ;;  %v2166_v56 = vadd.f32 %v6330_v33, %v2164_v15  ;;  %v2223_v23 = vrot.slane %v2222_v51, 2  ;;  %v2281_v57 = vsel %vm1570_vm5, %v2270_v12, -inf }
 0x1d0   :  { %v2122_v29 = vsel %vm1621_vm7, %v2120_v14, %v2121_v55  ;;  %v2177_v30 = vrot.slane %v2167_v49, %v6313_v46  ;;  %v2215_v61 = vmax.f32 %v2213_v11, %v2214_v53  ;;  %v2274_v62 = vrot.slane %v2273_v54, 4  ;;  %v1149_v2 = vpop.f32.mrf.mxu0  ;;  %v1409_v3 = vpop.f32.mrf.mxu1 }
 0x1d1   :  { %v2123_v32 = vsel %vm1623_vm8, %v2120_v14, %v2122_v29  ;;  %v2168_v63 = vmax.f32 %v2166_v56, 0.0  ;;  %v2224_v0 = vmax.f32 %v2222_v51, %v2223_v23  ;;  %v2282_v34 = vmax.f32 %v2280_v21, %v2281_v57  ;;  %1503 = vst.msk [vmem:[#allocation3 + $0xc8] sm:$0xff] %vm875_vm3, %v1149_v2  ;;  %1542 = vst.msk [vmem:[#allocation3 + $0x200] sm:$0xff] %vm875_vm3, %v1409_v3  ;;  %v6518_v51 = vld [vmem:[%s7158_s3] ss:$0 sm:$0xff]  ;;  %v2392_v56 = vld [vmem:[#allocation3 + $0x83] sm:$0xff] }
 0x1d2   :  { %v2124_v28 = vsel %vm1625_vm9, %v2120_v14, %v2123_v32  ;;  %v2216_v4 = vrot.slane %v2215_v61, 1  ;;  %v2275_v5 = vmax.f32 %v2273_v54, %v2274_v62  ;;  %v2329_v38 = vadd.f32 %v2325_v26, %v2321_v35  ;;  %v4944_v25 = vpop.f32.mrf.mxu1  ;;  %v4813_v13 = vpop.f32.mrf.mxu0  ;;  %v2393_v26 = vld [vmem:[#allocation3 + $0x8b] sm:$0x3]  ;;  %v2388_v32 = vld [vmem:[#allocation2 + $0x82] sm:$0xff]  ;;  %v2389_v3 = vld [vmem:[#allocation2 + $0x8a] sm:$0x3] }
 0x1d3   :  { %2125 = vrot.lane.b32.xlu1 %v2124_v28, %s5059_s9  ;;  %v2184_v6 = vrot.slane %v2168_v63, %v6313_v46  ;;  %v2225_v7 = vrot.slane %v2224_v0, 1  ;;  %v2283_v22 = vrot.slane %v2282_v34, 4  ;;  %v2330_v10 = vadd.f32 %v2326_v31, %v2322_v37  ;;  %v2395_v63 = vld [vmem:[#allocation3 + $0x1c3] sm:$0x3]  ;;  %v2390_v35 = vld [vmem:[#allocation2 + $0x1ba] sm:$0xff]  ;;  %s5064_s9 = smov 6  }
 0x1d4   :  { %v2217_v41 = vmax.f32 %v2215_v61, %v2216_v4  ;;  %v2276_v42 = vrot.slane %v2275_v5, 2  ;;  %v2331_v43 = vadd.f32 %v2327_v36, %v2323_v39  ;;  %v2332_v44 = vadd.f32 %v2328_v19, %v2324_v40  ;;  %v1154_v47 = vpop.f32.mrf.mxu0  ;;  %v1414_v48 = vpop.f32.mrf.mxu1  ;;  %v2391_v37 = vld [vmem:[#allocation2 + $0x1c2] sm:$0x3] }
 0x1d5   :  { %v2187_v16 = vrot.slane %v2184_v6, 7  ;;  %v2226_v45 = vmax.f32 %v2224_v0, %v2225_v7  ;;  %v2284_v8 = vmax.f32 %v2282_v34, %v2283_v22  ;;  %v2333_v9 = vsel %vm875_vm3, %v2329_v38, -inf  ;;  %1504 = vst.msk [vmem:[#allocation3 + $0xd0] sm:$0xff] %vm875_vm3, %v1154_v47  ;;  %1543 = vst.msk [vmem:[#allocation3 + $0x208] sm:$0xff] %vm875_vm3, %v1414_v48  ;;  %v3554_v7 = vld [vmem:[%s7159_s4 + $0xe0] sm:$0xff] }
 0x1d6   :  { %v2227_v11 = vadd.f32 %v6330_v33, %v2217_v41  ;;  %v2277_v12 = vmax.f32 %v2275_v5, %v2276_v42  ;;  %v2334_v50 = vsel %vm1570_vm5, %v2330_v10, -inf  ;;  %v2342_v14 = vsel %vm875_vm3, %v2331_v43, -inf  ;;  %v4947_v18 = vpop.f32.mrf.mxu1  ;;  %v4816_v49 = vpop.f32.mrf.mxu0  ;;  %v3538_v22 = vld [vmem:[%s7159_s4 + $0x60] sm:$0xff]  ;;  %4361 = vmatprep.subr.mxu0 %v3554_v7 }
 0x1d7   :  { %v2188_v15 = vsel %vm1619_vm6, %v2187_v16, %v2177_v30  ;;  %v2228_v52 = vadd.f32 %v6518_v51, %v2226_v45  ;;  %v2285_v17 = vrot.slane %v2284_v8, 2  ;;  %v2335_v33 = vmax.f32 %v2333_v9, %v2334_v50  ;;  %4362 = vmatpush3.msra.mxu0 %v3538_v22  ;;  %v2454_v48 = vld [vmem:[#allocation3 + $0x8d] sm:$0xff] }
 0x1d8   :  { %v2189_v53 = vsel %vm1621_vm7, %v2187_v16, %v2188_v15  ;;  %v2229_v54 = vmax.f32 %v2227_v11, 0.0  ;;  %v2278_v21 = vrot.slane %v2277_v12, 1  ;;  %v2343_v55 = vsel %vm1570_vm5, %v2332_v44, -inf  ;;  %v1159_v60 = vpop.f32.mrf.mxu0  ;;  %v1419_v29 = vpop.f32.mrf.mxu1 }
 0x1d9   :  { %v2190_v23 = vsel %vm1623_vm8, %v2187_v16, %v2189_v53  ;;  %v2230_v24 = vmax.f32 %v2228_v52, 0.0  ;;  %v2286_v57 = vmax.f32 %v2284_v8, %v2285_v17  ;;  %v2336_v58 = vrot.slane %v2335_v33, 4  ;;  %1505 = vst.msk [vmem:[#allocation3 + $0xd8] sm:$0xff] %vm875_vm3, %v1159_v60  ;;  %1544 = vst.msk [vmem:[#allocation3 + $0x210] sm:$0xff] %vm875_vm3, %v1419_v29  ;;  %v2450_v17 = vld [vmem:[#allocation2 + $0x8c] sm:$0xff] }
 0x1da   :  { %v2191_v30 = vsel %vm1625_vm9, %v2187_v16, %v2190_v23  ;;  %v2239_v61 = vrot.slane %v2229_v54, %v6313_v46  ;;  %v2279_v62 = vmax.f32 %v2277_v12, %v2278_v21  ;;  %v2344_v31 = vmax.f32 %v2342_v14, %v2343_v55  ;;  %v4950_v19 = vpop.f32.mrf.mxu1  ;;  %v4819_v28 = vpop.f32.mrf.mxu0  ;;  %v2456_v21 = vld [vmem:[#allocation3 + $0x1c5] sm:$0xff]  ;;  %v2457_v55 = vld [vmem:[#allocation3 + $0x1cd] sm:$0x3] }
 0x1db   :  { %2192 = vrot.lane.b32.xlu0 %v2191_v30, %s5060_s12  ;;  %v2246_v0 = vrot.slane %v2230_v24, %v6313_v46  ;;  %v2287_v34 = vrot.slane %v2286_v57, 1  ;;  %v2337_v2 = vmax.f32 %v2335_v33, %v2336_v58  ;;  %v2396_v36 = vadd.f32 %v2392_v56, %v2388_v32  ;;  %v2455_v33 = vld [vmem:[#allocation3 + $0x95] sm:$0x3] }
 0x1dc   :  { %v2289_v4 = vadd.f32 %v6518_v51, %v2279_v62  ;;  %v2345_v5 = vrot.slane %v2344_v31, 4  ;;  %v2397_v38 = vadd.f32 %v2393_v26, %v2389_v3  ;;  %v2398_v6 = vadd.f32 %v2394_v27, %v2390_v35  ;;  %v1164_v13 = vpop.f32.mrf.mxu0  ;;  %v1424_v41 = vpop.f32.mrf.mxu1  ;;  %v2451_v26 = vld [vmem:[#allocation2 + $0x94] sm:$0x3]  ;;  %v2452_v27 = vld [vmem:[#allocation2 + $0x1c4] sm:$0xff] }
 0x1dd   :  { %v2249_v25 = vrot.slane %v2246_v0, 7  ;;  %v2288_v39 = vmax.f32 %v2286_v57, %v2287_v34  ;;  %v2338_v40 = vrot.slane %v2337_v2, 2  ;;  %v2399_v10 = vadd.f32 %v2395_v63, %v2391_v37  ;;  %1506 = vst.msk [vmem:[#allocation3 + $0xe0] sm:$0xff] %vm875_vm3, %v1164_v13  ;;  %1545 = vst.msk [vmem:[#allocation3 + $0x218] sm:$0xff] %vm875_vm3, %v1424_v41  ;;  %v3585_v0 = vld [vmem:[%s7159_s4 + $0x1d8] sm:$0xff] }
 0x1de   :  { %v2291_v42 = vmax.f32 %v2289_v4, 0.0  ;;  %v2346_v43 = vmax.f32 %v2344_v31, %v2345_v5  ;;  %v2400_v44 = vsel %vm875_vm3, %v2396_v36, -inf  ;;  %v2401_v16 = vsel %vm1570_vm5, %v2397_v38, -inf  ;;  %v4822_v11 = vpop.f32.mrf.mxu0  ;;  %v4953_v12 = vpop.f32.mrf.mxu1  ;;  %v2453_v31 = vld [vmem:[#allocation2 + $0x1cc] sm:$0x3]  ;;  %v3569_v34 = vld [vmem:[%s7159_s4 + $0x158] sm:$0xff]  ;;  %4398 = vmatprep.subr.mxu1 %v3585_v0 }
 0x1df   :  { %v2250_v45 = vsel %vm1619_vm6, %v2249_v25, %v2239_v61  ;;  %v2290_v8 = vadd.f32 %v6518_v51, %v2288_v39  ;;  %v2339_v9 = vmax.f32 %v2337_v2, %v2338_v40  ;;  %v2402_v47 = vmax.f32 %v2400_v44, %v2401_v16  ;;  %4399 = vmatpush3.msra.mxu1 %v3569_v34 }
 0x1e0   :  { %v2251_v50 = vsel %vm1621_vm7, %v2249_v25, %v2250_v45  ;;  %v2301_v14 = vrot.slane %v2291_v42, %v6313_v46  ;;  %v2347_v15 = vrot.slane %v2346_v43, 2  ;;  %v2409_v52 = vsel %vm875_vm3, %v2398_v6, -inf  ;;  %v1169_v56 = vpop.f32.mrf.mxu0  ;;  %v1429_v23 = vpop.f32.mrf.mxu1 }
 0x1e1   :  { %v2252_v18 = vsel %vm1623_vm8, %v2249_v25, %v2251_v50  ;;  %v2292_v49 = vmax.f32 %v2290_v8, 0.0  ;;  %v2340_v53 = vrot.slane %v2339_v9, 1  ;;  %v2403_v54 = vrot.slane %v2402_v47, 4  ;;  %1507 = vst.msk [vmem:[#allocation3 + $0xe8] sm:$0xff] %vm875_vm3, %v1169_v56  ;;  %1546 = vst.msk [vmem:[#allocation3 + $0x220] sm:$0xff] %vm875_vm3, %v1429_v23  ;;  %v2512_v8 = vld [vmem:[#allocation2 + $0x96] sm:$0xff] }
 0x1e2   :  { %v2253_v24 = vsel %vm1625_vm9, %v2249_v25, %v2252_v18  ;;  %v2348_v57 = vmax.f32 %v2346_v43, %v2347_v15  ;;  %v2410_v58 = vsel %vm1570_vm5, %v2399_v10, -inf  ;;  %v2458_v60 = vadd.f32 %v2454_v48, %v2450_v17  ;;  %v4956_v32 = vpop.f32.mrf.mxu1  ;;  %v4825_v63 = vpop.f32.mrf.mxu0  ;;  %v2518_v15 = vld [vmem:[#allocation3 + $0x1cf] sm:$0xff]  ;;  %v3584_v56 = vld [vmem:[%s7159_s4 + $0x1d0] sm:$0xff] }
 0x1e3   :  { %2254 = vrot.lane.b32.xlu0 %v2253_v24, %s5061_s16  ;;  %v2308_v29 = vrot.slane %v2292_v49, %v6313_v46  ;;  %v2341_v30 = vmax.f32 %v2339_v9, %v2340_v53  ;;  %v2404_v61 = vmax.f32 %v2402_v47, %v2403_v54  ;;  %v2411_v62 = vmax.f32 %v2409_v52, %v2410_v58  ;;  %v2516_v9 = vld [vmem:[#allocation3 + $0x97] sm:$0xff]  ;;  %v2517_v47 = vld [vmem:[#allocation3 + $0x9f] sm:$0x3]  ;;  %s5071_s16 = smov 88  }
 0x1e4   :  { %v2349_v2 = vrot.slane %v2348_v57, 1  ;;  %v2459_v3 = vadd.f32 %v2455_v33, %v2451_v26  ;;  %v2460_v35 = vadd.f32 %v2456_v21, %v2452_v27  ;;  %v2461_v36 = vadd.f32 %v2457_v55, %v2453_v31  ;;  %v1174_v37 = vpop.f32.mrf.mxu0  ;;  %v1434_v38 = vpop.f32.mrf.mxu1  ;;  %v3553_v33 = vld [vmem:[%s7159_s4 + $0xd8] sm:$0xff]  ;;  %v2519_v21 = vld [vmem:[#allocation3 + $0x1d7] sm:$0x3]  ;;  %4400 = vmatprep.subr.mxu1 %v3584_v56 }
 0x1e5   :  { %v2311_v19 = vrot.slane %v2308_v29, 7  ;;  %v2351_v28 = vadd.f32 %v6518_v51, %v2341_v30  ;;  %v2405_v4 = vrot.slane %v2404_v61, 2  ;;  %v2412_v5 = vrot.slane %v2411_v62, 4  ;;  %1508 = vst.msk [vmem:[#allocation3 + $0xf0] sm:$0xff] %vm875_vm3, %v1174_v37  ;;  %1547 = vst.msk [vmem:[#allocation3 + $0x228] sm:$0xff] %vm875_vm3, %v1434_v38  ;;  %4363 = vmatprep.subr.mxu0 %v3553_v33  ;;  %v3537_v55 = vld [vmem:[%s7159_s4 + $0x58] sm:$0xff] }
 0x1e6   :  { %v2350_v6 = vmax.f32 %v2348_v57, %v2349_v2  ;;  %v2462_v7 = vsel %vm875_vm3, %v2458_v60, -inf  ;;  %v2463_v22 = vsel %vm1570_vm5, %v2459_v3, -inf  ;;  %v2471_v25 = vsel %vm875_vm3, %v2460_v35, -inf  ;;  %v4828_v41 = vpop.f32.mrf.mxu0  ;;  %v4959_v42 = vpop.f32.mrf.mxu1  ;;  %v2514_v57 = vld [vmem:[#allocation2 + $0x1ce] sm:$0xff]  ;;  %4364 = vmatpush3.msra.mxu0 %v3537_v55  ;;  %v2638_v33 = vld [vmem:[#allocation2 + $0x1e2] sm:$0xff] }
 0x1e7   :  { %v2312_v39 = vsel %vm1619_vm6, %v2311_v19, %v2301_v14  ;;  %v2353_v40 = vmax.f32 %v2351_v28, 0.0  ;;  %v2406_v10 = vmax.f32 %v2404_v61, %v2405_v4  ;;  %v2413_v13 = vmax.f32 %v2411_v62, %v2412_v5  ;;  %v2513_v14 = vld [vmem:[#allocation2 + $0x9e] sm:$0x3]  ;;  %v2515_v62 = vld [vmem:[#allocation2 + $0x1d6] sm:$0x3] }
 0x1e8   :  { %v2313_v43 = vsel %vm1621_vm7, %v2311_v19, %v2312_v39  ;;  %v2352_v44 = vadd.f32 %v6518_v51, %v2350_v6  ;;  %v2464_v16 = vmax.f32 %v2462_v7, %v2463_v22  ;;  %v2472_v45 = vsel %vm1570_vm5, %v2461_v36, -inf  ;;  %v1179_v52 = vpop.f32.mrf.mxu0  ;;  %v1439_v17 = vpop.f32.mrf.mxu1 }
 0x1e9   :  { %v2314_v48 = vsel %vm1623_vm8, %v2311_v19, %v2313_v43  ;;  %v2363_v11 = vrot.slane %v2353_v40, %v6313_v46  ;;  %v2407_v12 = vrot.slane %v2406_v10, 1  ;;  %v2414_v50 = vrot.slane %v2413_v13, 2  ;;  %1509 = vst.msk [vmem:[#allocation3 + $0xf8] sm:$0xff] %vm875_vm3, %v1179_v52  ;;  %1548 = vst.msk [vmem:[#allocation3 + $0x230] sm:$0xff] %vm875_vm3, %v1439_v17  ;;  %v2637_v17 = vld [vmem:[#allocation2 + $0xb2] sm:$0x3] }
 0x1ea   :  { %v2315_v18 = vsel %vm1625_vm9, %v2311_v19, %v2314_v48  ;;  %v2354_v49 = vmax.f32 %v2352_v44, 0.0  ;;  %v2465_v53 = vrot.slane %v2464_v16, 4  ;;  %v2473_v54 = vmax.f32 %v2471_v25, %v2472_v45  ;;  %v4962_v27 = vpop.f32.mrf.mxu1  ;;  %v4831_v60 = vpop.f32.mrf.mxu0  ;;  %v2641_v44 = vld [vmem:[#allocation3 + $0xb3] sm:$0x3] }
 0x1eb   :  { %2316 = vrot.lane.b32.xlu1 %v2315_v18, %s5062_s26  ;;  %v2408_v23 = vmax.f32 %v2406_v10, %v2407_v12  ;;  %v2415_v24 = vmax.f32 %v2413_v13, %v2414_v50  ;;  %v2520_v58 = vadd.f32 %v2516_v9, %v2512_v8  ;;  %v2521_v26 = vadd.f32 %v2517_v47, %v2513_v14  ;;  %v2640_v10 = vld [vmem:[#allocation3 + $0xab] sm:$0xff]  ;;  %v2642_v12 = vld [vmem:[#allocation3 + $0x1e3] sm:$0xff]  ;;  %v2639_v18 = vld [vmem:[#allocation2 + $0x1ea] sm:$0x3] }
 0x1ec   :  { %v2370_v29 = vrot.slane %v2354_v49, %v6313_v46  ;;  %v2466_v30 = vmax.f32 %v2464_v16, %v2465_v53  ;;  %v2474_v61 = vrot.slane %v2473_v54, 4  ;;  %v2522_v31 = vadd.f32 %v2518_v15, %v2514_v57  ;;  %v1184_v2 = vpop.f32.mrf.mxu0  ;;  %v1444_v3 = vpop.f32.mrf.mxu1  ;;  %v2643_v50 = vld [vmem:[#allocation3 + $0x1eb] sm:$0x3]  ;;  %v3552_v57 = vld [vmem:[%s7159_s4 + $0xd0] sm:$0xff] }
 0x1ed   :  { %v2416_v32 = vrot.slane %v2415_v24, 1  ;;  %v2418_v63 = vadd.f32 %v6518_v51, %v2408_v23  ;;  %v2523_v0 = vadd.f32 %v2519_v21, %v2515_v62  ;;  %v2524_v34 = vsel %vm875_vm3, %v2520_v58, -inf  ;;  %1510 = vst.msk [vmem:[#allocation3 + $0x100] sm:$0xff] %vm875_vm3, %v1184_v2  ;;  %1549 = vst.msk [vmem:[#allocation3 + $0x238] sm:$0xff] %vm875_vm3, %v1444_v3  ;;  %v3536_v58 = vld [vmem:[%s7159_s4 + $0x50] sm:$0xff]  ;;  %4365 = vmatprep.subr.mxu0 %v3552_v57 }
 0x1ee   :  { %v2373_v35 = vrot.slane %v2370_v29, 7  ;;  %v2467_v36 = vrot.slane %v2466_v30, 2  ;;  %v2475_v19 = vmax.f32 %v2473_v54, %v2474_v61  ;;  %v2525_v28 = vsel %vm1570_vm5, %v2521_v26, -inf  ;;  %v4965_v6 = vpop.f32.mrf.mxu1  ;;  %v4834_v7 = vpop.f32.mrf.mxu0  ;;  %4366 = vmatpush3.msra.mxu0 %v3536_v58  ;;  %v3583_v58 = vld [vmem:[%s7159_s4 + $0x1c8] sm:$0xff] }
 0x1ef   :  { %v2417_v4 = vmax.f32 %v2415_v24, %v2416_v32  ;;  %v2420_v5 = vmax.f32 %v2418_v63, 0.0  ;;  %v2526_v37 = vmax.f32 %v2524_v34, %v2525_v28  ;;  %v2533_v38 = vsel %vm875_vm3, %v2522_v31, -inf  ;;  %v3568_v24 = vld [vmem:[%s7159_s4 + $0x150] sm:$0xff] }
 0x1f0   :  { %v2374_v22 = vsel %vm1619_vm6, %v2373_v35, %v2363_v11  ;;  %v2468_v25 = vmax.f32 %v2466_v30, %v2467_v36  ;;  %v2476_v39 = vrot.slane %v2475_v19, 2  ;;  %v2534_v40 = vsel %vm1570_vm5, %v2523_v0, -inf  ;;  %v1189_v16 = vpop.f32.mrf.mxu0  ;;  %v1449_v45 = vpop.f32.mrf.mxu1  ;;  %v2636_v11 = vld [vmem:[#allocation2 + $0xaa] sm:$0xff]  ;;  %4401 = vmatpush3.msra.mxu1 %v3568_v24 }
 0x1f1   :  { %v2375_v13 = vsel %vm1621_vm7, %v2373_v35, %v2374_v22  ;;  %v2419_v41 = vadd.f32 %v6518_v51, %v2417_v4  ;;  %v2430_v42 = vrot.slane %v2420_v5, %v6313_v46  ;;  %v2527_v43 = vrot.slane %v2526_v37, 4  ;;  %1511 = vst.msk [vmem:[#allocation3 + $0x108] sm:$0xff] %vm875_vm3, %v1189_v16  ;;  %1550 = vst.msk [vmem:[#allocation3 + $0x240] sm:$0xff] %vm875_vm3, %v1449_v45  ;;  %v2578_v0 = vld [vmem:[#allocation3 + $0xa1] sm:$0xff]  ;;  %v2580_v16 = vld [vmem:[#allocation3 + $0x1d9] sm:$0xff] }
 0x1f2   :  { %v2376_v8 = vsel %vm1623_vm8, %v2373_v35, %v2375_v13  ;;  %v2469_v9 = vrot.slane %v2468_v25, 1  ;;  %v2477_v47 = vmax.f32 %v2475_v19, %v2476_v39  ;;  %v2535_v48 = vmax.f32 %v2533_v38, %v2534_v40  ;;  %v4837_v53 = vpop.f32.mrf.mxu0  ;;  %v4968_v54 = vpop.f32.mrf.mxu1  ;;  %v2574_v38 = vld [vmem:[#allocation2 + $0xa0] sm:$0xff]  ;;  %4402 = vmatprep.subr.mxu1 %v3583_v58 }
 0x1f3   :  { %v2377_v14 = vsel %vm1625_vm9, %v2373_v35, %v2376_v8  ;;  %v2421_v15 = vmax.f32 %v2419_v41, 0.0  ;;  %v2528_v52 = vmax.f32 %v2526_v37, %v2527_v43  ;;  %v2644_v49 = vadd.f32 %v2640_v10, %v2636_v11  ;;  %v2577_v53 = vld [vmem:[#allocation2 + $0x1e0] sm:$0x3] }
 0x1f4   :  { %2378 = vrot.lane.b32.xlu1 %v2377_v14, %s5063_s27  ;;  %v2470_v21 = vmax.f32 %v2468_v25, %v2469_v9  ;;  %v2478_v55 = vrot.slane %v2477_v47, 1  ;;  %v2536_v56 = vrot.slane %v2535_v48, 4  ;;  %v2645_v23 = vadd.f32 %v2641_v44, %v2637_v17  ;;  %v1194_v30 = vpop.f32.mrf.mxu0  ;;  %v1454_v61 = vpop.f32.mrf.mxu1  ;;  %v2579_v25 = vld [vmem:[#allocation3 + $0xa9] sm:$0x3]  ;;  %s5079_s27 = smov 102  }
 0x1f5   :  { %v2437_v26 = vrot.slane %v2421_v15, %v6313_v46  ;;  %v2529_v27 = vrot.slane %v2528_v52, 2  ;;  %v2646_v60 = vadd.f32 %v2642_v12, %v2638_v33  ;;  %v2647_v29 = vadd.f32 %v2643_v50, %v2639_v18  ;;  %1512 = vst.msk [vmem:[#allocation3 + $0x110] sm:$0xff] %vm875_vm3, %v1194_v30  ;;  %1551 = vst.msk [vmem:[#allocation3 + $0x248] sm:$0xff] %vm875_vm3, %v1454_v61 }
 0x1f6   :  { %v2479_v62 = vmax.f32 %v2477_v47, %v2478_v55  ;;  %v2480_v31 = vadd.f32 %v6518_v51, %v2470_v21  ;;  %v2537_v32 = vmax.f32 %v2535_v48, %v2536_v56  ;;  %v2648_v63 = vsel %vm875_vm3, %v2644_v49, -inf  ;;  %v4971_v36 = vpop.f32.mrf.mxu1  ;;  %v4840_v19 = vpop.f32.mrf.mxu0  ;;  %v2575_v47 = vld [vmem:[#allocation2 + $0xa8] sm:$0x3]  ;;  %v2581_v48 = vld [vmem:[#allocation3 + $0x1e1] sm:$0x3] }
 0x1f7   :  { %v2440_v34 = vrot.slane %v2437_v26, 7  ;;  %v2530_v2 = vmax.f32 %v2528_v52, %v2529_v27  ;;  %v2649_v3 = vsel %vm1570_vm5, %v2645_v23, -inf  ;;  %v2657_v35 = vsel %vm875_vm3, %v2646_v60, -inf  ;;  %v2576_v52 = vld [vmem:[#allocation2 + $0x1d8] sm:$0xff]  ;;  %v3567_v26 = vld [vmem:[%s7159_s4 + $0x148] sm:$0xff] }
 0x1f8   :  { %v2481_v28 = vadd.f32 %v6518_v51, %v2479_v62  ;;  %v2482_v4 = vmax.f32 %v2480_v31, 0.0  ;;  %v2538_v5 = vrot.slane %v2537_v32, 2  ;;  %v2650_v37 = vmax.f32 %v2648_v63, %v2649_v3  ;;  %v1199_v40 = vpop.f32.mrf.mxu0  ;;  %v1459_v10 = vpop.f32.mrf.mxu1  ;;  %4403 = vmatpush3.msra.mxu1 %v3567_v26  ;;  %v2707_v36 = vld [vmem:[#allocation3 + $0xb5] sm:$0xff]  ;;  %v2708_v19 = vld [vmem:[#allocation3 + $0xbd] sm:$0x3] }
 0x1f9   :  { %v2441_v6 = vsel %vm1619_vm6, %v2440_v34, %v2430_v42  ;;  %v2531_v7 = vrot.slane %v2530_v2, 1  ;;  %v2658_v22 = vsel %vm1570_vm5, %v2647_v29, -inf  ;;  %v2582_v39 = vadd.f32 %v2578_v0, %v2574_v38  ;;  %1513 = vst.msk [vmem:[#allocation3 + $0x118] sm:$0xff] %vm875_vm3, %v1199_v40  ;;  %1552 = vst.msk [vmem:[#allocation3 + $0x250] sm:$0xff] %vm875_vm3, %v1459_v10  ;;  %v2703_v10 = vld [vmem:[#allocation2 + $0xb4] sm:$0xff] }
 0x1fa   :  { %v2442_v13 = vsel %vm1621_vm7, %v2440_v34, %v2441_v6  ;;  %v2483_v41 = vmax.f32 %v2481_v28, 0.0  ;;  %v2492_v43 = vrot.slane %v2482_v4, %v6313_v46  ;;  %v2539_v44 = vmax.f32 %v2537_v32, %v2538_v5  ;;  %v4974_v11 = vpop.f32.mrf.mxu1  ;;  %v4843_v12 = vpop.f32.mrf.mxu0 }
 0x1fb   :  { %v2443_v42 = vsel %vm1623_vm8, %v2440_v34, %v2442_v13  ;;  %v2532_v45 = vmax.f32 %v2530_v2, %v2531_v7  ;;  %v2651_v8 = vrot.slane %v2650_v37, 4  ;;  %v2659_v9 = vmax.f32 %v2657_v35, %v2658_v22  ;;  %v2709_v7 = vld [vmem:[#allocation3 + $0x1ed] sm:$0xff]  ;;  %v2706_v12 = vld [vmem:[#allocation2 + $0x1f4] sm:$0x3] }
 0x1fc   :  { %v2444_v50 = vsel %vm1625_vm9, %v2440_v34, %v2443_v42  ;;  %v2499_v14 = vrot.slane %v2483_v41, %v6313_v46  ;;  %v2540_v15 = vrot.slane %v2539_v44, 1  ;;  %v2583_v17 = vadd.f32 %v2579_v25, %v2575_v47  ;;  %v1204_v21 = vpop.f32.mrf.mxu0  ;;  %v1464_v55 = vpop.f32.mrf.mxu1  ;;  %v2704_v13 = vld [vmem:[#allocation2 + $0xbc] sm:$0x3]  ;;  %v2710_v41 = vld [vmem:[#allocation3 + $0x1f5] sm:$0x3] }
 0x1fd   :  { %2445 = vrot.lane.b32.xlu0 %v2444_v50, %s5064_s9  ;;  %v2542_v33 = vadd.f32 %v6518_v51, %v2532_v45  ;;  %v2652_v18 = vmax.f32 %v2650_v37, %v2651_v8  ;;  %v2660_v49 = vrot.slane %v2659_v9, 4  ;;  %v2584_v54 = vadd.f32 %v2580_v16, %v2576_v52  ;;  %1514 = vst.msk [vmem:[#allocation3 + $0x120] sm:$0xff] %vm875_vm3, %v1204_v21  ;;  %v2705_v45 = vld [vmem:[#allocation2 + $0x1ec] sm:$0xff] }
 0x1fe   :  { %v2502_v56 = vrot.slane %v2499_v14, 7  ;;  %v2541_v23 = vmax.f32 %v2539_v44, %v2540_v15  ;;  %v2585_v24 = vadd.f32 %v2581_v48, %v2577_v53  ;;  %v2586_v57 = vsel %vm875_vm3, %v2582_v39, -inf  ;;  %1553 = vst.msk [vmem:[#allocation3 + $0x258] sm:$0xff] %vm875_vm3, %v1464_v55  ;;  %v4977_v61 = vpop.f32.mrf.mxu1  ;;  %v4846_v62 = vpop.f32.mrf.mxu0 }
 0x1ff   :  { %v2544_v27 = vmax.f32 %v2542_v33, 0.0  ;;  %v2653_v60 = vrot.slane %v2652_v18, 2  ;;  %v2661_v29 = vmax.f32 %v2659_v9, %v2660_v49  ;;  %v2587_v30 = vsel %vm1570_vm5, %v2583_v17, -inf  ;;  %v2769_v61 = vld [vmem:[#allocation3 + $0xbf] sm:$0xff] }
 0x200   :  { %v2503_v31 = vsel %vm1619_vm6, %v2502_v56, %v2492_v43  ;;  %v2543_v32 = vadd.f32 %v6518_v51, %v2541_v23  ;;  %v2588_v63 = vmax.f32 %v2586_v57, %v2587_v30  ;;  %v2595_v0 = vsel %vm875_vm3, %v2584_v54, -inf  ;;  %v1209_v28 = vpop.f32.mrf.mxu0  ;;  %v1469_v4 = vpop.f32.mrf.mxu1  ;;  %v2765_v30 = vld [vmem:[#allocation2 + $0xbe] sm:$0xff] }
 0x201   :  { %v2504_v34 = vsel %vm1621_vm7, %v2502_v56, %v2503_v31  ;;  %v2554_v2 = vrot.slane %v2544_v27, %v6313_v46  ;;  %v2654_v3 = vmax.f32 %v2652_v18, %v2653_v60  ;;  %v2662_v35 = vrot.slane %v2661_v29, 2  ;;  %1515 = vst.msk [vmem:[#allocation3 + $0x128] sm:$0xff] %vm875_vm3, %v1209_v28  ;;  %1554 = vst.msk [vmem:[#allocation3 + $0x260] sm:$0xff] %vm875_vm3, %v1469_v4  ;;  %v2767_v28 = vld [vmem:[#allocation2 + $0x1f6] sm:$0xff]  ;;  %v2772_v4 = vld [vmem:[#allocation3 + $0x1ff] sm:$0x3] }
 0x202   :  { %v2505_v5 = vsel %vm1623_vm8, %v2502_v56, %v2504_v34  ;;  %v2545_v37 = vmax.f32 %v2543_v32, 0.0  ;;  %v2589_v38 = vrot.slane %v2588_v63, 4  ;;  %v2596_v6 = vsel %vm1570_vm5, %v2585_v24, -inf  ;;  %v4980_v43 = vpop.f32.mrf.mxu1  ;;  %v4849_v44 = vpop.f32.mrf.mxu0  ;;  %v2771_v34 = vld [vmem:[#allocation3 + $0x1f7] sm:$0xff] }
 0x203   :  { %v2506_v22 = vsel %vm1625_vm9, %v2502_v56, %v2505_v5  ;;  %v2655_v25 = vrot.slane %v2654_v3, 1  ;;  %v2663_v39 = vmax.f32 %v2661_v29, %v2662_v35  ;;  %v2597_v40 = vmax.f32 %v2595_v0, %v2596_v6  ;;  %v2770_v0 = vld [vmem:[#allocation3 + $0xc7] sm:$0x3] }
 0x204   :  { %2507 = vrot.lane.b32.xlu1 %v2506_v22, %s5065_s14  ;;  %v2561_v16 = vrot.slane %v2545_v37, %v6313_v46  ;;  %v2590_v42 = vmax.f32 %v2588_v63, %v2589_v38  ;;  %v2711_v8 = vadd.f32 %v2707_v36, %v2703_v10  ;;  %v2712_v9 = vadd.f32 %v2708_v19, %v2704_v13  ;;  %v1214_v14 = vpop.f32.mrf.mxu0  ;;  %v1474_v15 = vpop.f32.mrf.mxu1  ;;  %v2766_v19 = vld [vmem:[#allocation2 + $0xc6] sm:$0x3]  ;;  %v3535_v22 = vld [vmem:[%s7159_s4 + $0x48] sm:$0xff]  ;;  %v2768_v10 = vld [vmem:[#allocation2 + $0x1fe] sm:$0x3] }
 0x205   :  { %v2656_v47 = vmax.f32 %v2654_v3, %v2655_v25  ;;  %v2664_v48 = vrot.slane %v2663_v39, 1  ;;  %v2598_v11 = vrot.slane %v2597_v40, 4  ;;  %v2713_v50 = vadd.f32 %v2709_v7, %v2705_v45  ;;  %1516 = vst.msk [vmem:[#allocation3 + $0x130] sm:$0x7f] %vm914_vm4, %v1214_v14  ;;  %1555 = vst.msk [vmem:[#allocation3 + $0x268] sm:$0x7f] %vm914_vm4, %v1474_v15 }
 0x206   :  { %v2564_v52 = vrot.slane %v2561_v16, 7  ;;  %v2591_v17 = vrot.slane %v2590_v42, 2  ;;  %v2714_v33 = vadd.f32 %v2710_v41, %v2706_v12  ;;  %v2715_v18 = vsel %vm875_vm3, %v2711_v8, -inf  ;;  %v4983_v55 = vpop.f32.mrf.mxu1  ;;  %v4852_v56 = vpop.f32.mrf.mxu0  ;;  %v3551_v7 = vld [vmem:[%s7159_s4 + $0xc8] sm:$0xff]  ;;  %v3582_v25 = vld [vmem:[%s7159_s4 + $0x1c0] sm:$0xff]  ;;  %v3581_v14 = vld [vmem:[%s7159_s4 + $0x1b8] sm:$0xff] }
 0x207   :  { %v2665_v49 = vmax.f32 %v2663_v39, %v2664_v48  ;;  %v2666_v53 = vadd.f32 %v6518_v51, %v2656_v47  ;;  %v2599_v54 = vmax.f32 %v2597_v40, %v2598_v11  ;;  %v2716_v21 = vsel %vm1570_vm5, %v2712_v9, -inf  ;;  %4367 = vmatprep.subr.mxu0 %v3551_v7  ;;  %4404 = vmatprep.subr.mxu1 %v3582_v25  ;;  %v3566_v45 = vld [vmem:[%s7159_s4 + $0x140] sm:$0xff]  ;;  %v3565_v15 = vld [vmem:[%s7159_s4 + $0x138] sm:$0xff] }
 0x208   :  { %v2565_v23 = vsel %vm1619_vm6, %v2564_v52, %v2554_v2  ;;  %v2592_v24 = vmax.f32 %v2590_v42, %v2591_v17  ;;  %v2717_v57 = vmax.f32 %v2715_v18, %v2716_v21  ;;  %v2724_v58 = vsel %vm875_vm3, %v2713_v50, -inf  ;;  %4368 = vmatpush3.msra.mxu0 %v3535_v22  ;;  %v3550_v8 = vld [vmem:[%s7159_s4 + $0xc0] sm:$0xff]  ;;  %4405 = vmatpush3.msra.mxu1 %v3566_v45 }
 0x209   :  { %v2566_v26 = vsel %vm1621_vm7, %v2564_v52, %v2565_v23  ;;  %v2667_v27 = vadd.f32 %v6518_v51, %v2665_v49  ;;  %v2668_v60 = vmax.f32 %v2666_v53, 0.0  ;;  %v2600_v29 = vrot.slane %v2599_v54, 2  ;;  %v2831_v12 = vld [vmem:[#allocation3 + $0xc9] sm:$0xff]  ;;  %4369 = vmatprep.subr.mxu0 %v3550_v8  ;;  %4406 = vmatprep.subr.mxu1 %v3581_v14  ;;  %v2893_v14 = vld [vmem:[#allocation3 + $0xd3] sm:$0xff] }
 0x20a   :  { %v2567_v62 = vsel %vm1623_vm8, %v2564_v52, %v2566_v26  ;;  %v2593_v31 = vrot.slane %v2592_v24, 1  ;;  %v2718_v32 = vrot.slane %v2717_v57, 4  ;;  %v2725_v63 = vsel %vm1570_vm5, %v2714_v33, -inf  ;;  %v3534_v50 = vld [vmem:[%s7159_s4 + $0x40] sm:$0xff]  ;;  %v3549_v49 = vld [vmem:[%s7159_s4 + $0xb8] sm:$0xff]  ;;  %4407 = vmatpush3.msra.mxu1 %v3565_v15  ;;  %v3532_v26 = vld [vmem:[%s7159_s4 + $0x30] sm:$0xff] }
 0x20b   :  { %v2568_v2 = vsel %vm1625_vm9, %v2564_v52, %v2567_v62  ;;  %v2669_v3 = vmax.f32 %v2667_v27, 0.0  ;;  %v2678_v35 = vrot.slane %v2668_v60, %v6313_v46  ;;  %v2601_v36 = vmax.f32 %v2599_v54, %v2600_v29  ;;  %4370 = vmatpush3.msra.mxu0 %v3534_v50  ;;  %v3533_v53 = vld [vmem:[%s7159_s4 + $0x38] sm:$0xff]  ;;  %v3580_v54 = vld [vmem:[%s7159_s4 + $0x1b0] sm:$0xff] }
 0x20c   :  { %2569 = vrot.lane.b32.xlu1 %v2568_v2, %s5066_s1  ;;  %v2594_v5 = vmax.f32 %v2592_v24, %v2593_v31  ;;  %v2719_v37 = vmax.f32 %v2717_v57, %v2718_v32  ;;  %v2726_v38 = vmax.f32 %v2724_v58, %v2725_v63  ;;  %v2773_v6 = vadd.f32 %v2769_v61, %v2765_v30  ;;  %v2827_v24 = vld [vmem:[#allocation2 + $0xc8] sm:$0xff]  ;;  %v3564_v57 = vld [vmem:[%s7159_s4 + $0x130] sm:$0xff]  ;;  %v2832_v61 = vld [vmem:[#allocation3 + $0xd1] sm:$0x3]  ;;  %s5068_s1 = smov 96  }
 0x20d   :  { %v2685_v39 = vrot.slane %v2669_v3, %v6313_v46  ;;  %v2602_v40 = vrot.slane %v2601_v36, 1  ;;  %v2774_v13 = vadd.f32 %v2770_v0, %v2766_v19  ;;  %v2775_v41 = vadd.f32 %v2771_v34, %v2767_v28  ;;  %4371 = vmatprep.subr.mxu0 %v3549_v49  ;;  %v3548_v58 = vld [vmem:[%s7159_s4 + $0xb0] sm:$0xff]  ;;  %4408 = vmatprep.subr.mxu1 %v3580_v54  ;;  %v3579_v31 = vld [vmem:[%s7159_s4 + $0x1a8] sm:$0xff]  ;;  %v2829_v2 = vld [vmem:[#allocation2 + $0x200] sm:$0xff] }
 0x20e   :  { %v2604_v43 = vadd.f32 %v6518_v51, %v2594_v5  ;;  %v2720_v44 = vrot.slane %v2719_v37, 2  ;;  %v2727_v16 = vrot.slane %v2726_v38, 4  ;;  %v2776_v42 = vadd.f32 %v2772_v4, %v2768_v10  ;;  %v2833_v62 = vld [vmem:[#allocation3 + $0x201] sm:$0xff]  ;;  %4372 = vmatpush3.msra.mxu0 %v3533_v53  ;;  %v2834_v3 = vld [vmem:[#allocation3 + $0x209] sm:$0x3]  ;;  %4409 = vmatpush3.msra.mxu1 %v3564_v57  ;;  %v3562_v10 = vld [vmem:[%s7159_s4 + $0x120] sm:$0xff] }
 0x20f   :  { %v2688_v9 = vrot.slane %v2685_v39, 7  ;;  %v2603_v47 = vmax.f32 %v2601_v36, %v2602_v40  ;;  %v2777_v48 = vsel %vm875_vm3, %v2773_v6, -inf  ;;  %v2778_v11 = vsel %vm1570_vm5, %v2774_v13, -inf  ;;  %4373 = vmatprep.subr.mxu0 %v3548_v58  ;;  %v3547_v36 = vld [vmem:[%s7159_s4 + $0xa8] sm:$0xff]  ;;  %v2828_v5 = vld [vmem:[#allocation2 + $0xd0] sm:$0x3]  ;;  %4410 = vmatprep.subr.mxu1 %v3579_v31 }
 0x210   :  { %v2606_v52 = vmax.f32 %v2604_v43, 0.0  ;;  %v2721_v17 = vmax.f32 %v2719_v37, %v2720_v44  ;;  %v2728_v33 = vmax.f32 %v2726_v38, %v2727_v16  ;;  %v2779_v18 = vmax.f32 %v2777_v48, %v2778_v11  ;;  %4374 = vmatpush3.msra.mxu0 %v3532_v26  ;;  %v3531_v38 = vld [vmem:[%s7159_s4 + $0x28] sm:$0xff]  ;;  %v3578_v6 = vld [vmem:[%s7159_s4 + $0x1a0] sm:$0xff]  ;;  %v3561_v49 = vld [vmem:[%s7159_s4 + $0x118] sm:$0xff] }
 0x211   :  { %v2689_v21 = vsel %vm1619_vm6, %v2688_v9, %v2678_v35  ;;  %v2605_v55 = vadd.f32 %v6518_v51, %v2603_v47  ;;  %v2786_v56 = vsel %vm875_vm3, %v2775_v41, -inf  ;;  %v2787_v23 = vsel %vm1570_vm5, %v2776_v42, -inf  ;;  %v3563_v35 = vld [vmem:[%s7159_s4 + $0x128] sm:$0xff]  ;;  %v3546_v13 = vld [vmem:[%s7159_s4 + $0xa0] sm:$0xff]  ;;  %4375 = vmatprep.subr.mxu0 %v3547_v36  ;;  %v3545_v53 = vld [vmem:[%s7159_s4 + $0x98] sm:$0xff] }
 0x212   :  { %v2690_v27 = vsel %vm1621_vm7, %v2688_v9, %v2689_v21  ;;  %v2616_v60 = vrot.slane %v2606_v52, %v6313_v46  ;;  %v2722_v29 = vrot.slane %v2721_v17, 1  ;;  %v2729_v30 = vrot.slane %v2728_v33, 2  ;;  %v2830_v39 = vld [vmem:[#allocation2 + $0x208] sm:$0x3]  ;;  %4411 = vmatpush3.msra.mxu1 %v3563_v35  ;;  %v3530_v42 = vld [vmem:[%s7159_s4 + $0x20] sm:$0xff]  ;;  %4376 = vmatpush3.msra.mxu0 %v3531_v38 }
 0x213   :  { %v2691_v32 = vsel %vm1623_vm8, %v2688_v9, %v2690_v27  ;;  %v2607_v63 = vmax.f32 %v2605_v55, 0.0  ;;  %v2780_v0 = vrot.slane %v2779_v18, 4  ;;  %v2788_v34 = vmax.f32 %v2786_v56, %v2787_v23  ;;  %4412 = vmatprep.subr.mxu1 %v3578_v6  ;;  %4377 = vmatprep.subr.mxu0 %v3546_v13  ;;  %v2894_v23 = vld [vmem:[#allocation3 + $0xdb] sm:$0x3]  ;;  %v2890_v31 = vld [vmem:[#allocation2 + $0xda] sm:$0x3] }
 0x214   :  { %v2692_v19 = vsel %vm1625_vm9, %v2688_v9, %v2691_v32  ;;  %v2723_v28 = vmax.f32 %v2721_v17, %v2722_v29  ;;  %v2730_v4 = vmax.f32 %v2728_v33, %v2729_v30  ;;  %v2835_v37 = vadd.f32 %v2831_v12, %v2827_v24  ;;  %4413 = vmatpush3.msra.mxu1 %v3562_v10  ;;  %v3529_v24 = vld [vmem:[%s7159_s4 + $0x18] sm:$0xff]  ;;  %v2896_v30 = vld [vmem:[#allocation3 + $0x213] sm:$0x3] }
 0x215   :  { %2693 = vrot.lane.b32.xlu0 %v2692_v19, %s5067_s25  ;;  %v2623_v7 = vrot.slane %v2607_v63, %v6313_v46  ;;  %v2781_v22 = vmax.f32 %v2779_v18, %v2780_v0  ;;  %v2789_v25 = vrot.slane %v2788_v34, 4  ;;  %v2836_v40 = vadd.f32 %v2832_v61, %v2828_v5  ;;  %4378 = vmatpush3.msra.mxu0 %v3530_v42  ;;  %v3577_v18 = vld [vmem:[%s7159_s4 + $0x198] sm:$0xff] }
 0x216   :  { %v2731_v41 = vrot.slane %v2730_v4, 1  ;;  %v2733_v43 = vadd.f32 %v6518_v51, %v2723_v28  ;;  %v2837_v44 = vadd.f32 %v2833_v62, %v2829_v2  ;;  %v2838_v16 = vadd.f32 %v2834_v3, %v2830_v39  ;;  %4414 = vmatprep.subr.mxu1 %v3577_v18  ;;  %4379 = vmatprep.subr.mxu0 %v3545_v53  ;;  %v2895_v29 = vld [vmem:[#allocation3 + $0x20b] sm:$0xff]  ;;  %v2891_v2 = vld [vmem:[#allocation2 + $0x20a] sm:$0xff]  ;;  %v2892_v3 = vld [vmem:[#allocation2 + $0x212] sm:$0x3] }
 0x217   :  { %v2626_v45 = vrot.slane %v2623_v7, 7  ;;  %v2782_v8 = vrot.slane %v2781_v22, 2  ;;  %v2790_v9 = vmax.f32 %v2788_v34, %v2789_v25  ;;  %v2839_v47 = vsel %vm875_vm3, %v2835_v37, -inf  ;;  %4415 = vmatpush3.msra.mxu1 %v3561_v49  ;;  %4380 = vmatpush3.msra.mxu0 %v3529_v24  ;;  %v6764_v37 = vld [vmem:[%s7158_s3] ss:$0 sm:$0xff]  ;;  %v2960_v25 = vld [vmem:[#allocation3 + $0xdd] sm:$0xff] }
 0x218   :  { %v2732_v48 = vmax.f32 %v2730_v4, %v2731_v41  ;;  %v2735_v11 = vmax.f32 %v2733_v43, 0.0  ;;  %v2840_v12 = vsel %vm1570_vm5, %v2836_v40, -inf  ;;  %v2848_v50 = vsel %vm875_vm3, %v2837_v44, -inf  ;;  %v3544_v41 = vld [vmem:[%s7159_s4 + $0x90] sm:$0xff]  ;;  %v3543_v44 = vld [vmem:[%s7159_s4 + $0x88] sm:$0xff] }
 0x219   :  { %v2627_v15 = vsel %vm1619_vm6, %v2626_v45, %v2616_v60  ;;  %v2783_v52 = vmax.f32 %v2781_v22, %v2782_v8  ;;  %v2791_v17 = vrot.slane %v2790_v9, 2  ;;  %v2841_v33 = vmax.f32 %v2839_v47, %v2840_v12  ;;  %v2889_v60 = vld [vmem:[#allocation2 + $0xd2] sm:$0xff]  ;;  %v2956_v22 = vld [vmem:[#allocation2 + $0xdc] sm:$0xff]  ;;  %4381 = vmatprep.subr.mxu0 %v3544_v41  ;;  %v3527_v47 = vld [vmem:[%s7159_s4 + $0x8] sm:$0xff] }
 0x21a   :  { %v2628_v54 = vsel %vm1621_vm7, %v2626_v45, %v2627_v15  ;;  %v2734_v21 = vadd.f32 %v6518_v51, %v2732_v48  ;;  %v2745_v55 = vrot.slane %v2735_v11, %v6313_v46  ;;  %v2849_v56 = vsel %vm1570_vm5, %v2838_v16, -inf  ;;  %v3528_v43 = vld [vmem:[%s7159_s4 + $0x10] sm:$0xff]  ;;  %v2962_v49 = vld [vmem:[#allocation3 + $0x215] sm:$0xff] }
 0x21b   :  { %v2629_v57 = vsel %vm1623_vm8, %v2626_v45, %v2628_v54  ;;  %v2784_v58 = vrot.slane %v2783_v52, 1  ;;  %v2792_v26 = vmax.f32 %v2790_v9, %v2791_v17  ;;  %v2842_v27 = vrot.slane %v2841_v33, 4  ;;  %v3576_v9 = vld [vmem:[%s7159_s4 + $0x190] sm:$0xff]  ;;  %4382 = vmatpush3.msra.mxu0 %v3528_v43 }
 0x21c   :  { %v2630_v51 = vsel %vm1625_vm9, %v2626_v45, %v2629_v57  ;;  %v2736_v61 = vmax.f32 %v2734_v21, 0.0  ;;  %v2850_v62 = vmax.f32 %v2848_v50, %v2849_v56  ;;  %v2897_v32 = vadd.f32 %v2893_v14, %v2889_v60  ;;  %v3560_v48 = vld [vmem:[%s7159_s4 + $0x110] sm:$0xff]  ;;  %4416 = vmatprep.subr.mxu1 %v3576_v9  ;;  %4383 = vmatprep.subr.mxu0 %v3543_v44  ;;  %v2957_v56 = vld [vmem:[#allocation2 + $0xe4] sm:$0x3] }
 0x21d   :  { %2631 = vrot.lane.b32.xlu0 %v2630_v51, %s5068_s1  ;;  %v2785_v63 = vmax.f32 %v2783_v52, %v2784_v58  ;;  %v2793_v0 = vrot.slane %v2792_v26, 1  ;;  %v2843_v34 = vmax.f32 %v2841_v33, %v2842_v27  ;;  %v2898_v35 = vadd.f32 %v2894_v23, %v2890_v31  ;;  %v2961_v14 = vld [vmem:[#allocation3 + $0xe5] sm:$0x3]  ;;  %4417 = vmatpush3.msra.mxu1 %v3560_v48  ;;  %v2963_v23 = vld [vmem:[#allocation3 + $0x21d] sm:$0x3] }
 0x21e   :  { %v2752_v36 = vrot.slane %v2736_v61, %v6313_v46  ;;  %v2851_v19 = vrot.slane %v2850_v62, 4  ;;  %v2899_v28 = vadd.f32 %v2895_v29, %v2891_v2  ;;  %v2900_v4 = vadd.f32 %v2896_v30, %v2892_v3  ;;  %4384 = vmatpush3.msra.mxu0 %v3527_v47  ;;  %v2959_v51 = vld [vmem:[#allocation2 + $0x21c] sm:$0x3] }
 0x21f   :  { %v2794_v5 = vmax.f32 %v2792_v26, %v2793_v0  ;;  %v2795_v38 = vadd.f32 %v6764_v37, %v2785_v63  ;;  %v2844_v6 = vrot.slane %v2843_v34, 2  ;;  %v2901_v7 = vsel %vm875_vm3, %v2897_v32, -inf  ;;  %v2958_v26 = vld [vmem:[#allocation2 + $0x214] sm:$0xff] }
 0x220   :  { %v2755_v39 = vrot.slane %v2752_v36, 7  ;;  %v2852_v40 = vmax.f32 %v2850_v62, %v2851_v19  ;;  %v2902_v10 = vsel %vm1570_vm5, %v2898_v35, -inf  ;;  %v2910_v13 = vsel %vm875_vm3, %v2899_v28, -inf  ;;  %v3022_v35 = vld [vmem:[#allocation3 + $0xe7] sm:$0xff] }
 0x221   :  { %v2796_v16 = vadd.f32 %v6764_v37, %v2794_v5  ;;  %v2797_v42 = vmax.f32 %v2795_v38, 0.0  ;;  %v2845_v45 = vmax.f32 %v2843_v34, %v2844_v6  ;;  %v2903_v8 = vmax.f32 %v2901_v7, %v2902_v10  ;;  %v3542_v5 = vld [vmem:[%s7159_s4 + $0x80] sm:$0xff]  ;;  %v3575_v38 = vld [vmem:[%s7159_s4 + $0x188] sm:$0xff] }
 0x222   :  { %v2756_v11 = vsel %vm1619_vm6, %v2755_v39, %v2745_v55  ;;  %v2853_v12 = vrot.slane %v2852_v40, 2  ;;  %v2911_v50 = vsel %vm1570_vm5, %v2900_v4, -inf  ;;  %v2964_v15 = vadd.f32 %v2960_v25, %v2956_v22  ;;  %v3526_v6 = vld [vmem:[%s7159_s4] sm:$0xff]  ;;  %4385 = vmatprep.subr.mxu0 %v3542_v5  ;;  %4418 = vmatprep.subr.mxu1 %v3575_v38  ;;  %v3559_v10 = vld [vmem:[%s7159_s4 + $0x108] sm:$0xff] }
 0x223   :  { %v2757_v52 = vsel %vm1621_vm7, %v2755_v39, %v2756_v11  ;;  %v2798_v17 = vmax.f32 %v2796_v16, 0.0  ;;  %v2807_v33 = vrot.slane %v2797_v42, %v6313_v46  ;;  %v2846_v18 = vrot.slane %v2845_v45, 1  ;;  %v3018_v42 = vld [vmem:[#allocation2 + $0xe6] sm:$0xff]  ;;  %4386 = vmatpush3.msra.mxu0 %v3526_v6  ;;  %4419 = vmatpush3.msra.mxu1 %v3559_v10 }
 0x224   :  { %v2758_v53 = vsel %vm1623_vm8, %v2755_v39, %v2757_v52  ;;  %v2854_v54 = vmax.f32 %v2852_v40, %v2853_v12  ;;  %v2904_v21 = vrot.slane %v2903_v8, 4  ;;  %v2912_v55 = vmax.f32 %v2910_v13, %v2911_v50  ;;  %v3023_v40 = vld [vmem:[#allocation3 + $0xef] sm:$0x3]  ;;  %v3019_v12 = vld [vmem:[#allocation2 + $0xee] sm:$0x3] }
 0x225   :  { %v2759_v24 = vsel %vm1625_vm9, %v2755_v39, %v2758_v53  ;;  %v2814_v57 = vrot.slane %v2798_v17, %v6313_v46  ;;  %v2847_v58 = vmax.f32 %v2845_v45, %v2846_v18  ;;  %v2965_v27 = vadd.f32 %v2961_v14, %v2957_v56  ;;  %v3574_v13 = vld [vmem:[%s7159_s4 + $0x180] sm:$0xff]  ;;  %v3024_v45 = vld [vmem:[#allocation3 + $0x21f] sm:$0xff]  ;;  %v3025_v50 = vld [vmem:[#allocation3 + $0x227] sm:$0x3] }
 0x226   :  { %2760 = vrot.lane.b32.xlu1 %v2759_v24, %s5069_s28  ;;  %v2855_v60 = vrot.slane %v2854_v54, 1  ;;  %v2905_v29 = vmax.f32 %v2903_v8, %v2904_v21  ;;  %v2913_v30 = vrot.slane %v2912_v55, 4  ;;  %v2966_v61 = vadd.f32 %v2962_v49, %v2958_v26  ;;  %v3558_v8 = vld [vmem:[%s7159_s4 + $0x100] sm:$0xff]  ;;  %4420 = vmatprep.subr.mxu1 %v3574_v13  ;;  %s5081_s28 = smov 4  }
 0x227   :  { %v2817_v62 = vrot.slane %v2814_v57, 7  ;;  %v2857_v31 = vadd.f32 %v6764_v37, %v2847_v58  ;;  %v2967_v32 = vadd.f32 %v2963_v23, %v2959_v51  ;;  %v2968_v63 = vsel %vm875_vm3, %v2964_v15, -inf  ;;  %v3020_v52 = vld [vmem:[#allocation2 + $0x21e] sm:$0xff]  ;;  %4421 = vmatpush3.msra.mxu1 %v3558_v8 }
 0x228   :  { %v2856_v0 = vmax.f32 %v2854_v54, %v2855_v60  ;;  %v2906_v34 = vrot.slane %v2905_v29, 2  ;;  %v2914_v2 = vmax.f32 %v2912_v55, %v2913_v30  ;;  %v2969_v3 = vsel %vm1570_vm5, %v2965_v27, -inf  ;;  %v3021_v54 = vld [vmem:[#allocation2 + $0x226] sm:$0x3]  ;;  %3909 = vmatprep.subr.mxu1 %v5049_v1 }
 0x229   :  { %v2818_v36 = vsel %vm1619_vm6, %v2817_v62, %v2807_v33  ;;  %v2859_v19 = vmax.f32 %v2857_v31, 0.0  ;;  %v2970_v28 = vmax.f32 %v2968_v63, %v2969_v3  ;;  %v2977_v4 = vsel %vm875_vm3, %v2966_v61, -inf }
 0x22a   :  { %v2819_v7 = vsel %vm1621_vm7, %v2817_v62, %v2818_v36  ;;  %v2858_v22 = vadd.f32 %v6764_v37, %v2856_v0  ;;  %v2907_v25 = vmax.f32 %v2905_v29, %v2906_v34  ;;  %v2915_v39 = vrot.slane %v2914_v2, 2 }
 0x22b   :  { %v2820_v41 = vsel %vm1623_vm8, %v2817_v62, %v2819_v7  ;;  %v2869_v43 = vrot.slane %v2859_v19, %v6313_v46  ;;  %v2971_v44 = vrot.slane %v2970_v28, 4  ;;  %v2978_v16 = vsel %vm1570_vm5, %v2967_v32, -inf }
 0x22c   :  { %v2821_v9 = vsel %vm1625_vm9, %v2817_v62, %v2820_v41  ;;  %v2860_v47 = vmax.f32 %v2858_v22, 0.0  ;;  %v2908_v48 = vrot.slane %v2907_v25, 1  ;;  %v2916_v11 = vmax.f32 %v2914_v2, %v2915_v39 }
 0x22d   :  { %2822 = vrot.lane.b32.xlu1 %v2821_v9, %s5070_s15  ;;  %v2972_v14 = vmax.f32 %v2970_v28, %v2971_v44  ;;  %v2979_v15 = vmax.f32 %v2977_v4, %v2978_v16  ;;  %v3026_v17 = vadd.f32 %v3022_v35, %v3018_v42  ;;  %v3027_v33 = vadd.f32 %v3023_v40, %v3019_v12  ;;  %v3080_v42 = vld [vmem:[#allocation2 + $0xf0] sm:$0xff] }
 0x22e   :  { %v2876_v18 = vrot.slane %v2860_v47, %v6313_v46  ;;  %v2909_v49 = vmax.f32 %v2907_v25, %v2908_v48  ;;  %v2917_v53 = vrot.slane %v2916_v11, 1  ;;  %v3028_v21 = vadd.f32 %v3024_v45, %v3020_v52  ;;  %v3084_v25 = vld [vmem:[#allocation3 + $0xf1] sm:$0xff] }
 0x22f   :  { %v2973_v55 = vrot.slane %v2972_v14, 2  ;;  %v2980_v56 = vrot.slane %v2979_v15, 4  ;;  %v3029_v23 = vadd.f32 %v3025_v50, %v3021_v54  ;;  %v3030_v24 = vsel %vm875_vm3, %v3026_v17, -inf  ;;  %v3086_v50 = vld [vmem:[#allocation3 + $0x229] sm:$0xff] }
 0x230   :  { %v2879_v57 = vrot.slane %v2876_v18, 7  ;;  %v2918_v58 = vmax.f32 %v2916_v11, %v2917_v53  ;;  %v2919_v26 = vadd.f32 %v6764_v37, %v2909_v49  ;;  %v3031_v27 = vsel %vm1570_vm5, %v3027_v33, -inf  ;;  %v3081_v33 = vld [vmem:[#allocation2 + $0xf8] sm:$0x3]  ;;  %v3087_v18 = vld [vmem:[#allocation3 + $0x231] sm:$0x3] }
 0x231   :  { %v2974_v60 = vmax.f32 %v2972_v14, %v2973_v55  ;;  %v2981_v29 = vmax.f32 %v2979_v15, %v2980_v56  ;;  %v3032_v30 = vmax.f32 %v3030_v24, %v3031_v27  ;;  %v3039_v51 = vsel %vm875_vm3, %v3028_v21, -inf  ;;  %v3082_v21 = vld [vmem:[#allocation2 + $0x228] sm:$0xff] }
 0x232   :  { %v2880_v61 = vsel %vm1619_vm6, %v2879_v57, %v2869_v43  ;;  %v2920_v62 = vadd.f32 %v6764_v37, %v2918_v58  ;;  %v2921_v31 = vmax.f32 %v2919_v26, 0.0  ;;  %v3040_v32 = vsel %vm1570_vm5, %v3029_v23, -inf }
 0x233   :  { %v2881_v63 = vsel %vm1621_vm7, %v2879_v57, %v2880_v61  ;;  %v2975_v0 = vrot.slane %v2974_v60, 1  ;;  %v2982_v34 = vrot.slane %v2981_v29, 2  ;;  %v3033_v2 = vrot.slane %v3032_v30, 4 }
 0x234   :  { %v2882_v3 = vsel %vm1623_vm8, %v2879_v57, %v2881_v63  ;;  %v2922_v35 = vmax.f32 %v2920_v62, 0.0  ;;  %v3041_v36 = vmax.f32 %v3039_v51, %v3040_v32  ;;  %v1594_v7 = vadd.f32 %v6764_v37, %v6322_v59  ;;  %v3085_v59 = vld [vmem:[#allocation3 + $0xf9] sm:$0x3]  ;;  %v1687_v63 = vpop.permute.xlu0 %1686 }
 0x235   :  { %v2883_v19 = vsel %vm1625_vm9, %v2879_v57, %v2882_v3  ;;  %v2976_v28 = vmax.f32 %v2974_v60, %v2975_v0  ;;  %v2983_v4 = vmax.f32 %v2981_v29, %v2982_v34  ;;  %v3034_v5 = vmax.f32 %v3032_v30, %v3033_v2  ;;  %v3083_v57 = vld [vmem:[#allocation2 + $0x230] sm:$0x3]  ;;  %v3147_v3 = vld [vmem:[#allocation3 + $0x103] sm:$0x3] }
 0x236   :  { %2884 = vrot.lane.b32.xlu0 %v2883_v19, %s5071_s16  ;;  %v2938_v38 = vrot.slane %v2922_v35, %v6313_v46  ;;  %v3042_v6 = vrot.slane %v3041_v36, 4  ;;  %v1595_v22 = vadd.f32 %v6764_v37, %v6319_v20  ;;  %v2931_v39 = vrot.slane %v2921_v31, %v6313_v46  ;;  %v3146_v2 = vld [vmem:[#allocation3 + $0xfb] sm:$0xff] }
 0x237   :  { %v2984_v40 = vrot.slane %v2983_v4, 1  ;;  %v2986_v10 = vadd.f32 %v6764_v37, %v2976_v28  ;;  %v3035_v13 = vrot.slane %v3034_v5, 2  ;;  %v1596_v44 = vmax.f32 %v1594_v7, 0.0 }
 0x238   :  { %v2941_v41 = vrot.slane %v2938_v38, 7  ;;  %v3043_v43 = vmax.f32 %v3041_v36, %v3042_v6  ;;  %v1597_v16 = vmax.f32 %v1595_v22, 0.0  ;;  %v3088_v47 = vadd.f32 %v3084_v25, %v3080_v42  ;;  %v3142_v22 = vld [vmem:[#allocation2 + $0xfa] sm:$0xff]  ;;  %v3148_v25 = vld [vmem:[#allocation3 + $0x233] sm:$0xff] }
 0x239   :  { %v2985_v45 = vmax.f32 %v2983_v4, %v2984_v40  ;;  %v2988_v8 = vmax.f32 %v2986_v10, 0.0  ;;  %v3036_v9 = vmax.f32 %v3034_v5, %v3035_v13  ;;  %v1606_v11 = vrot.slane %v1596_v44, %v6313_v46  ;;  %v1749_v4 = vpop.permute.xlu1 %1748  ;;  %v3143_v5 = vld [vmem:[#allocation2 + $0x102] sm:$0x3]  ;;  %v3144_v13 = vld [vmem:[#allocation2 + $0x232] sm:$0xff] }
 0x23a   :  { %v2942_v20 = vsel %vm1619_vm6, %v2941_v41, %v2931_v39  ;;  %v3044_v48 = vrot.slane %v3043_v43, 2  ;;  %v1613_v12 = vrot.slane %v1597_v16, %v6313_v46  ;;  %v3089_v55 = vadd.f32 %v3085_v59, %v3081_v33  ;;  %v3149_v39 = vld [vmem:[#allocation3 + $0x23b] sm:$0x3]  ;;  %v3216_v33 = vld [vmem:[#allocation3 + $0x245] sm:$0x3] }
 0x23b   :  { %v2943_v14 = vsel %vm1621_vm7, %v2941_v41, %v2942_v20  ;;  %v2987_v15 = vadd.f32 %v6764_v37, %v2985_v45  ;;  %v2998_v52 = vrot.slane %v2988_v8, %v6313_v46  ;;  %v3037_v17 = vrot.slane %v3036_v9, 1  ;;  %v3145_v8 = vld [vmem:[#allocation2 + $0x23a] sm:$0x3] }
 0x23c   :  { %v2944_v49 = vsel %vm1623_vm8, %v2941_v41, %v2943_v14  ;;  %v3045_v53 = vmax.f32 %v3043_v43, %v3044_v48  ;;  %v1618_v54 = vrot.slane %v1613_v12, 7  ;;  %v3090_v58 = vadd.f32 %v3086_v50, %v3082_v21 }
 0x23d   :  { %v2945_v56 = vsel %vm1625_vm9, %v2941_v41, %v2944_v49  ;;  %v2989_v23 = vmax.f32 %v2987_v15, 0.0  ;;  %v3038_v24 = vmax.f32 %v3036_v9, %v3037_v17  ;;  %v3091_v60 = vadd.f32 %v3087_v18, %v3083_v57  ;;  %v3213_v9 = vld [vmem:[#allocation3 + $0x105] sm:$0xff]  ;;  %v3215_v17 = vld [vmem:[#allocation3 + $0x23d] sm:$0xff] }
 0x23e   :  { %2946 = vrot.lane.b32.xlu0 %v2945_v56, %s5072_s17  ;;  %v3046_v26 = vrot.slane %v3045_v53, 1  ;;  %v1620_v27 = vsel %vm1619_vm6, %v1618_v54, %v1606_v11  ;;  %v3092_v29 = vsel %vm875_vm3, %v3088_v47, -inf  ;;  %v3093_v62 = vsel %vm1570_vm5, %v3089_v55, -inf  ;;  %v3209_v11 = vld [vmem:[#allocation2 + $0x104] sm:$0xff]  ;;  %v3210_v57 = vld [vmem:[#allocation2 + $0x10c] sm:$0x3] }
 0x23f   :  { %v3005_v30 = vrot.slane %v2989_v23, %v6313_v46  ;;  %v3048_v51 = vadd.f32 %v6764_v37, %v3038_v24  ;;  %v1622_v61 = vsel %vm1621_vm7, %v1618_v54, %v1620_v27  ;;  %v3094_v0 = vmax.f32 %v3092_v29, %v3093_v62 }
 0x240   :  { %v3047_v31 = vmax.f32 %v3045_v53, %v3046_v26  ;;  %v1624_v32 = vsel %vm1623_vm8, %v1618_v54, %v1622_v61  ;;  %v3101_v34 = vsel %vm875_vm3, %v3090_v58, -inf  ;;  %v3102_v28 = vsel %vm1570_vm5, %v3091_v60, -inf  ;;  %v3212_v58 = vld [vmem:[#allocation2 + $0x244] sm:$0x3] }
 0x241   :  { %v3008_v35 = vrot.slane %v3005_v30, 7  ;;  %v3050_v36 = vmax.f32 %v3048_v51, 0.0  ;;  %v1626_v19 = vsel %vm1625_vm9, %v1618_v54, %v1624_v32  ;;  %v3095_v6 = vrot.slane %v3094_v0, 4  ;;  %v3211_v54 = vld [vmem:[#allocation2 + $0x23c] sm:$0xff] }
 0x242   :  { %v3049_v38 = vadd.f32 %v6764_v37, %v3047_v31  ;;  %1628 = vst.msk [vmem:[#allocation4] sm:$0x3] %vm1570_vm5, %v1626_v19  ;;  %v3103_v7 = vmax.f32 %v3101_v34, %v3102_v28  ;;  %v3150_v41 = vadd.f32 %v3146_v2, %v3142_v22  ;;  %v3151_v43 = vadd.f32 %v3147_v3, %v3143_v5  ;;  %v1811_v5 = vpop.permute.xlu1 %1810 }
 0x243   :  { %v3009_v40 = vsel %vm1619_vm6, %v3008_v35, %v2998_v52  ;;  %v3060_v10 = vrot.slane %v3050_v36, %v6313_v46  ;;  %1690 = vst.msk [vmem:[#allocation4] sm:$0x3] %vm1689_vm10, %v1687_v63  ;;  %v3096_v42 = vmax.f32 %v3094_v0, %v3095_v6  ;;  %v3152_v47 = vadd.f32 %v3148_v25, %v3144_v13  ;;  %v3214_v52 = vld [vmem:[#allocation3 + $0x10d] sm:$0x3]  ;;  %v1873_v25 = vpop.permute.xlu0 %1872  ;;  %v3275_v13 = vld [vmem:[#allocation3 + $0x10f] sm:$0xff] }
 0x244   :  { %v3010_v44 = vsel %vm1621_vm7, %v3008_v35, %v3009_v40  ;;  %v3051_v16 = vmax.f32 %v3049_v38, 0.0  ;;  %v3104_v45 = vrot.slane %v3103_v7, 4  ;;  %1752 = vst.msk [vmem:[#allocation4] sm:$0x3] %vm1751_vm11, %v1749_v4  ;;  %v3153_v20 = vadd.f32 %v3149_v39, %v3145_v8 }
 0x245   :  { %v3011_v59 = vsel %vm1623_vm8, %v3008_v35, %v3010_v44  ;;  %v3154_v48 = vsel %vm875_vm3, %v3150_v41, -inf  ;;  %v3097_v14 = vrot.slane %v3096_v42, 2  ;;  %v3155_v18 = vsel %vm1570_vm5, %v3151_v43, -inf  ;;  %1814 = vst.msk [vmem:[#allocation4] sm:$0x3] %vm1813_vm12, %v1811_v5 }
 0x246   :  { %v3012_v12 = vsel %vm1625_vm9, %v3008_v35, %v3011_v59  ;;  %v3067_v50 = vrot.slane %v3051_v16, %v6313_v46  ;;  %v3105_v15 = vmax.f32 %v3103_v7, %v3104_v45  ;;  %v3163_v49 = vsel %vm875_vm3, %v3152_v47, -inf  ;;  %v3276_v59 = vld [vmem:[#allocation3 + $0x117] sm:$0x3]  ;;  %v3277_v47 = vld [vmem:[#allocation3 + $0x247] sm:$0xff] }
 0x247   :  { %3013 = vrot.lane.b32.xlu1 %v3012_v12, %s5073_s18  ;;  %v3164_v53 = vsel %vm1570_vm5, %v3153_v20, -inf  ;;  %v3217_v21 = vadd.f32 %v3213_v9, %v3209_v11  ;;  %v3098_v56 = vmax.f32 %v3096_v42, %v3097_v14  ;;  %v3156_v24 = vmax.f32 %v3154_v48, %v3155_v18  ;;  %v3271_v9 = vld [vmem:[#allocation2 + $0x10e] sm:$0xff]  ;;  %v3278_v12 = vld [vmem:[#allocation3 + $0x24f] sm:$0x3]  ;;  %v3273_v18 = vld [vmem:[#allocation2 + $0x246] sm:$0xff] }
 0x248   :  { %v3070_v55 = vrot.slane %v3067_v50, 7  ;;  %v3106_v23 = vrot.slane %v3105_v15, 2  ;;  %v3165_v26 = vmax.f32 %v3163_v49, %v3164_v53  ;;  %v3218_v27 = vadd.f32 %v3214_v52, %v3210_v57 }
 0x249   :  { %v3219_v60 = vadd.f32 %v3215_v17, %v3211_v54  ;;  %v3220_v29 = vadd.f32 %v3216_v33, %v3212_v58  ;;  %v3099_v51 = vrot.slane %v3098_v56, 1  ;;  %v3157_v62 = vrot.slane %v3156_v24, 4  ;;  %v3272_v33 = vld [vmem:[#allocation2 + $0x116] sm:$0x3]  ;;  %v3274_v54 = vld [vmem:[#allocation2 + $0x24e] sm:$0x3] }
 0x24a   :  { %v3071_v30 = vsel %vm1619_vm6, %v3070_v55, %v3060_v10  ;;  %v3107_v61 = vmax.f32 %v3105_v15, %v3106_v23  ;;  %v3166_v32 = vrot.slane %v3165_v26, 4  ;;  %v3221_v63 = vsel %vm875_vm3, %v3217_v21, -inf }
 0x24b   :  { %v3072_v31 = vsel %vm1621_vm7, %v3070_v55, %v3071_v30  ;;  %v3222_v0 = vsel %vm1570_vm5, %v3218_v27, -inf  ;;  %v3100_v2 = vmax.f32 %v3098_v56, %v3099_v51  ;;  %v3158_v35 = vmax.f32 %v3156_v24, %v3157_v62  ;;  %v1940_v62 = vpop.permute.xlu0 %1939 }
 0x24c   :  { %v3073_v34 = vsel %vm1623_vm8, %v3070_v55, %v3072_v31  ;;  %v3108_v3 = vrot.slane %v3107_v61, 1  ;;  %v3167_v19 = vmax.f32 %v3165_v26, %v3166_v32  ;;  %v3223_v28 = vmax.f32 %v3221_v63, %v3222_v0 }
 0x24d   :  { %v3074_v36 = vsel %vm1625_vm9, %v3070_v55, %v3073_v34  ;;  %v3230_v4 = vsel %vm875_vm3, %v3219_v60, -inf  ;;  %v3110_v6 = vadd.f32 %v6764_v37, %v3100_v2  ;;  %v3159_v7 = vrot.slane %v3158_v35, 2 }
 0x24e   :  { %3075 = vrot.lane.b32.xlu1 %v3074_v36, %s5074_s19  ;;  %v3109_v38 = vmax.f32 %v3107_v61, %v3108_v3  ;;  %v3231_v22 = vsel %vm1570_vm5, %v3220_v29, -inf  ;;  %v3168_v39 = vrot.slane %v3167_v19, 2  ;;  %v3224_v40 = vrot.slane %v3223_v28, 4 }
 0x24f   :  { %v3232_v10 = vmax.f32 %v3230_v4, %v3231_v22  ;;  %v3112_v43 = vmax.f32 %v3110_v6, 0.0  ;;  %v3160_v44 = vmax.f32 %v3158_v35, %v3159_v7  ;;  %v1874_v8 = vrot.slane %v1873_v25, 6  ;;  %v3399_v22 = vld [vmem:[#allocation3 + $0x123] sm:$0xff] }
 0x250   :  { %v3111_v41 = vadd.f32 %v6764_v37, %v3109_v38  ;;  %v3169_v16 = vmax.f32 %v3167_v19, %v3168_v39  ;;  %v3225_v42 = vmax.f32 %v3223_v28, %v3224_v40  ;;  %v3279_v50 = vadd.f32 %v3275_v13, %v3271_v9  ;;  %v3400_v40 = vld [vmem:[#allocation3 + $0x12b] sm:$0x3]  ;;  %v3396_v9 = vld [vmem:[#allocation2 + $0x12a] sm:$0x3] }
 0x251   :  { %v3233_v45 = vrot.slane %v3232_v10, 4  ;;  %v3122_v48 = vrot.slane %v3112_v43, %v6313_v46  ;;  %v3161_v11 = vrot.slane %v3160_v44, 1  ;;  %v1876_v17 = vsel %vm1875_vm13, %v1874_v8, %v1873_v25 }
 0x252   :  { %v3113_v20 = vmax.f32 %v3111_v41, 0.0  ;;  %v3170_v14 = vrot.slane %v3169_v16, 1  ;;  %v3226_v15 = vrot.slane %v3225_v42, 2  ;;  %v3280_v21 = vadd.f32 %v3276_v59, %v3272_v33  ;;  %1881 = vst.msk [vmem:[#allocation4] sm:$0xf] %vm1880_vm1, %v1876_v17 }
 0x253   :  { %v3234_v52 = vmax.f32 %v3232_v10, %v3233_v45  ;;  %v3162_v53 = vmax.f32 %v3160_v44, %v3161_v11  ;;  %v3281_v55 = vadd.f32 %v3277_v47, %v3273_v18  ;;  %v3282_v57 = vadd.f32 %v3278_v12, %v3274_v54  ;;  %v3621_v10 = vld [vmem:[%s7159_s4 + $0x2f8] sm:$0xff]  ;;  %v2002_v44 = vpop.permute.xlu0 %2001  ;;  %v3402_v59 = vld [vmem:[#allocation3 + $0x263] sm:$0x3]  ;;  %1943 = vst.msk [vmem:[#allocation4 + $0x2] sm:$0x3] %vm1942_vm2, %v1940_v62 }
 0x254   :  { %v3129_v49 = vrot.slane %v3113_v20, %v6313_v46  ;;  %v3171_v56 = vmax.f32 %v3169_v16, %v3170_v14  ;;  %v3227_v23 = vmax.f32 %v3225_v42, %v3226_v15  ;;  %v3283_v27 = vsel %vm875_vm3, %v3279_v50, -inf  ;;  %v3395_v16 = vld [vmem:[#allocation2 + $0x122] sm:$0xff]  ;;  %v3401_v42 = vld [vmem:[#allocation3 + $0x25b] sm:$0xff]  ;;  %4425 = vmatprep.subr.mxu0 %v3621_v10  ;;  %v3397_v12 = vld [vmem:[#allocation2 + $0x25a] sm:$0xff] }
 0x255   :  { %v3235_v24 = vrot.slane %v3234_v52, 2  ;;  %v3172_v26 = vadd.f32 %v6764_v37, %v3162_v53  ;;  %v3284_v60 = vsel %vm1570_vm5, %v3280_v21, -inf  ;;  %v3292_v63 = vsel %vm875_vm3, %v3281_v55, -inf  ;;  %v3398_v33 = vld [vmem:[#allocation2 + $0x262] sm:$0x3]  ;;  %v3337_v21 = vld [vmem:[#allocation3 + $0x119] sm:$0xff] }
 0x256   :  { %v3132_v58 = vrot.slane %v3129_v49, 7  ;;  %v3173_v29 = vadd.f32 %v6764_v37, %v3171_v56  ;;  %v3228_v30 = vrot.slane %v3227_v23, 1  ;;  %v3285_v61 = vmax.f32 %v3283_v27, %v3284_v60 }
 0x257   :  { %v3236_v51 = vmax.f32 %v3234_v52, %v3235_v24  ;;  %v3174_v32 = vmax.f32 %v3172_v26, 0.0  ;;  %v3293_v0 = vsel %vm1570_vm5, %v3282_v57, -inf  ;;  %vm2004_vm4 = vcmask 664992   ;;  %v3338_v57 = vld [vmem:[#allocation3 + $0x121] sm:$0x3] }
 0x258   :  { %v3133_v31 = vsel %vm1619_vm6, %v3132_v58, %v3122_v48  ;;  %v3175_v2 = vmax.f32 %v3173_v29, 0.0  ;;  %v3229_v3 = vmax.f32 %v3227_v23, %v3228_v30  ;;  %v3286_v28 = vrot.slane %v3285_v61, 4  ;;  %2005 = vst.msk [vmem:[#allocation4 + $0x2] sm:$0x3] %vm2004_vm4, %v2002_v44  ;;  %v3333_v30 = vld [vmem:[#allocation2 + $0x118] sm:$0xff] }
 0x259   :  { %v3134_v34 = vsel %vm1621_vm7, %v3132_v58, %v3133_v31  ;;  %v3237_v35 = vrot.slane %v3236_v51, 1  ;;  %v3184_v19 = vrot.slane %v3174_v32, %v6313_v46  ;;  %v3294_v4 = vmax.f32 %v3292_v63, %v3293_v0  ;;  %v3334_v31 = vld [vmem:[#allocation2 + $0x120] sm:$0x3]  ;;  %v3335_v32 = vld [vmem:[#allocation2 + $0x250] sm:$0xff]  ;;  %v3340_v63 = vld [vmem:[#allocation3 + $0x259] sm:$0x3] }
 0x25a   :  { %v3135_v36 = vsel %vm1623_vm8, %v3132_v58, %v3134_v34  ;;  %v3191_v38 = vrot.slane %v3175_v2, %v6313_v46  ;;  %v3239_v7 = vadd.f32 %v6764_v37, %v3229_v3  ;;  %v3287_v25 = vmax.f32 %v3285_v61, %v3286_v28 }
 0x25b   :  { %v3136_v5 = vsel %vm1625_vm9, %v3132_v58, %v3135_v36  ;;  %v3238_v6 = vmax.f32 %v3236_v51, %v3237_v35  ;;  %v3295_v39 = vrot.slane %v3294_v4, 4  ;;  %v3403_v47 = vadd.f32 %v3399_v22, %v3395_v16  ;;  %v3339_v58 = vld [vmem:[#allocation3 + $0x251] sm:$0xff] }
 0x25c   :  { %3137 = vrot.lane.b32.xlu0 %v3136_v5, %s5075_s20  ;;  %v3194_v13 = vrot.slane %v3191_v38, 7  ;;  %v3241_v43 = vmax.f32 %v3239_v7, 0.0  ;;  %v3288_v45 = vrot.slane %v3287_v25, 2  ;;  %v3404_v50 = vadd.f32 %v3400_v40, %v3396_v9  ;;  %v3336_v5 = vld [vmem:[#allocation2 + $0x258] sm:$0x3] }
 0x25d   :  { %v3240_v41 = vadd.f32 %v6764_v37, %v3238_v6  ;;  %v3296_v8 = vmax.f32 %v3294_v4, %v3295_v39  ;;  %v3405_v18 = vadd.f32 %v3401_v42, %v3397_v12  ;;  %v3406_v53 = vadd.f32 %v3402_v59, %v3398_v33  ;;  %v3468_v9 = vld [vmem:[#allocation3 + $0x265] sm:$0xff]  ;;  %v3469_v12 = vld [vmem:[#allocation3 + $0x26d] sm:$0x3] }
 0x25e   :  { %v3195_v20 = vsel %vm1619_vm6, %v3194_v13, %v3184_v19  ;;  %v3251_v11 = vrot.slane %v3241_v43, %v6313_v46  ;;  %v3289_v15 = vmax.f32 %v3287_v25, %v3288_v45  ;;  %v3407_v54 = vsel %vm875_vm3, %v3403_v47, -inf  ;;  %v6922_v43 = vpop.permute.xlu1 %2063 }
 0x25f   :  { %v3242_v48 = vmax.f32 %v3240_v41, 0.0  ;;  %v3196_v14 = vsel %vm1621_vm7, %v3194_v13, %v3195_v20  ;;  %v3297_v52 = vrot.slane %v3296_v8, 2  ;;  %v3408_v24 = vsel %vm1570_vm5, %v3404_v50, -inf  ;;  %v3467_v41 = vld [vmem:[#allocation3 + $0x135] sm:$0x3] }
 0x260   :  { %v3197_v17 = vsel %vm1623_vm8, %v3194_v13, %v3196_v14  ;;  %v3290_v56 = vrot.slane %v3289_v15, 1  ;;  %v3409_v27 = vmax.f32 %v3407_v54, %v3408_v24  ;;  %v3416_v60 = vsel %vm875_vm3, %v3405_v18, -inf }
 0x261   :  { %v3258_v49 = vrot.slane %v3242_v48, %v6313_v46  ;;  %v3198_v55 = vsel %vm1625_vm9, %v3194_v13, %v3197_v17  ;;  %v3298_v23 = vmax.f32 %v3296_v8, %v3297_v52  ;;  %v3417_v29 = vsel %vm1570_vm5, %v3406_v53, -inf  ;;  %v3466_v13 = vld [vmem:[#allocation3 + $0x12d] sm:$0xff]  ;;  %v3462_v8 = vld [vmem:[#allocation2 + $0x12c] sm:$0xff] }
 0x262   :  { %3199 = vrot.lane.b32.xlu0 %v3198_v55, %s5076_s23  ;;  %v3291_v51 = vmax.f32 %v3289_v15, %v3290_v56  ;;  %v3418_v62 = vmax.f32 %v3416_v60, %v3417_v29  ;;  %v3341_v0 = vadd.f32 %v3337_v21, %v3333_v30  ;;  %v3410_v2 = vrot.slane %v3409_v27, 4  ;;  %v3464_v15 = vld [vmem:[#allocation2 + $0x264] sm:$0xff]  ;;  %v3465_v53 = vld [vmem:[#allocation2 + $0x26c] sm:$0x3] }
 0x263   :  { %v3261_v26 = vrot.slane %v3258_v49, 7  ;;  %v3299_v61 = vrot.slane %v3298_v23, 1  ;;  %v3342_v3 = vadd.f32 %v3338_v57, %v3334_v31  ;;  %v3343_v35 = vadd.f32 %v3339_v58, %v3335_v32 }
 0x264   :  { %v3301_v28 = vadd.f32 %v6764_v37, %v3291_v51  ;;  %v3419_v4 = vrot.slane %v3418_v62, 4  ;;  %v3411_v6 = vmax.f32 %v3409_v27, %v3410_v2  ;;  %v3344_v7 = vadd.f32 %v3340_v63, %v3336_v5  ;;  %v2126_v27 = vpop.permute.xlu1 %2125 }
 0x265   :  { %v3262_v34 = vsel %vm1619_vm6, %v3261_v26, %v3251_v11  ;;  %v3300_v19 = vmax.f32 %v3298_v23, %v3299_v61  ;;  %v3345_v22 = vsel %vm875_vm3, %v3341_v0, -inf  ;;  %v3346_v16 = vsel %vm1570_vm5, %v3342_v3, -inf  ;;  %v3463_v11 = vld [vmem:[#allocation2 + $0x134] sm:$0x3] }
 0x266   :  { %v3263_v36 = vsel %vm1621_vm7, %v3261_v26, %v3262_v34  ;;  %v3303_v40 = vmax.f32 %v3301_v28, 0.0  ;;  %v3420_v10 = vmax.f32 %v3418_v62, %v3419_v4  ;;  %v3412_v44 = vrot.slane %v3411_v6, 2  ;;  %v2193_v28 = vpop.permute.xlu0 %2192 }
 0x267   :  { %v3264_v38 = vsel %vm1623_vm8, %v3261_v26, %v3263_v36  ;;  %v3302_v39 = vadd.f32 %v6764_v37, %v3300_v19  ;;  %v3354_v42 = vsel %vm875_vm3, %v3343_v35, -inf  ;;  %v3355_v45 = vsel %vm1570_vm5, %v3344_v7, -inf }
 0x268   :  { %v3265_v25 = vsel %vm1625_vm9, %v3261_v26, %v3264_v38  ;;  %v3313_v47 = vrot.slane %v3303_v40, %v6313_v46  ;;  %v3421_v20 = vrot.slane %v3420_v10, 2  ;;  %v3347_v48 = vmax.f32 %v3345_v22, %v3346_v16  ;;  %v2317_v4 = vpop.permute.xlu1 %2316 }
 0x269   :  { %3266 = vrot.lane.b32.xlu1 %v3265_v25, %s5077_s24  ;;  %v3304_v59 = vmax.f32 %v3302_v39, 0.0  ;;  %v3413_v50 = vmax.f32 %v3411_v6, %v3412_v44  ;;  %v3356_v14 = vmax.f32 %v3354_v42, %v3355_v45  ;;  %v3470_v52 = vadd.f32 %v3466_v13, %v3462_v8 }
 0x26a   :  { %v3471_v33 = vadd.f32 %v3467_v41, %v3463_v11  ;;  %v3422_v17 = vmax.f32 %v3420_v10, %v3421_v20  ;;  %v3348_v49 = vrot.slane %v3347_v48, 4  ;;  %v3472_v54 = vadd.f32 %v3468_v9, %v3464_v15 }
 0x26b   :  { %v3320_v18 = vrot.slane %v3304_v59, %v6313_v46  ;;  %v3414_v21 = vrot.slane %v3413_v50, 1  ;;  %v3357_v55 = vrot.slane %v3356_v14, 4  ;;  %v3473_v56 = vadd.f32 %v3469_v12, %v3465_v53 }
 0x26c   :  { %v3474_v23 = vsel %vm875_vm3, %v3470_v52, -inf  ;;  %v3423_v57 = vrot.slane %v3422_v17, 1  ;;  %v3349_v58 = vmax.f32 %v3347_v48, %v3348_v49  ;;  %v3475_v26 = vsel %vm1570_vm5, %v3471_v33, -inf  ;;  %v2255_v48 = vpop.permute.xlu0 %2254  ;;  %v2379_v11 = vpop.permute.xlu1 %2378 }
 0x26d   :  { %v3323_v24 = vrot.slane %v3320_v18, 7  ;;  %v3415_v60 = vmax.f32 %v3413_v50, %v3414_v21  ;;  %v3358_v29 = vmax.f32 %v3356_v14, %v3357_v55  ;;  %v3476_v30 = vmax.f32 %v3474_v23, %v3475_v26  ;;  %v5026_v55 = vld [vmem:[%s7158_s3] ss:$0 sm:$0xff]  ;;  %s5080_s3 = smov 72  }
 0x26e   :  { %v3483_v51 = vsel %vm875_vm3, %v3472_v54, -inf  ;;  %v3424_v62 = vmax.f32 %v3422_v17, %v3423_v57  ;;  %v3350_v31 = vrot.slane %v3349_v58, 2  ;;  %v3484_v32 = vsel %vm1570_vm5, %v3473_v56, -inf }
 0x26f   :  { %v3324_v61 = vsel %vm1619_vm6, %v3323_v24, %v3313_v47  ;;  %v3425_v0 = vadd.f32 %v6764_v37, %v3415_v60  ;;  %v3359_v34 = vrot.slane %v3358_v29, 2  ;;  %v3477_v2 = vrot.slane %v3476_v30, 4 }
 0x270   :  { %v3325_v63 = vsel %vm1621_vm7, %v3323_v24, %v3324_v61  ;;  %v3426_v35 = vadd.f32 %v6764_v37, %v3424_v62  ;;  %v3351_v36 = vmax.f32 %v3349_v58, %v3350_v31  ;;  %v3485_v19 = vmax.f32 %v3483_v51, %v3484_v32  ;;  %v2446_v57 = vpop.permute.xlu0 %2445 }
 0x271   :  { %v3326_v3 = vsel %vm1623_vm8, %v3323_v24, %v3325_v63  ;;  %v3427_v38 = vmax.f32 %v3425_v0, 0.0  ;;  %v3360_v6 = vmax.f32 %v3358_v29, %v3359_v34  ;;  %v3478_v7 = vmax.f32 %v3476_v30, %v3477_v2 }
 0x272   :  { %v3327_v5 = vsel %vm1625_vm9, %v3323_v24, %v3326_v3  ;;  %v3428_v22 = vmax.f32 %v3426_v35, 0.0  ;;  %v3352_v25 = vrot.slane %v3351_v36, 1  ;;  %v3486_v39 = vrot.slane %v3485_v19, 4 }
 0x273   :  { %3328 = vrot.lane.b32.xlu1 %v3327_v5, %s5078_s0  ;;  %vm2066_vm3 = vcmask 910992   ;;  %v3437_v40 = vrot.slane %v3427_v38, %v6313_v46  ;;  %v3361_v10 = vrot.slane %v3360_v6, 1  ;;  %v3479_v13 = vrot.slane %v3478_v7, 2 }
 0x274   :  { %2067 = vst.msk [vmem:[#allocation4 + $0x2] sm:$0x3] %vm2066_vm3, %v6922_v43  ;;  %vm2128_vm5 = vcmask 916480   ;;  %v3444_v41 = vrot.slane %v3428_v22, %v6313_v46  ;;  %v3353_v44 = vmax.f32 %v3351_v36, %v3352_v25  ;;  %v3487_v16 = vmax.f32 %v3485_v19, %v3486_v39  ;;  %v3605_v39 = vld [vmem:[%s7159_s4 + $0x278] sm:$0xff] }
 0x275   :  { %v2127_v42 = vrot.slane %v2126_v27, 6  ;;  %v3362_v45 = vmax.f32 %v3360_v6, %v3361_v10  ;;  %v3480_v8 = vmax.f32 %v3478_v7, %v3479_v13  ;;  %vm2131_vm10 = vcmask 1042304   ;;  %v3620_v10 = vld [vmem:[%s7159_s4 + $0x2f0] sm:$0xff]  ;;  %v3637_v13 = vld [vmem:[%s7159_s4 + $0x378] sm:$0xff] }
 0x276   :  { %vm2132_vm11 = vcmask 109570   ;;  %v3447_v9 = vrot.slane %v3444_v41, 7  ;;  %v3363_v59 = vadd.f32 %v6764_v37, %v3353_v44  ;;  %v3488_v47 = vrot.slane %v3487_v16, 2  ;;  %v2508_v53 = vpop.permute.xlu1 %2507  ;;  %v3604_v41 = vld [vmem:[%s7159_s4 + $0x270] sm:$0xff] }
 0x277   :  { %v2129_v20 = vsel %vm2128_vm5, %v2127_v42, %v2126_v27  ;;  %vm2133_vm12 = vmor %vm2132_vm11, %vm2131_vm10  ;;  %v3364_v43 = vadd.f32 %v6764_v37, %v3362_v45  ;;  %v3481_v12 = vrot.slane %v3480_v8, 1  ;;  %vm2195_vm13 = vcmask 353392   ;;  %v3636_v42 = vld [vmem:[%s7159_s4 + $0x370] sm:$0xff]  ;;  %v3603_v45 = vld [vmem:[%s7159_s4 + $0x268] sm:$0xff] }
 0x278   :  { %2134 = vst.msk [vmem:[#allocation4 + $0x2] sm:$0xf] %vm2133_vm12, %v2129_v20  ;;  %v3448_v50 = vsel %vm1619_vm6, %v3447_v9, %v3437_v40  ;;  %v3365_v14 = vmax.f32 %v3363_v59, 0.0  ;;  %v3489_v15 = vmax.f32 %v3487_v16, %v3488_v47  ;;  %vm2381_vm1 = vcmask 850944   ;;  %v3619_v16 = vld [vmem:[%s7159_s4 + $0x2e8] sm:$0xff]  ;;  %v3602_v59 = vld [vmem:[%s7159_s4 + $0x260] sm:$0xff] }
 0x279   :  { %2196 = vst.msk [vmem:[#allocation4 + $0x4] sm:$0x3] %vm2195_vm13, %v2193_v28  ;;  %v3449_v52 = vsel %vm1621_vm7, %v3447_v9, %v3448_v50  ;;  %v3366_v33 = vmax.f32 %v3364_v43, 0.0  ;;  %v3482_v18 = vmax.f32 %v3480_v8, %v3481_v12  ;;  %v2380_v37 = vrot.slane %v2379_v11, 6  ;;  %v3618_v8 = vld [vmem:[%s7159_s4 + $0x2e0] sm:$0xff]  ;;  %v3617_v47 = vld [vmem:[%s7159_s4 + $0x2d8] sm:$0xff] }
 0x27a   :  { %2258 = vst.msk [vmem:[#allocation4 + $0x4] sm:$0x3] %vm2257_vm14, %v2255_v48  ;;  %v3450_v17 = vsel %vm1623_vm8, %v3447_v9, %v3449_v52  ;;  %v3490_v49 = vrot.slane %v3489_v15, 1  ;;  %vm2384_vm2 = vcmask 1042240   ;;  %vm2385_vm4 = vcmask 44034   ;;  %v3634_v20 = vld [vmem:[%s7159_s4 + $0x360] sm:$0xff] }
 0x27b   :  { %2320 = vst.msk [vmem:[#allocation4 + $0x4] sm:$0x3] %vm2319_vm15, %v2317_v4  ;;  %v3451_v54 = vsel %vm1625_vm9, %v3447_v9, %v3450_v17  ;;  %v3382_v21 = vrot.slane %v3366_v33, %v6313_v46  ;;  %v3492_v56 = vadd.f32 %v5026_v55, %v3482_v18  ;;  %v2382_v24 = vsel %vm2381_vm1, %v2380_v37, %v2379_v11  ;;  %vm2386_vm5 = vmor %vm2385_vm4, %vm2384_vm2  ;;  %v3635_v9 = vld [vmem:[%s7159_s4 + $0x368] sm:$0xff]  ;;  %v3601_v48 = vld [vmem:[%s7159_s4 + $0x258] sm:$0xff] }
 0x27c   :  { %3452 = vrot.lane.b32.xlu0 %v3451_v54, %s5079_s27  ;;  %v3491_v23 = vmax.f32 %v3489_v15, %v3490_v49  ;;  %vm2448_vm3 = vcmask 287792   ;;  %v3375_v58 = vrot.slane %v3365_v14, %v6313_v46  ;;  %vm2510_vm10 = vcmask 533792   ;;  %2387 = vst.msk [vmem:[#allocation4 + $0x4] sm:$0xf] %vm2386_vm5, %v2382_v24  ;;  %v3616_v11 = vld [vmem:[%s7159_s4 + $0x2d0] sm:$0xff]  ;;  %v3633_v43 = vld [vmem:[%s7159_s4 + $0x358] sm:$0xff] }
 0x27d   :  { %v3385_v26 = vrot.slane %v3382_v21, 7  ;;  %vm2572_vm11 = vcmask 779792   ;;  %2449 = vst.msk [vmem:[#allocation4 + $0x6] sm:$0x3] %vm2448_vm3, %v2446_v57  ;;  %v3494_v51 = vmax.f32 %v3492_v56, 0.0  ;;  %vm2699_vm12 = vcmask 1042416  }
 0x27e   :  { %v3493_v27 = vadd.f32 %v5026_v55, %v3491_v23  ;;  %v2570_v60 = vpop.permute.xlu1 %2569  ;;  %2511 = vst.msk [vmem:[#allocation4 + $0x6] sm:$0x3] %vm2510_vm10, %v2508_v53  ;;  %vm2700_vm13 = vcmask 224258   ;;  %vm2696_vm14 = vcmask 1031168   ;;  %vm2634_vm15 = vcmask 1025792   ;;  %v3600_v12 = vld [vmem:[%s7159_s4 + $0x250] sm:$0xff] }
 0x27f   :  { %v3386_v29 = vsel %vm1619_vm6, %v3385_v26, %v3375_v58  ;;  %2573 = vst.msk [vmem:[#allocation4 + $0x6] sm:$0x3] %vm2572_vm11, %v2570_v60  ;;  %v3504_v63 = vrot.slane %v3494_v51, %v6313_v46  ;;  %vm2701_vm1 = vmor %vm2700_vm13, %vm2699_vm12  ;;  %v3615_v50 = vld [vmem:[%s7159_s4 + $0x2c8] sm:$0xff]  ;;  %v3632_v15 = vld [vmem:[%s7159_s4 + $0x350] sm:$0xff]  ;;  %vm2953_vm2 = vcmask 158722   ;;  %vm2949_vm4 = vcmask 965632  }
 0x280   :  { %v3387_v30 = vsel %vm1621_vm7, %v3385_v26, %v3386_v29  ;;  %v3495_v61 = vmax.f32 %v3493_v27, 0.0  ;;  %v3599_v52 = vld [vmem:[%s7159_s4 + $0x248] sm:$0xff]  ;;  %v3614_v33 = vld [vmem:[%s7159_s4 + $0x2c0] sm:$0xff]  ;;  %v3613_v49 = vld [vmem:[%s7159_s4 + $0x2b8] sm:$0xff]  ;;  %vm3016_vm5 = vcmask 402592   ;;  %vm3078_vm10 = vcmask 648592  }
 0x281   :  { %v3388_v62 = vsel %vm1623_vm8, %v3385_v26, %v3387_v30  ;;  %v3631_v18 = vld [vmem:[%s7159_s4 + $0x348] sm:$0xff]  ;;  %v3598_v17 = vld [vmem:[%s7159_s4 + $0x240] sm:$0xff]  ;;  %v3597_v53 = vld [vmem:[%s7159_s4 + $0x238] sm:$0xff]  ;;  %vm3205_vm11 = vcmask 1042288   ;;  %vm3206_vm12 = vcmask 93186   ;;  %vm3202_vm13 = vcmask 900096  }
 0x282   :  { %v3389_v31 = vsel %vm1625_vm9, %v3385_v26, %v3388_v62  ;;  %v3511_v32 = vrot.slane %v3495_v61, %v6313_v46  ;;  %v3630_v37 = vld [vmem:[%s7159_s4 + $0x340] sm:$0xff]  ;;  %v3612_v54 = vld [vmem:[%s7159_s4 + $0x2b0] sm:$0xff]  ;;  %v3629_v21 = vld [vmem:[%s7159_s4 + $0x338] sm:$0xff] }
 0x283   :  { %3390 = vrot.lane.b32.xlu0 %v3389_v31, %s5080_s3  ;;  %v3596_v55 = vld [vmem:[%s7159_s4 + $0x230] sm:$0xff]  ;;  %v3611_v56 = vld [vmem:[%s7159_s4 + $0x2a8] sm:$0xff]  ;;  %v3610_v26 = vld [vmem:[%s7159_s4 + $0x2a0] sm:$0xff] }
 0x284   :  { %v3514_v0 = vrot.slane %v3511_v32, 7  ;;  %v3628_v24 = vld [vmem:[%s7159_s4 + $0x330] sm:$0xff]  ;;  %v3595_v57 = vld [vmem:[%s7159_s4 + $0x228] sm:$0xff]  ;;  %v3594_v60 = vld [vmem:[%s7159_s4 + $0x220] sm:$0xff] }
 0x285   :  { %v3627_v27 = vld [vmem:[%s7159_s4 + $0x328] sm:$0xff]  ;;  %v3609_v30 = vld [vmem:[%s7159_s4 + $0x298] sm:$0xff]  ;;  %v3626_v51 = vld [vmem:[%s7159_s4 + $0x320] sm:$0xff] }
 0x286   :  { %v3515_v34 = vsel %vm1619_vm6, %v3514_v0, %v3504_v63  ;;  %vm2763_vm6 = vcmask 468192   ;;  %v3593_v61 = vld [vmem:[%s7159_s4 + $0x218] sm:$0xff]  ;;  %v3608_v62 = vld [vmem:[%s7159_s4 + $0x290] sm:$0xff]  ;;  %v3607_v63 = vld [vmem:[%s7159_s4 + $0x288] sm:$0xff] }
 0x287   :  { %v3516_v2 = vsel %vm1621_vm7, %v3514_v0, %v3515_v34  ;;  %v2694_v3 = vpop.permute.xlu0 %2693  ;;  %vm2825_vm7 = vcmask 714192   ;;  %v3625_v31 = vld [vmem:[%s7159_s4 + $0x318] sm:$0xff]  ;;  %v3592_v32 = vld [vmem:[%s7159_s4 + $0x210] sm:$0xff]  ;;  %v3591_v34 = vld [vmem:[%s7159_s4 + $0x208] sm:$0xff] }
 0x288   :  { %v3517_v35 = vsel %vm1623_vm8, %v3514_v0, %v3516_v2  ;;  %v2695_v19 = vrot.slane %v2694_v3, 6  ;;  %vm2887_vm8 = vcmask 960192  }
 0x289   :  { %v3518_v36 = vsel %vm1625_vm9, %v3514_v0, %v3517_v35  ;;  %vm2952_vm9 = vcmask 1042352   ;;  %v3624_v0 = vld [vmem:[%s7159_s4 + $0x310] sm:$0xff]  ;;  %v3623_v35 = vld [vmem:[%s7159_s4 + $0x308] sm:$0xff] }
 0x28a   :  { %3519 = vrot.lane.b32.xlu1 %v3518_v36, %s5081_s28  ;;  %v2697_v4 = vsel %vm2696_vm14, %v2695_v19, %v2694_v3  ;;  %vm2954_vm3 = vmor %vm2953_vm2, %vm2952_vm9  ;;  %v3606_v3 = vld [vmem:[%s7159_s4 + $0x280] sm:$0xff]  ;;  %vm3393_vm9 = vcmask 828992  }
 0x28b   :  { %v3590_v36 = vld [vmem:[%s7159_s4 + $0x200] sm:$0xff]  ;;  %vm3207_vm14 = vmor %vm3206_vm12, %vm3205_vm11 }
 0x28c   :  { %v3622_v19 = vld [vmem:[%s7159_s4 + $0x300] sm:$0xff] }
 0x28f   :  { %v2632_v28 = vpop.permute.xlu0 %2631 }
 0x290   :  { %2635 = vst.msk [vmem:[#allocation4 + $0x6] sm:$0x3] %vm2634_vm15, %v2632_v28  ;;  %v3642_v28 = vld [vmem:[%s7159_s4 + $0x3a0] sm:$0x3]  ;;  %vm3269_vm15 = vcmask 336992  }
 0x291   :  { %2702 = vst.msk [vmem:[#allocation4 + $0x6] sm:$0xf] %vm2701_vm1, %v2697_v4  ;;  %vm3331_vm1 = vcmask 582992  }
 0x298   :  { %v2761_v5 = vpop.permute.xlu1 %2760  ;;  %v3524_v38 = vld [vmem:[#allocation4] sm:$0xff] }
 0x299   :  { %2764 = vst.msk [vmem:[#allocation4 + $0x8] sm:$0x3] %vm2763_vm6, %v2761_v5  ;;  %v3659_v6 = vrot.slane %v3524_v38, %v6313_v46  ;;  %v3652_v7 = vcombine.high %v3524_v38, %v3524_v38  ;;  %v3641_v5 = vld [vmem:[%s7159_s4 + $0x398] sm:$0xff]  ;;  %v3640_v38 = vld [vmem:[%s7159_s4 + $0x390] sm:$0xff]  ;;  %vm3458_vm6 = vcmask 1042224  }
 0x29b   :  { %v3667_v22 = vcombine.high %v3659_v6, %v3659_v6  ;;  %v3666_v25 = vrot.slane %v3652_v7, %v6313_v46  ;;  %v3638_v7 = vld [vmem:[%s7159_s4 + $0x380] sm:$0xff] }
 0x29d   :  { %3763 = vmatprep.mubr.f32.mxu0 %v3667_v22  ;;  %v3668_v40 = vcombine.high %v3666_v25, %v3666_v25 }
 0x29e   :  { %3764 = vmatmul.mubr.f32.vlgmr.msra.gmra.mxu0 %v3659_v6  ;;  %v3639_v6 = vld [vmem:[%s7159_s4 + $0x388] sm:$0xff] }
 0x29f   :  { %v2823_v44 = vpop.permute.xlu1 %2822  ;;  %3833 = vmatprep.mubr.f32.mxu1 %v3668_v40  ;;  %4426 = vmatpush3.msra.mxu0 %v3605_v39 }
 0x2a0   :  { %2826 = vst.msk [vmem:[#allocation4 + $0x8] sm:$0x3] %vm2825_vm7, %v2823_v44  ;;  %3834 = vmatmul.mubr.f32.vlgmr.msra.gmra.mxu1 %v3666_v25  ;;  %4427 = vmatprep.subr.mxu0 %v3620_v10  ;;  %vm3459_vm7 = vcmask 27650  }
 0x2a1   :  { %3910 = vmatpush1.msra.mxu1 %v3637_v13  ;;  %4428 = vmatpush3.msra.mxu0 %v3604_v41  ;;  %vm3460_vm2 = vmor %vm3459_vm7, %vm3458_vm6 }
 0x2a2   :  { %3911 = vmatprep.subr.mxu1 %v5049_v1  ;;  %4429 = vmatprep.subr.mxu0 %v3619_v16 }
 0x2a3   :  { %3912 = vmatpush1.msra.mxu1 %v3636_v42  ;;  %4430 = vmatpush3.msra.mxu0 %v3603_v45 }
 0x2a4   :  { %3913 = vmatprep.subr.mxu1 %v5049_v1  ;;  %4431 = vmatprep.subr.mxu0 %v3618_v8 }
 0x2a5   :  { %3914 = vmatpush1.msra.mxu1 %v3635_v9  ;;  %4432 = vmatpush3.msra.mxu0 %v3602_v59 }
 0x2a6   :  { %3915 = vmatprep.subr.mxu1 %v5049_v1  ;;  %4433 = vmatprep.subr.mxu0 %v3617_v47 }
 0x2a7   :  { %3916 = vmatpush1.msra.mxu1 %v3634_v20  ;;  %4434 = vmatpush3.msra.mxu0 %v3601_v48 }
 0x2a8   :  { %v2885_v14 = vpop.permute.xlu0 %2884  ;;  %3917 = vmatprep.subr.mxu1 %v5049_v1  ;;  %4435 = vmatprep.subr.mxu0 %v3616_v11 }
 0x2a9   :  { %2888 = vst.msk [vmem:[#allocation4 + $0x8] sm:$0x3] %vm2887_vm8, %v2885_v14  ;;  %3918 = vmatpush1.msra.mxu1 %v3633_v43  ;;  %4436 = vmatpush3.msra.mxu0 %v3600_v12  ;;  %vm3455_vm8 = vcmask 834560  }
 0x2aa   :  { %3919 = vmatprep.subr.mxu1 %v5049_v1  ;;  %4437 = vmatprep.subr.mxu0 %v3615_v50  ;;  %v4168_v50 = vld [vmem:[%s7160_s5] ss:$0 sm:$0xff]  ;;  %s5082_s5 = smov [#allocation5]  }
 0x2ab   :  { %3920 = vmatpush1.msra.mxu1 %v3632_v15  ;;  %4438 = vmatpush3.msra.mxu0 %v3599_v52  ;;  %s3999_s24 = sshll.u32 %s5082_s5, 4  ;;  %s4000_s24 = int_to_ptr.vmem [resolvable:$true] %s3999_s24 }
 0x2ac   :  { %3921 = vmatprep.subr.mxu1 %v5049_v1  ;;  %4439 = vmatprep.subr.mxu0 %v3614_v33  ;;  %s5027_s0 = scalar_lea.vmem %s4000_s24, 32  ;;  %p5032_p1 = scmp.lt.s32.totalorder %s4000_s24, %s4000_s24 }
 0x2ad   :  { %3922 = vmatpush1.msra.mxu1 %v3631_v18  ;;  %4440 = vmatpush3.msra.mxu0 %v3598_v17  ;;  %p5028_p0 = scmp.ne.s32.totalorder %s4000_s24, %s5027_s0  ;;  %p5033_p2 = scmp.lt.s32.totalorder %s5027_s0, %s5027_s0 }
 0x2ae   :  { %3923 = vmatprep.subr.mxu1 %v5049_v1  ;;  %4441 = vmatprep.subr.mxu0 %v3613_v49 }
 0x2af   :  { %3924 = vmatpush1.msra.mxu1 %v3630_v37  ;;  %4442 = vmatpush3.msra.mxu0 %v3597_v53  ;;  %p5034_p3 = por %p5033_p2, %p5032_p1 }
 0x2b0   :  { %v2947_v23 = vpop.permute.xlu0 %2946  ;;  %3925 = vmatprep.subr.mxu1 %v5049_v1  ;;  %4443 = vmatprep.subr.mxu0 %v3612_v54 }
 0x2b1   :  { %v2948_v58 = vrot.slane %v2947_v23, 6  ;;  %3926 = vmatpush1.msra.mxu1 %v3629_v21  ;;  %4444 = vmatpush3.msra.mxu0 %v3596_v55  ;;  %p5035_p4 = pnand %p5034_p3, %p5028_p0 }
 0x2b2   :  { %3927 = vmatprep.subr.mxu1 %v5049_v1  ;;  %4445 = vmatprep.subr.mxu0 %v3611_v56 }
 0x2b3   :  { %v2950_v29 = vsel %vm2949_vm4, %v2948_v58, %v2947_v23  ;;  %3928 = vmatpush1.msra.mxu1 %v3628_v24  ;;  %4446 = vmatpush3.msra.mxu0 %v3595_v57  ;;  %vm3522_vm4 = vcmask 271392  }
 0x2b4   :  { %2955 = vst.msk [vmem:[#allocation4 + $0x8] sm:$0xf] %vm2954_vm3, %v2950_v29  ;;  %3929 = vmatprep.subr.mxu1 %v5049_v1  ;;  %4447 = vmatprep.subr.mxu0 %v3610_v26  ;;  %vm3693_vm3 = vcmask 277504  }
 0x2b5   :  { %3930 = vmatpush1.msra.mxu1 %v3627_v27  ;;  %4448 = vmatpush3.msra.mxu0 %v3594_v60 }
 0x2b6   :  { %3931 = vmatprep.subr.mxu1 %v5049_v1  ;;  %4449 = vmatprep.subr.mxu0 %v3609_v30 }
 0x2b7   :  { %3932 = vmatpush1.msra.mxu1 %v3626_v51  ;;  %4450 = vmatpush3.msra.mxu0 %v3593_v61 }
 0x2b8   :  { %3933 = vmatprep.subr.mxu1 %v5049_v1  ;;  %4451 = vmatprep.subr.mxu0 %v3608_v62 }
 0x2b9   :  { %v3014_v2 = vpop.permute.xlu1 %3013  ;;  %3934 = vmatpush1.msra.mxu1 %v3625_v31  ;;  %4452 = vmatpush3.msra.mxu0 %v3592_v32 }
 0x2ba   :  { %3017 = vst.msk [vmem:[#allocation4 + $0xa] sm:$0x3] %vm3016_vm5, %v3014_v2  ;;  %3935 = vmatprep.subr.mxu1 %v5049_v1  ;;  %4453 = vmatprep.subr.mxu0 %v3607_v63  ;;  %vm3979_vm5 = vcmask 279552  }
 0x2bb   :  { %3936 = vmatpush1.msra.mxu1 %v3624_v0  ;;  %4454 = vmatpush3.msra.mxu0 %v3591_v34 }
 0x2bc   :  { %3937 = vmatprep.subr.mxu1 %v5049_v1  ;;  %4455 = vmatprep.subr.mxu0 %v3606_v3 }
 0x2bd   :  { %3938 = vmatpush1.msra.mxu1 %v3623_v35  ;;  %4456 = vmatpush3.msra.mxu0 %v3590_v36 }
 0x2be   :  { %3939 = vmatprep.subr.mxu1 %v5049_v1 }
 0x2bf   :  { %3940 = vmatpush1.msra.mxu1 %v3622_v19 }
 0x2c0   :  { %v3076_v4 = vpop.permute.xlu1 %3075  ;;  %3963 = vmatprep.subr.mxu1 %v5049_v1 }
 0x2c1   :  { %3079 = vst.msk [vmem:[#allocation4 + $0xa] sm:$0x3] %vm3078_vm10, %v3076_v4  ;;  %4169 = vmatpush2.msk.msra.mxu1 %vm234_vm0, %v3642_v28  ;;  %vm3140_vm0 = vcmask 894592  }
 0x2c2   :  { %3965 = vmatprep.subr.mxu1 %v5049_v1 }
 0x2c3   :  { %3966 = vmatpush2.msra.mxu1 %v3641_v5 }
 0x2c4   :  { %3967 = vmatprep.subr.mxu1 %v5049_v1 }
 0x2c5   :  { %3968 = vmatpush2.msra.mxu1 %v3640_v38 }
 0x2c6   :  { %3969 = vmatprep.subr.mxu1 %v5049_v1 }
 0x2c7   :  { %3970 = vmatpush2.msra.mxu1 %v3639_v6 }
 0x2c8   :  { %3971 = vmatprep.subr.mxu1 %v5049_v1 }
 0x2c9   :  { %3972 = vmatpush2.msra.mxu1 %v3638_v7 }
 0x2ce   :  { %v3138_v22 = vpop.permute.xlu0 %3137 }
 0x2cf   :  { %3141 = vst.msk [vmem:[#allocation4 + $0xa] sm:$0x3] %vm3140_vm0, %v3138_v22 }
 0x2d4   :  { %v3200_v25 = vpop.permute.xlu0 %3199 }
 0x2d5   :  { %v3201_v39 = vrot.slane %v3200_v25, 6 }
 0x2d7   :  { %v3203_v40 = vsel %vm3202_vm13, %v3201_v39, %v3200_v25 }
 0x2d8   :  { %3208 = vst.msk [vmem:[#allocation4 + $0xa] sm:$0xf] %vm3207_vm14, %v3203_v40 }
 0x2db   :  { %v3267_v10 = vpop.permute.xlu1 %3266 }
 0x2dc   :  { %3270 = vst.msk [vmem:[#allocation4 + $0xc] sm:$0x3] %vm3269_vm15, %v3267_v10 }
 0x2e5   :  { %v3329_v13 = vpop.permute.xlu1 %3328 }
 0x2e6   :  { %3332 = vst.msk [vmem:[#allocation4 + $0xc] sm:$0x3] %vm3331_vm1, %v3329_v13 }
 0x2ee   :  { %v3453_v41 = vpop.permute.xlu0 %3452 }
 0x2ef   :  { %v3454_v1 = vrot.slane %v3453_v41, 6 }
 0x2f1   :  { %v3456_v16 = vsel %vm3455_vm8, %v3454_v1, %v3453_v41 }
 0x2f5   :  { %v3391_v44 = vpop.permute.xlu0 %3390 }
 0x2f6   :  { %3394 = vst.msk [vmem:[#allocation4 + $0xc] sm:$0x3] %vm3393_vm9, %v3391_v44 }
 0x2f7   :  { %3461 = vst.msk [vmem:[#allocation4 + $0xc] sm:$0xf] %vm3460_vm2, %v3456_v16 }
 0x2fc   :  { %v3520_v42 = vpop.permute.xlu1 %3519 }
 0x2fd   :  { %3523 = vst.msk [vmem:[#allocation4 + $0xe] sm:$0x3] %vm3522_vm4, %v3520_v42 }
 0x304   :  { %v3525_v45 = vld [vmem:[#allocation4 + $0x8] sm:$0xff] }
 0x305   :  { %v3669_v8 = vcombine.high %v3525_v45, %v3525_v45  ;;  %v3676_v9 = vrot.slane %v3525_v45, %v6313_v46 }
 0x307   :  { %v3684_v59 = vcombine.high %v3676_v9, %v3676_v9  ;;  %v3683_v47 = vrot.slane %v3669_v8, %v6313_v46 }
 0x309   :  { %3903 = vmatprep.mubr.f32.mxu0 %v3684_v59  ;;  %v3685_v20 = vcombine.high %v3683_v47, %v3683_v47 }
 0x30a   :  { %3904 = vmatmul.mubr.f32.vlgmr.msra.gmra.mxu0 %v3676_v9 }
 0x30b   :  { %4170 = vmatprep.mubr.msk.f32.mxu1 %vm3693_vm3, %v3685_v20 }
 0x30c   :  { %3974 = vmatmul.mubr.f32.vlgmr.msra.gmra.mxu1 %v3683_v47 }
 0x35e   :  { %v4387_v48 = vpop.f32.mrf.mxu0 }
 0x360   :  { %v4388_v11 = vpop.f32.mrf.mxu0  ;;  %v4422_v43 = vpop.f32.mrf.mxu1 }
 0x361   :  { %v4389_v12 = vadd.f32 %v4388_v11, %v4387_v48 }
 0x362   :  { %v4423_v14 = vpop.f32.mrf.mxu1 }
 0x363   :  { %v3766_v15 = vadd.f32 %v4389_v12, %v4168_v50  ;;  %v4424_v52 = vadd.f32 %v4423_v14, %v4422_v43 }
 0x365   :  { %v3836_v17 = vadd.f32 %v4424_v52, %v3766_v15 }
 0x3ca   :  { %v4457_v33 = vpop.f32.mrf.mxu0 }
 0x3cc   :  { %v4458_v18 = vpop.f32.mrf.mxu0  ;;  %v3975_v46 = vpop.f32.mrf.mxu1 }
 0x3cd   :  { %v4459_v49 = vadd.f32 %v4458_v18, %v4457_v33 }
 0x3ce   :  { %v3977_v37 = vpop.f32.mrf.mxu1 }
 0x3cf   :  { %v3906_v53 = vadd.f32 %v4459_v49, %v3836_v17 }
 0x3d1   :  { %v3976_v54 = vadd.f32 %v3975_v46, %v3906_v53 }
 0x3d3   :  { %v3980_v21 = vsel %vm3979_vm5, %v3976_v54, -inf }
 0x3d4   :  { %3981 = vmax.xlane.f32.xlu0 %v3980_v21 }
 0x45d   :  { %v3982_v55 = vpop.xlane.xlu0 %3981 }
 0x45e   :  { %v3983_v56 = vsub.f32 %v3976_v54, %v3982_v55 }
 0x460   :  { %v3984_v23 = vmul.f32 1.442695, %v3983_v56 }
 0x462   :  { %5020 = vpow2.f32 %v3984_v23 }
 0x46f   :  { %v5021_v24 = vpop.eup %5020 }
 0x470   :  { %v3986_v57 = vsel %vm3979_vm5, %v5021_v24, 0.0 }
 0x471   :  { %3987 = vadd.xlane.f32.xlu1 %v3986_v57 }
 0x4fa   :  { %v3988_v58 = vpop.xlane.xlu1 %3987 }
 0x4fb   :  { %5022 = vlog2.f32 %v3988_v58 }
 0x508   :  { %v5023_v26 = vpop.eup %5022 }
 0x509   :  { %v3990_v27 = vmul.f32 0.6931472, %v5023_v26 }
 0x50b   :  { %v3991_v60 = vsub.f32 %v3983_v56, %v3990_v27 }
 0x50d   :  { %3992 = vst.msk [vmem:[#allocation5] sm:$0x3] %vm3979_vm5, %v3991_v60 }
 0x50e   :  { %5038 = shalt.err (!%p5035_p4)
}
 0x50f   :  { %4002 = dma.vmem_to_hbm [thread:$0]  %s4000_s24, 32, %s7161_s6, [#allocation6]  }
 0x510   :  { %5047 = dma.done.wait [#allocation6], 32  }
 0x511   :  { %5048 = vsyncadd [#allocation6], 4294967264 }
 0x512   :  { %4006 = vsyncpa [#allocation6], 1 }

</bundles_post_ra>
